<compile_context>
chip_gen: v7x
topology: tpu7x:2x2x1
jax: 0.10.0
libtpu: 0.0.40
codegen_flags: <defaults>
</compile_context>

<pallas_src>
import math

import jax
import jax.numpy as jnp
from jax import lax
from jax.experimental import pallas as pl
from jax.experimental.pallas import tpu as pltpu

EPS = 1e-6                       # matches torch.nn.GroupNorm(eps=1e-06)
_VMEM_LIMIT = 48 * 1024 * 1024   # safe on v5e/v6e (128 MiB) and leaves headroom on v7x (64 MiB)
_GUARD = 8                       # sublane-aligned guard band around kh-expanded slabs


def _pick_db(D, cap=8):
    """Largest divisor of D that is <= cap (depth slices per grid step)."""
    for db in range(min(D, cap), 0, -1):
        if D % db == 0:
            return db
    return 1


def _pick_mt(HWp, cap=256):
    """Output-row tile size: largest multiple of 8 <= cap dividing HWp (else one tile)."""
    if HWp <= cap:
        return HWp
    for mt in range(cap - cap % 8, 7, -8):
        if HWp % mt == 0:
            return mt
    return HWp


# ----------------------------- kernel bodies -----------------------------


def make_gn_stats_kernel(H, W, C, G, Db):
    """Per-(sample, group) GroupNorm mean / rstd over the interior of padded planes."""
    cnt_blk = float(Db * H * W * (C // G))

    def kernel(x_ref, mask_ref, gmap_ref, gmapT_ref, mean_ref, rstd_ref,
               k_acc, s_acc, q_acc):
        d = pl.program_id(1)
        nd = pl.num_programs(1)

        mask = mask_ref[...]                                   # (P, C) interior mask
        x = x_ref[...].astype(jnp.float32) * mask              # (Db, P, C), ring -> 0
        s_c = jnp.sum(jnp.sum(x, axis=0), axis=0, keepdims=True)   # (1, C)
        s_g = jnp.dot(s_c, gmap_ref[...],
                      preferred_element_type=jnp.float32)      # (1, G)

        @pl.when(d == 0)
        def _():
            # shifted-moments pivot: first block's group mean (avoids cancellation)
            k_acc[...] = s_g / cnt_blk
            s_acc[...] = jnp.zeros_like(s_acc)
            q_acc[...] = jnp.zeros_like(q_acc)

        k_c = jnp.dot(k_acc[...], gmapT_ref[...],
                      preferred_element_type=jnp.float32)      # (1, C) pivot per channel
        xc = (x - k_c) * mask
        s2 = jnp.sum(jnp.sum(xc, axis=0), axis=0, keepdims=True)
        q2 = jnp.sum(jnp.sum(xc * xc, axis=0), axis=0, keepdims=True)
        s_acc[...] += jnp.dot(s2, gmap_ref[...], preferred_element_type=jnp.float32)
        q_acc[...] += jnp.dot(q2, gmap_ref[...], preferred_element_type=jnp.float32)

        @pl.when(d == nd - 1)
        def _():
            cnt = cnt_blk * nd
            mean_g = k_acc[...] + s_acc[...] / cnt
            var_g = jnp.maximum(q_acc[...] - s_acc[...] * s_acc[...] / cnt, 0.0) / cnt
            mean_ref[...] = mean_g
            rstd_ref[...] = lax.rsqrt(var_g + EPS)

    return kernel


def make_conv_block_kernel(H, W, C, Db, with_residual, with_stats):
    """Fused GN-affine + SiLU + 3x3x3 conv + bias (+ residual) (+ output group stats)."""
    Wp = W + 2
    P = (H + 2) * Wp
    HWp = H * Wp
    MT = _pick_mt(HWp)
    NT = HWp // MT

    def kernel(*args):
        it = iter(args)
        x_lo_ref = next(it)                       # (1, P, C)   depth halo below
        x_main_ref = next(it)                     # (Db, P, C)  main depth block
        x_hi_ref = next(it)                       # (1, P, C)   depth halo above
        res_ref = next(it) if with_residual else None
        mask_ref = next(it)                       # (P, C) f32: 1 inside HxW, 0 on the ring
        scale_ref = next(it)                      # (1, C) = rstd * gamma   (per sample)
        shift_ref = next(it)                      # (1, C) = beta - mean * rstd * gamma
        w_ref = next(it)                          # (9, 3C, C) bf16 packed conv weights
        b_ref = next(it)                          # (1, C) bias
        gmap_ref = next(it) if with_stats else None
        o_ref = next(it)                          # (Db, P, C) output
        s_ref = next(it) if with_stats else None  # (1, G) group sums
        q_ref = next(it) if with_stats else None  # (1, G) group sums of squares
        exp_ref = next(it)                        # (Db+2, HWp+2*GUARD, 3C) bf16 scratch

        db = pl.program_id(1)
        ndb = pl.num_programs(1)
        mask = mask_ref[...]
        scale = scale_ref[...]
        shift = shift_ref[...]
        zero_guard = jnp.zeros((_GUARD, 3 * C), jnp.bfloat16)

        def prep(slot, x2d, dvalid=None):
            # GroupNorm affine + SiLU; out-of-range depth is zeroed by folding the
            # validity flag into scale/shift (silu(0) == 0), the H/W ring by the mask.
            sc, sh = scale, shift
            if dvalid is not None:
                sc = sc * dvalid
                sh = sh * dvalid
            h = x2d.astype(jnp.float32) * sc + sh
            h = (h * jax.nn.sigmoid(h)) * mask
            hb = h.astype(jnp.bfloat16)                        # (P, C) bf16 MXU operand
            exp_ref[slot, 0:_GUARD, :] = zero_guard
            exp_ref[slot, _GUARD + HWp:_GUARD + HWp + _GUARD, :] = zero_guard
            for kh in range(3):                                # kh-expanded: K = 3C
                exp_ref[slot, _GUARD:_GUARD + HWp, kh * C:(kh + 1) * C] = \
                    hb[kh * Wp:kh * Wp + HWp, :]

        prep(0, x_lo_ref[0], (db > 0).astype(jnp.float32))               # depth d0 - 1
        for i in range(Db):
            prep(1 + i, x_main_ref[i])                                   # depths d0 .. d0+Db-1
        prep(Db + 1, x_hi_ref[0], (db < ndb - 1).astype(jnp.float32))    # depth d0 + Db

        bias = b_ref[...]
        if with_stats:
            s_c = jnp.zeros((1, C), jnp.float32)
            q_c = jnp.zeros((1, C), jnp.float32)

        for j in range(Db):                                    # output planes in the block
            for t in range(NT):                                # output row tiles
                r0 = _GUARD + t * MT
                acc = None
                for kd in range(3):
                    for kw in range(3):
                        # (MT, 3C) bf16 operand (kw realized as a +/-1 row offset of the
                        # kh-expanded slab); the (MT, C) f32 partial sum stays in vregs.
                        op = exp_ref[j + kd, r0 + kw - 1:r0 + kw - 1 + MT, :]
                        dd = jnp.dot(op, w_ref[kd * 3 + kw],
                                     preferred_element_type=jnp.float32)
                        acc = dd if acc is None else acc + dd
                orow = Wp + t * MT
                val = (acc + bias) * mask[orow:orow + MT, :]   # zero the output ring cols
                if with_stats:
                    s_c = s_c + jnp.sum(val, axis=0, keepdims=True)
                    q_c = q_c + jnp.sum(val * val, axis=0, keepdims=True)
                if with_residual:
                    val = val + res_ref[j, orow:orow + MT, :].astype(jnp.float32)
                o_ref[j, orow:orow + MT, :] = val.astype(o_ref.dtype)
            # zero only the top/bottom ring row strips (finite, so mask*0 downstream is safe)
            ring = jnp.zeros((Wp, C), o_ref.dtype)
            o_ref[j, 0:Wp, :] = ring
            o_ref[j, Wp + HWp:P, :] = ring

        if with_stats:
            s_ref[...] = jnp.dot(s_c, gmap_ref[...], preferred_element_type=jnp.float32)
            q_ref[...] = jnp.dot(q_c, gmap_ref[...], preferred_element_type=jnp.float32)

    return kernel


# ----------------------------- pallas_call wrappers -----------------------------


def gn_stats_call(act, mask, gmap, gmapT, H, W, Db):
    N, D, P, C = act.shape
    G = gmap.shape[1]
    assert D % Db == 0
    DB = D // Db
    kernel = make_gn_stats_kernel(H, W, C, G, Db)
    return pl.pallas_call(
        kernel,
        out_shape=(jax.ShapeDtypeStruct((N, 1, G), jnp.float32),
                   jax.ShapeDtypeStruct((N, 1, G), jnp.float32)),
        grid=(N, DB),
        in_specs=[
            pl.BlockSpec((None, Db, P, C), lambda n, d: (n, d, 0, 0)),
            pl.BlockSpec((P, C), lambda n, d: (0, 0)),
            pl.BlockSpec((C, G), lambda n, d: (0, 0)),
            pl.BlockSpec((G, C), lambda n, d: (0, 0)),
        ],
        out_specs=(pl.BlockSpec((None, 1, G), lambda n, d: (n, 0, 0)),
                   pl.BlockSpec((None, 1, G), lambda n, d: (n, 0, 0))),
        scratch_shapes=[pltpu.VMEM((1, G), jnp.float32),
                        pltpu.VMEM((1, G), jnp.float32),
                        pltpu.VMEM((1, G), jnp.float32)],
        compiler_params=pltpu.CompilerParams(
            dimension_semantics=("parallel", "arbitrary"),
            vmem_limit_bytes=_VMEM_LIMIT),
    )(act, mask, gmap, gmapT)


def conv_block_call(act, mask, scale, shift, w9, b, H, W, Db, *,
                    residual=None, gmap=None, out_dtype=jnp.float32,
                    compute_stats=False):
    N, D, P, C = act.shape
    assert D % Db == 0
    DB = D // Db
    Wp = W + 2
    HWp = H * Wp
    with_residual = residual is not None
    kernel = make_conv_block_kernel(H, W, C, Db, with_residual, compute_stats)

    map_lo = lambda n, db: (n, jnp.maximum(db * Db - 1, 0), 0, 0)     # clamped depth halo
    map_main = lambda n, db: (n, db, 0, 0)
    map_hi = lambda n, db: (n, jnp.minimum(db * Db + Db, D - 1), 0, 0)

    in_specs = [
        pl.BlockSpec((None, 1, P, C), map_lo),
        pl.BlockSpec((None, Db, P, C), map_main),
        pl.BlockSpec((None, 1, P, C), map_hi),
    ]
    operands = [act, act, act]
    if with_residual:
        in_specs.append(pl.BlockSpec((None, Db, P, C), map_main))
        operands.append(residual)
    in_specs += [
        pl.BlockSpec((P, C), lambda n, db: (0, 0)),                   # interior mask
        pl.BlockSpec((None, 1, C), lambda n, db: (n, 0, 0)),          # scale (per sample)
        pl.BlockSpec((None, 1, C), lambda n, db: (n, 0, 0)),          # shift (per sample)
        pl.BlockSpec((9, 3 * C, C), lambda n, db: (0, 0, 0)),         # packed conv weights
        pl.BlockSpec((1, C), lambda n, db: (0, 0)),                   # bias
    ]
    operands += [mask, scale, shift, w9, b]

    out_shapes = [jax.ShapeDtypeStruct((N, D, P, C), out_dtype)]
    out_specs = [pl.BlockSpec((None, Db, P, C), map_main)]
    if compute_stats:
        G = gmap.shape[1]
        in_specs.append(pl.BlockSpec((C, G), lambda n, db: (0, 0)))
        operands.append(gmap)
        out_shapes += [jax.ShapeDtypeStruct((N, DB, 1, G), jnp.float32),
                       jax.ShapeDtypeStruct((N, DB, 1, G), jnp.float32)]
        out_specs += [pl.BlockSpec((None, None, 1, G), lambda n, db: (n, db, 0, 0)),
                      pl.BlockSpec((None, None, 1, G), lambda n, db: (n, db, 0, 0))]

    return pl.pallas_call(
        kernel,
        out_shape=tuple(out_shapes) if compute_stats else out_shapes[0],
        grid=(N, DB),
        in_specs=in_specs,
        out_specs=tuple(out_specs) if compute_stats else out_specs[0],
        scratch_shapes=[pltpu.VMEM((Db + 2, HWp + 2 * _GUARD, 3 * C), jnp.bfloat16)],
        compiler_params=pltpu.CompilerParams(
            dimension_semantics=("parallel", "parallel"),
            vmem_limit_bytes=_VMEM_LIMIT),
    )(*operands)


# ----------------------------- plain-JAX glue -----------------------------


def _affine(mean_g, rstd_g, gamma, beta, Cg):
    mean_c = jnp.repeat(mean_g, Cg, axis=-1)       # (N, 1, C)
    rstd_c = jnp.repeat(rstd_g, Cg, axis=-1)
    scale = rstd_c * gamma
    shift = beta - mean_c * scale
    return scale, shift


def resblockx_forward(x_ncdhw, params, G, Db=None):
    """ResBlockX forward. x_ncdhw: (N, C, D, H, W) float32 (PyTorch layout).

    NOTE: in production the model should stay channels-last end-to-end and the
    NCDHW <-> padded-plane conversion (transpose + pad + crop below) should be hoisted
    out of the per-block hot loop; it is kept here so the API matches the PyTorch module.
    """
    x = jnp.transpose(x_ncdhw, (0, 2, 3, 4, 1)).astype(jnp.float32)   # -> NDHWC
    N, D, H, W, C = x.shape
    Hp, Wp = H + 2, W + 2
    Cg = C // G
    if Db is None:
        Db = _pick_db(D)
    assert D % Db == 0, "depth must be divisible by the depth block size"

    # zero-pad H/W once and flatten each depth slice into a (Hp*Wp, C) plane
    x_pf = jnp.pad(x, ((0, 0), (0, 0), (1, 1), (1, 1), (0, 0))).reshape(N, D, Hp * Wp, C)

    # interior mask of one padded plane (1 inside the original HxW region, 0 on the ring)
    rr = jnp.arange(Hp)[:, None]
    cc = jnp.arange(Wp)[None, :]
    m2 = ((rr >= 1) & (rr <= H) & (cc >= 1) & (cc <= W)).astype(jnp.float32)
    mask = jnp.broadcast_to(m2.reshape(Hp * Wp, 1), (Hp * Wp, C))

    gmap, gmapT = params["gmap"], params["gmapT"]

    # norm1 stats (the only standalone stats pass; norm2 stats are fused into conv1)
    m1, r1 = gn_stats_call(x_pf, mask, gmap, gmapT, H, W, Db)
    scale1, shift1 = _affine(m1, r1, params["gamma1"], params["beta1"], Cg)

    # TODO(synk): Dropout(p>0) not implemented; module default p=0.0 is an identity.
    h1_pf, s2p, q2p = conv_block_call(
        x_pf, mask, scale1, shift1, params["w9_1"], params["b1"], H, W, Db,
        gmap=gmap, out_dtype=jnp.bfloat16, compute_stats=True)

    # norm2 stats from the fused per-block partial sums (no extra HBM pass over h1)
    cnt = float(D * H * W * Cg)
    S = jnp.sum(s2p, axis=1)                                   # (N, 1, G)
    Q = jnp.sum(q2p, axis=1)
    mean2 = S / cnt
    var2 = jnp.maximum(Q / cnt - mean2 * mean2, 0.0)
    rstd2 = lax.rsqrt(var2 + EPS)
    scale2, shift2 = _affine(mean2, rstd2, params["gamma2"], params["beta2"], Cg)

    out_pf = conv_block_call(
        h1_pf, mask, scale2, shift2, params["w9_2"], params["b2"], H, W, Db,
        residual=x_pf, out_dtype=jnp.float32, compute_stats=False)

    out = out_pf.reshape(N, D, Hp, Wp, C)[:, :, 1:H + 1, 1:W + 1, :]
    return jnp.transpose(out, (0, 4, 1, 2, 3))   # back to NCDHW


# ----------------------------- parameters -----------------------------


def init_params(key, C, G):
    ks = jax.random.split(key, 8)
    fan_in = C * 27
    bound = 1.0 / math.sqrt(fan_in)
    # conv weights in PyTorch layout (Cout, Cin, kd, kh, kw), deterministic init
    w1_t = jax.random.uniform(ks[0], (C, C, 3, 3, 3), jnp.float32, -bound, bound)
    b1 = jax.random.uniform(ks[1], (1, C), jnp.float32, -bound, bound)
    w2_t = jax.random.uniform(ks[2], (C, C, 3, 3, 3), jnp.float32, -bound, bound)
    b2 = jax.random.uniform(ks[3], (1, C), jnp.float32, -bound, bound)
    gamma1 = 1.0 + 0.1 * jax.random.normal(ks[4], (1, C), jnp.float32)
    beta1 = 0.1 * jax.random.normal(ks[5], (1, C), jnp.float32)
    gamma2 = 1.0 + 0.1 * jax.random.normal(ks[6], (1, C), jnp.float32)
    beta2 = 0.1 * jax.random.normal(ks[7], (1, C), jnp.float32)

    # (Cout, Cin, kd, kh, kw) -> (kd, kh, kw, Cin, Cout)
    w1_dhwio = jnp.transpose(w1_t, (2, 3, 4, 1, 0))
    w2_dhwio = jnp.transpose(w2_t, (2, 3, 4, 1, 0))

    def pack_w9(w_dhwio):
        # (kd, kh, kw, ci, co) -> (kd, kw, kh, ci, co) -> (9, 3C, C), bf16 for the MXU.
        # Row index kh*C+ci is the K(=3C) axis matching the kh-expanded activation slabs.
        return (jnp.transpose(w_dhwio, (0, 2, 1, 3, 4))
                .reshape(9, 3 * C, C).astype(jnp.bfloat16))

    Cg = C // G
    gmap = (jnp.arange(C)[:, None] // Cg == jnp.arange(G)[None, :]).astype(jnp.float32)

    return dict(
        w9_1=pack_w9(w1_dhwio), b1=b1,
        w9_2=pack_w9(w2_dhwio), b2=b2,
        gamma1=gamma1, beta1=beta1, gamma2=gamma2, beta2=beta2,
        gmap=gmap, gmapT=gmap.T,
        w1_dhwio=w1_dhwio, w2_dhwio=w2_dhwio,
    )


# ----------------------------- pure-JAX reference -----------------------------


def _groupnorm_ref(x, gamma, beta, G):
    N, D, H, W, C = x.shape
    xg = x.reshape(N, D, H, W, G, C // G)
    mean = xg.mean(axis=(1, 2, 3, 5), keepdims=True)
    var = jnp.mean((xg - mean) ** 2, axis=(1, 2, 3, 5), keepdims=True)
    xn = ((xg - mean) / jnp.sqrt(var + EPS)).reshape(N, D, H, W, C)
    return xn * gamma + beta


def resblockx_reference(x_ncdhw, params, G):
    x = jnp.transpose(x_ncdhw, (0, 2, 3, 4, 1)).astype(jnp.float32)

    def conv(h, w_dhwio, b):
        y = lax.conv_general_dilated(
            h, w_dhwio, window_strides=(1, 1, 1), padding="SAME",
            dimension_numbers=("NDHWC", "DHWIO", "NDHWC"),
            precision=lax.Precision.HIGHEST)
        return y + b

    def silu(v):
        return v * jax.nn.sigmoid(v)

    h = silu(_groupnorm_ref(x, params["gamma1"], params["beta1"], G))
    h = conv(h, params["w1_dhwio"], params["b1"])
    h = silu(_groupnorm_ref(h, params["gamma2"], params["beta2"], G))
    h = conv(h, params["w2_dhwio"], params["b2"])
    out = x + h
    return jnp.transpose(out, (0, 4, 1, 2, 3))


# ----------------------------- main -----------------------------


if __name__ == "__main__":
    # Small shapes: batch=2, channels=16, depth=4, height=8, width=8, num_groups=4.
    # Db=2 exercises the depth-block halo path (production: C multiple of 128, Db 4-8).
    N, C, D, H, W = 2, 16, 4, 8, 8
    G = 4
    Db = 2

    key = jax.random.PRNGKey(0)
    kx, kp = jax.random.split(key)
    x = jax.random.normal(kx, (N, C, D, H, W), jnp.float32)   # PyTorch NCDHW input
    params = init_params(kp, C, G)

    fwd = jax.jit(lambda xx: resblockx_forward(xx, params, G, Db))
    out = jax.block_until_ready(fwd(x))

    ref = resblockx_reference(x, params, G)
    err = float(jnp.max(jnp.abs(out - ref)))

    assert out.shape == x.shape, f"bad output shape {out.shape}"
    assert bool(jnp.all(jnp.isfinite(out))), "non-finite output"
    assert err < 5e-2, f"mismatch vs reference: max abs err = {err}"
    print("KERNEL_OK")
</pallas_src>

<mosaic_0001>
module attributes {stable_mosaic.version = 11 : i64} {
  func.func @kernel(%arg0: i32, %arg1: i32, %arg2: memref<1x2x100x16xf32, #tpu.memory_space<vmem>>, %arg3: memref<100x16xf32, #tpu.memory_space<vmem>>, %arg4: memref<16x4xf32, #tpu.memory_space<vmem>>, %arg5: memref<4x16xf32, #tpu.memory_space<vmem>>, %arg6: memref<1x1x4xf32, #tpu.memory_space<vmem>>, %arg7: memref<1x1x4xf32, #tpu.memory_space<vmem>>, %arg8: memref<1x4xf32, #tpu.memory_space<vmem>>, %arg9: memref<1x4xf32, #tpu.memory_space<vmem>>, %arg10: memref<1x4xf32, #tpu.memory_space<vmem>>) attributes {dimension_semantics = [#tpu.dimension_semantics<parallel>, #tpu.dimension_semantics<arbitrary>], iteration_bounds = array<i64: 2, 2>, scalar_prefetch = 0 : i64, scratch_operands = 3 : i64, tpu.core_type = #tpu.core_type<tc>, window_params = [{transform_indices = @transform_0, window_bounds = array<i64: 1, 2, 100, 16>}, {pipeline_mode = #tpu.pipeline_mode<synchronous>, transform_indices = @transform_1, window_bounds = array<i64: 100, 16>}, {pipeline_mode = #tpu.pipeline_mode<synchronous>, transform_indices = @transform_2, window_bounds = array<i64: 16, 4>}, {pipeline_mode = #tpu.pipeline_mode<synchronous>, transform_indices = @transform_3, window_bounds = array<i64: 4, 16>}, {transform_indices = @transform_4, window_bounds = array<i64: 1, 1, 4>}, {transform_indices = @transform_5, window_bounds = array<i64: 1, 1, 4>}]} {
    %c0 = arith.constant 0 : index
    %c0_0 = arith.constant 0 : index
    %0 = vector.load %arg3[%c0, %c0_0] : memref<100x16xf32, #tpu.memory_space<vmem>>, vector<100x16xf32>
    %c0_1 = arith.constant 0 : index
    %c0_2 = arith.constant 0 : index
    %c0_3 = arith.constant 0 : index
    %c0_4 = arith.constant 0 : index
    %1 = vector.load %arg2[%c0_1, %c0_2, %c0_3, %c0_4] : memref<1x2x100x16xf32, #tpu.memory_space<vmem>>, vector<1x2x100x16xf32>
    %2 = vector.shape_cast %1 : vector<1x2x100x16xf32> to vector<2x100x16xf32>
    %3 = vector.shape_cast %0 : vector<100x16xf32> to vector<1x100x16xf32>
    %4 = vector.broadcast %3 : vector<1x100x16xf32> to vector<2x100x16xf32>
    %5 = arith.mulf %2, %4 : vector<2x100x16xf32>
    %cst = arith.constant dense<0.000000e+00> : vector<100x16xf32>
    %6 = vector.multi_reduction <add>, %5, %cst [0] : vector<2x100x16xf32> to vector<100x16xf32>
    %cst_5 = arith.constant dense<0.000000e+00> : vector<16xf32>
    %7 = vector.multi_reduction <add>, %6, %cst_5 [0] : vector<100x16xf32> to vector<16xf32>
    %8 = vector.shape_cast %7 : vector<16xf32> to vector<1x16xf32>
    %c0_6 = arith.constant 0 : index
    %c0_7 = arith.constant 0 : index
    %9 = vector.load %arg4[%c0_6, %c0_7] : memref<16x4xf32, #tpu.memory_space<vmem>>, vector<16x4xf32>
    %cst_8 = arith.constant dense<0.000000e+00> : vector<1x4xf32>
    %10 = tpu.matmul %8, %9, %cst_8 {dimension_numbers = #tpu.dot_dimension_numbers<[1], [0], [0], [1], [0, 0, 1, 1], [], []>} : vector<1x16xf32>, vector<16x4xf32>, vector<1x4xf32> -> vector<1x4xf32>
    %c0_i32 = arith.constant 0 : i32
    %11 = arith.cmpi eq, %arg1, %c0_i32 : i32
    %12 = arith.extui %11 : i1 to i32
    %c0_i32_9 = arith.constant 0 : i32
    %13 = arith.cmpi ne, %12, %c0_i32_9 : i32
    scf.if %13 {
      %cst_34 = arith.constant 5.120000e+02 : f32
      %43 = vector.broadcast %cst_34 : f32 to vector<1x4xf32>
      %44 = arith.divf %10, %43 : vector<1x4xf32>
      %c0_35 = arith.constant 0 : index
      %c0_36 = arith.constant 0 : index
      %45 = vector.load %arg8[%c0_35, %c0_36] : memref<1x4xf32, #tpu.memory_space<vmem>>, vector<1x4xf32>
      tpu.vector_store %arg8[%c0_35, %c0_36], %44 {strides = array<i32>} : memref<1x4xf32, #tpu.memory_space<vmem>>, vector<1x4xf32>,
      %cst_37 = arith.constant 0.000000e+00 : f32
      %46 = vector.broadcast %cst_37 : f32 to vector<1x4xf32>
      %c0_38 = arith.constant 0 : index
      %c0_39 = arith.constant 0 : index
      %47 = vector.load %arg9[%c0_38, %c0_39] : memref<1x4xf32, #tpu.memory_space<vmem>>, vector<1x4xf32>
      tpu.vector_store %arg9[%c0_38, %c0_39], %46 {strides = array<i32>} : memref<1x4xf32, #tpu.memory_space<vmem>>, vector<1x4xf32>,
      %cst_40 = arith.constant 0.000000e+00 : f32
      %48 = vector.broadcast %cst_40 : f32 to vector<1x4xf32>
      %c0_41 = arith.constant 0 : index
      %c0_42 = arith.constant 0 : index
      %49 = vector.load %arg10[%c0_41, %c0_42] : memref<1x4xf32, #tpu.memory_space<vmem>>, vector<1x4xf32>
      tpu.vector_store %arg10[%c0_41, %c0_42], %48 {strides = array<i32>} : memref<1x4xf32, #tpu.memory_space<vmem>>, vector<1x4xf32>,
    } else {
    }
    %c0_10 = arith.constant 0 : index
    %c0_11 = arith.constant 0 : index
    %14 = vector.load %arg8[%c0_10, %c0_11] : memref<1x4xf32, #tpu.memory_space<vmem>>, vector<1x4xf32>
    %c0_12 = arith.constant 0 : index
    %c0_13 = arith.constant 0 : index
    %15 = vector.load %arg5[%c0_12, %c0_13] : memref<4x16xf32, #tpu.memory_space<vmem>>, vector<4x16xf32>
    %cst_14 = arith.constant dense<0.000000e+00> : vector<1x16xf32>
    %16 = tpu.matmul %14, %15, %cst_14 {dimension_numbers = #tpu.dot_dimension_numbers<[1], [0], [0], [1], [0, 0, 1, 1], [], []>} : vector<1x4xf32>, vector<4x16xf32>, vector<1x16xf32> -> vector<1x16xf32>
    %17 = vector.shape_cast %16 : vector<1x16xf32> to vector<1x1x16xf32>
    %18 = vector.broadcast %17 : vector<1x1x16xf32> to vector<2x100x16xf32>
    %19 = arith.subf %5, %18 : vector<2x100x16xf32>
    %20 = vector.shape_cast %0 : vector<100x16xf32> to vector<1x100x16xf32>
    %21 = vector.broadcast %20 : vector<1x100x16xf32> to vector<2x100x16xf32>
    %22 = arith.mulf %19, %21 : vector<2x100x16xf32>
    %cst_15 = arith.constant dense<0.000000e+00> : vector<100x16xf32>
    %23 = vector.multi_reduction <add>, %22, %cst_15 [0] : vector<2x100x16xf32> to vector<100x16xf32>
    %cst_16 = arith.constant dense<0.000000e+00> : vector<16xf32>
    %24 = vector.multi_reduction <add>, %23, %cst_16 [0] : vector<100x16xf32> to vector<16xf32>
    %25 = vector.shape_cast %24 : vector<16xf32> to vector<1x16xf32>
    %26 = arith.mulf %22, %22 : vector<2x100x16xf32>
    %cst_17 = arith.constant dense<0.000000e+00> : vector<100x16xf32>
    %27 = vector.multi_reduction <add>, %26, %cst_17 [0] : vector<2x100x16xf32> to vector<100x16xf32>
    %cst_18 = arith.constant dense<0.000000e+00> : vector<16xf32>
    %28 = vector.multi_reduction <add>, %27, %cst_18 [0] : vector<100x16xf32> to vector<16xf32>
    %29 = vector.shape_cast %28 : vector<16xf32> to vector<1x16xf32>
    %c0_19 = arith.constant 0 : index
    %c0_20 = arith.constant 0 : index
    %30 = vector.load %arg9[%c0_19, %c0_20] : memref<1x4xf32, #tpu.memory_space<vmem>>, vector<1x4xf32>
    %c0_21 = arith.constant 0 : index
    %c0_22 = arith.constant 0 : index
    %31 = vector.load %arg4[%c0_21, %c0_22] : memref<16x4xf32, #tpu.memory_space<vmem>>, vector<16x4xf32>
    %cst_23 = arith.constant dense<0.000000e+00> : vector<1x4xf32>
    %32 = tpu.matmul %25, %31, %cst_23 {dimension_numbers = #tpu.dot_dimension_numbers<[1], [0], [0], [1], [0, 0, 1, 1], [], []>} : vector<1x16xf32>, vector<16x4xf32>, vector<1x4xf32> -> vector<1x4xf32>
    %33 = arith.addf %30, %32 : vector<1x4xf32>
    %c0_24 = arith.constant 0 : index
    %c0_25 = arith.constant 0 : index
    %34 = vector.load %arg9[%c0_24, %c0_25] : memref<1x4xf32, #tpu.memory_space<vmem>>, vector<1x4xf32>
    tpu.vector_store %arg9[%c0_24, %c0_25], %33 {strides = array<i32>} : memref<1x4xf32, #tpu.memory_space<vmem>>, vector<1x4xf32>,
    %c0_26 = arith.constant 0 : index
    %c0_27 = arith.constant 0 : index
    %35 = vector.load %arg10[%c0_26, %c0_27] : memref<1x4xf32, #tpu.memory_space<vmem>>, vector<1x4xf32>
    %c0_28 = arith.constant 0 : index
    %c0_29 = arith.constant 0 : index
    %36 = vector.load %arg4[%c0_28, %c0_29] : memref<16x4xf32, #tpu.memory_space<vmem>>, vector<16x4xf32>
    %cst_30 = arith.constant dense<0.000000e+00> : vector<1x4xf32>
    %37 = tpu.matmul %29, %36, %cst_30 {dimension_numbers = #tpu.dot_dimension_numbers<[1], [0], [0], [1], [0, 0, 1, 1], [], []>} : vector<1x16xf32>, vector<16x4xf32>, vector<1x4xf32> -> vector<1x4xf32>
    %38 = arith.addf %35, %37 : vector<1x4xf32>
    %c0_31 = arith.constant 0 : index
    %c0_32 = arith.constant 0 : index
    %39 = vector.load %arg10[%c0_31, %c0_32] : memref<1x4xf32, #tpu.memory_space<vmem>>, vector<1x4xf32>
    tpu.vector_store %arg10[%c0_31, %c0_32], %38 {strides = array<i32>} : memref<1x4xf32, #tpu.memory_space<vmem>>, vector<1x4xf32>,
    %c1_i32 = arith.constant 1 : i32
    %40 = arith.cmpi eq, %arg1, %c1_i32 : i32
    %41 = arith.extui %40 : i1 to i32
    %c0_i32_33 = arith.constant 0 : i32
    %42 = arith.cmpi ne, %41, %c0_i32_33 : i32
    scf.if %42 {
      %c0_34 = arith.constant 0 : index
      %c0_35 = arith.constant 0 : index
      %43 = vector.load %arg8[%c0_34, %c0_35] : memref<1x4xf32, #tpu.memory_space<vmem>>, vector<1x4xf32>
      %c0_36 = arith.constant 0 : index
      %c0_37 = arith.constant 0 : index
      %44 = vector.load %arg9[%c0_36, %c0_37] : memref<1x4xf32, #tpu.memory_space<vmem>>, vector<1x4xf32>
      %cst_38 = arith.constant 1.024000e+03 : f32
      %45 = vector.broadcast %cst_38 : f32 to vector<1x4xf32>
      %46 = arith.divf %44, %45 : vector<1x4xf32>
      %47 = arith.addf %43, %46 : vector<1x4xf32>
      %c0_39 = arith.constant 0 : index
      %c0_40 = arith.constant 0 : index
      %48 = vector.load %arg10[%c0_39, %c0_40] : memref<1x4xf32, #tpu.memory_space<vmem>>, vector<1x4xf32>
      %c0_41 = arith.constant 0 : index
      %c0_42 = arith.constant 0 : index
      %49 = vector.load %arg9[%c0_41, %c0_42] : memref<1x4xf32, #tpu.memory_space<vmem>>, vector<1x4xf32>
      %c0_43 = arith.constant 0 : index
      %c0_44 = arith.constant 0 : index
      %50 = vector.load %arg9[%c0_43, %c0_44] : memref<1x4xf32, #tpu.memory_space<vmem>>, vector<1x4xf32>
      %51 = arith.mulf %49, %50 : vector<1x4xf32>
      %cst_45 = arith.constant 1.024000e+03 : f32
      %52 = vector.broadcast %cst_45 : f32 to vector<1x4xf32>
      %53 = arith.divf %51, %52 : vector<1x4xf32>
      %54 = arith.subf %48, %53 : vector<1x4xf32>
      %cst_46 = arith.constant 0.000000e+00 : f32
      %55 = vector.broadcast %cst_46 : f32 to vector<1x4xf32>
      %56 = arith.maximumf %54, %55 : vector<1x4xf32>
      %cst_47 = arith.constant 1.024000e+03 : f32
      %57 = vector.broadcast %cst_47 : f32 to vector<1x4xf32>
      %58 = arith.divf %56, %57 : vector<1x4xf32>
      %c0_48 = arith.constant 0 : index
      %c0_49 = arith.constant 0 : index
      %c0_50 = arith.constant 0 : index
      %59 = vector.load %arg6[%c0_48, %c0_49, %c0_50] : memref<1x1x4xf32, #tpu.memory_space<vmem>>, vector<1x1x4xf32>
      %60 = vector.shape_cast %59 : vector<1x1x4xf32> to vector<1x4xf32>
      %61 = vector.shape_cast %47 : vector<1x4xf32> to vector<1x1x4xf32>
      tpu.vector_store %arg6[%c0_48, %c0_49, %c0_50], %61 {strides = array<i32>} : memref<1x1x4xf32, #tpu.memory_space<vmem>>, vector<1x1x4xf32>,
      %cst_51 = arith.constant 9.99999997E-7 : f32
      %62 = vector.broadcast %cst_51 : f32 to vector<1x4xf32>
      %63 = arith.addf %58, %62 : vector<1x4xf32>
      %64 = math.rsqrt %63 : vector<1x4xf32>
      %c0_52 = arith.constant 0 : index
      %c0_53 = arith.constant 0 : index
      %c0_54 = arith.constant 0 : index
      %65 = vector.load %arg7[%c0_52, %c0_53, %c0_54] : memref<1x1x4xf32, #tpu.memory_space<vmem>>, vector<1x1x4xf32>
      %66 = vector.shape_cast %65 : vector<1x1x4xf32> to vector<1x4xf32>
      %67 = vector.shape_cast %64 : vector<1x4xf32> to vector<1x1x4xf32>
      tpu.vector_store %arg7[%c0_52, %c0_53, %c0_54], %67 {strides = array<i32>} : memref<1x1x4xf32, #tpu.memory_space<vmem>>, vector<1x1x4xf32>,
    } else {
    }
    return
  }
  func.func @transform_0(%arg0: i32, %arg1: i32) -> (i32, i32, i32, i32) {
    %c0_i32 = arith.constant 0 : i32
    %c0_i32_0 = arith.constant 0 : i32
    %c0_i32_1 = arith.constant 0 : i32
    return %arg0, %arg1, %c0_i32, %c0_i32_0 : i32, i32, i32, i32
  }
  func.func @transform_1(%arg0: i32, %arg1: i32) -> (i32, i32) {
    %c0_i32 = arith.constant 0 : i32
    %c0_i32_0 = arith.constant 0 : i32
    %c0_i32_1 = arith.constant 0 : i32
    return %c0_i32, %c0_i32_0 : i32, i32
  }
  func.func @transform_2(%arg0: i32, %arg1: i32) -> (i32, i32) {
    %c0_i32 = arith.constant 0 : i32
    %c0_i32_0 = arith.constant 0 : i32
    %c0_i32_1 = arith.constant 0 : i32
    return %c0_i32, %c0_i32_0 : i32, i32
  }
  func.func @transform_3(%arg0: i32, %arg1: i32) -> (i32, i32) {
    %c0_i32 = arith.constant 0 : i32
    %c0_i32_0 = arith.constant 0 : i32
    %c0_i32_1 = arith.constant 0 : i32
    return %c0_i32, %c0_i32_0 : i32, i32
  }
  func.func @transform_4(%arg0: i32, %arg1: i32) -> (i32, i32, i32) {
    %c0_i32 = arith.constant 0 : i32
    %c0_i32_0 = arith.constant 0 : i32
    %c0_i32_1 = arith.constant 0 : i32
    return %arg0, %c0_i32, %c0_i32_0 : i32, i32, i32
  }
  func.func @transform_5(%arg0: i32, %arg1: i32) -> (i32, i32, i32) {
    %c0_i32 = arith.constant 0 : i32
    %c0_i32_0 = arith.constant 0 : i32
    %c0_i32_1 = arith.constant 0 : i32
    return %arg0, %c0_i32, %c0_i32_0 : i32, i32, i32
  }
}

module attributes {stable_mosaic.version = 11 : i64} {
  func.func @kernel(%arg0: i32, %arg1: i32, %arg2: memref<1x1x100x16xf32, #tpu.memory_space<vmem>>, %arg3: memref<1x2x100x16xf32, #tpu.memory_space<vmem>>, %arg4: memref<1x1x100x16xf32, #tpu.memory_space<vmem>>, %arg5: memref<100x16xf32, #tpu.memory_space<vmem>>, %arg6: memref<1x1x16xf32, #tpu.memory_space<vmem>>, %arg7: memref<1x1x16xf32, #tpu.memory_space<vmem>>, %arg8: memref<9x48x16xbf16, #tpu.memory_space<vmem>>, %arg9: memref<1x16xf32, #tpu.memory_space<vmem>>, %arg10: memref<16x4xf32, #tpu.memory_space<vmem>>, %arg11: memref<1x2x100x16xbf16, #tpu.memory_space<vmem>>, %arg12: memref<1x1x1x4xf32, #tpu.memory_space<vmem>>, %arg13: memref<1x1x1x4xf32, #tpu.memory_space<vmem>>, %arg14: memref<4x96x48xbf16, #tpu.memory_space<vmem>>) attributes {dimension_semantics = [#tpu.dimension_semantics<parallel>, #tpu.dimension_semantics<parallel>], iteration_bounds = array<i64: 2, 2>, scalar_prefetch = 0 : i64, scratch_operands = 1 : i64, tpu.core_type = #tpu.core_type<tc>, window_params = [{transform_indices = @transform_0, window_bounds = array<i64: 1, 1, 100, 16>}, {transform_indices = @transform_1, window_bounds = array<i64: 1, 2, 100, 16>}, {transform_indices = @transform_2, window_bounds = array<i64: 1, 1, 100, 16>}, {pipeline_mode = #tpu.pipeline_mode<synchronous>, transform_indices = @transform_3, window_bounds = array<i64: 100, 16>}, {transform_indices = @transform_4, window_bounds = array<i64: 1, 1, 16>}, {transform_indices = @transform_5, window_bounds = array<i64: 1, 1, 16>}, {pipeline_mode = #tpu.pipeline_mode<synchronous>, transform_indices = @transform_6, window_bounds = array<i64: 9, 48, 16>}, {pipeline_mode = #tpu.pipeline_mode<synchronous>, transform_indices = @transform_7, window_bounds = array<i64: 1, 16>}, {pipeline_mode = #tpu.pipeline_mode<synchronous>, transform_indices = @transform_8, window_bounds = array<i64: 16, 4>}, {transform_indices = @transform_9, window_bounds = array<i64: 1, 2, 100, 16>}, {transform_indices = @transform_10, window_bounds = array<i64: 1, 1, 1, 4>}, {transform_indices = @transform_11, window_bounds = array<i64: 1, 1, 1, 4>}]} {
    %c0 = arith.constant 0 : index
    %c0_0 = arith.constant 0 : index
    %0 = vector.load %arg5[%c0, %c0_0] : memref<100x16xf32, #tpu.memory_space<vmem>>, vector<100x16xf32>
    %c0_1 = arith.constant 0 : index
    %c0_2 = arith.constant 0 : index
    %c0_3 = arith.constant 0 : index
    %1 = vector.load %arg6[%c0_1, %c0_2, %c0_3] : memref<1x1x16xf32, #tpu.memory_space<vmem>>, vector<1x1x16xf32>
    %2 = vector.shape_cast %1 : vector<1x1x16xf32> to vector<1x16xf32>
    %c0_4 = arith.constant 0 : index
    %c0_5 = arith.constant 0 : index
    %c0_6 = arith.constant 0 : index
    %3 = vector.load %arg7[%c0_4, %c0_5, %c0_6] : memref<1x1x16xf32, #tpu.memory_space<vmem>>, vector<1x1x16xf32>
    %4 = vector.shape_cast %3 : vector<1x1x16xf32> to vector<1x16xf32>
    %cst = arith.constant 0.000000e+00 : bf16
    %5 = vector.broadcast %cst : bf16 to vector<8x48xbf16>
    %c0_7 = arith.constant 0 : index
    %c0_8 = arith.constant 0 : index
    %c0_9 = arith.constant 0 : index
    %c0_10 = arith.constant 0 : index
    %6 = vector.load %arg2[%c0_7, %c0_8, %c0_9, %c0_10] : memref<1x1x100x16xf32, #tpu.memory_space<vmem>>, vector<1x1x100x16xf32>
    %7 = vector.shape_cast %6 : vector<1x1x100x16xf32> to vector<100x16xf32>
    %c0_i32 = arith.constant 0 : i32
    %8 = arith.cmpi sgt, %arg1, %c0_i32 : i32
    %9 = arith.extui %8 : i1 to i32
    %10 = arith.sitofp %9 : i32 to f32
    %11 = vector.broadcast %10 : f32 to vector<1x16xf32>
    %12 = arith.mulf %2, %11 : vector<1x16xf32>
    %13 = vector.broadcast %10 : f32 to vector<1x16xf32>
    %14 = arith.mulf %4, %13 : vector<1x16xf32>
    %15 = vector.broadcast %12 : vector<1x16xf32> to vector<100x16xf32>
    %16 = arith.mulf %7, %15 : vector<100x16xf32>
    %17 = vector.broadcast %14 : vector<1x16xf32> to vector<100x16xf32>
    %18 = arith.addf %16, %17 : vector<100x16xf32>
    %19 = arith.negf %18 : vector<100x16xf32>
    %20 = math.exp %19 : vector<100x16xf32>
    %cst_11 = arith.constant 1.000000e+00 : f32
    %21 = vector.broadcast %cst_11 : f32 to vector<100x16xf32>
    %22 = arith.addf %21, %20 : vector<100x16xf32>
    %23 = arith.divf %21, %22 : vector<100x16xf32>
    %24 = arith.mulf %18, %23 : vector<100x16xf32>
    %25 = arith.mulf %24, %0 : vector<100x16xf32>
    %26 = arith.truncf %25 : vector<100x16xf32> to vector<100x16xbf16>
    %c0_12 = arith.constant 0 : index
    %c0_13 = arith.constant 0 : index
    %c0_14 = arith.constant 0 : index
    %27 = vector.load %arg14[%c0_12, %c0_13, %c0_14] : memref<4x96x48xbf16, #tpu.memory_space<vmem>>, vector<1x8x48xbf16>
    %28 = vector.shape_cast %27 : vector<1x8x48xbf16> to vector<8x48xbf16>
    %29 = vector.shape_cast %5 : vector<8x48xbf16> to vector<1x8x48xbf16>
    tpu.vector_store %arg14[%c0_12, %c0_13, %c0_14], %29 {strides = array<i32>} : memref<4x96x48xbf16, #tpu.memory_space<vmem>>, vector<1x8x48xbf16>,
    %c0_15 = arith.constant 0 : index
    %c88 = arith.constant 88 : index
    %c0_16 = arith.constant 0 : index
    %30 = vector.load %arg14[%c0_15, %c88, %c0_16] : memref<4x96x48xbf16, #tpu.memory_space<vmem>>, vector<1x8x48xbf16>
    %31 = vector.shape_cast %30 : vector<1x8x48xbf16> to vector<8x48xbf16>
    %32 = vector.shape_cast %5 : vector<8x48xbf16> to vector<1x8x48xbf16>
    tpu.vector_store %arg14[%c0_15, %c88, %c0_16], %32 {strides = array<i32>} : memref<4x96x48xbf16, #tpu.memory_space<vmem>>, vector<1x8x48xbf16>,
    %33 = vector.extract_strided_slice %26 {offsets = [0, 0], sizes = [80, 16], strides = [1, 1]} : vector<100x16xbf16> to vector<80x16xbf16>
    %c0_17 = arith.constant 0 : index
    %c8 = arith.constant 8 : index
    %c0_18 = arith.constant 0 : index
    %34 = vector.load %arg14[%c0_17, %c8, %c0_18] : memref<4x96x48xbf16, #tpu.memory_space<vmem>>, vector<1x80x16xbf16>
    %35 = vector.shape_cast %34 : vector<1x80x16xbf16> to vector<80x16xbf16>
    %36 = vector.shape_cast %33 : vector<80x16xbf16> to vector<1x80x16xbf16>
    tpu.vector_store %arg14[%c0_17, %c8, %c0_18], %36 {strides = array<i32>} : memref<4x96x48xbf16, #tpu.memory_space<vmem>>, vector<1x80x16xbf16>,
    %37 = vector.extract_strided_slice %26 {offsets = [10, 0], sizes = [80, 16], strides = [1, 1]} : vector<100x16xbf16> to vector<80x16xbf16>
    %c0_19 = arith.constant 0 : index
    %c8_20 = arith.constant 8 : index
    %c16 = arith.constant 16 : index
    %38 = vector.load %arg14[%c0_19, %c8_20, %c16] : memref<4x96x48xbf16, #tpu.memory_space<vmem>>, vector<1x80x16xbf16>
    %39 = vector.shape_cast %38 : vector<1x80x16xbf16> to vector<80x16xbf16>
    %40 = vector.shape_cast %37 : vector<80x16xbf16> to vector<1x80x16xbf16>
    tpu.vector_store %arg14[%c0_19, %c8_20, %c16], %40 {strides = array<i32>} : memref<4x96x48xbf16, #tpu.memory_space<vmem>>, vector<1x80x16xbf16>,
    %41 = vector.extract_strided_slice %26 {offsets = [20, 0], sizes = [80, 16], strides = [1, 1]} : vector<100x16xbf16> to vector<80x16xbf16>
    %c0_21 = arith.constant 0 : index
    %c8_22 = arith.constant 8 : index
    %c32 = arith.constant 32 : index
    %42 = vector.load %arg14[%c0_21, %c8_22, %c32] : memref<4x96x48xbf16, #tpu.memory_space<vmem>>, vector<1x80x16xbf16>
    %43 = vector.shape_cast %42 : vector<1x80x16xbf16> to vector<80x16xbf16>
    %44 = vector.shape_cast %41 : vector<80x16xbf16> to vector<1x80x16xbf16>
    tpu.vector_store %arg14[%c0_21, %c8_22, %c32], %44 {strides = array<i32>} : memref<4x96x48xbf16, #tpu.memory_space<vmem>>, vector<1x80x16xbf16>,
    %c0_23 = arith.constant 0 : index
    %c0_24 = arith.constant 0 : index
    %c0_25 = arith.constant 0 : index
    %c0_26 = arith.constant 0 : index
    %45 = vector.load %arg3[%c0_23, %c0_24, %c0_25, %c0_26] : memref<1x2x100x16xf32, #tpu.memory_space<vmem>>, vector<1x1x100x16xf32>
    %46 = vector.shape_cast %45 : vector<1x1x100x16xf32> to vector<100x16xf32>
    %47 = vector.broadcast %2 : vector<1x16xf32> to vector<100x16xf32>
    %48 = arith.mulf %46, %47 : vector<100x16xf32>
    %49 = vector.broadcast %4 : vector<1x16xf32> to vector<100x16xf32>
    %50 = arith.addf %48, %49 : vector<100x16xf32>
    %51 = arith.negf %50 : vector<100x16xf32>
    %52 = math.exp %51 : vector<100x16xf32>
    %cst_27 = arith.constant 1.000000e+00 : f32
    %53 = vector.broadcast %cst_27 : f32 to vector<100x16xf32>
    %54 = arith.addf %53, %52 : vector<100x16xf32>
    %55 = arith.divf %53, %54 : vector<100x16xf32>
    %56 = arith.mulf %50, %55 : vector<100x16xf32>
    %57 = arith.mulf %56, %0 : vector<100x16xf32>
    %58 = arith.truncf %57 : vector<100x16xf32> to vector<100x16xbf16>
    %c1 = arith.constant 1 : index
    %c0_28 = arith.constant 0 : index
    %c0_29 = arith.constant 0 : index
    %59 = vector.load %arg14[%c1, %c0_28, %c0_29] : memref<4x96x48xbf16, #tpu.memory_space<vmem>>, vector<1x8x48xbf16>
    %60 = vector.shape_cast %59 : vector<1x8x48xbf16> to vector<8x48xbf16>
    %61 = vector.shape_cast %5 : vector<8x48xbf16> to vector<1x8x48xbf16>
    tpu.vector_store %arg14[%c1, %c0_28, %c0_29], %61 {strides = array<i32>} : memref<4x96x48xbf16, #tpu.memory_space<vmem>>, vector<1x8x48xbf16>,
    %c1_30 = arith.constant 1 : index
    %c88_31 = arith.constant 88 : index
    %c0_32 = arith.constant 0 : index
    %62 = vector.load %arg14[%c1_30, %c88_31, %c0_32] : memref<4x96x48xbf16, #tpu.memory_space<vmem>>, vector<1x8x48xbf16>
    %63 = vector.shape_cast %62 : vector<1x8x48xbf16> to vector<8x48xbf16>
    %64 = vector.shape_cast %5 : vector<8x48xbf16> to vector<1x8x48xbf16>
    tpu.vector_store %arg14[%c1_30, %c88_31, %c0_32], %64 {strides = array<i32>} : memref<4x96x48xbf16, #tpu.memory_space<vmem>>, vector<1x8x48xbf16>,
    %65 = vector.extract_strided_slice %58 {offsets = [0, 0], sizes = [80, 16], strides = [1, 1]} : vector<100x16xbf16> to vector<80x16xbf16>
    %c1_33 = arith.constant 1 : index
    %c8_34 = arith.constant 8 : index
    %c0_35 = arith.constant 0 : index
    %66 = vector.load %arg14[%c1_33, %c8_34, %c0_35] : memref<4x96x48xbf16, #tpu.memory_space<vmem>>, vector<1x80x16xbf16>
    %67 = vector.shape_cast %66 : vector<1x80x16xbf16> to vector<80x16xbf16>
    %68 = vector.shape_cast %65 : vector<80x16xbf16> to vector<1x80x16xbf16>
    tpu.vector_store %arg14[%c1_33, %c8_34, %c0_35], %68 {strides = array<i32>} : memref<4x96x48xbf16, #tpu.memory_space<vmem>>, vector<1x80x16xbf16>,
    %69 = vector.extract_strided_slice %58 {offsets = [10, 0], sizes = [80, 16], strides = [1, 1]} : vector<100x16xbf16> to vector<80x16xbf16>
    %c1_36 = arith.constant 1 : index
    %c8_37 = arith.constant 8 : index
    %c16_38 = arith.constant 16 : index
    %70 = vector.load %arg14[%c1_36, %c8_37, %c16_38] : memref<4x96x48xbf16, #tpu.memory_space<vmem>>, vector<1x80x16xbf16>
    %71 = vector.shape_cast %70 : vector<1x80x16xbf16> to vector<80x16xbf16>
    %72 = vector.shape_cast %69 : vector<80x16xbf16> to vector<1x80x16xbf16>
    tpu.vector_store %arg14[%c1_36, %c8_37, %c16_38], %72 {strides = array<i32>} : memref<4x96x48xbf16, #tpu.memory_space<vmem>>, vector<1x80x16xbf16>,
    %73 = vector.extract_strided_slice %58 {offsets = [20, 0], sizes = [80, 16], strides = [1, 1]} : vector<100x16xbf16> to vector<80x16xbf16>
    %c1_39 = arith.constant 1 : index
    %c8_40 = arith.constant 8 : index
    %c32_41 = arith.constant 32 : index
    %74 = vector.load %arg14[%c1_39, %c8_40, %c32_41] : memref<4x96x48xbf16, #tpu.memory_space<vmem>>, vector<1x80x16xbf16>
    %75 = vector.shape_cast %74 : vector<1x80x16xbf16> to vector<80x16xbf16>
    %76 = vector.shape_cast %73 : vector<80x16xbf16> to vector<1x80x16xbf16>
    tpu.vector_store %arg14[%c1_39, %c8_40, %c32_41], %76 {strides = array<i32>} : memref<4x96x48xbf16, #tpu.memory_space<vmem>>, vector<1x80x16xbf16>,
    %c0_42 = arith.constant 0 : index
    %c1_43 = arith.constant 1 : index
    %c0_44 = arith.constant 0 : index
    %c0_45 = arith.constant 0 : index
    %77 = vector.load %arg3[%c0_42, %c1_43, %c0_44, %c0_45] : memref<1x2x100x16xf32, #tpu.memory_space<vmem>>, vector<1x1x100x16xf32>
    %78 = vector.shape_cast %77 : vector<1x1x100x16xf32> to vector<100x16xf32>
    %79 = vector.broadcast %2 : vector<1x16xf32> to vector<100x16xf32>
    %80 = arith.mulf %78, %79 : vector<100x16xf32>
    %81 = vector.broadcast %4 : vector<1x16xf32> to vector<100x16xf32>
    %82 = arith.addf %80, %81 : vector<100x16xf32>
    %83 = arith.negf %82 : vector<100x16xf32>
    %84 = math.exp %83 : vector<100x16xf32>
    %cst_46 = arith.constant 1.000000e+00 : f32
    %85 = vector.broadcast %cst_46 : f32 to vector<100x16xf32>
    %86 = arith.addf %85, %84 : vector<100x16xf32>
    %87 = arith.divf %85, %86 : vector<100x16xf32>
    %88 = arith.mulf %82, %87 : vector<100x16xf32>
    %89 = arith.mulf %88, %0 : vector<100x16xf32>
    %90 = arith.truncf %89 : vector<100x16xf32> to vector<100x16xbf16>
    %c2 = arith.constant 2 : index
    %c0_47 = arith.constant 0 : index
    %c0_48 = arith.constant 0 : index
    %91 = vector.load %arg14[%c2, %c0_47, %c0_48] : memref<4x96x48xbf16, #tpu.memory_space<vmem>>, vector<1x8x48xbf16>
    %92 = vector.shape_cast %91 : vector<1x8x48xbf16> to vector<8x48xbf16>
    %93 = vector.shape_cast %5 : vector<8x48xbf16> to vector<1x8x48xbf16>
    tpu.vector_store %arg14[%c2, %c0_47, %c0_48], %93 {strides = array<i32>} : memref<4x96x48xbf16, #tpu.memory_space<vmem>>, vector<1x8x48xbf16>,
    %c2_49 = arith.constant 2 : index
    %c88_50 = arith.constant 88 : index
    %c0_51 = arith.constant 0 : index
    %94 = vector.load %arg14[%c2_49, %c88_50, %c0_51] : memref<4x96x48xbf16, #tpu.memory_space<vmem>>, vector<1x8x48xbf16>
    %95 = vector.shape_cast %94 : vector<1x8x48xbf16> to vector<8x48xbf16>
    %96 = vector.shape_cast %5 : vector<8x48xbf16> to vector<1x8x48xbf16>
    tpu.vector_store %arg14[%c2_49, %c88_50, %c0_51], %96 {strides = array<i32>} : memref<4x96x48xbf16, #tpu.memory_space<vmem>>, vector<1x8x48xbf16>,
    %97 = vector.extract_strided_slice %90 {offsets = [0, 0], sizes = [80, 16], strides = [1, 1]} : vector<100x16xbf16> to vector<80x16xbf16>
    %c2_52 = arith.constant 2 : index
    %c8_53 = arith.constant 8 : index
    %c0_54 = arith.constant 0 : index
    %98 = vector.load %arg14[%c2_52, %c8_53, %c0_54] : memref<4x96x48xbf16, #tpu.memory_space<vmem>>, vector<1x80x16xbf16>
    %99 = vector.shape_cast %98 : vector<1x80x16xbf16> to vector<80x16xbf16>
    %100 = vector.shape_cast %97 : vector<80x16xbf16> to vector<1x80x16xbf16>
    tpu.vector_store %arg14[%c2_52, %c8_53, %c0_54], %100 {strides = array<i32>} : memref<4x96x48xbf16, #tpu.memory_space<vmem>>, vector<1x80x16xbf16>,
    %101 = vector.extract_strided_slice %90 {offsets = [10, 0], sizes = [80, 16], strides = [1, 1]} : vector<100x16xbf16> to vector<80x16xbf16>
    %c2_55 = arith.constant 2 : index
    %c8_56 = arith.constant 8 : index
    %c16_57 = arith.constant 16 : index
    %102 = vector.load %arg14[%c2_55, %c8_56, %c16_57] : memref<4x96x48xbf16, #tpu.memory_space<vmem>>, vector<1x80x16xbf16>
    %103 = vector.shape_cast %102 : vector<1x80x16xbf16> to vector<80x16xbf16>
    %104 = vector.shape_cast %101 : vector<80x16xbf16> to vector<1x80x16xbf16>
    tpu.vector_store %arg14[%c2_55, %c8_56, %c16_57], %104 {strides = array<i32>} : memref<4x96x48xbf16, #tpu.memory_space<vmem>>, vector<1x80x16xbf16>,
    %105 = vector.extract_strided_slice %90 {offsets = [20, 0], sizes = [80, 16], strides = [1, 1]} : vector<100x16xbf16> to vector<80x16xbf16>
    %c2_58 = arith.constant 2 : index
    %c8_59 = arith.constant 8 : index
    %c32_60 = arith.constant 32 : index
    %106 = vector.load %arg14[%c2_58, %c8_59, %c32_60] : memref<4x96x48xbf16, #tpu.memory_space<vmem>>, vector<1x80x16xbf16>
    %107 = vector.shape_cast %106 : vector<1x80x16xbf16> to vector<80x16xbf16>
    %108 = vector.shape_cast %105 : vector<80x16xbf16> to vector<1x80x16xbf16>
    tpu.vector_store %arg14[%c2_58, %c8_59, %c32_60], %108 {strides = array<i32>} : memref<4x96x48xbf16, #tpu.memory_space<vmem>>, vector<1x80x16xbf16>,
    %c0_61 = arith.constant 0 : index
    %c0_62 = arith.constant 0 : index
    %c0_63 = arith.constant 0 : index
    %c0_64 = arith.constant 0 : index
    %109 = vector.load %arg4[%c0_61, %c0_62, %c0_63, %c0_64] : memref<1x1x100x16xf32, #tpu.memory_space<vmem>>, vector<1x1x100x16xf32>
    %110 = vector.shape_cast %109 : vector<1x1x100x16xf32> to vector<100x16xf32>
    %c1_i32 = arith.constant 1 : i32
    %111 = arith.cmpi slt, %arg1, %c1_i32 : i32
    %112 = arith.extui %111 : i1 to i32
    %113 = arith.sitofp %112 : i32 to f32
    %114 = vector.broadcast %113 : f32 to vector<1x16xf32>
    %115 = arith.mulf %2, %114 : vector<1x16xf32>
    %116 = vector.broadcast %113 : f32 to vector<1x16xf32>
    %117 = arith.mulf %4, %116 : vector<1x16xf32>
    %118 = vector.broadcast %115 : vector<1x16xf32> to vector<100x16xf32>
    %119 = arith.mulf %110, %118 : vector<100x16xf32>
    %120 = vector.broadcast %117 : vector<1x16xf32> to vector<100x16xf32>
    %121 = arith.addf %119, %120 : vector<100x16xf32>
    %122 = arith.negf %121 : vector<100x16xf32>
    %123 = math.exp %122 : vector<100x16xf32>
    %cst_65 = arith.constant 1.000000e+00 : f32
    %124 = vector.broadcast %cst_65 : f32 to vector<100x16xf32>
    %125 = arith.addf %124, %123 : vector<100x16xf32>
    %126 = arith.divf %124, %125 : vector<100x16xf32>
    %127 = arith.mulf %121, %126 : vector<100x16xf32>
    %128 = arith.mulf %127, %0 : vector<100x16xf32>
    %129 = arith.truncf %128 : vector<100x16xf32> to vector<100x16xbf16>
    %c3 = arith.constant 3 : index
    %c0_66 = arith.constant 0 : index
    %c0_67 = arith.constant 0 : index
    %130 = vector.load %arg14[%c3, %c0_66, %c0_67] : memref<4x96x48xbf16, #tpu.memory_space<vmem>>, vector<1x8x48xbf16>
    %131 = vector.shape_cast %130 : vector<1x8x48xbf16> to vector<8x48xbf16>
    %132 = vector.shape_cast %5 : vector<8x48xbf16> to vector<1x8x48xbf16>
    tpu.vector_store %arg14[%c3, %c0_66, %c0_67], %132 {strides = array<i32>} : memref<4x96x48xbf16, #tpu.memory_space<vmem>>, vector<1x8x48xbf16>,
    %c3_68 = arith.constant 3 : index
    %c88_69 = arith.constant 88 : index
    %c0_70 = arith.constant 0 : index
    %133 = vector.load %arg14[%c3_68, %c88_69, %c0_70] : memref<4x96x48xbf16, #tpu.memory_space<vmem>>, vector<1x8x48xbf16>
    %134 = vector.shape_cast %133 : vector<1x8x48xbf16> to vector<8x48xbf16>
    %135 = vector.shape_cast %5 : vector<8x48xbf16> to vector<1x8x48xbf16>
    tpu.vector_store %arg14[%c3_68, %c88_69, %c0_70], %135 {strides = array<i32>} : memref<4x96x48xbf16, #tpu.memory_space<vmem>>, vector<1x8x48xbf16>,
    %136 = vector.extract_strided_slice %129 {offsets = [0, 0], sizes = [80, 16], strides = [1, 1]} : vector<100x16xbf16> to vector<80x16xbf16>
    %c3_71 = arith.constant 3 : index
    %c8_72 = arith.constant 8 : index
    %c0_73 = arith.constant 0 : index
    %137 = vector.load %arg14[%c3_71, %c8_72, %c0_73] : memref<4x96x48xbf16, #tpu.memory_space<vmem>>, vector<1x80x16xbf16>
    %138 = vector.shape_cast %137 : vector<1x80x16xbf16> to vector<80x16xbf16>
    %139 = vector.shape_cast %136 : vector<80x16xbf16> to vector<1x80x16xbf16>
    tpu.vector_store %arg14[%c3_71, %c8_72, %c0_73], %139 {strides = array<i32>} : memref<4x96x48xbf16, #tpu.memory_space<vmem>>, vector<1x80x16xbf16>,
    %140 = vector.extract_strided_slice %129 {offsets = [10, 0], sizes = [80, 16], strides = [1, 1]} : vector<100x16xbf16> to vector<80x16xbf16>
    %c3_74 = arith.constant 3 : index
    %c8_75 = arith.constant 8 : index
    %c16_76 = arith.constant 16 : index
    %141 = vector.load %arg14[%c3_74, %c8_75, %c16_76] : memref<4x96x48xbf16, #tpu.memory_space<vmem>>, vector<1x80x16xbf16>
    %142 = vector.shape_cast %141 : vector<1x80x16xbf16> to vector<80x16xbf16>
    %143 = vector.shape_cast %140 : vector<80x16xbf16> to vector<1x80x16xbf16>
    tpu.vector_store %arg14[%c3_74, %c8_75, %c16_76], %143 {strides = array<i32>} : memref<4x96x48xbf16, #tpu.memory_space<vmem>>, vector<1x80x16xbf16>,
    %144 = vector.extract_strided_slice %129 {offsets = [20, 0], sizes = [80, 16], strides = [1, 1]} : vector<100x16xbf16> to vector<80x16xbf16>
    %c3_77 = arith.constant 3 : index
    %c8_78 = arith.constant 8 : index
    %c32_79 = arith.constant 32 : index
    %145 = vector.load %arg14[%c3_77, %c8_78, %c32_79] : memref<4x96x48xbf16, #tpu.memory_space<vmem>>, vector<1x80x16xbf16>
    %146 = vector.shape_cast %145 : vector<1x80x16xbf16> to vector<80x16xbf16>
    %147 = vector.shape_cast %144 : vector<80x16xbf16> to vector<1x80x16xbf16>
    tpu.vector_store %arg14[%c3_77, %c8_78, %c32_79], %147 {strides = array<i32>} : memref<4x96x48xbf16, #tpu.memory_space<vmem>>, vector<1x80x16xbf16>,
    %c0_80 = arith.constant 0 : index
    %c0_81 = arith.constant 0 : index
    %148 = vector.load %arg9[%c0_80, %c0_81] : memref<1x16xf32, #tpu.memory_space<vmem>>, vector<1x16xf32>
    %cst_82 = arith.constant 0.000000e+00 : f32
    %149 = vector.broadcast %cst_82 : f32 to vector<1x16xf32>
    %cst_83 = arith.constant 0.000000e+00 : f32
    %150 = vector.broadcast %cst_83 : f32 to vector<1x16xf32>
    %c0_84 = arith.constant 0 : index
    %c7 = arith.constant 7 : index
    %c0_85 = arith.constant 0 : index
    %151 = vector.load %arg14[%c0_84, %c7, %c0_85] : memref<4x96x48xbf16, #tpu.memory_space<vmem>>, vector<1x80x48xbf16>
    %152 = vector.shape_cast %151 : vector<1x80x48xbf16> to vector<80x48xbf16>
    %c0_86 = arith.constant 0 : index
    %c0_87 = arith.constant 0 : index
    %c0_88 = arith.constant 0 : index
    %153 = vector.load %arg8[%c0_86, %c0_87, %c0_88] : memref<9x48x16xbf16, #tpu.memory_space<vmem>>, vector<1x48x16xbf16>
    %154 = vector.shape_cast %153 : vector<1x48x16xbf16> to vector<48x16xbf16>
    %cst_89 = arith.constant dense<0.000000e+00> : vector<80x16xf32>
    %155 = tpu.matmul %152, %154, %cst_89 {dimension_numbers = #tpu.dot_dimension_numbers<[1], [0], [0], [1], [0, 0, 1, 1], [], []>} : vector<80x48xbf16>, vector<48x16xbf16>, vector<80x16xf32> -> vector<80x16xf32>
    %c0_90 = arith.constant 0 : index
    %c8_91 = arith.constant 8 : index
    %c0_92 = arith.constant 0 : index
    %156 = vector.load %arg14[%c0_90, %c8_91, %c0_92] : memref<4x96x48xbf16, #tpu.memory_space<vmem>>, vector<1x80x48xbf16>
    %157 = vector.shape_cast %156 : vector<1x80x48xbf16> to vector<80x48xbf16>
    %c1_93 = arith.constant 1 : index
    %c0_94 = arith.constant 0 : index
    %c0_95 = arith.constant 0 : index
    %158 = vector.load %arg8[%c1_93, %c0_94, %c0_95] : memref<9x48x16xbf16, #tpu.memory_space<vmem>>, vector<1x48x16xbf16>
    %159 = vector.shape_cast %158 : vector<1x48x16xbf16> to vector<48x16xbf16>
    %cst_96 = arith.constant dense<0.000000e+00> : vector<80x16xf32>
    %160 = tpu.matmul %157, %159, %cst_96 {dimension_numbers = #tpu.dot_dimension_numbers<[1], [0], [0], [1], [0, 0, 1, 1], [], []>} : vector<80x48xbf16>, vector<48x16xbf16>, vector<80x16xf32> -> vector<80x16xf32>
    %161 = arith.addf %155, %160 : vector<80x16xf32>
    %c0_97 = arith.constant 0 : index
    %c9 = arith.constant 9 : index
    %c0_98 = arith.constant 0 : index
    %162 = vector.load %arg14[%c0_97, %c9, %c0_98] : memref<4x96x48xbf16, #tpu.memory_space<vmem>>, vector<1x80x48xbf16>
    %163 = vector.shape_cast %162 : vector<1x80x48xbf16> to vector<80x48xbf16>
    %c2_99 = arith.constant 2 : index
    %c0_100 = arith.constant 0 : index
    %c0_101 = arith.constant 0 : index
    %164 = vector.load %arg8[%c2_99, %c0_100, %c0_101] : memref<9x48x16xbf16, #tpu.memory_space<vmem>>, vector<1x48x16xbf16>
    %165 = vector.shape_cast %164 : vector<1x48x16xbf16> to vector<48x16xbf16>
    %cst_102 = arith.constant dense<0.000000e+00> : vector<80x16xf32>
    %166 = tpu.matmul %163, %165, %cst_102 {dimension_numbers = #tpu.dot_dimension_numbers<[1], [0], [0], [1], [0, 0, 1, 1], [], []>} : vector<80x48xbf16>, vector<48x16xbf16>, vector<80x16xf32> -> vector<80x16xf32>
    %167 = arith.addf %161, %166 : vector<80x16xf32>
    %c1_103 = arith.constant 1 : index
    %c7_104 = arith.constant 7 : index
    %c0_105 = arith.constant 0 : index
    %168 = vector.load %arg14[%c1_103, %c7_104, %c0_105] : memref<4x96x48xbf16, #tpu.memory_space<vmem>>, vector<1x80x48xbf16>
    %169 = vector.shape_cast %168 : vector<1x80x48xbf16> to vector<80x48xbf16>
    %c3_106 = arith.constant 3 : index
    %c0_107 = arith.constant 0 : index
    %c0_108 = arith.constant 0 : index
    %170 = vector.load %arg8[%c3_106, %c0_107, %c0_108] : memref<9x48x16xbf16, #tpu.memory_space<vmem>>, vector<1x48x16xbf16>
    %171 = vector.shape_cast %170 : vector<1x48x16xbf16> to vector<48x16xbf16>
    %cst_109 = arith.constant dense<0.000000e+00> : vector<80x16xf32>
    %172 = tpu.matmul %169, %171, %cst_109 {dimension_numbers = #tpu.dot_dimension_numbers<[1], [0], [0], [1], [0, 0, 1, 1], [], []>} : vector<80x48xbf16>, vector<48x16xbf16>, vector<80x16xf32> -> vector<80x16xf32>
    %173 = arith.addf %167, %172 : vector<80x16xf32>
    %c1_110 = arith.constant 1 : index
    %c8_111 = arith.constant 8 : index
    %c0_112 = arith.constant 0 : index
    %174 = vector.load %arg14[%c1_110, %c8_111, %c0_112] : memref<4x96x48xbf16, #tpu.memory_space<vmem>>, vector<1x80x48xbf16>
    %175 = vector.shape_cast %174 : vector<1x80x48xbf16> to vector<80x48xbf16>
    %c4 = arith.constant 4 : index
    %c0_113 = arith.constant 0 : index
    %c0_114 = arith.constant 0 : index
    %176 = vector.load %arg8[%c4, %c0_113, %c0_114] : memref<9x48x16xbf16, #tpu.memory_space<vmem>>, vector<1x48x16xbf16>
    %177 = vector.shape_cast %176 : vector<1x48x16xbf16> to vector<48x16xbf16>
    %cst_115 = arith.constant dense<0.000000e+00> : vector<80x16xf32>
    %178 = tpu.matmul %175, %177, %cst_115 {dimension_numbers = #tpu.dot_dimension_numbers<[1], [0], [0], [1], [0, 0, 1, 1], [], []>} : vector<80x48xbf16>, vector<48x16xbf16>, vector<80x16xf32> -> vector<80x16xf32>
    %179 = arith.addf %173, %178 : vector<80x16xf32>
    %c1_116 = arith.constant 1 : index
    %c9_117 = arith.constant 9 : index
    %c0_118 = arith.constant 0 : index
    %180 = vector.load %arg14[%c1_116, %c9_117, %c0_118] : memref<4x96x48xbf16, #tpu.memory_space<vmem>>, vector<1x80x48xbf16>
    %181 = vector.shape_cast %180 : vector<1x80x48xbf16> to vector<80x48xbf16>
    %c5 = arith.constant 5 : index
    %c0_119 = arith.constant 0 : index
    %c0_120 = arith.constant 0 : index
    %182 = vector.load %arg8[%c5, %c0_119, %c0_120] : memref<9x48x16xbf16, #tpu.memory_space<vmem>>, vector<1x48x16xbf16>
    %183 = vector.shape_cast %182 : vector<1x48x16xbf16> to vector<48x16xbf16>
    %cst_121 = arith.constant dense<0.000000e+00> : vector<80x16xf32>
    %184 = tpu.matmul %181, %183, %cst_121 {dimension_numbers = #tpu.dot_dimension_numbers<[1], [0], [0], [1], [0, 0, 1, 1], [], []>} : vector<80x48xbf16>, vector<48x16xbf16>, vector<80x16xf32> -> vector<80x16xf32>
    %185 = arith.addf %179, %184 : vector<80x16xf32>
    %c2_122 = arith.constant 2 : index
    %c7_123 = arith.constant 7 : index
    %c0_124 = arith.constant 0 : index
    %186 = vector.load %arg14[%c2_122, %c7_123, %c0_124] : memref<4x96x48xbf16, #tpu.memory_space<vmem>>, vector<1x80x48xbf16>
    %187 = vector.shape_cast %186 : vector<1x80x48xbf16> to vector<80x48xbf16>
    %c6 = arith.constant 6 : index
    %c0_125 = arith.constant 0 : index
    %c0_126 = arith.constant 0 : index
    %188 = vector.load %arg8[%c6, %c0_125, %c0_126] : memref<9x48x16xbf16, #tpu.memory_space<vmem>>, vector<1x48x16xbf16>
    %189 = vector.shape_cast %188 : vector<1x48x16xbf16> to vector<48x16xbf16>
    %cst_127 = arith.constant dense<0.000000e+00> : vector<80x16xf32>
    %190 = tpu.matmul %187, %189, %cst_127 {dimension_numbers = #tpu.dot_dimension_numbers<[1], [0], [0], [1], [0, 0, 1, 1], [], []>} : vector<80x48xbf16>, vector<48x16xbf16>, vector<80x16xf32> -> vector<80x16xf32>
    %191 = arith.addf %185, %190 : vector<80x16xf32>
    %c2_128 = arith.constant 2 : index
    %c8_129 = arith.constant 8 : index
    %c0_130 = arith.constant 0 : index
    %192 = vector.load %arg14[%c2_128, %c8_129, %c0_130] : memref<4x96x48xbf16, #tpu.memory_space<vmem>>, vector<1x80x48xbf16>
    %193 = vector.shape_cast %192 : vector<1x80x48xbf16> to vector<80x48xbf16>
    %c7_131 = arith.constant 7 : index
    %c0_132 = arith.constant 0 : index
    %c0_133 = arith.constant 0 : index
    %194 = vector.load %arg8[%c7_131, %c0_132, %c0_133] : memref<9x48x16xbf16, #tpu.memory_space<vmem>>, vector<1x48x16xbf16>
    %195 = vector.shape_cast %194 : vector<1x48x16xbf16> to vector<48x16xbf16>
    %cst_134 = arith.constant dense<0.000000e+00> : vector<80x16xf32>
    %196 = tpu.matmul %193, %195, %cst_134 {dimension_numbers = #tpu.dot_dimension_numbers<[1], [0], [0], [1], [0, 0, 1, 1], [], []>} : vector<80x48xbf16>, vector<48x16xbf16>, vector<80x16xf32> -> vector<80x16xf32>
    %197 = arith.addf %191, %196 : vector<80x16xf32>
    %c2_135 = arith.constant 2 : index
    %c9_136 = arith.constant 9 : index
    %c0_137 = arith.constant 0 : index
    %198 = vector.load %arg14[%c2_135, %c9_136, %c0_137] : memref<4x96x48xbf16, #tpu.memory_space<vmem>>, vector<1x80x48xbf16>
    %199 = vector.shape_cast %198 : vector<1x80x48xbf16> to vector<80x48xbf16>
    %c8_138 = arith.constant 8 : index
    %c0_139 = arith.constant 0 : index
    %c0_140 = arith.constant 0 : index
    %200 = vector.load %arg8[%c8_138, %c0_139, %c0_140] : memref<9x48x16xbf16, #tpu.memory_space<vmem>>, vector<1x48x16xbf16>
    %201 = vector.shape_cast %200 : vector<1x48x16xbf16> to vector<48x16xbf16>
    %cst_141 = arith.constant dense<0.000000e+00> : vector<80x16xf32>
    %202 = tpu.matmul %199, %201, %cst_141 {dimension_numbers = #tpu.dot_dimension_numbers<[1], [0], [0], [1], [0, 0, 1, 1], [], []>} : vector<80x48xbf16>, vector<48x16xbf16>, vector<80x16xf32> -> vector<80x16xf32>
    %203 = arith.addf %197, %202 : vector<80x16xf32>
    %204 = vector.broadcast %148 : vector<1x16xf32> to vector<80x16xf32>
    %205 = arith.addf %203, %204 : vector<80x16xf32>
    %206 = vector.extract_strided_slice %0 {offsets = [10, 0], sizes = [80, 16], strides = [1, 1]} : vector<100x16xf32> to vector<80x16xf32>
    %207 = arith.mulf %205, %206 : vector<80x16xf32>
    %cst_142 = arith.constant dense<0.000000e+00> : vector<16xf32>
    %208 = vector.multi_reduction <add>, %207, %cst_142 [0] : vector<80x16xf32> to vector<16xf32>
    %209 = vector.shape_cast %208 : vector<16xf32> to vector<1x16xf32>
    %210 = arith.addf %149, %209 : vector<1x16xf32>
    %211 = arith.mulf %207, %207 : vector<80x16xf32>
    %cst_143 = arith.constant dense<0.000000e+00> : vector<16xf32>
    %212 = vector.multi_reduction <add>, %211, %cst_143 [0] : vector<80x16xf32> to vector<16xf32>
    %213 = vector.shape_cast %212 : vector<16xf32> to vector<1x16xf32>
    %214 = arith.addf %150, %213 : vector<1x16xf32>
    %215 = arith.truncf %207 : vector<80x16xf32> to vector<80x16xbf16>
    %c0_144 = arith.constant 0 : index
    %c0_145 = arith.constant 0 : index
    %c10 = arith.constant 10 : index
    %c0_146 = arith.constant 0 : index
    %216 = vector.load %arg11[%c0_144, %c0_145, %c10, %c0_146] : memref<1x2x100x16xbf16, #tpu.memory_space<vmem>>, vector<1x1x80x16xbf16>
    %217 = vector.shape_cast %216 : vector<1x1x80x16xbf16> to vector<80x16xbf16>
    %218 = vector.shape_cast %215 : vector<80x16xbf16> to vector<1x1x80x16xbf16>
    tpu.vector_store %arg11[%c0_144, %c0_145, %c10, %c0_146], %218 {strides = array<i32>} : memref<1x2x100x16xbf16, #tpu.memory_space<vmem>>, vector<1x1x80x16xbf16>,
    %cst_147 = arith.constant 0.000000e+00 : bf16
    %219 = vector.broadcast %cst_147 : bf16 to vector<10x16xbf16>
    %c0_148 = arith.constant 0 : index
    %c0_149 = arith.constant 0 : index
    %c0_150 = arith.constant 0 : index
    %c0_151 = arith.constant 0 : index
    %220 = vector.load %arg11[%c0_148, %c0_149, %c0_150, %c0_151] : memref<1x2x100x16xbf16, #tpu.memory_space<vmem>>, vector<1x1x10x16xbf16>
    %221 = vector.shape_cast %220 : vector<1x1x10x16xbf16> to vector<10x16xbf16>
    %222 = vector.shape_cast %219 : vector<10x16xbf16> to vector<1x1x10x16xbf16>
    tpu.vector_store %arg11[%c0_148, %c0_149, %c0_150, %c0_151], %222 {strides = array<i32>} : memref<1x2x100x16xbf16, #tpu.memory_space<vmem>>, vector<1x1x10x16xbf16>,
    %c0_152 = arith.constant 0 : index
    %c0_153 = arith.constant 0 : index
    %c90 = arith.constant 90 : index
    %c0_154 = arith.constant 0 : index
    %223 = vector.load %arg11[%c0_152, %c0_153, %c90, %c0_154] : memref<1x2x100x16xbf16, #tpu.memory_space<vmem>>, vector<1x1x10x16xbf16>
    %224 = vector.shape_cast %223 : vector<1x1x10x16xbf16> to vector<10x16xbf16>
    %225 = vector.shape_cast %219 : vector<10x16xbf16> to vector<1x1x10x16xbf16>
    tpu.vector_store %arg11[%c0_152, %c0_153, %c90, %c0_154], %225 {strides = array<i32>} : memref<1x2x100x16xbf16, #tpu.memory_space<vmem>>, vector<1x1x10x16xbf16>,
    %c1_155 = arith.constant 1 : index
    %c7_156 = arith.constant 7 : index
    %c0_157 = arith.constant 0 : index
    %226 = vector.load %arg14[%c1_155, %c7_156, %c0_157] : memref<4x96x48xbf16, #tpu.memory_space<vmem>>, vector<1x80x48xbf16>
    %227 = vector.shape_cast %226 : vector<1x80x48xbf16> to vector<80x48xbf16>
    %c0_158 = arith.constant 0 : index
    %c0_159 = arith.constant 0 : index
    %c0_160 = arith.constant 0 : index
    %228 = vector.load %arg8[%c0_158, %c0_159, %c0_160] : memref<9x48x16xbf16, #tpu.memory_space<vmem>>, vector<1x48x16xbf16>
    %229 = vector.shape_cast %228 : vector<1x48x16xbf16> to vector<48x16xbf16>
    %cst_161 = arith.constant dense<0.000000e+00> : vector<80x16xf32>
    %230 = tpu.matmul %227, %229, %cst_161 {dimension_numbers = #tpu.dot_dimension_numbers<[1], [0], [0], [1], [0, 0, 1, 1], [], []>} : vector<80x48xbf16>, vector<48x16xbf16>, vector<80x16xf32> -> vector<80x16xf32>
    %c1_162 = arith.constant 1 : index
    %c8_163 = arith.constant 8 : index
    %c0_164 = arith.constant 0 : index
    %231 = vector.load %arg14[%c1_162, %c8_163, %c0_164] : memref<4x96x48xbf16, #tpu.memory_space<vmem>>, vector<1x80x48xbf16>
    %232 = vector.shape_cast %231 : vector<1x80x48xbf16> to vector<80x48xbf16>
    %c1_165 = arith.constant 1 : index
    %c0_166 = arith.constant 0 : index
    %c0_167 = arith.constant 0 : index
    %233 = vector.load %arg8[%c1_165, %c0_166, %c0_167] : memref<9x48x16xbf16, #tpu.memory_space<vmem>>, vector<1x48x16xbf16>
    %234 = vector.shape_cast %233 : vector<1x48x16xbf16> to vector<48x16xbf16>
    %cst_168 = arith.constant dense<0.000000e+00> : vector<80x16xf32>
    %235 = tpu.matmul %232, %234, %cst_168 {dimension_numbers = #tpu.dot_dimension_numbers<[1], [0], [0], [1], [0, 0, 1, 1], [], []>} : vector<80x48xbf16>, vector<48x16xbf16>, vector<80x16xf32> -> vector<80x16xf32>
    %236 = arith.addf %230, %235 : vector<80x16xf32>
    %c1_169 = arith.constant 1 : index
    %c9_170 = arith.constant 9 : index
    %c0_171 = arith.constant 0 : index
    %237 = vector.load %arg14[%c1_169, %c9_170, %c0_171] : memref<4x96x48xbf16, #tpu.memory_space<vmem>>, vector<1x80x48xbf16>
    %238 = vector.shape_cast %237 : vector<1x80x48xbf16> to vector<80x48xbf16>
    %c2_172 = arith.constant 2 : index
    %c0_173 = arith.constant 0 : index
    %c0_174 = arith.constant 0 : index
    %239 = vector.load %arg8[%c2_172, %c0_173, %c0_174] : memref<9x48x16xbf16, #tpu.memory_space<vmem>>, vector<1x48x16xbf16>
    %240 = vector.shape_cast %239 : vector<1x48x16xbf16> to vector<48x16xbf16>
    %cst_175 = arith.constant dense<0.000000e+00> : vector<80x16xf32>
    %241 = tpu.matmul %238, %240, %cst_175 {dimension_numbers = #tpu.dot_dimension_numbers<[1], [0], [0], [1], [0, 0, 1, 1], [], []>} : vector<80x48xbf16>, vector<48x16xbf16>, vector<80x16xf32> -> vector<80x16xf32>
    %242 = arith.addf %236, %241 : vector<80x16xf32>
    %c2_176 = arith.constant 2 : index
    %c7_177 = arith.constant 7 : index
    %c0_178 = arith.constant 0 : index
    %243 = vector.load %arg14[%c2_176, %c7_177, %c0_178] : memref<4x96x48xbf16, #tpu.memory_space<vmem>>, vector<1x80x48xbf16>
    %244 = vector.shape_cast %243 : vector<1x80x48xbf16> to vector<80x48xbf16>
    %c3_179 = arith.constant 3 : index
    %c0_180 = arith.constant 0 : index
    %c0_181 = arith.constant 0 : index
    %245 = vector.load %arg8[%c3_179, %c0_180, %c0_181] : memref<9x48x16xbf16, #tpu.memory_space<vmem>>, vector<1x48x16xbf16>
    %246 = vector.shape_cast %245 : vector<1x48x16xbf16> to vector<48x16xbf16>
    %cst_182 = arith.constant dense<0.000000e+00> : vector<80x16xf32>
    %247 = tpu.matmul %244, %246, %cst_182 {dimension_numbers = #tpu.dot_dimension_numbers<[1], [0], [0], [1], [0, 0, 1, 1], [], []>} : vector<80x48xbf16>, vector<48x16xbf16>, vector<80x16xf32> -> vector<80x16xf32>
    %248 = arith.addf %242, %247 : vector<80x16xf32>
    %c2_183 = arith.constant 2 : index
    %c8_184 = arith.constant 8 : index
    %c0_185 = arith.constant 0 : index
    %249 = vector.load %arg14[%c2_183, %c8_184, %c0_185] : memref<4x96x48xbf16, #tpu.memory_space<vmem>>, vector<1x80x48xbf16>
    %250 = vector.shape_cast %249 : vector<1x80x48xbf16> to vector<80x48xbf16>
    %c4_186 = arith.constant 4 : index
    %c0_187 = arith.constant 0 : index
    %c0_188 = arith.constant 0 : index
    %251 = vector.load %arg8[%c4_186, %c0_187, %c0_188] : memref<9x48x16xbf16, #tpu.memory_space<vmem>>, vector<1x48x16xbf16>
    %252 = vector.shape_cast %251 : vector<1x48x16xbf16> to vector<48x16xbf16>
    %cst_189 = arith.constant dense<0.000000e+00> : vector<80x16xf32>
    %253 = tpu.matmul %250, %252, %cst_189 {dimension_numbers = #tpu.dot_dimension_numbers<[1], [0], [0], [1], [0, 0, 1, 1], [], []>} : vector<80x48xbf16>, vector<48x16xbf16>, vector<80x16xf32> -> vector<80x16xf32>
    %254 = arith.addf %248, %253 : vector<80x16xf32>
    %c2_190 = arith.constant 2 : index
    %c9_191 = arith.constant 9 : index
    %c0_192 = arith.constant 0 : index
    %255 = vector.load %arg14[%c2_190, %c9_191, %c0_192] : memref<4x96x48xbf16, #tpu.memory_space<vmem>>, vector<1x80x48xbf16>
    %256 = vector.shape_cast %255 : vector<1x80x48xbf16> to vector<80x48xbf16>
    %c5_193 = arith.constant 5 : index
    %c0_194 = arith.constant 0 : index
    %c0_195 = arith.constant 0 : index
    %257 = vector.load %arg8[%c5_193, %c0_194, %c0_195] : memref<9x48x16xbf16, #tpu.memory_space<vmem>>, vector<1x48x16xbf16>
    %258 = vector.shape_cast %257 : vector<1x48x16xbf16> to vector<48x16xbf16>
    %cst_196 = arith.constant dense<0.000000e+00> : vector<80x16xf32>
    %259 = tpu.matmul %256, %258, %cst_196 {dimension_numbers = #tpu.dot_dimension_numbers<[1], [0], [0], [1], [0, 0, 1, 1], [], []>} : vector<80x48xbf16>, vector<48x16xbf16>, vector<80x16xf32> -> vector<80x16xf32>
    %260 = arith.addf %254, %259 : vector<80x16xf32>
    %c3_197 = arith.constant 3 : index
    %c7_198 = arith.constant 7 : index
    %c0_199 = arith.constant 0 : index
    %261 = vector.load %arg14[%c3_197, %c7_198, %c0_199] : memref<4x96x48xbf16, #tpu.memory_space<vmem>>, vector<1x80x48xbf16>
    %262 = vector.shape_cast %261 : vector<1x80x48xbf16> to vector<80x48xbf16>
    %c6_200 = arith.constant 6 : index
    %c0_201 = arith.constant 0 : index
    %c0_202 = arith.constant 0 : index
    %263 = vector.load %arg8[%c6_200, %c0_201, %c0_202] : memref<9x48x16xbf16, #tpu.memory_space<vmem>>, vector<1x48x16xbf16>
    %264 = vector.shape_cast %263 : vector<1x48x16xbf16> to vector<48x16xbf16>
    %cst_203 = arith.constant dense<0.000000e+00> : vector<80x16xf32>
    %265 = tpu.matmul %262, %264, %cst_203 {dimension_numbers = #tpu.dot_dimension_numbers<[1], [0], [0], [1], [0, 0, 1, 1], [], []>} : vector<80x48xbf16>, vector<48x16xbf16>, vector<80x16xf32> -> vector<80x16xf32>
    %266 = arith.addf %260, %265 : vector<80x16xf32>
    %c3_204 = arith.constant 3 : index
    %c8_205 = arith.constant 8 : index
    %c0_206 = arith.constant 0 : index
    %267 = vector.load %arg14[%c3_204, %c8_205, %c0_206] : memref<4x96x48xbf16, #tpu.memory_space<vmem>>, vector<1x80x48xbf16>
    %268 = vector.shape_cast %267 : vector<1x80x48xbf16> to vector<80x48xbf16>
    %c7_207 = arith.constant 7 : index
    %c0_208 = arith.constant 0 : index
    %c0_209 = arith.constant 0 : index
    %269 = vector.load %arg8[%c7_207, %c0_208, %c0_209] : memref<9x48x16xbf16, #tpu.memory_space<vmem>>, vector<1x48x16xbf16>
    %270 = vector.shape_cast %269 : vector<1x48x16xbf16> to vector<48x16xbf16>
    %cst_210 = arith.constant dense<0.000000e+00> : vector<80x16xf32>
    %271 = tpu.matmul %268, %270, %cst_210 {dimension_numbers = #tpu.dot_dimension_numbers<[1], [0], [0], [1], [0, 0, 1, 1], [], []>} : vector<80x48xbf16>, vector<48x16xbf16>, vector<80x16xf32> -> vector<80x16xf32>
    %272 = arith.addf %266, %271 : vector<80x16xf32>
    %c3_211 = arith.constant 3 : index
    %c9_212 = arith.constant 9 : index
    %c0_213 = arith.constant 0 : index
    %273 = vector.load %arg14[%c3_211, %c9_212, %c0_213] : memref<4x96x48xbf16, #tpu.memory_space<vmem>>, vector<1x80x48xbf16>
    %274 = vector.shape_cast %273 : vector<1x80x48xbf16> to vector<80x48xbf16>
    %c8_214 = arith.constant 8 : index
    %c0_215 = arith.constant 0 : index
    %c0_216 = arith.constant 0 : index
    %275 = vector.load %arg8[%c8_214, %c0_215, %c0_216] : memref<9x48x16xbf16, #tpu.memory_space<vmem>>, vector<1x48x16xbf16>
    %276 = vector.shape_cast %275 : vector<1x48x16xbf16> to vector<48x16xbf16>
    %cst_217 = arith.constant dense<0.000000e+00> : vector<80x16xf32>
    %277 = tpu.matmul %274, %276, %cst_217 {dimension_numbers = #tpu.dot_dimension_numbers<[1], [0], [0], [1], [0, 0, 1, 1], [], []>} : vector<80x48xbf16>, vector<48x16xbf16>, vector<80x16xf32> -> vector<80x16xf32>
    %278 = arith.addf %272, %277 : vector<80x16xf32>
    %279 = vector.broadcast %148 : vector<1x16xf32> to vector<80x16xf32>
    %280 = arith.addf %278, %279 : vector<80x16xf32>
    %281 = vector.extract_strided_slice %0 {offsets = [10, 0], sizes = [80, 16], strides = [1, 1]} : vector<100x16xf32> to vector<80x16xf32>
    %282 = arith.mulf %280, %281 : vector<80x16xf32>
    %cst_218 = arith.constant dense<0.000000e+00> : vector<16xf32>
    %283 = vector.multi_reduction <add>, %282, %cst_218 [0] : vector<80x16xf32> to vector<16xf32>
    %284 = vector.shape_cast %283 : vector<16xf32> to vector<1x16xf32>
    %285 = arith.addf %210, %284 : vector<1x16xf32>
    %286 = arith.mulf %282, %282 : vector<80x16xf32>
    %cst_219 = arith.constant dense<0.000000e+00> : vector<16xf32>
    %287 = vector.multi_reduction <add>, %286, %cst_219 [0] : vector<80x16xf32> to vector<16xf32>
    %288 = vector.shape_cast %287 : vector<16xf32> to vector<1x16xf32>
    %289 = arith.addf %214, %288 : vector<1x16xf32>
    %290 = arith.truncf %282 : vector<80x16xf32> to vector<80x16xbf16>
    %c0_220 = arith.constant 0 : index
    %c1_221 = arith.constant 1 : index
    %c10_222 = arith.constant 10 : index
    %c0_223 = arith.constant 0 : index
    %291 = vector.load %arg11[%c0_220, %c1_221, %c10_222, %c0_223] : memref<1x2x100x16xbf16, #tpu.memory_space<vmem>>, vector<1x1x80x16xbf16>
    %292 = vector.shape_cast %291 : vector<1x1x80x16xbf16> to vector<80x16xbf16>
    %293 = vector.shape_cast %290 : vector<80x16xbf16> to vector<1x1x80x16xbf16>
    tpu.vector_store %arg11[%c0_220, %c1_221, %c10_222, %c0_223], %293 {strides = array<i32>} : memref<1x2x100x16xbf16, #tpu.memory_space<vmem>>, vector<1x1x80x16xbf16>,
    %cst_224 = arith.constant 0.000000e+00 : bf16
    %294 = vector.broadcast %cst_224 : bf16 to vector<10x16xbf16>
    %c0_225 = arith.constant 0 : index
    %c1_226 = arith.constant 1 : index
    %c0_227 = arith.constant 0 : index
    %c0_228 = arith.constant 0 : index
    %295 = vector.load %arg11[%c0_225, %c1_226, %c0_227, %c0_228] : memref<1x2x100x16xbf16, #tpu.memory_space<vmem>>, vector<1x1x10x16xbf16>
    %296 = vector.shape_cast %295 : vector<1x1x10x16xbf16> to vector<10x16xbf16>
    %297 = vector.shape_cast %294 : vector<10x16xbf16> to vector<1x1x10x16xbf16>
    tpu.vector_store %arg11[%c0_225, %c1_226, %c0_227, %c0_228], %297 {strides = array<i32>} : memref<1x2x100x16xbf16, #tpu.memory_space<vmem>>, vector<1x1x10x16xbf16>,
    %c0_229 = arith.constant 0 : index
    %c1_230 = arith.constant 1 : index
    %c90_231 = arith.constant 90 : index
    %c0_232 = arith.constant 0 : index
    %298 = vector.load %arg11[%c0_229, %c1_230, %c90_231, %c0_232] : memref<1x2x100x16xbf16, #tpu.memory_space<vmem>>, vector<1x1x10x16xbf16>
    %299 = vector.shape_cast %298 : vector<1x1x10x16xbf16> to vector<10x16xbf16>
    %300 = vector.shape_cast %294 : vector<10x16xbf16> to vector<1x1x10x16xbf16>
    tpu.vector_store %arg11[%c0_229, %c1_230, %c90_231, %c0_232], %300 {strides = array<i32>} : memref<1x2x100x16xbf16, #tpu.memory_space<vmem>>, vector<1x1x10x16xbf16>,
    %c0_233 = arith.constant 0 : index
    %c0_234 = arith.constant 0 : index
    %301 = vector.load %arg10[%c0_233, %c0_234] : memref<16x4xf32, #tpu.memory_space<vmem>>, vector<16x4xf32>
    %cst_235 = arith.constant dense<0.000000e+00> : vector<1x4xf32>
    %302 = tpu.matmul %285, %301, %cst_235 {dimension_numbers = #tpu.dot_dimension_numbers<[1], [0], [0], [1], [0, 0, 1, 1], [], []>} : vector<1x16xf32>, vector<16x4xf32>, vector<1x4xf32> -> vector<1x4xf32>
    %c0_236 = arith.constant 0 : index
    %c0_237 = arith.constant 0 : index
    %c0_238 = arith.constant 0 : index
    %c0_239 = arith.constant 0 : index
    %303 = vector.load %arg12[%c0_236, %c0_237, %c0_238, %c0_239] : memref<1x1x1x4xf32, #tpu.memory_space<vmem>>, vector<1x1x1x4xf32>
    %304 = vector.shape_cast %303 : vector<1x1x1x4xf32> to vector<1x4xf32>
    %305 = vector.shape_cast %302 : vector<1x4xf32> to vector<1x1x1x4xf32>
    tpu.vector_store %arg12[%c0_236, %c0_237, %c0_238, %c0_239], %305 {strides = array<i32>} : memref<1x1x1x4xf32, #tpu.memory_space<vmem>>, vector<1x1x1x4xf32>,
    %c0_240 = arith.constant 0 : index
    %c0_241 = arith.constant 0 : index
    %306 = vector.load %arg10[%c0_240, %c0_241] : memref<16x4xf32, #tpu.memory_space<vmem>>, vector<16x4xf32>
    %cst_242 = arith.constant dense<0.000000e+00> : vector<1x4xf32>
    %307 = tpu.matmul %289, %306, %cst_242 {dimension_numbers = #tpu.dot_dimension_numbers<[1], [0], [0], [1], [0, 0, 1, 1], [], []>} : vector<1x16xf32>, vector<16x4xf32>, vector<1x4xf32> -> vector<1x4xf32>
    %c0_243 = arith.constant 0 : index
    %c0_244 = arith.constant 0 : index
    %c0_245 = arith.constant 0 : index
    %c0_246 = arith.constant 0 : index
    %308 = vector.load %arg13[%c0_243, %c0_244, %c0_245, %c0_246] : memref<1x1x1x4xf32, #tpu.memory_space<vmem>>, vector<1x1x1x4xf32>
    %309 = vector.shape_cast %308 : vector<1x1x1x4xf32> to vector<1x4xf32>
    %310 = vector.shape_cast %307 : vector<1x4xf32> to vector<1x1x1x4xf32>
    tpu.vector_store %arg13[%c0_243, %c0_244, %c0_245, %c0_246], %310 {strides = array<i32>} : memref<1x1x1x4xf32, #tpu.memory_space<vmem>>, vector<1x1x1x4xf32>,
    return
  }
  func.func @transform_0(%arg0: i32, %arg1: i32) -> (i32, i32, i32, i32) {
    %c2_i32 = arith.constant 2 : i32
    %0 = arith.muli %arg1, %c2_i32 : i32
    %c1_i32 = arith.constant 1 : i32
    %1 = arith.subi %0, %c1_i32 : i32
    %c0_i32 = arith.constant 0 : i32
    %2 = arith.maxsi %1, %c0_i32 : i32
    %c0_i32_0 = arith.constant 0 : i32
    %c0_i32_1 = arith.constant 0 : i32
    %c0_i32_2 = arith.constant 0 : i32
    return %arg0, %2, %c0_i32_0, %c0_i32_1 : i32, i32, i32, i32
  }
  func.func @transform_1(%arg0: i32, %arg1: i32) -> (i32, i32, i32, i32) {
    %c0_i32 = arith.constant 0 : i32
    %c0_i32_0 = arith.constant 0 : i32
    %c0_i32_1 = arith.constant 0 : i32
    return %arg0, %arg1, %c0_i32, %c0_i32_0 : i32, i32, i32, i32
  }
  func.func @transform_2(%arg0: i32, %arg1: i32) -> (i32, i32, i32, i32) {
    %c2_i32 = arith.constant 2 : i32
    %0 = arith.muli %arg1, %c2_i32 : i32
    %c2_i32_0 = arith.constant 2 : i32
    %1 = arith.addi %0, %c2_i32_0 : i32
    %c3_i32 = arith.constant 3 : i32
    %2 = arith.minsi %1, %c3_i32 : i32
    %c0_i32 = arith.constant 0 : i32
    %c0_i32_1 = arith.constant 0 : i32
    %c0_i32_2 = arith.constant 0 : i32
    return %arg0, %2, %c0_i32, %c0_i32_1 : i32, i32, i32, i32
  }
  func.func @transform_3(%arg0: i32, %arg1: i32) -> (i32, i32) {
    %c0_i32 = arith.constant 0 : i32
    %c0_i32_0 = arith.constant 0 : i32
    %c0_i32_1 = arith.constant 0 : i32
    return %c0_i32, %c0_i32_0 : i32, i32
  }
  func.func @transform_4(%arg0: i32, %arg1: i32) -> (i32, i32, i32) {
    %c0_i32 = arith.constant 0 : i32
    %c0_i32_0 = arith.constant 0 : i32
    %c0_i32_1 = arith.constant 0 : i32
    return %arg0, %c0_i32, %c0_i32_0 : i32, i32, i32
  }
  func.func @transform_5(%arg0: i32, %arg1: i32) -> (i32, i32, i32) {
    %c0_i32 = arith.constant 0 : i32
    %c0_i32_0 = arith.constant 0 : i32
    %c0_i32_1 = arith.constant 0 : i32
    return %arg0, %c0_i32, %c0_i32_0 : i32, i32, i32
  }
  func.func @transform_6(%arg0: i32, %arg1: i32) -> (i32, i32, i32) {
    %c0_i32 = arith.constant 0 : i32
    %c0_i32_0 = arith.constant 0 : i32
    %c0_i32_1 = arith.constant 0 : i32
    %c0_i32_2 = arith.constant 0 : i32
    return %c0_i32, %c0_i32_0, %c0_i32_1 : i32, i32, i32
  }
  func.func @transform_7(%arg0: i32, %arg1: i32) -> (i32, i32) {
    %c0_i32 = arith.constant 0 : i32
    %c0_i32_0 = arith.constant 0 : i32
    %c0_i32_1 = arith.constant 0 : i32
    return %c0_i32, %c0_i32_0 : i32, i32
  }
  func.func @transform_8(%arg0: i32, %arg1: i32) -> (i32, i32) {
    %c0_i32 = arith.constant 0 : i32
    %c0_i32_0 = arith.constant 0 : i32
    %c0_i32_1 = arith.constant 0 : i32
    return %c0_i32, %c0_i32_0 : i32, i32
  }
  func.func @transform_9(%arg0: i32, %arg1: i32) -> (i32, i32, i32, i32) {
    %c0_i32 = arith.constant 0 : i32
    %c0_i32_0 = arith.constant 0 : i32
    %c0_i32_1 = arith.constant 0 : i32
    return %arg0, %arg1, %c0_i32, %c0_i32_0 : i32, i32, i32, i32
  }
  func.func @transform_10(%arg0: i32, %arg1: i32) -> (i32, i32, i32, i32) {
    %c0_i32 = arith.constant 0 : i32
    %c0_i32_0 = arith.constant 0 : i32
    %c0_i32_1 = arith.constant 0 : i32
    return %arg0, %arg1, %c0_i32, %c0_i32_0 : i32, i32, i32, i32
  }
  func.func @transform_11(%arg0: i32, %arg1: i32) -> (i32, i32, i32, i32) {
    %c0_i32 = arith.constant 0 : i32
    %c0_i32_0 = arith.constant 0 : i32
    %c0_i32_1 = arith.constant 0 : i32
    return %arg0, %arg1, %c0_i32, %c0_i32_0 : i32, i32, i32, i32
  }
}

module attributes {stable_mosaic.version = 11 : i64} {
  func.func @kernel(%arg0: i32, %arg1: i32, %arg2: memref<1x1x100x16xbf16, #tpu.memory_space<vmem>>, %arg3: memref<1x2x100x16xbf16, #tpu.memory_space<vmem>>, %arg4: memref<1x1x100x16xbf16, #tpu.memory_space<vmem>>, %arg5: memref<1x2x100x16xf32, #tpu.memory_space<vmem>>, %arg6: memref<100x16xf32, #tpu.memory_space<vmem>>, %arg7: memref<1x1x16xf32, #tpu.memory_space<vmem>>, %arg8: memref<1x1x16xf32, #tpu.memory_space<vmem>>, %arg9: memref<9x48x16xbf16, #tpu.memory_space<vmem>>, %arg10: memref<1x16xf32, #tpu.memory_space<vmem>>, %arg11: memref<1x2x100x16xf32, #tpu.memory_space<vmem>>, %arg12: memref<4x96x48xbf16, #tpu.memory_space<vmem>>) attributes {dimension_semantics = [#tpu.dimension_semantics<parallel>, #tpu.dimension_semantics<parallel>], iteration_bounds = array<i64: 2, 2>, scalar_prefetch = 0 : i64, scratch_operands = 1 : i64, tpu.core_type = #tpu.core_type<tc>, window_params = [{transform_indices = @transform_0, window_bounds = array<i64: 1, 1, 100, 16>}, {transform_indices = @transform_1, window_bounds = array<i64: 1, 2, 100, 16>}, {transform_indices = @transform_2, window_bounds = array<i64: 1, 1, 100, 16>}, {transform_indices = @transform_3, window_bounds = array<i64: 1, 2, 100, 16>}, {pipeline_mode = #tpu.pipeline_mode<synchronous>, transform_indices = @transform_4, window_bounds = array<i64: 100, 16>}, {transform_indices = @transform_5, window_bounds = array<i64: 1, 1, 16>}, {transform_indices = @transform_6, window_bounds = array<i64: 1, 1, 16>}, {pipeline_mode = #tpu.pipeline_mode<synchronous>, transform_indices = @transform_7, window_bounds = array<i64: 9, 48, 16>}, {pipeline_mode = #tpu.pipeline_mode<synchronous>, transform_indices = @transform_8, window_bounds = array<i64: 1, 16>}, {transform_indices = @transform_9, window_bounds = array<i64: 1, 2, 100, 16>}]} {
    %c0 = arith.constant 0 : index
    %c0_0 = arith.constant 0 : index
    %0 = vector.load %arg6[%c0, %c0_0] : memref<100x16xf32, #tpu.memory_space<vmem>>, vector<100x16xf32>
    %c0_1 = arith.constant 0 : index
    %c0_2 = arith.constant 0 : index
    %c0_3 = arith.constant 0 : index
    %1 = vector.load %arg7[%c0_1, %c0_2, %c0_3] : memref<1x1x16xf32, #tpu.memory_space<vmem>>, vector<1x1x16xf32>
    %2 = vector.shape_cast %1 : vector<1x1x16xf32> to vector<1x16xf32>
    %c0_4 = arith.constant 0 : index
    %c0_5 = arith.constant 0 : index
    %c0_6 = arith.constant 0 : index
    %3 = vector.load %arg8[%c0_4, %c0_5, %c0_6] : memref<1x1x16xf32, #tpu.memory_space<vmem>>, vector<1x1x16xf32>
    %4 = vector.shape_cast %3 : vector<1x1x16xf32> to vector<1x16xf32>
    %cst = arith.constant 0.000000e+00 : bf16
    %5 = vector.broadcast %cst : bf16 to vector<8x48xbf16>
    %c0_7 = arith.constant 0 : index
    %c0_8 = arith.constant 0 : index
    %c0_9 = arith.constant 0 : index
    %c0_10 = arith.constant 0 : index
    %6 = vector.load %arg2[%c0_7, %c0_8, %c0_9, %c0_10] : memref<1x1x100x16xbf16, #tpu.memory_space<vmem>>, vector<1x1x100x16xbf16>
    %7 = vector.shape_cast %6 : vector<1x1x100x16xbf16> to vector<100x16xbf16>
    %c0_i32 = arith.constant 0 : i32
    %8 = arith.cmpi sgt, %arg1, %c0_i32 : i32
    %9 = arith.extui %8 : i1 to i32
    %10 = arith.sitofp %9 : i32 to f32
    %11 = vector.broadcast %10 : f32 to vector<1x16xf32>
    %12 = arith.mulf %2, %11 : vector<1x16xf32>
    %13 = vector.broadcast %10 : f32 to vector<1x16xf32>
    %14 = arith.mulf %4, %13 : vector<1x16xf32>
    %15 = arith.extf %7 : vector<100x16xbf16> to vector<100x16xf32>
    %16 = vector.broadcast %12 : vector<1x16xf32> to vector<100x16xf32>
    %17 = arith.mulf %15, %16 : vector<100x16xf32>
    %18 = vector.broadcast %14 : vector<1x16xf32> to vector<100x16xf32>
    %19 = arith.addf %17, %18 : vector<100x16xf32>
    %20 = arith.negf %19 : vector<100x16xf32>
    %21 = math.exp %20 : vector<100x16xf32>
    %cst_11 = arith.constant 1.000000e+00 : f32
    %22 = vector.broadcast %cst_11 : f32 to vector<100x16xf32>
    %23 = arith.addf %22, %21 : vector<100x16xf32>
    %24 = arith.divf %22, %23 : vector<100x16xf32>
    %25 = arith.mulf %19, %24 : vector<100x16xf32>
    %26 = arith.mulf %25, %0 : vector<100x16xf32>
    %27 = arith.truncf %26 : vector<100x16xf32> to vector<100x16xbf16>
    %c0_12 = arith.constant 0 : index
    %c0_13 = arith.constant 0 : index
    %c0_14 = arith.constant 0 : index
    %28 = vector.load %arg12[%c0_12, %c0_13, %c0_14] : memref<4x96x48xbf16, #tpu.memory_space<vmem>>, vector<1x8x48xbf16>
    %29 = vector.shape_cast %28 : vector<1x8x48xbf16> to vector<8x48xbf16>
    %30 = vector.shape_cast %5 : vector<8x48xbf16> to vector<1x8x48xbf16>
    tpu.vector_store %arg12[%c0_12, %c0_13, %c0_14], %30 {strides = array<i32>} : memref<4x96x48xbf16, #tpu.memory_space<vmem>>, vector<1x8x48xbf16>,
    %c0_15 = arith.constant 0 : index
    %c88 = arith.constant 88 : index
    %c0_16 = arith.constant 0 : index
    %31 = vector.load %arg12[%c0_15, %c88, %c0_16] : memref<4x96x48xbf16, #tpu.memory_space<vmem>>, vector<1x8x48xbf16>
    %32 = vector.shape_cast %31 : vector<1x8x48xbf16> to vector<8x48xbf16>
    %33 = vector.shape_cast %5 : vector<8x48xbf16> to vector<1x8x48xbf16>
    tpu.vector_store %arg12[%c0_15, %c88, %c0_16], %33 {strides = array<i32>} : memref<4x96x48xbf16, #tpu.memory_space<vmem>>, vector<1x8x48xbf16>,
    %34 = vector.extract_strided_slice %27 {offsets = [0, 0], sizes = [80, 16], strides = [1, 1]} : vector<100x16xbf16> to vector<80x16xbf16>
    %c0_17 = arith.constant 0 : index
    %c8 = arith.constant 8 : index
    %c0_18 = arith.constant 0 : index
    %35 = vector.load %arg12[%c0_17, %c8, %c0_18] : memref<4x96x48xbf16, #tpu.memory_space<vmem>>, vector<1x80x16xbf16>
    %36 = vector.shape_cast %35 : vector<1x80x16xbf16> to vector<80x16xbf16>
    %37 = vector.shape_cast %34 : vector<80x16xbf16> to vector<1x80x16xbf16>
    tpu.vector_store %arg12[%c0_17, %c8, %c0_18], %37 {strides = array<i32>} : memref<4x96x48xbf16, #tpu.memory_space<vmem>>, vector<1x80x16xbf16>,
    %38 = vector.extract_strided_slice %27 {offsets = [10, 0], sizes = [80, 16], strides = [1, 1]} : vector<100x16xbf16> to vector<80x16xbf16>
    %c0_19 = arith.constant 0 : index
    %c8_20 = arith.constant 8 : index
    %c16 = arith.constant 16 : index
    %39 = vector.load %arg12[%c0_19, %c8_20, %c16] : memref<4x96x48xbf16, #tpu.memory_space<vmem>>, vector<1x80x16xbf16>
    %40 = vector.shape_cast %39 : vector<1x80x16xbf16> to vector<80x16xbf16>
    %41 = vector.shape_cast %38 : vector<80x16xbf16> to vector<1x80x16xbf16>
    tpu.vector_store %arg12[%c0_19, %c8_20, %c16], %41 {strides = array<i32>} : memref<4x96x48xbf16, #tpu.memory_space<vmem>>, vector<1x80x16xbf16>,
    %42 = vector.extract_strided_slice %27 {offsets = [20, 0], sizes = [80, 16], strides = [1, 1]} : vector<100x16xbf16> to vector<80x16xbf16>
    %c0_21 = arith.constant 0 : index
    %c8_22 = arith.constant 8 : index
    %c32 = arith.constant 32 : index
    %43 = vector.load %arg12[%c0_21, %c8_22, %c32] : memref<4x96x48xbf16, #tpu.memory_space<vmem>>, vector<1x80x16xbf16>
    %44 = vector.shape_cast %43 : vector<1x80x16xbf16> to vector<80x16xbf16>
    %45 = vector.shape_cast %42 : vector<80x16xbf16> to vector<1x80x16xbf16>
    tpu.vector_store %arg12[%c0_21, %c8_22, %c32], %45 {strides = array<i32>} : memref<4x96x48xbf16, #tpu.memory_space<vmem>>, vector<1x80x16xbf16>,
    %c0_23 = arith.constant 0 : index
    %c0_24 = arith.constant 0 : index
    %c0_25 = arith.constant 0 : index
    %c0_26 = arith.constant 0 : index
    %46 = vector.load %arg3[%c0_23, %c0_24, %c0_25, %c0_26] : memref<1x2x100x16xbf16, #tpu.memory_space<vmem>>, vector<1x1x100x16xbf16>
    %47 = vector.shape_cast %46 : vector<1x1x100x16xbf16> to vector<100x16xbf16>
    %48 = arith.extf %47 : vector<100x16xbf16> to vector<100x16xf32>
    %49 = vector.broadcast %2 : vector<1x16xf32> to vector<100x16xf32>
    %50 = arith.mulf %48, %49 : vector<100x16xf32>
    %51 = vector.broadcast %4 : vector<1x16xf32> to vector<100x16xf32>
    %52 = arith.addf %50, %51 : vector<100x16xf32>
    %53 = arith.negf %52 : vector<100x16xf32>
    %54 = math.exp %53 : vector<100x16xf32>
    %cst_27 = arith.constant 1.000000e+00 : f32
    %55 = vector.broadcast %cst_27 : f32 to vector<100x16xf32>
    %56 = arith.addf %55, %54 : vector<100x16xf32>
    %57 = arith.divf %55, %56 : vector<100x16xf32>
    %58 = arith.mulf %52, %57 : vector<100x16xf32>
    %59 = arith.mulf %58, %0 : vector<100x16xf32>
    %60 = arith.truncf %59 : vector<100x16xf32> to vector<100x16xbf16>
    %c1 = arith.constant 1 : index
    %c0_28 = arith.constant 0 : index
    %c0_29 = arith.constant 0 : index
    %61 = vector.load %arg12[%c1, %c0_28, %c0_29] : memref<4x96x48xbf16, #tpu.memory_space<vmem>>, vector<1x8x48xbf16>
    %62 = vector.shape_cast %61 : vector<1x8x48xbf16> to vector<8x48xbf16>
    %63 = vector.shape_cast %5 : vector<8x48xbf16> to vector<1x8x48xbf16>
    tpu.vector_store %arg12[%c1, %c0_28, %c0_29], %63 {strides = array<i32>} : memref<4x96x48xbf16, #tpu.memory_space<vmem>>, vector<1x8x48xbf16>,
    %c1_30 = arith.constant 1 : index
    %c88_31 = arith.constant 88 : index
    %c0_32 = arith.constant 0 : index
    %64 = vector.load %arg12[%c1_30, %c88_31, %c0_32] : memref<4x96x48xbf16, #tpu.memory_space<vmem>>, vector<1x8x48xbf16>
    %65 = vector.shape_cast %64 : vector<1x8x48xbf16> to vector<8x48xbf16>
    %66 = vector.shape_cast %5 : vector<8x48xbf16> to vector<1x8x48xbf16>
    tpu.vector_store %arg12[%c1_30, %c88_31, %c0_32], %66 {strides = array<i32>} : memref<4x96x48xbf16, #tpu.memory_space<vmem>>, vector<1x8x48xbf16>,
    %67 = vector.extract_strided_slice %60 {offsets = [0, 0], sizes = [80, 16], strides = [1, 1]} : vector<100x16xbf16> to vector<80x16xbf16>
    %c1_33 = arith.constant 1 : index
    %c8_34 = arith.constant 8 : index
    %c0_35 = arith.constant 0 : index
    %68 = vector.load %arg12[%c1_33, %c8_34, %c0_35] : memref<4x96x48xbf16, #tpu.memory_space<vmem>>, vector<1x80x16xbf16>
    %69 = vector.shape_cast %68 : vector<1x80x16xbf16> to vector<80x16xbf16>
    %70 = vector.shape_cast %67 : vector<80x16xbf16> to vector<1x80x16xbf16>
    tpu.vector_store %arg12[%c1_33, %c8_34, %c0_35], %70 {strides = array<i32>} : memref<4x96x48xbf16, #tpu.memory_space<vmem>>, vector<1x80x16xbf16>,
    %71 = vector.extract_strided_slice %60 {offsets = [10, 0], sizes = [80, 16], strides = [1, 1]} : vector<100x16xbf16> to vector<80x16xbf16>
    %c1_36 = arith.constant 1 : index
    %c8_37 = arith.constant 8 : index
    %c16_38 = arith.constant 16 : index
    %72 = vector.load %arg12[%c1_36, %c8_37, %c16_38] : memref<4x96x48xbf16, #tpu.memory_space<vmem>>, vector<1x80x16xbf16>
    %73 = vector.shape_cast %72 : vector<1x80x16xbf16> to vector<80x16xbf16>
    %74 = vector.shape_cast %71 : vector<80x16xbf16> to vector<1x80x16xbf16>
    tpu.vector_store %arg12[%c1_36, %c8_37, %c16_38], %74 {strides = array<i32>} : memref<4x96x48xbf16, #tpu.memory_space<vmem>>, vector<1x80x16xbf16>,
    %75 = vector.extract_strided_slice %60 {offsets = [20, 0], sizes = [80, 16], strides = [1, 1]} : vector<100x16xbf16> to vector<80x16xbf16>
    %c1_39 = arith.constant 1 : index
    %c8_40 = arith.constant 8 : index
    %c32_41 = arith.constant 32 : index
    %76 = vector.load %arg12[%c1_39, %c8_40, %c32_41] : memref<4x96x48xbf16, #tpu.memory_space<vmem>>, vector<1x80x16xbf16>
    %77 = vector.shape_cast %76 : vector<1x80x16xbf16> to vector<80x16xbf16>
    %78 = vector.shape_cast %75 : vector<80x16xbf16> to vector<1x80x16xbf16>
    tpu.vector_store %arg12[%c1_39, %c8_40, %c32_41], %78 {strides = array<i32>} : memref<4x96x48xbf16, #tpu.memory_space<vmem>>, vector<1x80x16xbf16>,
    %c0_42 = arith.constant 0 : index
    %c1_43 = arith.constant 1 : index
    %c0_44 = arith.constant 0 : index
    %c0_45 = arith.constant 0 : index
    %79 = vector.load %arg3[%c0_42, %c1_43, %c0_44, %c0_45] : memref<1x2x100x16xbf16, #tpu.memory_space<vmem>>, vector<1x1x100x16xbf16>
    %80 = vector.shape_cast %79 : vector<1x1x100x16xbf16> to vector<100x16xbf16>
    %81 = arith.extf %80 : vector<100x16xbf16> to vector<100x16xf32>
    %82 = vector.broadcast %2 : vector<1x16xf32> to vector<100x16xf32>
    %83 = arith.mulf %81, %82 : vector<100x16xf32>
    %84 = vector.broadcast %4 : vector<1x16xf32> to vector<100x16xf32>
    %85 = arith.addf %83, %84 : vector<100x16xf32>
    %86 = arith.negf %85 : vector<100x16xf32>
    %87 = math.exp %86 : vector<100x16xf32>
    %cst_46 = arith.constant 1.000000e+00 : f32
    %88 = vector.broadcast %cst_46 : f32 to vector<100x16xf32>
    %89 = arith.addf %88, %87 : vector<100x16xf32>
    %90 = arith.divf %88, %89 : vector<100x16xf32>
    %91 = arith.mulf %85, %90 : vector<100x16xf32>
    %92 = arith.mulf %91, %0 : vector<100x16xf32>
    %93 = arith.truncf %92 : vector<100x16xf32> to vector<100x16xbf16>
    %c2 = arith.constant 2 : index
    %c0_47 = arith.constant 0 : index
    %c0_48 = arith.constant 0 : index
    %94 = vector.load %arg12[%c2, %c0_47, %c0_48] : memref<4x96x48xbf16, #tpu.memory_space<vmem>>, vector<1x8x48xbf16>
    %95 = vector.shape_cast %94 : vector<1x8x48xbf16> to vector<8x48xbf16>
    %96 = vector.shape_cast %5 : vector<8x48xbf16> to vector<1x8x48xbf16>
    tpu.vector_store %arg12[%c2, %c0_47, %c0_48], %96 {strides = array<i32>} : memref<4x96x48xbf16, #tpu.memory_space<vmem>>, vector<1x8x48xbf16>,
    %c2_49 = arith.constant 2 : index
    %c88_50 = arith.constant 88 : index
    %c0_51 = arith.constant 0 : index
    %97 = vector.load %arg12[%c2_49, %c88_50, %c0_51] : memref<4x96x48xbf16, #tpu.memory_space<vmem>>, vector<1x8x48xbf16>
    %98 = vector.shape_cast %97 : vector<1x8x48xbf16> to vector<8x48xbf16>
    %99 = vector.shape_cast %5 : vector<8x48xbf16> to vector<1x8x48xbf16>
    tpu.vector_store %arg12[%c2_49, %c88_50, %c0_51], %99 {strides = array<i32>} : memref<4x96x48xbf16, #tpu.memory_space<vmem>>, vector<1x8x48xbf16>,
    %100 = vector.extract_strided_slice %93 {offsets = [0, 0], sizes = [80, 16], strides = [1, 1]} : vector<100x16xbf16> to vector<80x16xbf16>
    %c2_52 = arith.constant 2 : index
    %c8_53 = arith.constant 8 : index
    %c0_54 = arith.constant 0 : index
    %101 = vector.load %arg12[%c2_52, %c8_53, %c0_54] : memref<4x96x48xbf16, #tpu.memory_space<vmem>>, vector<1x80x16xbf16>
    %102 = vector.shape_cast %101 : vector<1x80x16xbf16> to vector<80x16xbf16>
    %103 = vector.shape_cast %100 : vector<80x16xbf16> to vector<1x80x16xbf16>
    tpu.vector_store %arg12[%c2_52, %c8_53, %c0_54], %103 {strides = array<i32>} : memref<4x96x48xbf16, #tpu.memory_space<vmem>>, vector<1x80x16xbf16>,
    %104 = vector.extract_strided_slice %93 {offsets = [10, 0], sizes = [80, 16], strides = [1, 1]} : vector<100x16xbf16> to vector<80x16xbf16>
    %c2_55 = arith.constant 2 : index
    %c8_56 = arith.constant 8 : index
    %c16_57 = arith.constant 16 : index
    %105 = vector.load %arg12[%c2_55, %c8_56, %c16_57] : memref<4x96x48xbf16, #tpu.memory_space<vmem>>, vector<1x80x16xbf16>
    %106 = vector.shape_cast %105 : vector<1x80x16xbf16> to vector<80x16xbf16>
    %107 = vector.shape_cast %104 : vector<80x16xbf16> to vector<1x80x16xbf16>
    tpu.vector_store %arg12[%c2_55, %c8_56, %c16_57], %107 {strides = array<i32>} : memref<4x96x48xbf16, #tpu.memory_space<vmem>>, vector<1x80x16xbf16>,
    %108 = vector.extract_strided_slice %93 {offsets = [20, 0], sizes = [80, 16], strides = [1, 1]} : vector<100x16xbf16> to vector<80x16xbf16>
    %c2_58 = arith.constant 2 : index
    %c8_59 = arith.constant 8 : index
    %c32_60 = arith.constant 32 : index
    %109 = vector.load %arg12[%c2_58, %c8_59, %c32_60] : memref<4x96x48xbf16, #tpu.memory_space<vmem>>, vector<1x80x16xbf16>
    %110 = vector.shape_cast %109 : vector<1x80x16xbf16> to vector<80x16xbf16>
    %111 = vector.shape_cast %108 : vector<80x16xbf16> to vector<1x80x16xbf16>
    tpu.vector_store %arg12[%c2_58, %c8_59, %c32_60], %111 {strides = array<i32>} : memref<4x96x48xbf16, #tpu.memory_space<vmem>>, vector<1x80x16xbf16>,
    %c0_61 = arith.constant 0 : index
    %c0_62 = arith.constant 0 : index
    %c0_63 = arith.constant 0 : index
    %c0_64 = arith.constant 0 : index
    %112 = vector.load %arg4[%c0_61, %c0_62, %c0_63, %c0_64] : memref<1x1x100x16xbf16, #tpu.memory_space<vmem>>, vector<1x1x100x16xbf16>
    %113 = vector.shape_cast %112 : vector<1x1x100x16xbf16> to vector<100x16xbf16>
    %c1_i32 = arith.constant 1 : i32
    %114 = arith.cmpi slt, %arg1, %c1_i32 : i32
    %115 = arith.extui %114 : i1 to i32
    %116 = arith.sitofp %115 : i32 to f32
    %117 = vector.broadcast %116 : f32 to vector<1x16xf32>
    %118 = arith.mulf %2, %117 : vector<1x16xf32>
    %119 = vector.broadcast %116 : f32 to vector<1x16xf32>
    %120 = arith.mulf %4, %119 : vector<1x16xf32>
    %121 = arith.extf %113 : vector<100x16xbf16> to vector<100x16xf32>
    %122 = vector.broadcast %118 : vector<1x16xf32> to vector<100x16xf32>
    %123 = arith.mulf %121, %122 : vector<100x16xf32>
    %124 = vector.broadcast %120 : vector<1x16xf32> to vector<100x16xf32>
    %125 = arith.addf %123, %124 : vector<100x16xf32>
    %126 = arith.negf %125 : vector<100x16xf32>
    %127 = math.exp %126 : vector<100x16xf32>
    %cst_65 = arith.constant 1.000000e+00 : f32
    %128 = vector.broadcast %cst_65 : f32 to vector<100x16xf32>
    %129 = arith.addf %128, %127 : vector<100x16xf32>
    %130 = arith.divf %128, %129 : vector<100x16xf32>
    %131 = arith.mulf %125, %130 : vector<100x16xf32>
    %132 = arith.mulf %131, %0 : vector<100x16xf32>
    %133 = arith.truncf %132 : vector<100x16xf32> to vector<100x16xbf16>
    %c3 = arith.constant 3 : index
    %c0_66 = arith.constant 0 : index
    %c0_67 = arith.constant 0 : index
    %134 = vector.load %arg12[%c3, %c0_66, %c0_67] : memref<4x96x48xbf16, #tpu.memory_space<vmem>>, vector<1x8x48xbf16>
    %135 = vector.shape_cast %134 : vector<1x8x48xbf16> to vector<8x48xbf16>
    %136 = vector.shape_cast %5 : vector<8x48xbf16> to vector<1x8x48xbf16>
    tpu.vector_store %arg12[%c3, %c0_66, %c0_67], %136 {strides = array<i32>} : memref<4x96x48xbf16, #tpu.memory_space<vmem>>, vector<1x8x48xbf16>,
    %c3_68 = arith.constant 3 : index
    %c88_69 = arith.constant 88 : index
    %c0_70 = arith.constant 0 : index
    %137 = vector.load %arg12[%c3_68, %c88_69, %c0_70] : memref<4x96x48xbf16, #tpu.memory_space<vmem>>, vector<1x8x48xbf16>
    %138 = vector.shape_cast %137 : vector<1x8x48xbf16> to vector<8x48xbf16>
    %139 = vector.shape_cast %5 : vector<8x48xbf16> to vector<1x8x48xbf16>
    tpu.vector_store %arg12[%c3_68, %c88_69, %c0_70], %139 {strides = array<i32>} : memref<4x96x48xbf16, #tpu.memory_space<vmem>>, vector<1x8x48xbf16>,
    %140 = vector.extract_strided_slice %133 {offsets = [0, 0], sizes = [80, 16], strides = [1, 1]} : vector<100x16xbf16> to vector<80x16xbf16>
    %c3_71 = arith.constant 3 : index
    %c8_72 = arith.constant 8 : index
    %c0_73 = arith.constant 0 : index
    %141 = vector.load %arg12[%c3_71, %c8_72, %c0_73] : memref<4x96x48xbf16, #tpu.memory_space<vmem>>, vector<1x80x16xbf16>
    %142 = vector.shape_cast %141 : vector<1x80x16xbf16> to vector<80x16xbf16>
    %143 = vector.shape_cast %140 : vector<80x16xbf16> to vector<1x80x16xbf16>
    tpu.vector_store %arg12[%c3_71, %c8_72, %c0_73], %143 {strides = array<i32>} : memref<4x96x48xbf16, #tpu.memory_space<vmem>>, vector<1x80x16xbf16>,
    %144 = vector.extract_strided_slice %133 {offsets = [10, 0], sizes = [80, 16], strides = [1, 1]} : vector<100x16xbf16> to vector<80x16xbf16>
    %c3_74 = arith.constant 3 : index
    %c8_75 = arith.constant 8 : index
    %c16_76 = arith.constant 16 : index
    %145 = vector.load %arg12[%c3_74, %c8_75, %c16_76] : memref<4x96x48xbf16, #tpu.memory_space<vmem>>, vector<1x80x16xbf16>
    %146 = vector.shape_cast %145 : vector<1x80x16xbf16> to vector<80x16xbf16>
    %147 = vector.shape_cast %144 : vector<80x16xbf16> to vector<1x80x16xbf16>
    tpu.vector_store %arg12[%c3_74, %c8_75, %c16_76], %147 {strides = array<i32>} : memref<4x96x48xbf16, #tpu.memory_space<vmem>>, vector<1x80x16xbf16>,
    %148 = vector.extract_strided_slice %133 {offsets = [20, 0], sizes = [80, 16], strides = [1, 1]} : vector<100x16xbf16> to vector<80x16xbf16>
    %c3_77 = arith.constant 3 : index
    %c8_78 = arith.constant 8 : index
    %c32_79 = arith.constant 32 : index
    %149 = vector.load %arg12[%c3_77, %c8_78, %c32_79] : memref<4x96x48xbf16, #tpu.memory_space<vmem>>, vector<1x80x16xbf16>
    %150 = vector.shape_cast %149 : vector<1x80x16xbf16> to vector<80x16xbf16>
    %151 = vector.shape_cast %148 : vector<80x16xbf16> to vector<1x80x16xbf16>
    tpu.vector_store %arg12[%c3_77, %c8_78, %c32_79], %151 {strides = array<i32>} : memref<4x96x48xbf16, #tpu.memory_space<vmem>>, vector<1x80x16xbf16>,
    %c0_80 = arith.constant 0 : index
    %c0_81 = arith.constant 0 : index
    %152 = vector.load %arg10[%c0_80, %c0_81] : memref<1x16xf32, #tpu.memory_space<vmem>>, vector<1x16xf32>
    %c0_82 = arith.constant 0 : index
    %c7 = arith.constant 7 : index
    %c0_83 = arith.constant 0 : index
    %153 = vector.load %arg12[%c0_82, %c7, %c0_83] : memref<4x96x48xbf16, #tpu.memory_space<vmem>>, vector<1x80x48xbf16>
    %154 = vector.shape_cast %153 : vector<1x80x48xbf16> to vector<80x48xbf16>
    %c0_84 = arith.constant 0 : index
    %c0_85 = arith.constant 0 : index
    %c0_86 = arith.constant 0 : index
    %155 = vector.load %arg9[%c0_84, %c0_85, %c0_86] : memref<9x48x16xbf16, #tpu.memory_space<vmem>>, vector<1x48x16xbf16>
    %156 = vector.shape_cast %155 : vector<1x48x16xbf16> to vector<48x16xbf16>
    %cst_87 = arith.constant dense<0.000000e+00> : vector<80x16xf32>
    %157 = tpu.matmul %154, %156, %cst_87 {dimension_numbers = #tpu.dot_dimension_numbers<[1], [0], [0], [1], [0, 0, 1, 1], [], []>} : vector<80x48xbf16>, vector<48x16xbf16>, vector<80x16xf32> -> vector<80x16xf32>
    %c0_88 = arith.constant 0 : index
    %c8_89 = arith.constant 8 : index
    %c0_90 = arith.constant 0 : index
    %158 = vector.load %arg12[%c0_88, %c8_89, %c0_90] : memref<4x96x48xbf16, #tpu.memory_space<vmem>>, vector<1x80x48xbf16>
    %159 = vector.shape_cast %158 : vector<1x80x48xbf16> to vector<80x48xbf16>
    %c1_91 = arith.constant 1 : index
    %c0_92 = arith.constant 0 : index
    %c0_93 = arith.constant 0 : index
    %160 = vector.load %arg9[%c1_91, %c0_92, %c0_93] : memref<9x48x16xbf16, #tpu.memory_space<vmem>>, vector<1x48x16xbf16>
    %161 = vector.shape_cast %160 : vector<1x48x16xbf16> to vector<48x16xbf16>
    %cst_94 = arith.constant dense<0.000000e+00> : vector<80x16xf32>
    %162 = tpu.matmul %159, %161, %cst_94 {dimension_numbers = #tpu.dot_dimension_numbers<[1], [0], [0], [1], [0, 0, 1, 1], [], []>} : vector<80x48xbf16>, vector<48x16xbf16>, vector<80x16xf32> -> vector<80x16xf32>
    %163 = arith.addf %157, %162 : vector<80x16xf32>
    %c0_95 = arith.constant 0 : index
    %c9 = arith.constant 9 : index
    %c0_96 = arith.constant 0 : index
    %164 = vector.load %arg12[%c0_95, %c9, %c0_96] : memref<4x96x48xbf16, #tpu.memory_space<vmem>>, vector<1x80x48xbf16>
    %165 = vector.shape_cast %164 : vector<1x80x48xbf16> to vector<80x48xbf16>
    %c2_97 = arith.constant 2 : index
    %c0_98 = arith.constant 0 : index
    %c0_99 = arith.constant 0 : index
    %166 = vector.load %arg9[%c2_97, %c0_98, %c0_99] : memref<9x48x16xbf16, #tpu.memory_space<vmem>>, vector<1x48x16xbf16>
    %167 = vector.shape_cast %166 : vector<1x48x16xbf16> to vector<48x16xbf16>
    %cst_100 = arith.constant dense<0.000000e+00> : vector<80x16xf32>
    %168 = tpu.matmul %165, %167, %cst_100 {dimension_numbers = #tpu.dot_dimension_numbers<[1], [0], [0], [1], [0, 0, 1, 1], [], []>} : vector<80x48xbf16>, vector<48x16xbf16>, vector<80x16xf32> -> vector<80x16xf32>
    %169 = arith.addf %163, %168 : vector<80x16xf32>
    %c1_101 = arith.constant 1 : index
    %c7_102 = arith.constant 7 : index
    %c0_103 = arith.constant 0 : index
    %170 = vector.load %arg12[%c1_101, %c7_102, %c0_103] : memref<4x96x48xbf16, #tpu.memory_space<vmem>>, vector<1x80x48xbf16>
    %171 = vector.shape_cast %170 : vector<1x80x48xbf16> to vector<80x48xbf16>
    %c3_104 = arith.constant 3 : index
    %c0_105 = arith.constant 0 : index
    %c0_106 = arith.constant 0 : index
    %172 = vector.load %arg9[%c3_104, %c0_105, %c0_106] : memref<9x48x16xbf16, #tpu.memory_space<vmem>>, vector<1x48x16xbf16>
    %173 = vector.shape_cast %172 : vector<1x48x16xbf16> to vector<48x16xbf16>
    %cst_107 = arith.constant dense<0.000000e+00> : vector<80x16xf32>
    %174 = tpu.matmul %171, %173, %cst_107 {dimension_numbers = #tpu.dot_dimension_numbers<[1], [0], [0], [1], [0, 0, 1, 1], [], []>} : vector<80x48xbf16>, vector<48x16xbf16>, vector<80x16xf32> -> vector<80x16xf32>
    %175 = arith.addf %169, %174 : vector<80x16xf32>
    %c1_108 = arith.constant 1 : index
    %c8_109 = arith.constant 8 : index
    %c0_110 = arith.constant 0 : index
    %176 = vector.load %arg12[%c1_108, %c8_109, %c0_110] : memref<4x96x48xbf16, #tpu.memory_space<vmem>>, vector<1x80x48xbf16>
    %177 = vector.shape_cast %176 : vector<1x80x48xbf16> to vector<80x48xbf16>
    %c4 = arith.constant 4 : index
    %c0_111 = arith.constant 0 : index
    %c0_112 = arith.constant 0 : index
    %178 = vector.load %arg9[%c4, %c0_111, %c0_112] : memref<9x48x16xbf16, #tpu.memory_space<vmem>>, vector<1x48x16xbf16>
    %179 = vector.shape_cast %178 : vector<1x48x16xbf16> to vector<48x16xbf16>
    %cst_113 = arith.constant dense<0.000000e+00> : vector<80x16xf32>
    %180 = tpu.matmul %177, %179, %cst_113 {dimension_numbers = #tpu.dot_dimension_numbers<[1], [0], [0], [1], [0, 0, 1, 1], [], []>} : vector<80x48xbf16>, vector<48x16xbf16>, vector<80x16xf32> -> vector<80x16xf32>
    %181 = arith.addf %175, %180 : vector<80x16xf32>
    %c1_114 = arith.constant 1 : index
    %c9_115 = arith.constant 9 : index
    %c0_116 = arith.constant 0 : index
    %182 = vector.load %arg12[%c1_114, %c9_115, %c0_116] : memref<4x96x48xbf16, #tpu.memory_space<vmem>>, vector<1x80x48xbf16>
    %183 = vector.shape_cast %182 : vector<1x80x48xbf16> to vector<80x48xbf16>
    %c5 = arith.constant 5 : index
    %c0_117 = arith.constant 0 : index
    %c0_118 = arith.constant 0 : index
    %184 = vector.load %arg9[%c5, %c0_117, %c0_118] : memref<9x48x16xbf16, #tpu.memory_space<vmem>>, vector<1x48x16xbf16>
    %185 = vector.shape_cast %184 : vector<1x48x16xbf16> to vector<48x16xbf16>
    %cst_119 = arith.constant dense<0.000000e+00> : vector<80x16xf32>
    %186 = tpu.matmul %183, %185, %cst_119 {dimension_numbers = #tpu.dot_dimension_numbers<[1], [0], [0], [1], [0, 0, 1, 1], [], []>} : vector<80x48xbf16>, vector<48x16xbf16>, vector<80x16xf32> -> vector<80x16xf32>
    %187 = arith.addf %181, %186 : vector<80x16xf32>
    %c2_120 = arith.constant 2 : index
    %c7_121 = arith.constant 7 : index
    %c0_122 = arith.constant 0 : index
    %188 = vector.load %arg12[%c2_120, %c7_121, %c0_122] : memref<4x96x48xbf16, #tpu.memory_space<vmem>>, vector<1x80x48xbf16>
    %189 = vector.shape_cast %188 : vector<1x80x48xbf16> to vector<80x48xbf16>
    %c6 = arith.constant 6 : index
    %c0_123 = arith.constant 0 : index
    %c0_124 = arith.constant 0 : index
    %190 = vector.load %arg9[%c6, %c0_123, %c0_124] : memref<9x48x16xbf16, #tpu.memory_space<vmem>>, vector<1x48x16xbf16>
    %191 = vector.shape_cast %190 : vector<1x48x16xbf16> to vector<48x16xbf16>
    %cst_125 = arith.constant dense<0.000000e+00> : vector<80x16xf32>
    %192 = tpu.matmul %189, %191, %cst_125 {dimension_numbers = #tpu.dot_dimension_numbers<[1], [0], [0], [1], [0, 0, 1, 1], [], []>} : vector<80x48xbf16>, vector<48x16xbf16>, vector<80x16xf32> -> vector<80x16xf32>
    %193 = arith.addf %187, %192 : vector<80x16xf32>
    %c2_126 = arith.constant 2 : index
    %c8_127 = arith.constant 8 : index
    %c0_128 = arith.constant 0 : index
    %194 = vector.load %arg12[%c2_126, %c8_127, %c0_128] : memref<4x96x48xbf16, #tpu.memory_space<vmem>>, vector<1x80x48xbf16>
    %195 = vector.shape_cast %194 : vector<1x80x48xbf16> to vector<80x48xbf16>
    %c7_129 = arith.constant 7 : index
    %c0_130 = arith.constant 0 : index
    %c0_131 = arith.constant 0 : index
    %196 = vector.load %arg9[%c7_129, %c0_130, %c0_131] : memref<9x48x16xbf16, #tpu.memory_space<vmem>>, vector<1x48x16xbf16>
    %197 = vector.shape_cast %196 : vector<1x48x16xbf16> to vector<48x16xbf16>
    %cst_132 = arith.constant dense<0.000000e+00> : vector<80x16xf32>
    %198 = tpu.matmul %195, %197, %cst_132 {dimension_numbers = #tpu.dot_dimension_numbers<[1], [0], [0], [1], [0, 0, 1, 1], [], []>} : vector<80x48xbf16>, vector<48x16xbf16>, vector<80x16xf32> -> vector<80x16xf32>
    %199 = arith.addf %193, %198 : vector<80x16xf32>
    %c2_133 = arith.constant 2 : index
    %c9_134 = arith.constant 9 : index
    %c0_135 = arith.constant 0 : index
    %200 = vector.load %arg12[%c2_133, %c9_134, %c0_135] : memref<4x96x48xbf16, #tpu.memory_space<vmem>>, vector<1x80x48xbf16>
    %201 = vector.shape_cast %200 : vector<1x80x48xbf16> to vector<80x48xbf16>
    %c8_136 = arith.constant 8 : index
    %c0_137 = arith.constant 0 : index
    %c0_138 = arith.constant 0 : index
    %202 = vector.load %arg9[%c8_136, %c0_137, %c0_138] : memref<9x48x16xbf16, #tpu.memory_space<vmem>>, vector<1x48x16xbf16>
    %203 = vector.shape_cast %202 : vector<1x48x16xbf16> to vector<48x16xbf16>
    %cst_139 = arith.constant dense<0.000000e+00> : vector<80x16xf32>
    %204 = tpu.matmul %201, %203, %cst_139 {dimension_numbers = #tpu.dot_dimension_numbers<[1], [0], [0], [1], [0, 0, 1, 1], [], []>} : vector<80x48xbf16>, vector<48x16xbf16>, vector<80x16xf32> -> vector<80x16xf32>
    %205 = arith.addf %199, %204 : vector<80x16xf32>
    %206 = vector.broadcast %152 : vector<1x16xf32> to vector<80x16xf32>
    %207 = arith.addf %205, %206 : vector<80x16xf32>
    %208 = vector.extract_strided_slice %0 {offsets = [10, 0], sizes = [80, 16], strides = [1, 1]} : vector<100x16xf32> to vector<80x16xf32>
    %209 = arith.mulf %207, %208 : vector<80x16xf32>
    %c0_140 = arith.constant 0 : index
    %c0_141 = arith.constant 0 : index
    %c10 = arith.constant 10 : index
    %c0_142 = arith.constant 0 : index
    %210 = vector.load %arg5[%c0_140, %c0_141, %c10, %c0_142] : memref<1x2x100x16xf32, #tpu.memory_space<vmem>>, vector<1x1x80x16xf32>
    %211 = vector.shape_cast %210 : vector<1x1x80x16xf32> to vector<80x16xf32>
    %212 = arith.addf %209, %211 : vector<80x16xf32>
    %c0_143 = arith.constant 0 : index
    %c0_144 = arith.constant 0 : index
    %c10_145 = arith.constant 10 : index
    %c0_146 = arith.constant 0 : index
    %213 = vector.load %arg11[%c0_143, %c0_144, %c10_145, %c0_146] : memref<1x2x100x16xf32, #tpu.memory_space<vmem>>, vector<1x1x80x16xf32>
    %214 = vector.shape_cast %213 : vector<1x1x80x16xf32> to vector<80x16xf32>
    %215 = vector.shape_cast %212 : vector<80x16xf32> to vector<1x1x80x16xf32>
    tpu.vector_store %arg11[%c0_143, %c0_144, %c10_145, %c0_146], %215 {strides = array<i32>} : memref<1x2x100x16xf32, #tpu.memory_space<vmem>>, vector<1x1x80x16xf32>,
    %cst_147 = arith.constant 0.000000e+00 : f32
    %216 = vector.broadcast %cst_147 : f32 to vector<10x16xf32>
    %c0_148 = arith.constant 0 : index
    %c0_149 = arith.constant 0 : index
    %c0_150 = arith.constant 0 : index
    %c0_151 = arith.constant 0 : index
    %217 = vector.load %arg11[%c0_148, %c0_149, %c0_150, %c0_151] : memref<1x2x100x16xf32, #tpu.memory_space<vmem>>, vector<1x1x10x16xf32>
    %218 = vector.shape_cast %217 : vector<1x1x10x16xf32> to vector<10x16xf32>
    %219 = vector.shape_cast %216 : vector<10x16xf32> to vector<1x1x10x16xf32>
    tpu.vector_store %arg11[%c0_148, %c0_149, %c0_150, %c0_151], %219 {strides = array<i32>} : memref<1x2x100x16xf32, #tpu.memory_space<vmem>>, vector<1x1x10x16xf32>,
    %c0_152 = arith.constant 0 : index
    %c0_153 = arith.constant 0 : index
    %c90 = arith.constant 90 : index
    %c0_154 = arith.constant 0 : index
    %220 = vector.load %arg11[%c0_152, %c0_153, %c90, %c0_154] : memref<1x2x100x16xf32, #tpu.memory_space<vmem>>, vector<1x1x10x16xf32>
    %221 = vector.shape_cast %220 : vector<1x1x10x16xf32> to vector<10x16xf32>
    %222 = vector.shape_cast %216 : vector<10x16xf32> to vector<1x1x10x16xf32>
    tpu.vector_store %arg11[%c0_152, %c0_153, %c90, %c0_154], %222 {strides = array<i32>} : memref<1x2x100x16xf32, #tpu.memory_space<vmem>>, vector<1x1x10x16xf32>,
    %c1_155 = arith.constant 1 : index
    %c7_156 = arith.constant 7 : index
    %c0_157 = arith.constant 0 : index
    %223 = vector.load %arg12[%c1_155, %c7_156, %c0_157] : memref<4x96x48xbf16, #tpu.memory_space<vmem>>, vector<1x80x48xbf16>
    %224 = vector.shape_cast %223 : vector<1x80x48xbf16> to vector<80x48xbf16>
    %c0_158 = arith.constant 0 : index
    %c0_159 = arith.constant 0 : index
    %c0_160 = arith.constant 0 : index
    %225 = vector.load %arg9[%c0_158, %c0_159, %c0_160] : memref<9x48x16xbf16, #tpu.memory_space<vmem>>, vector<1x48x16xbf16>
    %226 = vector.shape_cast %225 : vector<1x48x16xbf16> to vector<48x16xbf16>
    %cst_161 = arith.constant dense<0.000000e+00> : vector<80x16xf32>
    %227 = tpu.matmul %224, %226, %cst_161 {dimension_numbers = #tpu.dot_dimension_numbers<[1], [0], [0], [1], [0, 0, 1, 1], [], []>} : vector<80x48xbf16>, vector<48x16xbf16>, vector<80x16xf32> -> vector<80x16xf32>
    %c1_162 = arith.constant 1 : index
    %c8_163 = arith.constant 8 : index
    %c0_164 = arith.constant 0 : index
    %228 = vector.load %arg12[%c1_162, %c8_163, %c0_164] : memref<4x96x48xbf16, #tpu.memory_space<vmem>>, vector<1x80x48xbf16>
    %229 = vector.shape_cast %228 : vector<1x80x48xbf16> to vector<80x48xbf16>
    %c1_165 = arith.constant 1 : index
    %c0_166 = arith.constant 0 : index
    %c0_167 = arith.constant 0 : index
    %230 = vector.load %arg9[%c1_165, %c0_166, %c0_167] : memref<9x48x16xbf16, #tpu.memory_space<vmem>>, vector<1x48x16xbf16>
    %231 = vector.shape_cast %230 : vector<1x48x16xbf16> to vector<48x16xbf16>
    %cst_168 = arith.constant dense<0.000000e+00> : vector<80x16xf32>
    %232 = tpu.matmul %229, %231, %cst_168 {dimension_numbers = #tpu.dot_dimension_numbers<[1], [0], [0], [1], [0, 0, 1, 1], [], []>} : vector<80x48xbf16>, vector<48x16xbf16>, vector<80x16xf32> -> vector<80x16xf32>
    %233 = arith.addf %227, %232 : vector<80x16xf32>
    %c1_169 = arith.constant 1 : index
    %c9_170 = arith.constant 9 : index
    %c0_171 = arith.constant 0 : index
    %234 = vector.load %arg12[%c1_169, %c9_170, %c0_171] : memref<4x96x48xbf16, #tpu.memory_space<vmem>>, vector<1x80x48xbf16>
    %235 = vector.shape_cast %234 : vector<1x80x48xbf16> to vector<80x48xbf16>
    %c2_172 = arith.constant 2 : index
    %c0_173 = arith.constant 0 : index
    %c0_174 = arith.constant 0 : index
    %236 = vector.load %arg9[%c2_172, %c0_173, %c0_174] : memref<9x48x16xbf16, #tpu.memory_space<vmem>>, vector<1x48x16xbf16>
    %237 = vector.shape_cast %236 : vector<1x48x16xbf16> to vector<48x16xbf16>
    %cst_175 = arith.constant dense<0.000000e+00> : vector<80x16xf32>
    %238 = tpu.matmul %235, %237, %cst_175 {dimension_numbers = #tpu.dot_dimension_numbers<[1], [0], [0], [1], [0, 0, 1, 1], [], []>} : vector<80x48xbf16>, vector<48x16xbf16>, vector<80x16xf32> -> vector<80x16xf32>
    %239 = arith.addf %233, %238 : vector<80x16xf32>
    %c2_176 = arith.constant 2 : index
    %c7_177 = arith.constant 7 : index
    %c0_178 = arith.constant 0 : index
    %240 = vector.load %arg12[%c2_176, %c7_177, %c0_178] : memref<4x96x48xbf16, #tpu.memory_space<vmem>>, vector<1x80x48xbf16>
    %241 = vector.shape_cast %240 : vector<1x80x48xbf16> to vector<80x48xbf16>
    %c3_179 = arith.constant 3 : index
    %c0_180 = arith.constant 0 : index
    %c0_181 = arith.constant 0 : index
    %242 = vector.load %arg9[%c3_179, %c0_180, %c0_181] : memref<9x48x16xbf16, #tpu.memory_space<vmem>>, vector<1x48x16xbf16>
    %243 = vector.shape_cast %242 : vector<1x48x16xbf16> to vector<48x16xbf16>
    %cst_182 = arith.constant dense<0.000000e+00> : vector<80x16xf32>
    %244 = tpu.matmul %241, %243, %cst_182 {dimension_numbers = #tpu.dot_dimension_numbers<[1], [0], [0], [1], [0, 0, 1, 1], [], []>} : vector<80x48xbf16>, vector<48x16xbf16>, vector<80x16xf32> -> vector<80x16xf32>
    %245 = arith.addf %239, %244 : vector<80x16xf32>
    %c2_183 = arith.constant 2 : index
    %c8_184 = arith.constant 8 : index
    %c0_185 = arith.constant 0 : index
    %246 = vector.load %arg12[%c2_183, %c8_184, %c0_185] : memref<4x96x48xbf16, #tpu.memory_space<vmem>>, vector<1x80x48xbf16>
    %247 = vector.shape_cast %246 : vector<1x80x48xbf16> to vector<80x48xbf16>
    %c4_186 = arith.constant 4 : index
    %c0_187 = arith.constant 0 : index
    %c0_188 = arith.constant 0 : index
    %248 = vector.load %arg9[%c4_186, %c0_187, %c0_188] : memref<9x48x16xbf16, #tpu.memory_space<vmem>>, vector<1x48x16xbf16>
    %249 = vector.shape_cast %248 : vector<1x48x16xbf16> to vector<48x16xbf16>
    %cst_189 = arith.constant dense<0.000000e+00> : vector<80x16xf32>
    %250 = tpu.matmul %247, %249, %cst_189 {dimension_numbers = #tpu.dot_dimension_numbers<[1], [0], [0], [1], [0, 0, 1, 1], [], []>} : vector<80x48xbf16>, vector<48x16xbf16>, vector<80x16xf32> -> vector<80x16xf32>
    %251 = arith.addf %245, %250 : vector<80x16xf32>
    %c2_190 = arith.constant 2 : index
    %c9_191 = arith.constant 9 : index
    %c0_192 = arith.constant 0 : index
    %252 = vector.load %arg12[%c2_190, %c9_191, %c0_192] : memref<4x96x48xbf16, #tpu.memory_space<vmem>>, vector<1x80x48xbf16>
    %253 = vector.shape_cast %252 : vector<1x80x48xbf16> to vector<80x48xbf16>
    %c5_193 = arith.constant 5 : index
    %c0_194 = arith.constant 0 : index
    %c0_195 = arith.constant 0 : index
    %254 = vector.load %arg9[%c5_193, %c0_194, %c0_195] : memref<9x48x16xbf16, #tpu.memory_space<vmem>>, vector<1x48x16xbf16>
    %255 = vector.shape_cast %254 : vector<1x48x16xbf16> to vector<48x16xbf16>
    %cst_196 = arith.constant dense<0.000000e+00> : vector<80x16xf32>
    %256 = tpu.matmul %253, %255, %cst_196 {dimension_numbers = #tpu.dot_dimension_numbers<[1], [0], [0], [1], [0, 0, 1, 1], [], []>} : vector<80x48xbf16>, vector<48x16xbf16>, vector<80x16xf32> -> vector<80x16xf32>
    %257 = arith.addf %251, %256 : vector<80x16xf32>
    %c3_197 = arith.constant 3 : index
    %c7_198 = arith.constant 7 : index
    %c0_199 = arith.constant 0 : index
    %258 = vector.load %arg12[%c3_197, %c7_198, %c0_199] : memref<4x96x48xbf16, #tpu.memory_space<vmem>>, vector<1x80x48xbf16>
    %259 = vector.shape_cast %258 : vector<1x80x48xbf16> to vector<80x48xbf16>
    %c6_200 = arith.constant 6 : index
    %c0_201 = arith.constant 0 : index
    %c0_202 = arith.constant 0 : index
    %260 = vector.load %arg9[%c6_200, %c0_201, %c0_202] : memref<9x48x16xbf16, #tpu.memory_space<vmem>>, vector<1x48x16xbf16>
    %261 = vector.shape_cast %260 : vector<1x48x16xbf16> to vector<48x16xbf16>
    %cst_203 = arith.constant dense<0.000000e+00> : vector<80x16xf32>
    %262 = tpu.matmul %259, %261, %cst_203 {dimension_numbers = #tpu.dot_dimension_numbers<[1], [0], [0], [1], [0, 0, 1, 1], [], []>} : vector<80x48xbf16>, vector<48x16xbf16>, vector<80x16xf32> -> vector<80x16xf32>
    %263 = arith.addf %257, %262 : vector<80x16xf32>
    %c3_204 = arith.constant 3 : index
    %c8_205 = arith.constant 8 : index
    %c0_206 = arith.constant 0 : index
    %264 = vector.load %arg12[%c3_204, %c8_205, %c0_206] : memref<4x96x48xbf16, #tpu.memory_space<vmem>>, vector<1x80x48xbf16>
    %265 = vector.shape_cast %264 : vector<1x80x48xbf16> to vector<80x48xbf16>
    %c7_207 = arith.constant 7 : index
    %c0_208 = arith.constant 0 : index
    %c0_209 = arith.constant 0 : index
    %266 = vector.load %arg9[%c7_207, %c0_208, %c0_209] : memref<9x48x16xbf16, #tpu.memory_space<vmem>>, vector<1x48x16xbf16>
    %267 = vector.shape_cast %266 : vector<1x48x16xbf16> to vector<48x16xbf16>
    %cst_210 = arith.constant dense<0.000000e+00> : vector<80x16xf32>
    %268 = tpu.matmul %265, %267, %cst_210 {dimension_numbers = #tpu.dot_dimension_numbers<[1], [0], [0], [1], [0, 0, 1, 1], [], []>} : vector<80x48xbf16>, vector<48x16xbf16>, vector<80x16xf32> -> vector<80x16xf32>
    %269 = arith.addf %263, %268 : vector<80x16xf32>
    %c3_211 = arith.constant 3 : index
    %c9_212 = arith.constant 9 : index
    %c0_213 = arith.constant 0 : index
    %270 = vector.load %arg12[%c3_211, %c9_212, %c0_213] : memref<4x96x48xbf16, #tpu.memory_space<vmem>>, vector<1x80x48xbf16>
    %271 = vector.shape_cast %270 : vector<1x80x48xbf16> to vector<80x48xbf16>
    %c8_214 = arith.constant 8 : index
    %c0_215 = arith.constant 0 : index
    %c0_216 = arith.constant 0 : index
    %272 = vector.load %arg9[%c8_214, %c0_215, %c0_216] : memref<9x48x16xbf16, #tpu.memory_space<vmem>>, vector<1x48x16xbf16>
    %273 = vector.shape_cast %272 : vector<1x48x16xbf16> to vector<48x16xbf16>
    %cst_217 = arith.constant dense<0.000000e+00> : vector<80x16xf32>
    %274 = tpu.matmul %271, %273, %cst_217 {dimension_numbers = #tpu.dot_dimension_numbers<[1], [0], [0], [1], [0, 0, 1, 1], [], []>} : vector<80x48xbf16>, vector<48x16xbf16>, vector<80x16xf32> -> vector<80x16xf32>
    %275 = arith.addf %269, %274 : vector<80x16xf32>
    %276 = vector.broadcast %152 : vector<1x16xf32> to vector<80x16xf32>
    %277 = arith.addf %275, %276 : vector<80x16xf32>
    %278 = vector.extract_strided_slice %0 {offsets = [10, 0], sizes = [80, 16], strides = [1, 1]} : vector<100x16xf32> to vector<80x16xf32>
    %279 = arith.mulf %277, %278 : vector<80x16xf32>
    %c0_218 = arith.constant 0 : index
    %c1_219 = arith.constant 1 : index
    %c10_220 = arith.constant 10 : index
    %c0_221 = arith.constant 0 : index
    %280 = vector.load %arg5[%c0_218, %c1_219, %c10_220, %c0_221] : memref<1x2x100x16xf32, #tpu.memory_space<vmem>>, vector<1x1x80x16xf32>
    %281 = vector.shape_cast %280 : vector<1x1x80x16xf32> to vector<80x16xf32>
    %282 = arith.addf %279, %281 : vector<80x16xf32>
    %c0_222 = arith.constant 0 : index
    %c1_223 = arith.constant 1 : index
    %c10_224 = arith.constant 10 : index
    %c0_225 = arith.constant 0 : index
    %283 = vector.load %arg11[%c0_222, %c1_223, %c10_224, %c0_225] : memref<1x2x100x16xf32, #tpu.memory_space<vmem>>, vector<1x1x80x16xf32>
    %284 = vector.shape_cast %283 : vector<1x1x80x16xf32> to vector<80x16xf32>
    %285 = vector.shape_cast %282 : vector<80x16xf32> to vector<1x1x80x16xf32>
    tpu.vector_store %arg11[%c0_222, %c1_223, %c10_224, %c0_225], %285 {strides = array<i32>} : memref<1x2x100x16xf32, #tpu.memory_space<vmem>>, vector<1x1x80x16xf32>,
    %cst_226 = arith.constant 0.000000e+00 : f32
    %286 = vector.broadcast %cst_226 : f32 to vector<10x16xf32>
    %c0_227 = arith.constant 0 : index
    %c1_228 = arith.constant 1 : index
    %c0_229 = arith.constant 0 : index
    %c0_230 = arith.constant 0 : index
    %287 = vector.load %arg11[%c0_227, %c1_228, %c0_229, %c0_230] : memref<1x2x100x16xf32, #tpu.memory_space<vmem>>, vector<1x1x10x16xf32>
    %288 = vector.shape_cast %287 : vector<1x1x10x16xf32> to vector<10x16xf32>
    %289 = vector.shape_cast %286 : vector<10x16xf32> to vector<1x1x10x16xf32>
    tpu.vector_store %arg11[%c0_227, %c1_228, %c0_229, %c0_230], %289 {strides = array<i32>} : memref<1x2x100x16xf32, #tpu.memory_space<vmem>>, vector<1x1x10x16xf32>,
    %c0_231 = arith.constant 0 : index
    %c1_232 = arith.constant 1 : index
    %c90_233 = arith.constant 90 : index
    %c0_234 = arith.constant 0 : index
    %290 = vector.load %arg11[%c0_231, %c1_232, %c90_233, %c0_234] : memref<1x2x100x16xf32, #tpu.memory_space<vmem>>, vector<1x1x10x16xf32>
    %291 = vector.shape_cast %290 : vector<1x1x10x16xf32> to vector<10x16xf32>
    %292 = vector.shape_cast %286 : vector<10x16xf32> to vector<1x1x10x16xf32>
    tpu.vector_store %arg11[%c0_231, %c1_232, %c90_233, %c0_234], %292 {strides = array<i32>} : memref<1x2x100x16xf32, #tpu.memory_space<vmem>>, vector<1x1x10x16xf32>,
    return
  }
  func.func @transform_0(%arg0: i32, %arg1: i32) -> (i32, i32, i32, i32) {
    %c2_i32 = arith.constant 2 : i32
    %0 = arith.muli %arg1, %c2_i32 : i32
    %c1_i32 = arith.constant 1 : i32
    %1 = arith.subi %0, %c1_i32 : i32
    %c0_i32 = arith.constant 0 : i32
    %2 = arith.maxsi %1, %c0_i32 : i32
    %c0_i32_0 = arith.constant 0 : i32
    %c0_i32_1 = arith.constant 0 : i32
    %c0_i32_2 = arith.constant 0 : i32
    return %arg0, %2, %c0_i32_0, %c0_i32_1 : i32, i32, i32, i32
  }
  func.func @transform_1(%arg0: i32, %arg1: i32) -> (i32, i32, i32, i32) {
    %c0_i32 = arith.constant 0 : i32
    %c0_i32_0 = arith.constant 0 : i32
    %c0_i32_1 = arith.constant 0 : i32
    return %arg0, %arg1, %c0_i32, %c0_i32_0 : i32, i32, i32, i32
  }
  func.func @transform_2(%arg0: i32, %arg1: i32) -> (i32, i32, i32, i32) {
    %c2_i32 = arith.constant 2 : i32
    %0 = arith.muli %arg1, %c2_i32 : i32
    %c2_i32_0 = arith.constant 2 : i32
    %1 = arith.addi %0, %c2_i32_0 : i32
    %c3_i32 = arith.constant 3 : i32
    %2 = arith.minsi %1, %c3_i32 : i32
    %c0_i32 = arith.constant 0 : i32
    %c0_i32_1 = arith.constant 0 : i32
    %c0_i32_2 = arith.constant 0 : i32
    return %arg0, %2, %c0_i32, %c0_i32_1 : i32, i32, i32, i32
  }
  func.func @transform_3(%arg0: i32, %arg1: i32) -> (i32, i32, i32, i32) {
    %c0_i32 = arith.constant 0 : i32
    %c0_i32_0 = arith.constant 0 : i32
    %c0_i32_1 = arith.constant 0 : i32
    return %arg0, %arg1, %c0_i32, %c0_i32_0 : i32, i32, i32, i32
  }
  func.func @transform_4(%arg0: i32, %arg1: i32) -> (i32, i32) {
    %c0_i32 = arith.constant 0 : i32
    %c0_i32_0 = arith.constant 0 : i32
    %c0_i32_1 = arith.constant 0 : i32
    return %c0_i32, %c0_i32_0 : i32, i32
  }
  func.func @transform_5(%arg0: i32, %arg1: i32) -> (i32, i32, i32) {
    %c0_i32 = arith.constant 0 : i32
    %c0_i32_0 = arith.constant 0 : i32
    %c0_i32_1 = arith.constant 0 : i32
    return %arg0, %c0_i32, %c0_i32_0 : i32, i32, i32
  }
  func.func @transform_6(%arg0: i32, %arg1: i32) -> (i32, i32, i32) {
    %c0_i32 = arith.constant 0 : i32
    %c0_i32_0 = arith.constant 0 : i32
    %c0_i32_1 = arith.constant 0 : i32
    return %arg0, %c0_i32, %c0_i32_0 : i32, i32, i32
  }
  func.func @transform_7(%arg0: i32, %arg1: i32) -> (i32, i32, i32) {
    %c0_i32 = arith.constant 0 : i32
    %c0_i32_0 = arith.constant 0 : i32
    %c0_i32_1 = arith.constant 0 : i32
    %c0_i32_2 = arith.constant 0 : i32
    return %c0_i32, %c0_i32_0, %c0_i32_1 : i32, i32, i32
  }
  func.func @transform_8(%arg0: i32, %arg1: i32) -> (i32, i32) {
    %c0_i32 = arith.constant 0 : i32
    %c0_i32_0 = arith.constant 0 : i32
    %c0_i32_1 = arith.constant 0 : i32
    return %c0_i32, %c0_i32_0 : i32, i32
  }
  func.func @transform_9(%arg0: i32, %arg1: i32) -> (i32, i32, i32, i32) {
    %c0_i32 = arith.constant 0 : i32
    %c0_i32_0 = arith.constant 0 : i32
    %c0_i32_1 = arith.constant 0 : i32
    return %arg0, %arg1, %c0_i32, %c0_i32_0 : i32, i32, i32, i32
  }
}

</mosaic_0001>

<bundles_post_ra>
// kernel: _lambda_.3
= control target key start
LH: loop header
LB: loop body
LE: loop exit
PB: predicated region body
PF: predicated region fallthrough
CT: control target
= control target key end

     0   :  { %s1237_s18 = smov 0   ;;  %s1239_s19 = smov 0   ;;  %s1869_s0 = inlined_call_operand.vmem [shape: f32[2,4,100,16], index: 0, kind: input, shape index: {}]   ;;  %s1870_s1 = inlined_call_operand.vmem [shape: f32[100,16], index: 1, kind: input, shape index: {}]   ;;  %s1871_s2 = inlined_call_operand.vmem [shape: f32[16,4], index: 2, kind: input, shape index: {}]   ;;  %s1872_s3 = inlined_call_operand.vmem [shape: f32[4,16], index: 3, kind: input, shape index: {}]   ;;  %s1873_s4 = inlined_call_operand.vmem [shape: f32[2,1,4], index: 4, kind: output, shape index: {0}]   ;;  %s1874_s5 = inlined_call_operand.vmem [shape: f32[2,1,4], index: 5, kind: output, shape index: {1}]  }
   0x1   :  { %s1241_s20 = smov 0   ;;  %s1243_s21 = smov 0  }
   0x2   :  { %s1245_s22 = smov 0  }
   0x3 LB: > { %s25_s23 = sadd.s32 1, %s1193_s20  ;;  %s28_s24 = sadd.s32 1, %s1197_s21  ;;  %s1201_s22 = sphi %s1245_s22, %s16_s22   ;;  %s1197_s21 = sphi %s1243_s21, %s1884_s21   ;;  %s1193_s20 = sphi %s1241_s20, %s1883_s20   ;;  %s1189_s19 = sphi %s1239_s19, %s1882_s19   ;;  %s1185_s18 = sphi %s1237_s18, %s1881_s18  }
   0x4   : > { %p26_p0 = scmp.ge.s32.totalorder %s25_s23, 2  ;;  %p1057_p1 = scmp.ge.s32.totalorder %s1201_s22, 1 }
   0x5   : > { %p210_p2 = scmp.lt.s32.totalorder %s1201_s22, 5 }
   0x6   : > { %s1886_s23 = smov (%p26_p0, %s25_s23), 0  ;;  %s1888_s24 = smov (!%p26_p0, %s28_s24), %s1197_s21 }
   0x7   : > { %p211_p3 = pnand %p1057_p1, %p210_p2  ;;  %p30_p4 = scmp.ge.s32.totalorder %s1888_s24, 2 }
   0x8   : > { %v398_v0 = vld [vmem:[%s1871_s2] sm:$0xff] (!%p211_p3)  ;;  %v399_v1 = vld [vmem:[%s1871_s2 + $0x8] sm:$0xff] (!%p211_p3)  ;;  %s1058_s29 = sshll.u32 (!%p211_p3), %s1185_s18, 1  ;;  %v1875_v2 = vmov (!%p211_p3), 0.0|0.0   ;;  %vm1204_vm0 = vmmov (!%p211_p3), 0   ;;  %v1877_v4 = vmov (!%p211_p3), 0.0  }
   0x9   : > { %s1890_s24 = smov (%p30_p4, %s1888_s24), 0  ;;  %214 = sbr.rel (%p211_p3) target bundleno = 821 (0x335), region = 36 }
   0xa   : > { %1106 = vmatprep.subr.bf16.mxu0 (!%p211_p3), %v1875_v2  ;;  %v1107_v3 = vpack.c.bf16 (!%p211_p3), %v399_v1, %v398_v0  ;;  %1084 = vmatprep.mubr.msk.f32.mxu0 (!%p211_p3), %vm1204_vm0, %v1877_v4  ;;  %p245_p5 = scmp.lt.s32.totalorder (!%p211_p3), %s1189_s19, 1  ;;  %p247_p6 = scmp.lt.s32.totalorder (!%p211_p3), %s1058_s29, 3  ;;  %v1298_v5 = vld [vmem:[%s1870_s1] sm:$0xff] (!%p211_p3)  ;;  %v1303_v6 = vld [vmem:[%s1870_s1 + $0x8] sm:$0xff] (!%p211_p3)  ;;  %v1309_v8 = vld [vmem:[%s1870_s1 + $0x10] sm:$0xff] (!%p211_p3)  ;;  %vm326_vm1 = vcmask (!%p211_p3), 130048  }
   0xb   : > { %v1314_v9 = vld [vmem:[%s1870_s1 + $0x18] sm:$0xff] (!%p211_p3)  ;;  %v1329_v18 = vld [vmem:[%s1870_s1 + $0x20] sm:$0xff] (!%p211_p3)  ;;  %v1357_v28 = vld [vmem:[%s1870_s1 + $0x28] sm:$0xff] (!%p211_p3)  ;;  %vm363_vm2 = vcmask (!%p211_p3), 125952   ;;  %p1061_p7 = scmp.ne.s32.totalorder (!%p211_p3), %s1185_s18, 0 }
   0xc   : > { %1108 = vmatpush3.bf16.msra.mxu0 (!%p211_p3), %v1107_v3  ;;  %v1369_v33 = vld [vmem:[%s1870_s1 + $0x30] sm:$0xff] (!%p211_p3)  ;;  %v1389_v42 = vld [vmem:[%s1870_s1 + $0x38] sm:$0xff] (!%p211_p3)  ;;  %v1405_v48 = vld [vmem:[%s1870_s1 + $0x40] sm:$0xff] (!%p211_p3) }
   0xd   : > { %v1426_v61 = vld [vmem:[%s1870_s1 + $0x48] sm:$0xff] (!%p211_p3) }
  0x10   : > { %s1892_s19 = smov (!%p245_p5, %s1189_s19), 1  ;;  %s1894_s29 = smov (!%p247_p6, %s1058_s29), 3 }
  0x11   : > { %s1116_s30 = smul.u32 52, %s1892_s19  ;;  %s257_s8 = scalar_lea.vmem %s1873_s4, %s1892_s19  ;;  %vm479_vm3 = vcmask (!%p1061_p7), 24576  }
  0x12   : > { %s1115_s9 = smul.u32 13, %s1894_s29  ;;  %s260_s12 = scalar_lea.vmem %s1874_s5, %s1892_s19 }
  0x14   : > { %s251_s13 = sadd.s32 %s1116_s30, %s1115_s9 }
  0x15   : > { %s1059_s14 = sshll.u32 %s251_s13, 3 }
  0x16   : > { %s1293_s17 = scalar_lea.vmem %s1869_s0, %s1059_s14 }
  0x17   : > { %v274_v7 = vld [vmem:[%s1293_s17] sm:$0xff]  ;;  %v275_v10 = vld [vmem:[%s1293_s17 + $0x8] sm:$0xff]  ;;  %v276_v11 = vld [vmem:[%s1293_s17 + $0x10] sm:$0xff] }
  0x18   : > { %v287_v12 = vld [vmem:[%s1293_s17 + $0x68] sm:$0xff]  ;;  %v288_v13 = vld [vmem:[%s1293_s17 + $0x70] sm:$0xff]  ;;  %v277_v14 = vld [vmem:[%s1293_s17 + $0x18] sm:$0xff]  ;;  %v1324_v17 = vmul.f32 %v274_v7, %v1298_v5  ;;  %v1333_v20 = vmul.f32 %v275_v10, %v1303_v6  ;;  %v1343_v24 = vmul.f32 %v276_v11, %v1309_v8 }
  0x19   : > { %v289_v15 = vld [vmem:[%s1293_s17 + $0x78] sm:$0xff]  ;;  %v290_v16 = vld [vmem:[%s1293_s17 + $0x80] sm:$0xff]  ;;  %v1336_v21 = vmul.f32 %v287_v12, %v1298_v5  ;;  %v1339_v22 = vmul.f32 %v288_v13, %v1303_v6  ;;  %v291_v23 = vld [vmem:[%s1293_s17 + $0x88] sm:$0xff]  ;;  %v1349_v26 = vmul.f32 %v277_v14, %v1314_v9 }
  0x1a   : > { %v278_v19 = vld [vmem:[%s1293_s17 + $0x20] sm:$0xff]  ;;  %v1346_v25 = vmul.f32 %v289_v15, %v1309_v8  ;;  %v1352_v27 = vmul.f32 %v290_v16, %v1314_v9  ;;  %v279_v29 = vld [vmem:[%s1293_s17 + $0x28] sm:$0xff]  ;;  %v292_v30 = vld [vmem:[%s1293_s17 + $0x90] sm:$0xff]  ;;  %v327_v32 = vsel %vm326_vm1, %v1324_v17, 0.0  ;;  %v1373_v35 = vmul.f32 %v291_v23, %v1329_v18 }
  0x1b   : > { %v1362_v31 = vmul.f32 %v278_v19, %v1329_v18  ;;  %v280_v34 = vld [vmem:[%s1293_s17 + $0x30] sm:$0xff]  ;;  %v328_v36 = vsel %vm326_vm1, %v1336_v21, 0.0  ;;  %v330_v37 = vsel %vm326_vm1, %v1333_v20, 0.0  ;;  %v331_v38 = vsel %vm326_vm1, %v1339_v22, 0.0  ;;  %v293_v39 = vld [vmem:[%s1293_s17 + $0x98] sm:$0xff]  ;;  %v282_v49 = vld [vmem:[%s1293_s17 + $0x40] sm:$0xff] }
  0x1c   : > { %v333_v40 = vsel %vm326_vm1, %v1343_v24, 0.0  ;;  %v334_v41 = vsel %vm326_vm1, %v1346_v25, 0.0  ;;  %v281_v43 = vld [vmem:[%s1293_s17 + $0x38] sm:$0xff]  ;;  %v1393_v44 = vmul.f32 %v279_v29, %v1357_v28  ;;  %v1396_v45 = vmul.f32 %v292_v30, %v1357_v28  ;;  %v294_v50 = vld [vmem:[%s1293_s17 + $0xa0] sm:$0xff]  ;;  %v295_v54 = vld [vmem:[%s1293_s17 + $0xa8] sm:$0xff] }
  0x1d   : > { %v336_v46 = vsel %vm326_vm1, %v1349_v26, 0.0  ;;  %v337_v47 = vsel %vm326_vm1, %v1352_v27, 0.0  ;;  %v1410_v51 = vmul.f32 %v280_v34, %v1369_v33  ;;  %v329_v52 = vadd.f32 %v328_v36, %v327_v32  ;;  %v283_v62 = vld [vmem:[%s1293_s17 + $0x48] sm:$0xff]  ;;  %v296_v7 = vld [vmem:[%s1293_s17 + $0xb0] sm:$0xff]  ;;  %v297_v30 = vld [vmem:[%s1293_s17 + $0xb8] sm:$0xff] }
  0x1e   : > { %v332_v53 = vadd.f32 %v331_v38, %v330_v37  ;;  %v1414_v55 = vmul.f32 %v293_v39, %v1369_v33  ;;  %v335_v56 = vadd.f32 %v334_v41, %v333_v40  ;;  %v339_v57 = vsel %vm326_vm1, %v1362_v31, 0.0  ;;  %v1448_v14 = vld [vmem:[%s1870_s1 + $0x50] sm:$0xff]  ;;  %v1464_v37 = vld [vmem:[%s1870_s1 + $0x58] sm:$0xff] }
  0x1f   : > { %v340_v58 = vsel %vm326_vm1, %v1373_v35, 0.0  ;;  %v1421_v59 = vmul.f32 %v281_v43, %v1389_v42  ;;  %v338_v60 = vadd.f32 %v337_v47, %v336_v46  ;;  %v1430_v63 = vmul.f32 %v282_v49, %v1405_v48  ;;  %v284_v15 = vld [vmem:[%s1293_s17 + $0x50] sm:$0xff]  ;;  %v285_v38 = vld [vmem:[%s1293_s17 + $0x58] sm:$0xff]  ;;  %v298_v46 = vld [vmem:[%s1293_s17 + $0xc0] sm:$0xff] }
  0x20   : > { %v1433_v0 = vmul.f32 %v294_v50, %v1389_v42  ;;  %v342_v1 = vsel %vm326_vm1, %v1393_v44, 0.0  ;;  %v343_v3 = vsel %vm326_vm1, %v1396_v45, 0.0  ;;  %v1441_v10 = vmul.f32 %v295_v54, %v1405_v48 }
  0x21   : > { %v341_v11 = vadd.f32 %v340_v58, %v339_v57  ;;  %v367_v12 = vsel %vm326_vm1, %v329_v52, 0.0  ;;  %v368_v13 = vsel %vm326_vm1, %v332_v53, 0.0  ;;  %v345_v16 = vsel %vm326_vm1, %v1410_v51, 0.0  ;;  %v1482_v52 = vld [vmem:[%s1870_s1 + $0x60] sm:$0xf] }
  0x22   : > { %v346_v19 = vsel %vm326_vm1, %v1414_v55, 0.0  ;;  %v369_v23 = vadd.f32 %v368_v13, %v367_v12  ;;  %v370_v29 = vsel %vm326_vm1, %v335_v56, 0.0  ;;  %v1458_v32 = vmul.f32 %v283_v62, %v1426_v61  ;;  %v286_v53 = vld [vmem:[%s1293_s17 + $0x60] sm:$0xf] }
  0x23   : > { %v344_v34 = vadd.f32 %v343_v3, %v342_v1  ;;  %v372_v36 = vsel %vm326_vm1, %v338_v60, 0.0  ;;  %v1468_v39 = vmul.f32 %v296_v7, %v1426_v61  ;;  %v348_v40 = vsel %vm326_vm1, %v1421_v59, 0.0  ;;  %v299_v60 = vld [vmem:[%s1293_s17 + $0xc8] sm:$0xf] }
  0x24   : > { %v349_v41 = vsel %vm326_vm1, %v1433_v0, 0.0  ;;  %v371_v43 = vadd.f32 %v370_v29, %v369_v23  ;;  %v1476_v47 = vmul.f32 %v284_v15, %v1448_v14  ;;  %v347_v49 = vadd.f32 %v346_v19, %v345_v16 }
  0x25   : > { %v374_v50 = vsel %vm326_vm1, %v341_v11, 0.0  ;;  %v1486_v54 = vmul.f32 %v297_v30, %v1448_v14  ;;  %v351_v56 = vsel %vm326_vm1, %v1430_v63, 0.0  ;;  %v352_v57 = vsel %vm326_vm1, %v1441_v10, 0.0 }
  0x26   : > { %v373_v58 = vadd.f32 %v372_v36, %v371_v43  ;;  %v1494_v62 = vmul.f32 %v285_v38, %v1464_v37  ;;  %v350_v1 = vadd.f32 %v349_v41, %v348_v40  ;;  %v376_v3 = vsel %vm326_vm1, %v344_v34, 0.0 }
  0x27   : > { %v1498_v7 = vmul.f32 %v298_v46, %v1464_v37  ;;  %v354_v11 = vsel %vm326_vm1, %v1458_v32, 0.0  ;;  %v355_v12 = vsel %vm326_vm1, %v1468_v39, 0.0  ;;  %v1505_v15 = vmul.f32 %v286_v53, %v1482_v52 }
  0x28   : > { %v375_v13 = vadd.f32 %v374_v50, %v373_v58  ;;  %v353_v16 = vadd.f32 %v352_v57, %v351_v56  ;;  %v378_v19 = vsel %vm326_vm1, %v347_v49, 0.0  ;;  %v1509_v23 = vmul.f32 %v299_v60, %v1482_v52 }
  0x29   : > { %v357_v29 = vsel %vm326_vm1, %v1476_v47, 0.0  ;;  %v358_v30 = vsel %vm326_vm1, %v1486_v54, 0.0  ;;  %v356_v36 = vadd.f32 %v355_v12, %v354_v11  ;;  %v380_v38 = vsel %vm326_vm1, %v350_v1, 0.0 }
  0x2a   : > { %v377_v34 = vadd.f32 %v376_v3, %v375_v13  ;;  %v360_v40 = vsel %vm326_vm1, %v1494_v62, 0.0  ;;  %v361_v41 = vsel %vm326_vm1, %v1498_v7, 0.0  ;;  %v359_v46 = vadd.f32 %v358_v30, %v357_v29 }
  0x2b   : > { %v382_v49 = vsel %vm326_vm1, %v353_v16, 0.0  ;;  %v364_v50 = vsel %vm363_vm2, %v1505_v15, 0.0  ;;  %v365_v53 = vsel %vm363_vm2, %v1509_v23, 0.0  ;;  %v362_v57 = vadd.f32 %v361_v41, %v360_v40 }
  0x2c   : > { %v379_v43 = vadd.f32 %v378_v19, %v377_v34  ;;  %v384_v58 = vsel %vm326_vm1, %v356_v36, 0.0  ;;  %v366_v1 = vadd.f32 %v365_v53, %v364_v50  ;;  %v386_v3 = vsel %vm326_vm1, %v359_v46, 0.0 }
  0x2d   : > { %v388_v12 = vsel %vm326_vm1, %v362_v57, 0.0  ;;  %v1206_v46 = vmov (!%p1061_p7), 0.0  }
  0x2e   : > { %v381_v56 = vadd.f32 %v380_v38, %v379_v43  ;;  %v390_v16 = vsel %vm363_vm2, %v366_v1, 0.0  ;;  %481 = vst.msk [vmem:[#allocation3] sm:$0x1] (!%p1061_p7), %vm479_vm3, %v1206_v46  ;;  %482 = vst.msk [vmem:[#allocation4] sm:$0x1] (!%p1061_p7), %vm479_vm3, %v1206_v46 }
  0x30   : > { %v383_v60 = vadd.f32 %v382_v49, %v381_v56 }
  0x32   : > { %v385_v11 = vadd.f32 %v384_v58, %v383_v60 }
  0x34   : > { %v387_v13 = vadd.f32 %v386_v3, %v385_v11 }
  0x36   : > { %v389_v19 = vadd.f32 %v388_v12, %v387_v13 }
  0x38   : > { %v391_v29 = vadd.f32 %v390_v16, %v389_v19 }
  0x3a   : > { %v392_v30 = vrot.slane %v391_v29, 4 }
  0x3c   : > { %v393_v34 = vadd.f32 %v392_v30, %v391_v29 }
  0x3e   : > { %v394_v2 = vrot.slane %v393_v34, 2 }
  0x40   : > { %v395_v4 = vadd.f32 %v394_v2, %v393_v34 }
  0x42   : > { %v396_v38 = vrot.slane %v395_v4, 1 }
  0x44   : > { %v397_v40 = vadd.f32 %v396_v38, %v395_v4 }
  0x46   : > { %1085 = vmatmul.mubr.msk.f32.vlgmr.msra.gmra.mrb[0].mxu0 %vm326_vm1, %v397_v40 }
 0x114   : > { %476 = sbr.rel (%p1061_p7) target bundleno = 285 (0x11d), region = 40 }
 0x119   : > { %v469_v36 = vpop.f32.mrb[0].mxu0 }
 0x11a   : > { %v1086_v41 = vpop.f32.mrb[1].mxu0  ;;  %v478_v43 = vmul.f32 (!%p1061_p7), 0.001953125, %v469_v36 }
 0x11c   : > { %480 = vst.msk [vmem:[#allocation2] sm:$0x1] %vm479_vm3, %v478_v43 }
 0x11d PF: > { %v1879_v49 = vmov 0.0   ;;  %v484_v2 = vld [vmem:[%s1872_s3] sm:$0xf]  ;;  %vm489_vm4 = vcmask 1043456   ;;  %vm485_vm5 = vcmask 31744   ;;  %v1880_v50 = vmov 0.0|0.0  }
 0x11e   : > { %1087 = vmatprep.subr.mxu1 %v1879_v49  ;;  %1089 = vmatprep.mubr.msk.f32.mxu1 %vm1204_vm0, %v1879_v49  ;;  %v786_v53 = vld [vmem:[%s1871_s2] sm:$0xff]  ;;  %v787_v56 = vld [vmem:[%s1871_s2 + $0x8] sm:$0xff]  ;;  %v563_v58 = vlaneseq  ;;  %vm862_vm6 = vcmask 24576   ;;  %p1066_p8 = scmp.ne.s32.totalorder %s1185_s18, 1 }
 0x11f   : > { %1088 = vmatpush3.msk.msra.mxu1 %vm489_vm4, %v484_v2  ;;  %1112 = vmatprep.subr.bf16.mxu0 %v1880_v50  ;;  %v1110_v57 = vpack.c.bf16 %v787_v56, %v786_v53 }
 0x120   : > { %1109 = vmatprep.subr.bf16.mxu1 %v1880_v50  ;;  %1103 = vmatprep.mubr.msk.f32.mxu0 %vm1204_vm0, %v1879_v49  ;;  %v564_v60 = vshrl.u32 %v563_v58, 7 }
 0x121   : > { %1114 = vmatpush3.bf16.msra.mxu0 %v1110_v57 }
 0x122   : > { %v565_v11 = vsub.s32 0, %v564_v60 }
 0x123   : > { %v483_v4 = vld [vmem:[#allocation2] sm:$0x1] }
 0x124   : > { %1090 = vmatmul.mubr.msk.f32.vlgmr.msra.gmra.mrb[0].mxu1 %vm485_vm5, %v483_v4 }
 0x125   : > { %1096 = vmatprep.mubr.msk.f32.mxu1 %vm1204_vm0, %v1879_v49  ;;  %1111 = vmatpush3.bf16.msra.mxu1 %v1110_v57 }
 0x1f7   : > { %v559_v1 = vpop.f32.mrb[0].mxu1 }
 0x1f8   : > { %v1091_v3 = vpop.f32.mrb[1].mxu1  ;;  %v1549_v12 = vrot.slane %v559_v1, %v565_v11 }
 0x1fa   : > { %v567_v13 = vsub.f32 %v1324_v17, %v1549_v12  ;;  %v568_v16 = vsub.f32 %v1333_v20, %v1549_v12  ;;  %v580_v19 = vsub.f32 %v1336_v21, %v1549_v12  ;;  %v581_v29 = vsub.f32 %v1339_v22, %v1549_v12 }
 0x1fb   : > { %v569_v30 = vsub.f32 %v1343_v24, %v1549_v12  ;;  %v570_v34 = vsub.f32 %v1349_v26, %v1549_v12  ;;  %v582_v38 = vsub.f32 %v1346_v25, %v1549_v12  ;;  %v571_v17 = vsub.f32 %v1362_v31, %v1549_v12 }
 0x1fc   : > { %v572_v20 = vsub.f32 %v1393_v44, %v1549_v12  ;;  %v573_v21 = vsub.f32 %v1410_v51, %v1549_v12  ;;  %v583_v22 = vsub.f32 %v1352_v27, %v1549_v12  ;;  %v1574_v24 = vmul.f32 %v567_v13, %v1298_v5 }
 0x1fd   : > { %v1577_v26 = vmul.f32 %v568_v16, %v1303_v6  ;;  %v1580_v25 = vmul.f32 %v580_v19, %v1298_v5  ;;  %v1583_v31 = vmul.f32 %v581_v29, %v1303_v6  ;;  %v574_v44 = vsub.f32 %v1421_v59, %v1549_v12 }
 0x1fe   : > { %v575_v51 = vsub.f32 %v1430_v63, %v1549_v12  ;;  %v576_v27 = vsub.f32 %v1458_v32, %v1549_v12  ;;  %v577_v40 = vsub.f32 %v1476_v47, %v1549_v12  ;;  %v578_v36 = vsub.f32 %v1494_v62, %v1549_v12 }
 0x1ff   : > { %v584_v5 = vsub.f32 %v1373_v35, %v1549_v12  ;;  %v1598_v6 = vmul.f32 %v569_v30, %v1309_v8  ;;  %v1601_v59 = vmul.f32 %v582_v38, %v1309_v8  ;;  %v579_v63 = vsub.f32 %v1505_v15, %v1549_v12 }
 0x200   : > { %v585_v32 = vsub.f32 %v1396_v45, %v1549_v12  ;;  %v1608_v47 = vmul.f32 %v570_v34, %v1314_v9  ;;  %v1611_v62 = vmul.f32 %v583_v22, %v1314_v9  ;;  %v619_v35 = vsel %vm326_vm1, %v1574_v24, 0.0 }
 0x201   : > { %v620_v41 = vsel %vm326_vm1, %v1580_v25, 0.0  ;;  %v622_v8 = vsel %vm326_vm1, %v1577_v26, 0.0  ;;  %v623_v15 = vsel %vm326_vm1, %v1583_v31, 0.0  ;;  %v586_v45 = vsub.f32 %v1414_v55, %v1549_v12 }
 0x202   : > { %v587_v43 = vsub.f32 %v1433_v0, %v1549_v12  ;;  %v588_v9 = vsub.f32 %v1441_v10, %v1549_v12  ;;  %v589_v46 = vsub.f32 %v1468_v39, %v1549_v12  ;;  %v1630_v49 = vmul.f32 %v571_v17, %v1329_v18 }
 0x203   : > { %v1633_v2 = vmul.f32 %v584_v5, %v1329_v18  ;;  %v625_v4 = vsel %vm326_vm1, %v1598_v6, 0.0  ;;  %v626_v55 = vsel %vm326_vm1, %v1601_v59, 0.0  ;;  %v590_v0 = vsub.f32 %v1486_v54, %v1549_v12 }
 0x204   : > { %v591_v10 = vsub.f32 %v1498_v7, %v1549_v12  ;;  %v621_v50 = vadd.f32 %v620_v41, %v619_v35  ;;  %v624_v39 = vadd.f32 %v623_v15, %v622_v8  ;;  %v1644_v53 = vmul.f32 %v572_v20, %v1357_v28 }
 0x205   : > { %v1647_v18 = vmul.f32 %v585_v32, %v1357_v28  ;;  %v628_v56 = vsel %vm326_vm1, %v1608_v47, 0.0  ;;  %v629_v57 = vsel %vm326_vm1, %v1611_v62, 0.0  ;;  %v592_v54 = vsub.f32 %v1509_v23, %v1549_v12 }
 0x206   : > { %v1656_v58 = vmul.f32 %v573_v21, %v1369_v33  ;;  %v1659_v7 = vmul.f32 %v574_v44, %v1389_v42  ;;  %v627_v60 = vadd.f32 %v626_v55, %v625_v4  ;;  %v1662_v1 = vmul.f32 %v575_v51, %v1405_v48 }
 0x207   : > { %v1665_v28 = vmul.f32 %v586_v45, %v1369_v33  ;;  %v631_v3 = vsel %vm326_vm1, %v1630_v49, 0.0  ;;  %v632_v11 = vsel %vm326_vm1, %v1633_v2, 0.0  ;;  %v1672_v23 = vmul.f32 %v576_v27, %v1426_v61 }
 0x208   : > { %v630_v12 = vadd.f32 %v629_v57, %v628_v56  ;;  %v658_v13 = vsel %vm326_vm1, %v621_v50, 0.0  ;;  %v659_v16 = vsel %vm326_vm1, %v624_v39, 0.0  ;;  %v1677_v19 = vmul.f32 %v587_v43, %v1389_v42 }
 0x209   : > { %v634_v33 = vsel %vm326_vm1, %v1644_v53, 0.0  ;;  %v635_v29 = vsel %vm326_vm1, %v1647_v18, 0.0  ;;  %v660_v30 = vadd.f32 %v659_v16, %v658_v13  ;;  %v1684_v34 = vmul.f32 %v577_v40, %v1448_v14 }
 0x20a   : > { %v1687_v38 = vmul.f32 %v588_v9, %v1405_v48  ;;  %v633_v17 = vadd.f32 %v632_v11, %v631_v3  ;;  %v661_v20 = vsel %vm326_vm1, %v627_v60, 0.0  ;;  %v1691_v21 = vmul.f32 %v578_v36, %v1464_v37 }
 0x20b   : > { %v637_v42 = vsel %vm326_vm1, %v1656_v58, 0.0  ;;  %v638_v22 = vsel %vm326_vm1, %v1665_v28, 0.0  ;;  %v662_v44 = vadd.f32 %v661_v20, %v660_v30  ;;  %v1698_v51 = vmul.f32 %v589_v46, %v1426_v61 }
 0x20c   : > { %v1701_v27 = vmul.f32 %v590_v0, %v1448_v14  ;;  %v636_v48 = vadd.f32 %v635_v29, %v634_v33  ;;  %v663_v40 = vsel %vm326_vm1, %v630_v12, 0.0  ;;  %v1705_v5 = vmul.f32 %v591_v10, %v1464_v37 }
 0x20d   : > { %v640_v36 = vsel %vm326_vm1, %v1659_v7, 0.0  ;;  %v641_v32 = vsel %vm326_vm1, %v1677_v19, 0.0  ;;  %v664_v35 = vadd.f32 %v663_v40, %v662_v44  ;;  %v639_v41 = vadd.f32 %v638_v22, %v637_v42 }
 0x20e   : > { %v643_v61 = vsel %vm326_vm1, %v1662_v1, 0.0  ;;  %v644_v14 = vsel %vm326_vm1, %v1687_v38, 0.0  ;;  %v665_v8 = vsel %vm326_vm1, %v633_v17, 0.0  ;;  %v1717_v15 = vmul.f32 %v579_v63, %v1482_v52 }
 0x20f   : > { %v666_v37 = vadd.f32 %v665_v8, %v664_v35  ;;  %v642_v45 = vadd.f32 %v641_v32, %v640_v36  ;;  %v646_v43 = vsel %vm326_vm1, %v1672_v23, 0.0  ;;  %v647_v9 = vsel %vm326_vm1, %v1698_v51, 0.0 }
 0x210   : > { %v667_v46 = vsel %vm326_vm1, %v636_v48, 0.0  ;;  %v1725_v4 = vmul.f32 %v592_v54, %v1482_v52  ;;  %v645_v55 = vadd.f32 %v644_v14, %v643_v61  ;;  %v649_v0 = vsel %vm326_vm1, %v1684_v34, 0.0 }
 0x211   : > { %v668_v10 = vadd.f32 %v667_v46, %v666_v37  ;;  %v650_v63 = vsel %vm326_vm1, %v1701_v27, 0.0  ;;  %v652_v50 = vsel %vm326_vm1, %v1691_v21, 0.0  ;;  %v653_v39 = vsel %vm326_vm1, %v1705_v5, 0.0 }
 0x212   : > { %v669_v56 = vsel %vm326_vm1, %v639_v41, 0.0  ;;  %v648_v57 = vadd.f32 %v647_v9, %v646_v43  ;;  %v689_v52 = vmul.f32 %v1574_v24, %v1574_v24  ;;  %v702_v54 = vmul.f32 %v1580_v25, %v1580_v25 }
 0x213   : > { %v670_v60 = vadd.f32 %v669_v56, %v668_v10  ;;  %v671_v3 = vsel %vm326_vm1, %v642_v45, 0.0  ;;  %v690_v11 = vmul.f32 %v1577_v26, %v1577_v26  ;;  %v703_v12 = vmul.f32 %v1583_v31, %v1583_v31 }
 0x214   : > { %v651_v13 = vadd.f32 %v650_v63, %v649_v0  ;;  %v654_v16 = vadd.f32 %v653_v39, %v652_v50  ;;  %v655_v33 = vsel %vm363_vm2, %v1717_v15, 0.0  ;;  %v656_v24 = vsel %vm363_vm2, %v1725_v4, 0.0 }
 0x215   : > { %v672_v29 = vadd.f32 %v671_v3, %v670_v60  ;;  %v673_v30 = vsel %vm326_vm1, %v645_v55, 0.0  ;;  %v691_v25 = vmul.f32 %v1598_v6, %v1598_v6  ;;  %v704_v26 = vmul.f32 %v1601_v59, %v1601_v59 }
 0x216   : > { %v675_v31 = vsel %vm326_vm1, %v648_v57, 0.0  ;;  %v715_v20 = vsel %vm326_vm1, %v689_v52, 0.0  ;;  %v716_v42 = vsel %vm326_vm1, %v702_v54, 0.0  ;;  %v692_v22 = vmul.f32 %v1608_v47, %v1608_v47 }
 0x217   : > { %v674_v17 = vadd.f32 %v673_v30, %v672_v29  ;;  %v705_v44 = vmul.f32 %v1611_v62, %v1611_v62  ;;  %v718_v48 = vsel %vm326_vm1, %v690_v11, 0.0  ;;  %v719_v6 = vsel %vm326_vm1, %v703_v12, 0.0 }
 0x218   : > { %v657_v40 = vadd.f32 %v656_v24, %v655_v33  ;;  %v677_v59 = vsel %vm326_vm1, %v651_v13, 0.0  ;;  %v693_v32 = vmul.f32 %v1630_v49, %v1630_v49  ;;  %v706_v35 = vmul.f32 %v1633_v2, %v1633_v2 }
 0x219   : > { %v676_v36 = vadd.f32 %v675_v31, %v674_v17  ;;  %v717_v41 = vadd.f32 %v716_v42, %v715_v20  ;;  %v721_v47 = vsel %vm326_vm1, %v691_v25, 0.0  ;;  %v722_v61 = vsel %vm326_vm1, %v704_v26, 0.0 }
 0x21a   : > { %v679_v14 = vsel %vm326_vm1, %v654_v16, 0.0  ;;  %v720_v8 = vadd.f32 %v719_v6, %v718_v48  ;;  %v694_v37 = vmul.f32 %v1644_v53, %v1644_v53  ;;  %v707_v45 = vmul.f32 %v1647_v18, %v1647_v18 }
 0x21b   : > { %v678_v62 = vadd.f32 %v677_v59, %v676_v36  ;;  %v724_v49 = vsel %vm326_vm1, %v692_v22, 0.0  ;;  %v725_v43 = vsel %vm326_vm1, %v705_v44, 0.0  ;;  %v681_v9 = vsel %vm363_vm2, %v657_v40, 0.0 }
 0x21c   : > { %v695_v46 = vmul.f32 %v1656_v58, %v1656_v58  ;;  %v723_v55 = vadd.f32 %v722_v61, %v721_v47  ;;  %v708_v0 = vmul.f32 %v1665_v28, %v1665_v28  ;;  %v727_v10 = vsel %vm326_vm1, %v693_v32, 0.0 }
 0x21d   : > { %v680_v2 = vadd.f32 %v679_v14, %v678_v62  ;;  %v728_v53 = vsel %vm326_vm1, %v706_v35, 0.0  ;;  %v754_v18 = vsel %vm326_vm1, %v717_v41, 0.0  ;;  %v696_v50 = vmul.f32 %v1659_v7, %v1659_v7 }
 0x21e   : > { %v726_v39 = vadd.f32 %v725_v43, %v724_v49  ;;  %v755_v56 = vsel %vm326_vm1, %v720_v8, 0.0  ;;  %v709_v58 = vmul.f32 %v1677_v19, %v1677_v19  ;;  %v730_v57 = vsel %vm326_vm1, %v694_v37, 0.0 }
 0x21f   : > { %v682_v63 = vadd.f32 %v681_v9, %v680_v2  ;;  %v731_v28 = vsel %vm326_vm1, %v707_v45, 0.0  ;;  %v756_v60 = vadd.f32 %v755_v56, %v754_v18  ;;  %v697_v54 = vmul.f32 %v1662_v1, %v1662_v1 }
 0x220   : > { %v729_v3 = vadd.f32 %v728_v53, %v727_v10  ;;  %v757_v11 = vsel %vm326_vm1, %v723_v55, 0.0  ;;  %v710_v7 = vmul.f32 %v1687_v38, %v1687_v38  ;;  %v733_v12 = vsel %vm326_vm1, %v695_v46, 0.0 }
 0x221   : > { %v683_v52 = vrot.slane %v682_v63, 4  ;;  %v734_v13 = vsel %vm326_vm1, %v708_v0, 0.0  ;;  %v758_v19 = vadd.f32 %v757_v11, %v756_v60  ;;  %v698_v33 = vmul.f32 %v1672_v23, %v1672_v23  ;;  %v785_v11 = vld [vmem:[#allocation3] sm:$0x1] }
 0x222   : > { %v732_v29 = vadd.f32 %v731_v28, %v730_v57  ;;  %v759_v24 = vsel %vm326_vm1, %v726_v39, 0.0  ;;  %v711_v1 = vmul.f32 %v1698_v51, %v1698_v51  ;;  %v736_v30 = vsel %vm326_vm1, %v696_v50, 0.0 }
 0x223   : > { %v684_v16 = vadd.f32 %v683_v52, %v682_v63  ;;  %v737_v25 = vsel %vm326_vm1, %v709_v58, 0.0  ;;  %v760_v38 = vadd.f32 %v759_v24, %v758_v19  ;;  %v699_v17 = vmul.f32 %v1684_v34, %v1684_v34  ;;  %v864_v19 = vld [vmem:[#allocation4] sm:$0x1]  ;;  %v946_v24 = vld [vmem:[#allocation2] sm:$0x1] (!%p1066_p8) }
 0x224   : > { %v735_v31 = vadd.f32 %v734_v13, %v733_v12  ;;  %v761_v20 = vsel %vm326_vm1, %v729_v3, 0.0  ;;  %v712_v23 = vmul.f32 %v1701_v27, %v1701_v27  ;;  %v739_v42 = vsel %vm326_vm1, %v697_v54, 0.0 }
 0x225   : > { %v685_v26 = vrot.slane %v684_v16, 2  ;;  %v740_v22 = vsel %vm326_vm1, %v710_v7, 0.0  ;;  %v762_v51 = vadd.f32 %v761_v20, %v760_v38  ;;  %v700_v48 = vmul.f32 %v1691_v21, %v1691_v21 }
 0x226   : > { %v738_v6 = vadd.f32 %v737_v25, %v736_v30  ;;  %v763_v40 = vsel %vm326_vm1, %v732_v29, 0.0  ;;  %v713_v34 = vmul.f32 %v1705_v5, %v1705_v5  ;;  %v742_v36 = vsel %vm326_vm1, %v698_v33, 0.0 }
 0x227   : > { %v686_v44 = vadd.f32 %v685_v26, %v684_v16  ;;  %v743_v59 = vsel %vm326_vm1, %v711_v1, 0.0  ;;  %v764_v27 = vadd.f32 %v763_v40, %v762_v51  ;;  %v701_v35 = vmul.f32 %v1717_v15, %v1717_v15 }
 0x228   : > { %v741_v41 = vadd.f32 %v740_v22, %v739_v42  ;;  %v765_v47 = vsel %vm326_vm1, %v735_v31, 0.0  ;;  %v714_v21 = vmul.f32 %v1725_v4, %v1725_v4  ;;  %v745_v61 = vsel %vm326_vm1, %v699_v17, 0.0 }
 0x229   : > { %v687_v32 = vrot.slane %v686_v44, 1  ;;  %v746_v62 = vsel %vm326_vm1, %v712_v23, 0.0  ;;  %v766_v5 = vadd.f32 %v765_v47, %v764_v27  ;;  %v744_v8 = vadd.f32 %v743_v59, %v742_v36 }
 0x22a   : > { %v767_v37 = vsel %vm326_vm1, %v738_v6, 0.0  ;;  %v748_v45 = vsel %vm326_vm1, %v700_v48, 0.0  ;;  %v749_v49 = vsel %vm326_vm1, %v713_v34, 0.0  ;;  %v747_v43 = vadd.f32 %v746_v62, %v745_v61 }
 0x22b   : > { %v688_v14 = vadd.f32 %v687_v32, %v686_v44  ;;  %v768_v15 = vadd.f32 %v767_v37, %v766_v5  ;;  %v769_v2 = vsel %vm326_vm1, %v741_v41, 0.0  ;;  %v751_v4 = vsel %vm363_vm2, %v701_v35, 0.0 }
 0x22c   : > { %v752_v9 = vsel %vm363_vm2, %v714_v21, 0.0  ;;  %v750_v55 = vadd.f32 %v749_v49, %v748_v45  ;;  %v771_v0 = vsel %vm326_vm1, %v744_v8, 0.0  ;;  %v773_v18 = vsel %vm326_vm1, %v747_v43, 0.0 }
 0x22d   : > { %1097 = vmatmul.mubr.msk.f32.vlgmr.msra.gmra.mrb[2].mxu1 %vm326_vm1, %v688_v14  ;;  %v770_v46 = vadd.f32 %v769_v2, %v768_v15  ;;  %v753_v53 = vadd.f32 %v752_v9, %v751_v4 }
 0x22e   : > { %v775_v50 = vsel %vm326_vm1, %v750_v55, 0.0 }
 0x22f   : > { %v772_v10 = vadd.f32 %v771_v0, %v770_v46  ;;  %v777_v56 = vsel %vm363_vm2, %v753_v53, 0.0 }
 0x231   : > { %v774_v63 = vadd.f32 %v773_v18, %v772_v10 }
 0x233   : > { %v776_v39 = vadd.f32 %v775_v50, %v774_v63 }
 0x235   : > { %v778_v58 = vadd.f32 %v777_v56, %v776_v39 }
 0x237   : > { %v779_v57 = vrot.slane %v778_v58, 4 }
 0x239   : > { %v780_v28 = vadd.f32 %v779_v57, %v778_v58 }
 0x23b   : > { %v781_v60 = vrot.slane %v780_v28, 2 }
 0x23d   : > { %v782_v52 = vadd.f32 %v781_v60, %v780_v28 }
 0x23f   : > { %v783_v54 = vrot.slane %v782_v52, 1 }
 0x241   : > { %v784_v3 = vadd.f32 %v783_v54, %v782_v52 }
 0x243   : > { %1104 = vmatmul.mubr.msk.f32.vlgmr.msra.gmra.mrb[2].mxu0 %vm326_vm1, %v784_v3 }
 0x300   : > { %v857_v7 = vpop.f32.mrb[2].mxu1 }
 0x301   : > { %v861_v12 = vadd.f32 %v857_v7, %v785_v11  ;;  %v1098_v13 = vpop.f32.mrb[3].mxu1 }
 0x303   : > { %863 = vst.msk [vmem:[#allocation3] sm:$0x1] %vm862_vm6, %v861_v12 }
 0x30a   : > { %v947_v1 = vld [vmem:[#allocation3] sm:$0x1] (!%p1066_p8) }
 0x30b   : > { %v949_v30 = vmul.f32 (!%p1066_p8), 0.0009765625, %v947_v1  ;;  %v952_v25 = vmul.f32 (!%p1066_p8), %v947_v1, %v947_v1 }
 0x30d   : > { %v950_v26 = vadd.f32 (!%p1066_p8), %v949_v30, %v946_v24  ;;  %v953_v17 = vmul.f32 (!%p1066_p8), 0.0009765625, %v952_v25 }
 0x30f   : > { %957 = vst.msk [vmem:[%s257_s8] sm:$0x1] (!%p1066_p8), %vm862_vm6, %v950_v26 }
 0x313   : > { %945 = sbr.rel (%p1066_p8) target bundleno = 821 (0x335), region = 44 }
 0x316   : > { %v936_v16 = vpop.f32.mrb[2].mxu0 }
 0x317   : > { %v940_v33 = vadd.f32 %v936_v16, %v864_v19  ;;  %v1105_v29 = vpop.f32.mrb[3].mxu0 }
 0x319   : > { %941 = vst.msk [vmem:[#allocation4] sm:$0x1] %vm862_vm6, %v940_v33 }
 0x320   : > { %v951_v38 = vld [vmem:[#allocation4] sm:$0x1] }
 0x321   : > { %v954_v31 = vsub.f32 %v951_v38, %v953_v17 }
 0x323   : > { %v955_v20 = vmax.f32 %v954_v31, 0.0 }
 0x325   : > { %v956_v23 = vmul.f32 0.0009765625, %v955_v20 }
 0x327   : > { %v958_v42 = vadd.f32 1e-06, %v956_v23 }
 0x329   : > { %1161 = vrsqrt.f32 %v958_v42 }
 0x333   : > { %v1162_v22 = vpop.eup %1161 }
 0x334   : > { %960 = vst.msk [vmem:[%s260_s12] sm:$0x1] %vm862_vm6, %v1162_v22 }
 0x335 PF: > { %s16_s22 = sadd.s32 1, %s1201_s22   ;;  %s1881_s18 = smov %s1193_s20 }
 0x336   : > { %p13_p9 = scmp.ge.s32.totalorder %s16_s22, 6   ;;  %s1882_s19 = smov %s1197_s21 }
 0x337   : > { %s1883_s20 = smov %s1886_s23  ;;  %s1884_s21 = smov %s1890_s24 }
 0x338   :  { %15 = sbr.rel (!%p13_p9) target bundleno = 3 (0x3), region = 86 }

// kernel: _lambda_.4
= control target key start
LH: loop header
LB: loop body
LE: loop exit
PB: predicated region body
PF: predicated region fallthrough
CT: control target
= control target key end

     0   :  { %s6798_s17 = smov 0   ;;  %s6800_s18 = smov 0   ;;  %s9185_s0 = inlined_call_operand.vmem [shape: f32[2,4,100,16], index: 0, kind: input, shape index: {}, may-alias: {0,1,2}]   ;;  %s9186_s1 = inlined_call_operand.vmem [shape: f32[2,4,100,16], index: 1, kind: input, shape index: {}, may-alias: {0,1,2}]   ;;  %s9187_s2 = inlined_call_operand.vmem [shape: f32[2,4,100,16], index: 2, kind: input, shape index: {}, may-alias: {0,1,2}]   ;;  %s9188_s3 = inlined_call_operand.vmem [shape: f32[100,16], index: 3, kind: input, shape index: {}]   ;;  %s9189_s4 = inlined_call_operand.vmem [shape: f32[2,1,16], index: 4, kind: input, shape index: {}]   ;;  %s9190_s5 = inlined_call_operand.vmem [shape: f32[2,1,16], index: 5, kind: input, shape index: {}]   ;;  %s9191_s6 = inlined_call_operand.vmem [shape: bf16[9,48,16], index: 6, kind: input, shape index: {}]   ;;  %s9192_s7 = inlined_call_operand.vmem [shape: f32[1,16], index: 7, kind: input, shape index: {}]   ;;  %s9193_s8 = inlined_call_operand.vmem [shape: f32[16,4], index: 8, kind: input, shape index: {}]   ;;  %s9194_s9 = inlined_call_operand.vmem [shape: bf16[2,4,100,16], index: 9, kind: output, shape index: {0}]   ;;  %s9195_s10 = inlined_call_operand.vmem [shape: f32[2,2,1,4], index: 10, kind: output, shape index: {1}]   ;;  %s9196_s11 = inlined_call_operand.vmem [shape: f32[2,2,1,4], index: 11, kind: output, shape index: {2}]  }
   0x1   :  { %s6802_s19 = smov 0   ;;  %s6804_s20 = smov 0  }
   0x2   :  { %s6806_s21 = smov 0  }
   0x3 LB: > { %9212 = sst [smem:[#allocation3_spill]] %s6722_s19  ;;  %s31_s22 = sadd.s32 1, %s6722_s19  ;;  %s6730_s21 = sphi %s6806_s21, %s22_s21   ;;  %s6726_s20 = sphi %s6804_s20, %s9237_s20   ;;  %s6722_s19 = sphi %s6802_s19, %s9236_s19   ;;  %s6718_s18 = sphi %s6800_s18, %s9235_s18   ;;  %s6714_s17 = sphi %s6798_s17, %s9234_s17  }
   0x4   : > { %9213 = sst [smem:[#allocation4_spill]] %s6726_s20  ;;  %s34_s23 = sadd.s32 1, %s6726_s20 }
   0x5   : > { %p32_p0 = scmp.ge.s32.totalorder %s31_s22, 2  ;;  %p5330_p1 = scmp.ge.s32.totalorder %s6730_s21, 1 }
   0x6   : > { %p448_p2 = scmp.lt.s32.totalorder %s6730_s21, 5 }
   0x7   : > { %s9239_s22 = smov (%p32_p0, %s31_s22), 0  ;;  %s9241_s23 = smov (!%p32_p0, %s34_s23), %s6726_s20 }
   0x8   : > { %9214 = sst [smem:[#allocation5_spill]] %s9239_s22  ;;  %p449_p3 = pnand %p5330_p1, %p448_p2 }
   0x9   : > { %p36_p4 = scmp.ge.s32.totalorder %s9241_s23, 2 }
   0xa   : > { %452 = sbr.rel (%p449_p3) target bundleno = 1021 (0x3fd), region = 56 }
   0xb   : > { %s9243_s23 = smov (%p36_p4, %s9241_s23), 0 }
   0xc   : > { %9215 = sst [smem:[#allocation6_spill]] %s9243_s23 }
  0x11   : > { %s6831_s24 = sshll.u32 %s6714_s17, 1  ;;  %p548_p5 = scmp.lt.s32.totalorder %s6718_s18, 1  ;;  %v656_v0 = vlaneseq  ;;  %vm829_vm0 = vcmask 130052   ;;  %vm839_vm1 = vcmask 1046528   ;;  %vm879_vm2 = vcmask 1041408  }
  0x12   : > { %s5332_s25 = sadd.s32 4294967295, %s6831_s24  ;;  %p564_p6 = scmp.lt.s32.totalorder %s6831_s24, 3  ;;  %vm813_vm3 = vcmask 1043456   ;;  %vm831_vm4 = vcmask 130048   ;;  %vm6735_vm5 = vmmov 0   ;;  %vm804_vm6 = vcmask 388096  }
  0x13   : > { %p546_p7 = scmp.gt.s32.totalorder %s5332_s25, 0  ;;  %p5333_p8 = scmp.lt.s32.totalorder %s5332_s25, 3  ;;  %v657_v1 = vshrl.u32 %v656_v0, 7  ;;  %vm3345_vm7 = vcmask 123904   ;;  %vm836_vm8 = vcmask 125952   ;;  %vm806_vm9 = vcmask 392196  }
  0x14   : > { %s9245_s18 = smov (!%p548_p5, %s6718_s18), 1  ;;  %p649_p9 = scmp.gt.s32.totalorder %s6714_s17, 0  ;;  %vm869_vm10 = vcmask 261252   ;;  %vm909_vm11 = vcmask 392452   ;;  %vm871_vm12 = vcmask 261248   ;;  %vm911_vm13 = vcmask 392448  }
  0x15   : > { %s9247_s25 = smov (!%p546_p7, %s5332_s25), 0  ;;  %s6838_s26 = smul.u32 52, %s9245_s18  ;;  %v658_v2 = vsub.s32 0, %v657_v1  ;;  %vm1758_vm14 = vcmask 392192   ;;  %vm1847_vm15 = vsmask.f32 4352 }
  0x16   : > { %s9249_s25 = smov (!%p5333_p8, %s9247_s25), 3  ;;  %s591_s14 = scalar_lea.vmem %s9189_s4, %s9245_s18 }
  0x17   : > { %s565_s27 = scalar_select %p564_p6, %s6831_s24, 3  ;;  %v634_v3 = vld [vmem:[%s591_s14] sm:$0x1] }
  0x18   : > { %s6355_s28 = smul.u32 13, %s9249_s25  ;;  %p608_p10 = scmp.lt.s32.totalorder %s6714_s17, 1  ;;  %v6861_v4 = vrot.slane %v634_v3, %v658_v2 }
  0x19   : > { %s6357_s29 = smul.u32 13, %s565_s27  ;;  %s594_s20 = scalar_lea.vmem %s9190_s5, %s9245_s18 }
  0x1a   : > { %s554_s30 = sadd.s32 %s6838_s26, %s6355_s28  ;;  %v635_v5 = vld [vmem:[%s594_s20] sm:$0x1]  ;;  %s6733_s22 = smov 32  }
  0x1b   : > { %s6847_s15 = sadd.s32 %s6357_s29, %s6838_s26  ;;  %s5338_s25 = sshll.u32 %s554_s30, 3  ;;  %v6872_v9 = vrot.slane %v635_v5, %v658_v2 }
  0x1c   : > { %s5340_s16 = sshll.u32 %s6847_s15, 3  ;;  %s6868_s23 = scalar_lea.vmem %s9185_s0, %s5338_s25 }
  0x1d   : > { %s6859_s28 = scalar_lea.vmem %s9186_s1, %s5340_s16  ;;  %v636_v13 = vld [vmem:[%s6868_s23] sm:$0xff]  ;;  %v637_v14 = vld [vmem:[%s6868_s23 + $0x8] sm:$0xff]  ;;  %v638_v19 = vld [vmem:[%s6868_s23 + $0x10] sm:$0xff]  ;;  %s6734_s14 = smov 16  }
  0x1e   : > { %s650_s29 = scalar_select %p649_p9, 1, 0  ;;  %v918_v6 = vld [vmem:[%s6859_s28] sm:$0xff]  ;;  %v919_v7 = vld [vmem:[%s6859_s28 + $0x8] sm:$0xff]  ;;  %v920_v10 = vld [vmem:[%s6859_s28 + $0x10] sm:$0xff] }
  0x1f   : > { %s1447_s12 = scalar_select %p608_p10, 1, 0  ;;  %v921_v11 = vld [vmem:[%s6859_s28 + $0x18] sm:$0xff]  ;;  %v937_v12 = vmul.f32 %v6861_v4, %v918_v6  ;;  %v922_v18 = vld [vmem:[%s6859_s28 + $0x20] sm:$0xff]  ;;  %v938_v24 = vmul.f32 %v6861_v4, %v919_v7  ;;  %v641_v27 = vld [vmem:[%s6868_s23 + $0x28] sm:$0xff]  ;;  %v939_v30 = vmul.f32 %v6861_v4, %v920_v10 }
  0x20   : > { %s651_s19 = scvt.s32.f32 %s650_s29  ;;  %v639_v20 = vld [vmem:[%s6868_s23 + $0x18] sm:$0xff]  ;;  %v640_v23 = vld [vmem:[%s6868_s23 + $0x20] sm:$0xff]  ;;  %v642_v28 = vld [vmem:[%s6868_s23 + $0x30] sm:$0xff]  ;;  %v940_v31 = vmul.f32 %v6861_v4, %v921_v11  ;;  %v6897_v35 = vmul.f32 %v6861_v4, %v922_v18  ;;  %s5347_s27 = sshll.u32 %s6847_s15, 2 }
  0x21   : > { %s1448_s30 = scvt.s32.f32 %s1447_s12  ;;  %v643_v29 = vld [vmem:[%s6868_s23 + $0x38] sm:$0xff]  ;;  %v6894_v34 = vadd.f32 %v6872_v9, %v937_v12  ;;  %v644_v40 = vld [vmem:[%s6868_s23 + $0x40] sm:$0xff]  ;;  %v645_v41 = vld [vmem:[%s6868_s23 + $0x48] sm:$0xff]  ;;  %v6925_v63 = vadd.f32 %v6872_v9, %v938_v24  ;;  %v6928_v0 = vadd.f32 %v6872_v9, %v939_v30  ;;  %s7271_s13 = scalar_lea.vmem %s9194_s9, %s5347_s27 }
  0x22   : > { %v652_v8 = vstv %s651_s19  ;;  %v646_v50 = vld [vmem:[%s6868_s23 + $0x50] sm:$0xff]  ;;  %v647_v51 = vld [vmem:[%s6868_s23 + $0x58] sm:$0xff]  ;;  %v648_v62 = vld [vmem:[%s6868_s23 + $0x60] sm:$0xf]  ;;  %v6948_v18 = vadd.f32 %v6872_v9, %v940_v31  ;;  %s573_s15 = sadd.s32 2, %s6831_s24  ;;  %s9255_s17 = smov (!%p608_p10, %s6714_s17), 1 }
  0x23   : > { %v653_v15 = vmul.f32 %v652_v8, %v634_v3  ;;  %v654_v16 = vmul.f32 %v652_v8, %v635_v5  ;;  %v1449_v17 = vstv %s1448_s30  ;;  %v924_v10 = vld [vmem:[%s6859_s28 + $0x30] sm:$0xff]  ;;  %v925_v24 = vld [vmem:[%s6859_s28 + $0x38] sm:$0xff]  ;;  %v927_v30 = vld [vmem:[%s6859_s28 + $0x48] sm:$0xff]  ;;  %p574_p11 = scmp.lt.s32.totalorder %s573_s15, 3 }
  0x24   : > { %v1450_v21 = vmul.f32 %v1449_v17, %v634_v3  ;;  %v1451_v22 = vmul.f32 %v1449_v17, %v635_v5  ;;  %v923_v5 = vld [vmem:[%s6859_s28 + $0x28] sm:$0xff] }
  0x25   : > { %v659_v25 = vrot.slane %v653_v15, %v658_v2  ;;  %v678_v26 = vrot.slane %v654_v16, %v658_v2  ;;  %s9251_s15 = smov (!%p574_p11, %s573_s15), 3 }
  0x26   : > { %v6889_v32 = vrot.slane %v1450_v21, %v658_v2  ;;  %v6891_v33 = vrot.slane %v1451_v22, %v658_v2  ;;  %v942_v21 = vmul.f32 %v6861_v4, %v923_v5  ;;  %s9253_s15 = smov (!%p574_p11, %s9251_s15), 3 }
  0x27   : > { %v661_v36 = vmul.f32 %v659_v25, %v636_v13  ;;  %v662_v37 = vmul.f32 %v659_v25, %v637_v14  ;;  %v663_v38 = vmul.f32 %v659_v25, %v638_v19  ;;  %v664_v39 = vmul.f32 %v659_v25, %v639_v20 }
  0x28   : > { %9216 = vst [vmem:[#allocation7_spill] sm:$0xff] %v6889_v32  ;;  %9217 = vst [vmem:[#allocation8_spill] sm:$0xff] %v6891_v33  ;;  %v665_v42 = vmul.f32 %v659_v25, %v640_v23  ;;  %v666_v43 = vmul.f32 %v659_v25, %v641_v27  ;;  %v667_v44 = vmul.f32 %v659_v25, %v642_v28  ;;  %v6952_v20 = vmul.f32 -1.442695, %v6894_v34 }
  0x29   : > { %v668_v45 = vmul.f32 %v659_v25, %v643_v29  ;;  %v6901_v46 = vadd.f32 %v678_v26, %v661_v36  ;;  %v6903_v47 = vadd.f32 %v678_v26, %v662_v37  ;;  %v6905_v48 = vadd.f32 %v678_v26, %v663_v38  ;;  %v926_v29 = vld [vmem:[%s6859_s28 + $0x40] sm:$0xff] }
  0x2a   : > { %v6907_v49 = vadd.f32 %v678_v26, %v664_v39  ;;  %v6911_v52 = vadd.f32 %v678_v26, %v665_v42  ;;  %v6913_v53 = vadd.f32 %v678_v26, %v666_v43  ;;  %v6915_v54 = vadd.f32 %v678_v26, %v667_v44 }
  0x2b   : > { %v6917_v55 = vadd.f32 %v678_v26, %v668_v45  ;;  %v5350_v56 = vmul.f32 -1.442695, %v6901_v46  ;;  %v5351_v57 = vmul.f32 -1.442695, %v6903_v47  ;;  %v5352_v58 = vmul.f32 -1.442695, %v6905_v48 }
  0x2c   : > { %v669_v59 = vmul.f32 %v659_v25, %v644_v40  ;;  %v5353_v60 = vmul.f32 -1.442695, %v6907_v49  ;;  %v670_v61 = vmul.f32 %v659_v25, %v645_v41  ;;  %v5354_v1 = vmul.f32 -1.442695, %v6911_v52 }
  0x2d   : > { %6459 = vpow2.f32 %v5350_v56  ;;  %v5355_v2 = vmul.f32 -1.442695, %v6913_v53  ;;  %v671_v7 = vmul.f32 %v659_v25, %v646_v50  ;;  %v672_v8 = vmul.f32 %v659_v25, %v647_v51  ;;  %v928_v51 = vld [vmem:[%s6859_s28 + $0x50] sm:$0xff]  ;;  %v930_v56 = vld [vmem:[%s6859_s28 + $0x60] sm:$0xf] }
  0x2e   : > { %v6932_v3 = vadd.f32 %v678_v26, %v669_v59  ;;  %6461 = vpow2.f32 %v5351_v57  ;;  %v6935_v6 = vadd.f32 %v678_v26, %v670_v61  ;;  %v5356_v11 = vmul.f32 -1.442695, %v6915_v54 }
  0x2f   : > { %6463 = vpow2.f32 %v5352_v58  ;;  %v5357_v12 = vmul.f32 -1.442695, %v6917_v55  ;;  %v673_v13 = vmul.f32 %v659_v25, %v648_v62  ;;  %v6941_v15 = vadd.f32 %v678_v26, %v671_v7 }
  0x30   : > { %6465 = vpow2.f32 %v5353_v60  ;;  %v5358_v14 = vmul.f32 -1.442695, %v6932_v3  ;;  %v6943_v16 = vadd.f32 %v678_v26, %v672_v8  ;;  %v5359_v19 = vmul.f32 -1.442695, %v6935_v6 }
  0x31   : > { %6467 = vpow2.f32 %v5354_v1  ;;  %v6945_v17 = vadd.f32 %v678_v26, %v673_v13  ;;  %v5360_v22 = vmul.f32 -1.442695, %v6941_v15  ;;  %v6957_v23 = vmul.f32 -1.442695, %v6925_v63  ;;  %v929_v1 = vld [vmem:[%s6859_s28 + $0x58] sm:$0xff] }
  0x32   : > { %6469 = vpow2.f32 %v5355_v2  ;;  %v943_v25 = vmul.f32 %v6861_v4, %v924_v10  ;;  %v5361_v26 = vmul.f32 -1.442695, %v6943_v16  ;;  %v6963_v27 = vmul.f32 -1.442695, %v6928_v0 }
  0x33   : > { %6471 = vpow2.f32 %v5356_v11  ;;  %v6967_v28 = vadd.f32 %v6872_v9, %v6897_v35  ;;  %v5362_v31 = vmul.f32 -1.442695, %v6945_v17  ;;  %v6973_v36 = vmul.f32 -1.442695, %v6948_v18 }
  0x34   : > { %6473 = vpow2.f32 %v5357_v12  ;;  %v6976_v37 = vadd.f32 %v6872_v9, %v942_v21  ;;  %v6979_v39 = vadd.f32 %v6872_v9, %v943_v25  ;;  %v944_v42 = vmul.f32 %v6861_v4, %v925_v24 }
  0x35   : > { %6475 = vpow2.f32 %v5358_v14  ;;  %v6982_v41 = vmul.f32 -1.442695, %v6967_v28  ;;  %v945_v45 = vmul.f32 %v6861_v4, %v926_v29  ;;  %v946_v50 = vmul.f32 %v6861_v4, %v927_v30 }
  0x36   : > { %6477 = vpow2.f32 %v5359_v19  ;;  %v6990_v59 = vmul.f32 -1.442695, %v6976_v37  ;;  %v6993_v62 = vmul.f32 -1.442695, %v6979_v39  ;;  %v6997_v7 = vadd.f32 %v6872_v9, %v944_v42 }
  0x37   : > { %v6460_v38 = vpop.eup %6459  ;;  %6479 = vpow2.f32 %v5360_v22  ;;  %v947_v8 = vmul.f32 %v6861_v4, %v928_v51  ;;  %v7001_v12 = vadd.f32 %v6872_v9, %v945_v45  ;;  %v7004_v13 = vadd.f32 %v6872_v9, %v946_v50  ;;  %v7024_v45 = vld [vmem:[%s9188_s3] sm:$0xff] }
  0x38   : > { %v6462_v35 = vpop.eup %6461  ;;  %v732_v40 = vadd.f32 1.0, %v6460_v38  ;;  %6481 = vpow2.f32 %v5361_v26  ;;  %v948_v21 = vmul.f32 %v6861_v4, %v929_v1  ;;  %v949_v22 = vmul.f32 %v6861_v4, %v930_v56  ;;  %v5376_v38 = vld [vmem:[%s6859_s28 + $0x68] sm:$0xff] }
  0x39   : > { %v6464_v43 = vpop.eup %6463  ;;  %v733_v44 = vadd.f32 1.0, %v6462_v35  ;;  %6483 = vpow2.f32 %v5362_v31  ;;  %v7009_v30 = vmul.f32 -1.442695, %v6997_v7  ;;  %v7012_v31 = vadd.f32 %v6872_v9, %v947_v8  ;;  %v5377_v8 = vld [vmem:[%s6859_s28 + $0x70] sm:$0xff] }
  0x3a   : > { %v6466_v57 = vpop.eup %6465  ;;  %v734_v58 = vadd.f32 1.0, %v6464_v43  ;;  %6485 = vrcp.f32 %v732_v40  ;;  %v7016_v42 = vmul.f32 -1.442695, %v7001_v12  ;;  %v7019_v43 = vmul.f32 -1.442695, %v7004_v13 }
  0x3b   : > { %v6468_v60 = vpop.eup %6467  ;;  %v735_v61 = vadd.f32 1.0, %v6466_v57  ;;  %6487 = vrcp.f32 %v733_v44  ;;  %v7027_v51 = vadd.f32 %v6872_v9, %v948_v21  ;;  %v7030_v56 = vadd.f32 %v6872_v9, %v949_v22 }
  0x3c   : > { %v6470_v2 = vpop.eup %6469  ;;  %6489 = vrcp.f32 %v734_v58  ;;  %v736_v5 = vadd.f32 1.0, %v6468_v60  ;;  %v7035_v58 = vld [vmem:[%s9188_s3 + $0x8] sm:$0xff] }
  0x3d   : > { %v6472_v10 = vpop.eup %6471  ;;  %6491 = vrcp.f32 %v735_v61  ;;  %v737_v11 = vadd.f32 1.0, %v6470_v2  ;;  %9218 = vst [vmem:[#allocation9_spill] sm:$0xff] %v7030_v56  ;;  %v1195_v61 = vmul.f32 %v5376_v38, %v6861_v4  ;;  %v7041_v2 = vld [vmem:[%s9188_s3 + $0x10] sm:$0xff] }
  0x3e   : > { %v6474_v14 = vpop.eup %6473  ;;  %6493 = vrcp.f32 %v736_v5  ;;  %v738_v19 = vadd.f32 1.0, %v6472_v10 }
  0x3f   : > { %v6476_v24 = vpop.eup %6475  ;;  %6495 = vrcp.f32 %v737_v11  ;;  %v739_v25 = vadd.f32 1.0, %v6474_v14  ;;  %v7047_v11 = vld [vmem:[%s9188_s3 + $0x18] sm:$0xff] }
  0x40   : > { %v6478_v26 = vpop.eup %6477  ;;  %6497 = vrcp.f32 %v738_v19  ;;  %v740_v29 = vadd.f32 1.0, %v6476_v24  ;;  %v7051_v19 = vmul.f32 -1.442695, %v7012_v31  ;;  %v7057_v24 = vld [vmem:[%s9188_s3 + $0x20] sm:$0xff] }
  0x41   : > { %v6480_v35 = vpop.eup %6479  ;;  %6499 = vrcp.f32 %v739_v25  ;;  %v741_v40 = vadd.f32 1.0, %v6478_v26  ;;  %v7060_v25 = vmul.f32 -1.442695, %v7027_v51  ;;  %v7063_v26 = vmul.f32 -1.442695, %v7030_v56 }
  0x42   : > { %v6482_v44 = vpop.eup %6481  ;;  %6501 = vrcp.f32 %v740_v29  ;;  %v742_v50 = vadd.f32 1.0, %v6480_v35  ;;  %v7074_v35 = vadd.f32 %v1195_v61, %v6872_v9 }
  0x43   : > { %v6484_v57 = vpop.eup %6483  ;;  %6503 = vrcp.f32 %v741_v40  ;;  %v743_v60 = vadd.f32 1.0, %v6482_v44 }
  0x44   : > { %v6486_v1 = vpop.eup %6485  ;;  %6505 = vrcp.f32 %v742_v50  ;;  %v744_v5 = vadd.f32 1.0, %v6484_v57  ;;  %9219 = vst [vmem:[#allocation10_spill] sm:$0xff] %v7074_v35  ;;  %v7085_v57 = vmul.f32 %v5377_v8, %v6861_v4 }
  0x45   : > { %v6488_v10 = vpop.eup %6487  ;;  %v771_v14 = vmul.f32 %v6486_v1, %v6901_v46  ;;  %6507 = vrcp.f32 %v743_v60  ;;  %v7095_v1 = vld [vmem:[%s9188_s3 + $0x38] sm:$0xff] }
  0x46   : > { %v6490_v21 = vpop.eup %6489  ;;  %v772_v22 = vmul.f32 %v6488_v10, %v6903_v47  ;;  %6509 = vrcp.f32 %v744_v5  ;;  %v7070_v47 = vld [vmem:[%s9188_s3 + $0x28] sm:$0xff] }
  0x47   : > { %v6492_v46 = vpop.eup %6491  ;;  %v773_v29 = vmul.f32 %v6490_v21, %v6905_v48  ;;  %v784_v38 = vmul.f32 %v771_v14, %v7024_v45  ;;  %6511 = vpow2.f32 %v6952_v20  ;;  %v7081_v48 = vld [vmem:[%s9188_s3 + $0x30] sm:$0xff]  ;;  %v6405_v20 = vld [vmem:[%s9191_s6 + $0x18] sm:$0xff]   ;;  %v7105_v14 = vld [vmem:[%s9188_s3 + $0x40] sm:$0xff] }
  0x48   : > { %v6494_v40 = vpop.eup %6493  ;;  %v774_v44 = vmul.f32 %v6492_v46, %v6907_v49  ;;  %v785_v50 = vmul.f32 %v772_v22, %v7035_v58  ;;  %6513 = vpow2.f32 %v6957_v23 }
  0x49   : > { %v6496_v60 = vpop.eup %6495  ;;  %v786_v61 = vmul.f32 %v773_v29, %v7041_v2  ;;  %v775_v49 = vmul.f32 %v6494_v40, %v6911_v52  ;;  %6515 = vpow2.f32 %v6963_v27  ;;  %v9199_v52 = vmov 0.0  }
  0x4a   : > { %v6498_v23 = vpop.eup %6497  ;;  %v787_v5 = vmul.f32 %v774_v44, %v7047_v11  ;;  %v7099_v8 = vpack.c.bf16 %v785_v50, %v784_v38  ;;  %v776_v10 = vmul.f32 %v6496_v60, %v6913_v53  ;;  %6517 = vpow2.f32 %v6973_v36  ;;  %5867 = vmatprep.subr.bf16.mxu0 %v9199_v52  ;;  %5893 = vmatprep.subr.bf16.mxu1 %v9199_v52  ;;  %v7124_v44 = vld [vmem:[%s9188_s3 + $0x48] sm:$0xff] }
  0x4b   : > { %v6500_v27 = vpop.eup %6499  ;;  %v788_v21 = vmul.f32 %v775_v49, %v7057_v24  ;;  %v777_v22 = vmul.f32 %v6498_v23, %v6915_v54  ;;  %6519 = vpow2.f32 %v6982_v41  ;;  %v7114_v53 = vmul.f32 -1.442695, %v7074_v35  ;;  %5868 = vmatpush3.bf16.msra.mxu0 %v6405_v20  ;;  %v7129_v54 = vld [vmem:[%s9188_s3 + $0x50] sm:$0xff]  ;;  %v6406_v41 = vld [vmem:[%s9191_s6] sm:$0xff]  }
  0x4c   : > { %v6502_v46 = vpop.eup %6501  ;;  %v7116_v29 = vpack.c.bf16 %v787_v5, %v786_v61  ;;  %v840_v36 = vrot.slane %v7099_v8, 1  ;;  %v789_v38 = vmul.f32 %v776_v10, %v7070_v47  ;;  %v778_v40 = vmul.f32 %v6500_v27, %v6917_v55  ;;  %9220 = vst [vmem:[#allocation11_spill] sm:$0xff] %v7129_v54  ;;  %5869 = vmatprep.subr.bf16.mxu0 %v9199_v52  ;;  %v6407_v55 = vld [vmem:[%s9191_s6 + $0x20] sm:$0xff]   ;;  %v7150_v52 = vld [vmem:[%s9188_s3 + $0x58] sm:$0xff] }
  0x4d   : > { %v6504_v50 = vpop.eup %6503  ;;  %v790_v20 = vmul.f32 %v777_v22, %v7081_v48  ;;  %v779_v60 = vmul.f32 %v6502_v46, %v6932_v3  ;;  %6521 = vpow2.f32 %v6990_v59  ;;  %v9202_v61 = vrot.slane %v7099_v8, 4  ;;  %9221 = vst [vmem:[#allocation12_spill] sm:$0xff] %v7150_v52  ;;  %v7155_v3 = vld [vmem:[%s9188_s3 + $0x60] sm:$0xf]  ;;  %5894 = vmatpush3.bf16.msra.mxu1 %v6406_v41 }
  0x4e   : > { %v6506_v49 = vpop.eup %6505  ;;  %v841_v23 = vrot.slane %v7116_v29, 1  ;;  %v880_v5 = vrot.slane %v7116_v29, 6  ;;  %v7144_v10 = vpack.c.bf16 %v789_v38, %v788_v21  ;;  %v791_v27 = vmul.f32 %v778_v40, %v7095_v1  ;;  %9222 = vst [vmem:[#allocation13_spill] sm:$0xff] %v7155_v3 }
  0x4f   : > { %v6508_v59 = vpop.eup %6507  ;;  %v780_v22 = vmul.f32 %v6504_v50, %v6935_v6  ;;  %v792_v46 = vmul.f32 %v779_v60, %v7105_v14  ;;  %v781_v21 = vmul.f32 %v6506_v49, %v6941_v15  ;;  %6523 = vpow2.f32 %v6993_v62  ;;  %830 = vst.msk [vmem:[#allocation2] sm:$0xf0] %vm829_vm0, %v9202_v61  ;;  %5870 = vmatpush3.bf16.msra.mxu0 %v6407_v55  ;;  %v6408_v62 = vld [vmem:[%s9191_s6 + $0x8] sm:$0xff]  }
  0x50   : > { %v9223_v38 = vmov 0.0   ;;  %v6510_v40 = vpop.eup %6509  ;;  %v842_v33 = vsel %vm839_vm1, %v840_v36, %v841_v23  ;;  %891 = vrot.lane.b32.xlu1 %v880_v5, %s6733_s22  ;;  %v843_v6 = vrot.slane %v7144_v10, 1  ;;  %v881_v41 = vrot.slane %v7144_v10, 6  ;;  %v6409_v55 = vld [vmem:[%s9191_s6 + $0x28] sm:$0xff]  }
  0x51   : > { %5895 = vmatprep.subr.bf16.mxu1 %v9223_v38  ;;  %v7169_v15 = vpack.c.bf16 %v791_v27, %v790_v20  ;;  %5871 = vmatprep.subr.bf16.mxu0 %v9223_v38  ;;  %v6512_v36 = vpop.eup %6511  ;;  %v793_v50 = vmul.f32 %v780_v22, %v7124_v44  ;;  %v782_v60 = vmul.f32 %v6508_v59, %v6943_v16  ;;  %v6410_v27 = vld [vmem:[%s9191_s6 + $0x10] sm:$0xff]  }
  0x52   : > { %851 = vrot.lane.b32.xlu0 %v842_v33, %s6734_s14  ;;  %v794_v20 = vmul.f32 %v781_v21, %v7129_v54  ;;  %v783_v49 = vmul.f32 %v6510_v40, %v6945_v17  ;;  %v6514_v61 = vpop.eup %6513  ;;  %v844_v32 = vsel %vm839_vm1, %v841_v23, %v843_v6  ;;  %v882_v35 = vsel %vm879_vm2, %v880_v5, %v881_v41  ;;  %v5378_v54 = vld [vmem:[%s6859_s28 + $0x78] sm:$0xff] }
  0x53   : > { %v845_v33 = vrot.slane %v7169_v15, 1  ;;  %v883_v22 = vrot.slane %v7169_v15, 6  ;;  %5896 = vmatpush3.bf16.msra.mxu1 %v6408_v62  ;;  %v6516_v16 = vpop.eup %6515  ;;  %v7190_v59 = vpack.c.bf16 %v793_v50, %v792_v46  ;;  %v795_v17 = vmul.f32 %v782_v60, %v7150_v52  ;;  %5872 = vmatpush3.bf16.msra.mxu0 %v6409_v55 }
  0x54   : > { %v796_v21 = vmul.f32 %v783_v49, %v7155_v3  ;;  %v1008_v40 = vadd.f32 1.0, %v6512_v36  ;;  %5897 = vmatprep.subr.bf16.mxu1 %v9223_v38  ;;  %v6518_v23 = vpop.eup %6517  ;;  %893 = vrot.lane.b32.xlu1 %v882_v35, %s6733_s22  ;;  %v1009_v56 = vadd.f32 1.0, %v6514_v61  ;;  %v1010_v50 = vadd.f32 1.0, %v6516_v16  ;;  %v5379_v61 = vld [vmem:[%s6859_s28 + $0x80] sm:$0xff]  ;;  %v5380_v16 = vld [vmem:[%s6859_s28 + $0x88] sm:$0xff] }
  0x55   : > { %v846_v5 = vsel %vm839_vm1, %v843_v6, %v845_v33  ;;  %5919 = vmatprep.subr.bf16.mxu0 %v9223_v38  ;;  %v6520_v46 = vpop.eup %6519  ;;  %v884_v62 = vsel %vm879_vm2, %v881_v41, %v883_v22  ;;  %v885_v55 = vrot.slane %v7190_v59, 6  ;;  %v7202_v36 = vpack.c.bf16 %v795_v17, %v794_v20  ;;  %5873 = vmatprep.mubr.msk.bf16.mxu0 %vm6735_vm5, %v9223_v38 }
  0x56   : > { %853 = vrot.lane.b32.xlu0 %v844_v32, %s6734_s14  ;;  %v847_v35 = vrot.slane %v7190_v59, 1  ;;  %v1011_v6 = vadd.f32 1.0, %v6518_v23  ;;  %6525 = vrcp.f32 %v1008_v40  ;;  %v815_v60 = vrot.slane %v7116_v29, 4  ;;  %5899 = vmatprep.mubr.msk.bf16.mxu1 %vm6735_vm5, %v9223_v38 }
  0x57   : > { %5898 = vmatpush3.bf16.msra.mxu1 %v6410_v27  ;;  %v6522_v49 = vpop.eup %6521  ;;  %v803_v3 = vpack.c.bf16 %v796_v21, %v796_v21  ;;  %v1012_v52 = vadd.f32 1.0, %v6520_v46  ;;  %v1197_v32 = vmul.f32 %v5378_v54, %v6861_v4  ;;  %v887_v41 = vrot.slane %v7202_v36, 6 }
  0x58   : > { %5945 = vmatprep.subr.bf16.mxu1 %v9223_v38  ;;  %895 = vrot.lane.b32.xlu1 %v884_v62, %s6733_s22  ;;  %6527 = vrcp.f32 %v1009_v56  ;;  %v1013_v20 = vadd.f32 1.0, %v6522_v49  ;;  %v9224_v17 = vrot.slane %v7099_v8, 4  ;;  %v886_v27 = vsel %vm879_vm2, %v883_v22, %v885_v55 }
  0x59   : > { %v6524_v29 = vpop.eup %6523  ;;  %6529 = vrcp.f32 %v1010_v50  ;;  %v1198_v54 = vmul.f32 %v5379_v61, %v6861_v4  ;;  %v7220_v21 = vadd.f32 %v7085_v57, %v6872_v9  ;;  %v848_v56 = vsel %vm839_vm1, %v845_v33, %v847_v35 }
  0x5a   : > { %v816_v40 = vsel %vm813_vm3, %v9224_v17, %v815_v60  ;;  %855 = vrot.lane.b32.xlu0 %v846_v5, %s6734_s14  ;;  %v849_v8 = vrot.slane %v7202_v36, 1  ;;  %6531 = vrcp.f32 %v1011_v6  ;;  %v1014_v23 = vadd.f32 1.0, %v6524_v29 }
  0x5b   : > { %832 = vst.msk [vmem:[#allocation2 + $0x8] sm:$0xff] %vm831_vm4, %v816_v40  ;;  %6533 = vrcp.f32 %v1012_v52  ;;  %v7226_v22 = vadd.f32 %v1197_v32, %v6872_v9  ;;  %v817_v5 = vrot.slane %v7144_v10, 4  ;;  %v819_v46 = vrot.slane %v7169_v15, 4  ;;  %v5381_v52 = vld [vmem:[%s6859_s28 + $0x90] sm:$0xff]  ;;  %v5384_v40 = vld [vmem:[%s6859_s28 + $0xa8] sm:$0xff] }
  0x5c   : > { %897 = vrot.lane.b32.xlu1 %v886_v27, %s6733_s22  ;;  %v889_v57 = vrot.slane %v803_v3, 6  ;;  %6535 = vrcp.f32 %v1013_v20  ;;  %v1199_v62 = vmul.f32 %v5380_v16, %v6861_v4  ;;  %v888_v33 = vsel %vm879_vm2, %v885_v55, %v887_v41  ;;  %v5383_v16 = vld [vmem:[%s6859_s28 + $0xa0] sm:$0xff] }
  0x5d   : > { %6537 = vpow2.f32 %v7009_v30  ;;  %v818_v50 = vsel %vm813_vm3, %v815_v60, %v817_v5  ;;  %v820_v10 = vsel %vm813_vm3, %v817_v5, %v819_v46  ;;  %v850_v3 = vsel %vm839_vm1, %v847_v35, %v849_v8  ;;  %v5382_v30 = vld [vmem:[%s6859_s28 + $0x98] sm:$0xff] }
  0x5e   : > { %857 = vrot.lane.b32.xlu0 %v848_v56, %s6734_s14  ;;  %6539 = vrcp.f32 %v1014_v23  ;;  %v7245_v15 = vadd.f32 %v1198_v54, %v6872_v9  ;;  %v5390_v55 = vmul.f32 -1.442695, %v7220_v21  ;;  %833 = vst.msk [vmem:[#allocation2 + $0x10] sm:$0xff] %vm831_vm4, %v818_v50  ;;  %834 = vst.msk [vmem:[#allocation2 + $0x18] sm:$0xff] %vm831_vm4, %v820_v10  ;;  %v821_v6 = vrot.slane %v7190_v59, 4  ;;  %v5385_v10 = vld [vmem:[%s6859_s28 + $0xb0] sm:$0xff] }
  0x5f   : > { %6541 = vpow2.f32 %v7016_v42  ;;  %v890_v61 = vsel %vm879_vm2, %v887_v41, %v889_v57  ;;  %v1200_v60 = vmul.f32 %v5381_v52, %v6861_v4  ;;  %v7260_v49 = vadd.f32 %v1199_v62, %v6872_v9 }
  0x60   : > { %v6526_v35 = vpop.eup %6525  ;;  %899 = vrot.lane.b32.xlu1 %v888_v33, %s6733_s22  ;;  %6543 = vpow2.f32 %v7019_v43  ;;  %v6736_v32 = vmov 0   ;;  %v822_v43 = vsel %vm813_vm3, %v819_v46, %v821_v6  ;;  %v5391_v41 = vmul.f32 -1.442695, %v7226_v22  ;;  %837 = vst.msk [vmem:[#allocation2 + $0x28] sm:$0xf] %vm836_vm8, %v821_v6 }
  0x61   : > { %805 = vst.msk [vmem:[#allocation2] sm:$0xf] %vm804_vm6, %v6736_v32  ;;  %1081 = vst.msk [vmem:[#allocation2 + $0x30] sm:$0xf] %vm804_vm6, %v6736_v32  ;;  %v1047_v42 = vmul.f32 %v6526_v35, %v6894_v34  ;;  %6545 = vpow2.f32 %v7051_v19  ;;  %v5392_v20 = vmul.f32 -1.442695, %v7245_v15  ;;  %v1201_v17 = vmul.f32 %v5382_v30, %v6861_v4 }
  0x62   : > { %1333 = vst.msk [vmem:[#allocation2 + $0x60] sm:$0xf] %vm804_vm6, %v6736_v32  ;;  %1602 = vst.msk [vmem:[#allocation2 + $0x90] sm:$0xf] %vm804_vm6, %v6736_v32  ;;  %859 = vrot.lane.b32.xlu0 %v850_v3, %s6734_s14  ;;  %v6528_v59 = vpop.eup %6527  ;;  %6547 = vpow2.f32 %v7060_v25  ;;  %v7295_v54 = vadd.f32 %v1200_v60, %v6872_v9  ;;  %v5393_v56 = vmul.f32 -1.442695, %v7260_v49  ;;  %v1203_v57 = vmul.f32 %v5384_v40, %v6861_v4 }
  0x63   : > { %835 = vst.msk [vmem:[#allocation2 + $0x20] sm:$0xff] %vm831_vm4, %v822_v43  ;;  %v6530_v34 = vpop.eup %6529  ;;  %v1048_v19 = vmul.f32 %v6528_v59, %v6925_v63  ;;  %v1060_v25 = vmul.f32 %v1047_v42, %v7024_v45  ;;  %6549 = vpow2.f32 %v7063_v26  ;;  %vm876_vm6 = vcmask 257152  }
  0x64   : > { %3346 = vst.msk [vmem:[%s7271_s13 + $0x30] sm:$0x3] %vm3345_vm7, %v6736_v32  ;;  %5690 = vst.msk [vmem:[%s7271_s13 + $0x64] sm:$0x3] %vm3345_vm7, %v6736_v32  ;;  %v6532_v29 = vpop.eup %6531  ;;  %901 = vrot.lane.b32.xlu1 %v890_v61, %s6733_s22  ;;  %v1049_v27 = vmul.f32 %v6530_v34, %v6928_v0  ;;  %6551 = vpow2.f32 %v7114_v53  ;;  %v1202_v53 = vmul.f32 %v5383_v16, %v6861_v4  ;;  %v7323_v6 = vmul.f32 -1.442695, %v7295_v54 }
  0x65   : > { %3342 = vst.msk [vmem:[%s7271_s13] sm:$0xf] %vm836_vm8, %v6736_v32  ;;  %5687 = vst.msk [vmem:[%s7271_s13 + $0x34] sm:$0xf] %vm836_vm8, %v6736_v32  ;;  %v6534_v63 = vpop.eup %6533  ;;  %v1050_v0 = vmul.f32 %v6532_v29, %v6948_v18  ;;  %v1061_v26 = vmul.f32 %v1048_v19, %v7035_v58  ;;  %6553 = vpow2.f32 %v5390_v55  ;;  %v7326_v61 = vadd.f32 %v1201_v17, %v6872_v9  ;;  %v5386_v16 = vld [vmem:[%s6859_s28 + $0xb8] sm:$0xff] }
  0x66   : > { %861 = vrot.lane.b32.xlu0 %v849_v8, %s6734_s14  ;;  %v6536_v23 = vpop.eup %6535  ;;  %v1062_v5 = vmul.f32 %v1049_v27, %v7041_v2  ;;  %v1051_v46 = vmul.f32 %v6534_v63, %v6967_v28  ;;  %6555 = vpow2.f32 %v5391_v41  ;;  %v7329_v60 = vadd.f32 %v1202_v53, %v6872_v9  ;;  %807 = vst.msk [vmem:[#allocation2 + $0x28] sm:$0xf0] %vm806_vm9, %v6736_v32 }
  0x67   : > { %v6538_v62 = vpop.eup %6537  ;;  %v1063_v36 = vmul.f32 %v1050_v0, %v7047_v11  ;;  %v7315_v8 = vpack.c.bf16 %v1061_v26, %v1060_v25  ;;  %v1052_v18 = vmul.f32 %v6536_v23, %v6976_v37  ;;  %6557 = vpow2.f32 %v5392_v20  ;;  %1082 = vst.msk [vmem:[#allocation2 + $0x58] sm:$0xf0] %vm806_vm9, %v6736_v32  ;;  %1334 = vst.msk [vmem:[#allocation2 + $0x88] sm:$0xf0] %vm806_vm9, %v6736_v32 }
  0x68   : > { %v6540_v33 = vpop.eup %6539  ;;  %v1064_v52 = vmul.f32 %v1051_v46, %v7057_v24  ;;  %v1015_v50 = vadd.f32 1.0, %v6538_v62  ;;  %6559 = vpow2.f32 %v5393_v56  ;;  %v1204_v41 = vmul.f32 %v5385_v10, %v6861_v4  ;;  %1603 = vst.msk [vmem:[#allocation2 + $0xb8] sm:$0xf0] %vm806_vm9, %v6736_v32 }
  0x69   : > { %v6542_v3 = vpop.eup %6541  ;;  %v1074_v28 = vpack.c.bf16 %v1063_v36, %v1062_v5  ;;  %v1110_v55 = vrot.slane %v7315_v8, 1  ;;  %v1065_v30 = vmul.f32 %v1052_v18, %v7070_v47  ;;  %v7335_v20 = vadd.f32 %v1203_v57, %v6872_v9 }
  0x6a   : > { %v6544_v35 = vpop.eup %6543  ;;  %6561 = vrcp.f32 %v1015_v50  ;;  %v1016_v37 = vadd.f32 1.0, %v6542_v3  ;;  %v1205_v53 = vmul.f32 %v5386_v16, %v6861_v4  ;;  %v1088_v23 = vrot.slane %v7315_v8, 4 }
  0x6b   : > { %v6546_v42 = vpop.eup %6545  ;;  %v1111_v43 = vrot.slane %v1074_v28, 1  ;;  %v7331_v59 = vpack.c.bf16 %v1065_v30, %v1064_v52  ;;  %v1146_v19 = vrot.slane %v1074_v28, 6  ;;  %v1017_v25 = vadd.f32 1.0, %v6544_v35 }
  0x6c   : > { %v6548_v34 = vpop.eup %6547  ;;  %6563 = vrcp.f32 %v1016_v37  ;;  %v1018_v40 = vadd.f32 1.0, %v6546_v42  ;;  %v1053_v57 = vmul.f32 %v6540_v33, %v6979_v39  ;;  %1103 = vst.msk [vmem:[#allocation2 + $0x30] sm:$0xf0] %vm829_vm0, %v1088_v23  ;;  %v1089_v52 = vrot.slane %v1074_v28, 4  ;;  %v5387_v39 = vld [vmem:[%s6859_s28 + $0xc0] sm:$0xff] }
  0x6d   : > { %v6550_v17 = vpop.eup %6549  ;;  %v1112_v29 = vsel %vm839_vm1, %v1110_v55, %v1111_v43  ;;  %v1113_v27 = vrot.slane %v7331_v59, 1  ;;  %v1147_v56 = vrot.slane %v7331_v59, 6  ;;  %v1019_v63 = vadd.f32 1.0, %v6548_v34 }
  0x6e   : > { %v6552_v0 = vpop.eup %6551  ;;  %1121 = vrot.lane.b32.xlu0 %v1112_v29, %s6734_s14  ;;  %6565 = vrcp.f32 %v1017_v25  ;;  %v1020_v26 = vadd.f32 1.0, %v6550_v17  ;;  %v1091_v8 = vrot.slane %v7331_v59, 4  ;;  %v1090_v30 = vsel %vm813_vm3, %v1088_v23, %v1089_v52 }
  0x6f   : > { %v6554_v5 = vpop.eup %6553  ;;  %v1114_v46 = vsel %vm839_vm1, %v1111_v43, %v1113_v27  ;;  %6567 = vrcp.f32 %v1018_v40  ;;  %v1260_v62 = vadd.f32 1.0, %v6552_v0  ;;  %v1148_v10 = vsel %vm879_vm2, %v1146_v19, %v1147_v56  ;;  %1104 = vst.msk [vmem:[#allocation2 + $0x38] sm:$0xff] %vm831_vm4, %v1090_v30  ;;  %v5388_v0 = vld [vmem:[%s6859_s28 + $0xc8] sm:$0xf]  ;;  %s6358_s28 = smul.u32 13, %s9253_s15 }
  0x70   : > { %v6556_v36 = vpop.eup %6555  ;;  %1123 = vrot.lane.b32.xlu1 %v1114_v46, %s6734_s14  ;;  %6569 = vrcp.f32 %v1019_v63  ;;  %v1261_v18 = vadd.f32 1.0, %v6554_v5  ;;  %v1092_v28 = vsel %vm813_vm3, %v1089_v52, %v1091_v8  ;;  %v5395_v42 = vmul.f32 -1.442695, %v7326_v61 }
  0x71   : > { %v6558_v50 = vpop.eup %6557  ;;  %6571 = vrcp.f32 %v1020_v26  ;;  %v1262_v3 = vadd.f32 1.0, %v6556_v36  ;;  %1105 = vst.msk [vmem:[#allocation2 + $0x40] sm:$0xff] %vm831_vm4, %v1092_v28  ;;  %v7369_v43 = vadd.f32 %v1204_v41, %v6872_v9  ;;  %v1206_v16 = vmul.f32 %v5387_v39, %v6861_v4  ;;  %v9225_v39 = vld [vmem:[#allocation11_spill] sm:$0xff]  ;;  %s582_s23 = sadd.s32 %s6358_s28, %s6838_s26 }
  0x72   : > { %v6560_v33 = vpop.eup %6559  ;;  %1157 = vrot.lane.b32.xlu0 %v1146_v19, %s6733_s22  ;;  %v1263_v55 = vadd.f32 1.0, %v6558_v50  ;;  %6573 = vrcp.f32 %v1260_v62  ;;  %v1066_v19 = vmul.f32 %v1053_v57, %v7081_v48  ;;  %v5396_v25 = vmul.f32 -1.442695, %v7329_v60  ;;  %s5345_s19 = sshll.u32 %s582_s23, 3 }
  0x73   : > { %6575 = vrcp.f32 %v1261_v18  ;;  %v1264_v35 = vadd.f32 1.0, %v6560_v33  ;;  %v5397_v17 = vmul.f32 -1.442695, %v7335_v20  ;;  %v7378_v29 = vadd.f32 %v1205_v53, %v6872_v9  ;;  %s7517_s20 = scalar_lea.vmem %s9187_s2, %s5345_s19 }
  0x74   : > { %v6562_v37 = vpop.eup %6561  ;;  %1159 = vrot.lane.b32.xlu1 %v1148_v10, %s6733_s22  ;;  %6577 = vrcp.f32 %v1262_v3  ;;  %v5398_v26 = vmul.f32 -1.442695, %v7369_v43  ;;  %v7385_v23 = vadd.f32 %v1206_v16, %v6872_v9  ;;  %v1207_v36 = vmul.f32 %v5388_v0, %v6861_v4 }
  0x75   : > { %v1054_v34 = vmul.f32 %v6562_v37, %v6997_v7  ;;  %6579 = vrcp.f32 %v1263_v55  ;;  %v5399_v62 = vmul.f32 -1.442695, %v7378_v29  ;;  %v9226_v55 = vld [vmem:[#allocation9_spill] sm:$0xff]  ;;  %vm916_vm7 = vcmask 388352  }
  0x76   : > { %v6564_v40 = vpop.eup %6563  ;;  %6581 = vpow2.f32 %v7323_v6  ;;  %vm2015_vm9 = vsmask.f32 3328 }
  0x77   : > { %v1067_v41 = vmul.f32 %v1054_v34, %v7095_v1  ;;  %v1055_v63 = vmul.f32 %v6564_v40, %v7001_v12  ;;  %6583 = vrcp.f32 %v1264_v35  ;;  %v9228_v34 = vld [vmem:[#allocation13_spill] sm:$0xff] }
  0x78   : > { %v6566_v7 = vpop.eup %6565  ;;  %6585 = vpow2.f32 %v5395_v42  ;;  %v9227_v42 = vld [vmem:[#allocation12_spill] sm:$0xff] }
  0x79   : > { %v6568_v5 = vpop.eup %6567  ;;  %v7387_v6 = vpack.c.bf16 %v1067_v41, %v1066_v19  ;;  %v1056_v46 = vmul.f32 %v6566_v7, %v7004_v13  ;;  %v1068_v53 = vmul.f32 %v1055_v63, %v7105_v14  ;;  %6587 = vpow2.f32 %v5396_v25  ;;  %v9229_v25 = vld [vmem:[#allocation10_spill] sm:$0xff] }
  0x7a   : > { %v6570_v57 = vpop.eup %6569  ;;  %v1057_v12 = vmul.f32 %v6568_v5, %v7012_v31  ;;  %6589 = vpow2.f32 %v5397_v17 }
  0x7b   : > { %v6572_v18 = vpop.eup %6571  ;;  %v1115_v52 = vrot.slane %v7387_v6, 1  ;;  %v1149_v50 = vrot.slane %v7387_v6, 6  ;;  %v1069_v10 = vmul.f32 %v1056_v46, %v7124_v44  ;;  %v1058_v13 = vmul.f32 %v6570_v57, %v7027_v51 }
  0x7c   : > { %v6574_v3 = vpop.eup %6573  ;;  %v1070_v33 = vmul.f32 %v1057_v12, %v9225_v39  ;;  %v1059_v30 = vmul.f32 %v6572_v18, %v9226_v55  ;;  %6591 = vpow2.f32 %v5398_v26  ;;  %v1093_v31 = vrot.slane %v7387_v6, 4 }
  0x7d   : > { %v6576_v28 = vpop.eup %6575  ;;  %v1116_v4 = vsel %vm839_vm1, %v1113_v27, %v1115_v52  ;;  %v1150_v35 = vsel %vm879_vm2, %v1147_v56, %v1149_v50  ;;  %v1077_v37 = vpack.c.bf16 %v1069_v10, %v1068_v53  ;;  %v1071_v51 = vmul.f32 %v1058_v13, %v9227_v42 }
  0x7e   : > { %v6578_v16 = vpop.eup %6577  ;;  %1125 = vrot.lane.b32.xlu0 %v1116_v4, %s6734_s14  ;;  %1161 = vrot.lane.b32.xlu1 %v1150_v35, %s6733_s22  ;;  %v1072_v19 = vmul.f32 %v1059_v30, %v9228_v34  ;;  %v1299_v40 = vmul.f32 %v6574_v3, %v9229_v25  ;;  %v1300_v17 = vmul.f32 %v6576_v28, %v7220_v21  ;;  %6593 = vpow2.f32 %v5399_v62 }
  0x7f   : > { %v6580_v27 = vpop.eup %6579  ;;  %v1117_v41 = vrot.slane %v1077_v37, 1  ;;  %v1151_v63 = vrot.slane %v1077_v37, 6  ;;  %v1078_v0 = vpack.c.bf16 %v1071_v51, %v1070_v33  ;;  %v1301_v56 = vmul.f32 %v6578_v16, %v7226_v22 }
  0x80   : > { %v6582_v7 = vpop.eup %6581  ;;  %v1079_v26 = vpack.c.bf16 %v1072_v19, %v1072_v19  ;;  %v1302_v5 = vmul.f32 %v6580_v27, %v7245_v15  ;;  %v1312_v46 = vmul.f32 %v1299_v40, %v7024_v45  ;;  %v1313_v53 = vmul.f32 %v1300_v17, %v7035_v58 }
  0x81   : > { %v6584_v57 = vpop.eup %6583  ;;  %v1118_v12 = vsel %vm839_vm1, %v1115_v52, %v1117_v41  ;;  %v1152_v21 = vsel %vm879_vm2, %v1149_v50, %v1151_v63  ;;  %v1119_v62 = vrot.slane %v1078_v0, 1  ;;  %v1153_v18 = vrot.slane %v1078_v0, 6 }
  0x82   : > { %v6586_v10 = vpop.eup %6585  ;;  %1127 = vrot.lane.b32.xlu0 %v1118_v12, %s6734_s14  ;;  %1163 = vrot.lane.b32.xlu1 %v1152_v21, %s6733_s22  ;;  %v1155_v22 = vrot.slane %v1079_v26, 6  ;;  %v1314_v13 = vmul.f32 %v1301_v56, %v7041_v2  ;;  %v1315_v15 = vmul.f32 %v1302_v5, %v7047_v11  ;;  %v7423_v45 = vpack.c.bf16 %v1313_v53, %v1312_v46 }
  0x83   : > { %v6588_v58 = vpop.eup %6587  ;;  %v1120_v3 = vsel %vm839_vm1, %v1117_v41, %v1119_v62  ;;  %v1154_v52 = vsel %vm879_vm2, %v1151_v63, %v1153_v18  ;;  %v1265_v50 = vadd.f32 1.0, %v6582_v7  ;;  %v1266_v30 = vadd.f32 1.0, %v6586_v10 }
  0x84   : > { %v6590_v33 = vpop.eup %6589  ;;  %v7427_v55 = vpack.c.bf16 %v1315_v15, %v1314_v13  ;;  %v7430_v28 = vadd.f32 %v1207_v36, %v6872_v9  ;;  %v1267_v4 = vadd.f32 1.0, %v6588_v58  ;;  %v5400_v11 = vmul.f32 -1.442695, %v7385_v23 }
  0x85   : > { %6595 = vrcp.f32 %v1265_v50  ;;  %v1268_v2 = vadd.f32 1.0, %v6590_v33  ;;  %v1156_v51 = vsel %vm879_vm2, %v1153_v18, %v1155_v22  ;;  %v1362_v16 = vrot.slane %v7423_v45, 1 }
  0x86   : > { %v6592_v35 = vpop.eup %6591  ;;  %1129 = vrot.lane.b32.xlu0 %v1120_v3, %s6734_s14  ;;  %1165 = vrot.lane.b32.xlu1 %v1154_v52, %s6733_s22  ;;  %6597 = vrcp.f32 %v1266_v30  ;;  %v1094_v9 = vsel %vm813_vm3, %v1091_v8, %v1093_v31  ;;  %v1363_v36 = vrot.slane %v7427_v55, 1  ;;  %v1095_v25 = vrot.slane %v1077_v37, 4 }
  0x87   : > { %6599 = vrcp.f32 %v1267_v4  ;;  %v1269_v19 = vadd.f32 1.0, %v6592_v35  ;;  %1106 = vst.msk [vmem:[#allocation2 + $0x48] sm:$0xff] %vm831_vm4, %v1094_v9  ;;  %v5401_v17 = vmul.f32 -1.442695, %v7430_v28  ;;  %v1303_v8 = vmul.f32 %v6584_v57, %v7260_v49 }
  0x88   : > { %v6594_v40 = vpop.eup %6593  ;;  %6601 = vrcp.f32 %v1268_v2  ;;  %v1096_v27 = vsel %vm813_vm3, %v1093_v31, %v1095_v25  ;;  %1108 = vst.msk [vmem:[#allocation2 + $0x58] sm:$0xf] %vm836_vm8, %v1095_v25  ;;  %v1364_v59 = vsel %vm839_vm1, %v1362_v16, %v1363_v36  ;;  %v1398_v6 = vrot.slane %v7427_v55, 6 }
  0x89   : > { %6603 = vrcp.f32 %v1269_v19  ;;  %1107 = vst.msk [vmem:[#allocation2 + $0x50] sm:$0xff] %vm831_vm4, %v1096_v27  ;;  %v1270_v37 = vadd.f32 1.0, %v6594_v40  ;;  %v1316_v0 = vmul.f32 %v1303_v8, %v7057_v24  ;;  %v1435_v8 = vld [vmem:[%s7517_s20 + $0x10] sm:$0xff] }
  0x8a   : > { %1131 = vrot.lane.b32.xlu0 %v1119_v62, %s6734_s14  ;;  %1167 = vrot.lane.b32.xlu1 %v1156_v51, %s6733_s22  ;;  %6605 = vpow2.f32 %v5400_v11 }
  0x8b   : > { %6607 = vpow2.f32 %v5401_v17 }
  0x8c   : > { %6609 = vrcp.f32 %v1270_v37  ;;  %v1436_v37 = vld [vmem:[%s7517_s20 + $0x18] sm:$0xff] }
  0x8e   : > { %1373 = vrot.lane.b32.xlu0 %v1364_v59, %s6734_s14 }
  0x8f   : > { %v6596_v31 = vpop.eup %6595 }
  0x90   : > { %v6598_v41 = vpop.eup %6597  ;;  %v1304_v63 = vmul.f32 %v6596_v31, %v7295_v54 }
  0x91   : > { %v6600_v56 = vpop.eup %6599  ;;  %v1305_v7 = vmul.f32 %v6598_v41, %v7326_v61 }
  0x92   : > { %v6602_v26 = vpop.eup %6601  ;;  %v1317_v5 = vmul.f32 %v1304_v63, %v7070_v47  ;;  %1409 = vrot.lane.b32.xlu0 %v1398_v6, %s6733_s22  ;;  %v1306_v49 = vmul.f32 %v6600_v56, %v7329_v60  ;;  %v1437_v56 = vld [vmem:[%s7517_s20 + $0x20] sm:$0xff] }
  0x93   : > { %v6604_v46 = vpop.eup %6603  ;;  %v1318_v53 = vmul.f32 %v1305_v7, %v7081_v48  ;;  %v1307_v57 = vmul.f32 %v6602_v26, %v7335_v20  ;;  %v1438_v7 = vld [vmem:[%s7517_s20 + $0x28] sm:$0xff] }
  0x94   : > { %v6606_v12 = vpop.eup %6605  ;;  %v7464_v54 = vpack.c.bf16 %v1317_v5, %v1316_v0  ;;  %v1319_v24 = vmul.f32 %v1306_v49, %v7095_v1  ;;  %v1308_v61 = vmul.f32 %v6604_v46, %v7369_v43  ;;  %v9231_v5 = vld [vmem:[#allocation8_spill] sm:$0xff] }
  0x95   : > { %v1320_v21 = vmul.f32 %v1307_v57, %v7105_v14  ;;  %v1271_v62 = vadd.f32 1.0, %v6606_v12  ;;  %v6608_v47 = vpop.eup %6607 }
  0x96   : > { %v1365_v18 = vrot.slane %v7464_v54, 1  ;;  %v1399_v60 = vrot.slane %v7464_v54, 6  ;;  %v7471_v10 = vpack.c.bf16 %v1319_v24, %v1318_v53  ;;  %v1321_v48 = vmul.f32 %v1308_v61, %v7124_v44  ;;  %v6610_v58 = vpop.eup %6609 }
  0x97   : > { %6611 = vrcp.f32 %v1271_v62  ;;  %v1272_v20 = vadd.f32 1.0, %v6608_v47  ;;  %v1309_v33 = vmul.f32 %v6610_v58, %v7378_v29  ;;  %v1343_v27 = vrot.slane %v7464_v54, 4 }
  0x98   : > { %v1366_v22 = vsel %vm839_vm1, %v1363_v36, %v1365_v18  ;;  %v1367_v1 = vrot.slane %v7471_v10, 1  ;;  %v7477_v43 = vpack.c.bf16 %v1321_v48, %v1320_v21  ;;  %v1400_v14 = vsel %vm879_vm2, %v1398_v6, %v1399_v60  ;;  %v9230_v6 = vld [vmem:[#allocation7_spill] sm:$0xff] }
  0x99   : > { %1375 = vrot.lane.b32.xlu1 %v1366_v22, %s6734_s14  ;;  %6613 = vrcp.f32 %v1272_v20  ;;  %v1401_v15 = vrot.slane %v7471_v10, 6  ;;  %v1322_v11 = vmul.f32 %v1309_v33, %v9225_v39  ;;  %v1460_v63 = vmul.f32 %v9230_v6, %v1435_v8 }
  0x9a   : > { %v1368_v13 = vsel %vm839_vm1, %v1365_v18, %v1367_v1  ;;  %v1369_v44 = vrot.slane %v7477_v43, 1  ;;  %v1403_v50 = vrot.slane %v7477_v43, 6  ;;  %v1461_v0 = vmul.f32 %v9230_v6, %v1436_v37 }
  0x9b   : > { %1377 = vrot.lane.b32.xlu0 %v1368_v13, %s6734_s14  ;;  %v1402_v52 = vsel %vm879_vm2, %v1399_v60, %v1401_v15  ;;  %v7537_v53 = vadd.f32 %v9231_v5, %v1460_v63  ;;  %v1462_v57 = vmul.f32 %v9230_v6, %v1437_v56  ;;  %v1463_v24 = vmul.f32 %v9230_v6, %v1438_v7  ;;  %v1440_v13 = vld [vmem:[%s7517_s20 + $0x38] sm:$0xff]  ;;  %v1442_v56 = vld [vmem:[%s7517_s20 + $0x48] sm:$0xff] }
  0x9c   : > { %v1370_v3 = vsel %vm839_vm1, %v1367_v1, %v1369_v44  ;;  %v1404_v4 = vsel %vm879_vm2, %v1401_v15, %v1403_v50  ;;  %v7541_v54 = vadd.f32 %v9231_v5, %v1461_v0  ;;  %v1345_v61 = vrot.slane %v7471_v10, 4  ;;  %v1441_v0 = vld [vmem:[%s7517_s20 + $0x40] sm:$0xff] }
  0x9d   : > { %1411 = vrot.lane.b32.xlu1 %v1400_v14, %s6733_s22  ;;  %v7549_v47 = vadd.f32 %v9231_v5, %v1462_v57  ;;  %v5404_v18 = vmul.f32 -1.442695, %v7537_v53  ;;  %v7555_v48 = vadd.f32 %v9231_v5, %v1463_v24  ;;  %v1439_v14 = vld [vmem:[%s7517_s20 + $0x30] sm:$0xff]  ;;  %v1465_v58 = vmul.f32 %v9230_v6, %v1440_v13 }
  0x9e   : > { %v5405_v60 = vmul.f32 -1.442695, %v7541_v54  ;;  %v1346_v20 = vsel %vm813_vm3, %v1343_v27, %v1345_v61  ;;  %v1464_v15 = vmul.f32 %v9230_v6, %v1439_v14 }
  0x9f   : > { %1379 = vrot.lane.b32.xlu0 %v1370_v3, %s6734_s14  ;;  %1358 = vst.msk [vmem:[#allocation2 + $0x78] sm:$0xff] %vm831_vm4, %v1346_v20  ;;  %v5406_v1 = vmul.f32 -1.442695, %v7549_v47  ;;  %v1466_v20 = vmul.f32 %v9230_v6, %v1441_v0 }
  0xa1   : > { %v6612_v30 = vpop.eup %6611  ;;  %1413 = vrot.lane.b32.xlu1 %v1402_v52, %s6733_s22  ;;  %v7568_v52 = vadd.f32 %v9231_v5, %v1464_v15 }
  0xa2   : > { %v1310_v2 = vmul.f32 %v6612_v30, %v7385_v23 }
  0xa3   : > { %v6614_v35 = vpop.eup %6613 }
  0xa4   : > { %v1323_v51 = vmul.f32 %v1310_v2, %v9227_v42  ;;  %v1311_v16 = vmul.f32 %v6614_v35, %v7430_v28  ;;  %v1340_v42 = vrot.slane %v7423_v45, 4  ;;  %v1433_v45 = vld [vmem:[%s7517_s20] sm:$0xff] }
  0xa5   : > { %1415 = vrot.lane.b32.xlu1 %v1404_v4, %s6733_s22  ;;  %v1458_v31 = vmul.f32 %v9230_v6, %v1433_v45  ;;  %v1347_v4 = vrot.slane %v7477_v43, 4 }
  0xa6   : > { %v1330_v29 = vpack.c.bf16 %v1323_v51, %v1322_v11  ;;  %v1324_v9 = vmul.f32 %v1311_v16, %v9228_v34  ;;  %v1341_v34 = vrot.slane %v7427_v55, 4  ;;  %1355 = vst.msk [vmem:[#allocation2 + $0x60] sm:$0xf0] %vm829_vm0, %v1340_v42  ;;  %v1434_v55 = vld [vmem:[%s7517_s20 + $0x8] sm:$0xff] }
  0xa7   : > { %v1459_v41 = vmul.f32 %v9230_v6, %v1434_v55  ;;  %v7531_v49 = vadd.f32 %v9231_v5, %v1458_v31  ;;  %v1348_v16 = vsel %vm813_vm3, %v1345_v61, %v1347_v4  ;;  %1360 = vst.msk [vmem:[#allocation2 + $0x88] sm:$0xf] %vm836_vm8, %v1347_v4  ;;  %v6412_v61 = vld [vmem:[%s9191_s6 + $0x48] sm:$0xff]  }
  0xa8   : > { %v1371_v36 = vrot.slane %v1330_v29, 1  ;;  %v1405_v19 = vrot.slane %v1330_v29, 6  ;;  %v1331_v25 = vpack.c.bf16 %v1324_v9, %v1324_v9  ;;  %v1342_v28 = vsel %vm813_vm3, %v1340_v42, %v1341_v34  ;;  %1359 = vst.msk [vmem:[#allocation2 + $0x80] sm:$0xff] %vm831_vm4, %v1348_v16 }
  0xa9   : > { %1356 = vst.msk [vmem:[#allocation2 + $0x68] sm:$0xff] %vm831_vm4, %v1342_v28  ;;  %v1344_v59 = vsel %vm813_vm3, %v1341_v34, %v1343_v27  ;;  %v7534_v46 = vadd.f32 %v9231_v5, %v1459_v41  ;;  %v5402_v21 = vmul.f32 -1.442695, %v7531_v49  ;;  %v5408_v9 = vmul.f32 -1.442695, %v7568_v52 }
  0xaa   : > { %v1372_v40 = vsel %vm839_vm1, %v1369_v44, %v1371_v36  ;;  %v1406_v23 = vsel %vm879_vm2, %v1403_v50, %v1405_v19  ;;  %v1407_v17 = vrot.slane %v1331_v25, 6  ;;  %1357 = vst.msk [vmem:[#allocation2 + $0x70] sm:$0xff] %vm831_vm4, %v1344_v59  ;;  %v5407_v44 = vmul.f32 -1.442695, %v7555_v48 }
  0xab   : > { %1381 = vrot.lane.b32.xlu0 %v1372_v40, %s6734_s14  ;;  %1417 = vrot.lane.b32.xlu1 %v1406_v23, %s6733_s22  ;;  %v5403_v62 = vmul.f32 -1.442695, %v7534_v46  ;;  %6615 = vpow2.f32 %v5402_v21  ;;  %v7571_v50 = vadd.f32 %v9231_v5, %v1465_v58  ;;  %v7644_v16 = vadd.f32 %v9231_v5, %v1466_v20 }
  0xac   : > { %v1408_v39 = vsel %vm879_vm2, %v1405_v19, %v1407_v17 }
  0xad   : > { %6617 = vpow2.f32 %v5403_v62  ;;  %v5409_v28 = vmul.f32 -1.442695, %v7571_v50 }
  0xae   : > { %6619 = vpow2.f32 %v5404_v18 }
  0xaf   : > { %1383 = vrot.lane.b32.xlu0 %v1371_v36, %s6734_s14  ;;  %1419 = vrot.lane.b32.xlu1 %v1408_v39, %s6733_s22  ;;  %6621 = vpow2.f32 %v5405_v60  ;;  %v6411_v39 = vld [vmem:[%s9191_s6 + $0x30] sm:$0xff]   ;;  %v6413_v60 = vld [vmem:[%s9191_s6 + $0x38] sm:$0xff]  }
  0xb0   : > { %6623 = vpow2.f32 %v5406_v1 }
  0xb1   : > { %6625 = vpow2.f32 %v5407_v44 }
  0xb2   : > { %6627 = vpow2.f32 %v5408_v9 }
  0xb5   : > { %v6616_v36 = vpop.eup %6615 }
  0xb6   : > { %v1529_v45 = vadd.f32 1.0, %v6616_v36 }
  0xb7   : > { %v6618_v23 = vpop.eup %6617 }
  0xb8   : > { %v6620_v27 = vpop.eup %6619  ;;  %v1530_v55 = vadd.f32 1.0, %v6618_v23  ;;  %6629 = vrcp.f32 %v1529_v45 }
  0xb9   : > { %v6622_v8 = vpop.eup %6621  ;;  %v1531_v57 = vadd.f32 1.0, %v6620_v27  ;;  %6631 = vpow2.f32 %v5409_v28 }
  0xba   : > { %6633 = vrcp.f32 %v1530_v55 }
  0xbb   : > { %6635 = vrcp.f32 %v1531_v57 }
  0xc2   : > { %v892_v26 = vpop.permute.xlu1 %891 }
  0xc4   : > { %v852_v12 = vpop.permute.xlu0 %851 }
  0xc5   : > { %870 = vst.msk [vmem:[#allocation2] sm:$0xf0] %vm869_vm10, %v852_v12  ;;  %v6624_v12 = vpop.eup %6623 }
  0xc6   : > { %910 = vst.msk [vmem:[#allocation2] sm:$0xf0] %vm909_vm11, %v892_v26  ;;  %v894_v10 = vpop.permute.xlu1 %893  ;;  %v6626_v1 = vpop.eup %6625 }
  0xc8   : > { %v854_v22 = vpop.permute.xlu0 %853 }
  0xc9   : > { %872 = vst.msk [vmem:[#allocation2 + $0x8] sm:$0xff] %vm871_vm12, %v854_v22  ;;  %v1467_v22 = vmul.f32 %v9230_v6, %v1442_v56 }
  0xca   : > { %912 = vst.msk [vmem:[#allocation2 + $0x8] sm:$0xff] %vm911_vm13, %v894_v10  ;;  %v896_v3 = vpop.permute.xlu1 %895  ;;  %v1532_v10 = vadd.f32 1.0, %v6622_v8 }
  0xcc   : > { %v856_v33 = vpop.permute.xlu0 %855  ;;  %6637 = vrcp.f32 %v1532_v10 }
  0xcd   : > { %873 = vst.msk [vmem:[#allocation2 + $0x10] sm:$0xff] %vm871_vm12, %v856_v33  ;;  %v1703_v30 = vld [vmem:[#allocation2] sm:$0xf8]  ;;  %v1533_v33 = vadd.f32 1.0, %v6624_v12 }
  0xce   : > { %913 = vst.msk [vmem:[#allocation2 + $0x10] sm:$0xff] %vm911_vm13, %v896_v3  ;;  %v7576_v2 = vld [vmem:[#allocation2] sm:$0xf0]  ;;  %v1849_v11 = vshrl.u32 %v1703_v30, 16  ;;  %v898_v35 = vpop.permute.xlu1 %897  ;;  %v1852_v51 = vshll.u32 %v1703_v30, 16  ;;  %v6414_v30 = vld [vmem:[%s9191_s6 + $0x50] sm:$0xff]  }
  0xcf   : > { %v1729_v19 = vrot.slane %v7576_v2, 4  ;;  %6639 = vrcp.f32 %v1533_v33 }
  0xd0   : > { %v858_v29 = vpop.permute.xlu0 %857  ;;  %v1851_v25 = vrot.slane %v1849_v11, 3  ;;  %v1854_v40 = vrot.slane %v1852_v51, 4  ;;  %v1534_v51 = vadd.f32 1.0, %v6626_v1  ;;  %v6667_v1 = vld [vmem:[%s9188_s3] sm:$0xff] }
  0xd1   : > { %874 = vst.msk [vmem:[#allocation2 + $0x18] sm:$0xff] %vm871_vm12, %v858_v29  ;;  %v7583_v43 = vld [vmem:[#allocation2 + $0x8] sm:$0xff]  ;;  %v7647_v29 = vadd.f32 %v9231_v5, %v1467_v22 }
  0xd2   : > { %914 = vst.msk [vmem:[#allocation2 + $0x18] sm:$0xff] %vm911_vm13, %v898_v35  ;;  %v1730_v17 = vrot.slane %v7583_v43, 4  ;;  %v1857_v42 = vshrl.u32 %v7583_v43, 16  ;;  %v1860_v34 = vshll.u32 %v7583_v43, 16  ;;  %v900_v59 = vpop.permute.xlu1 %899  ;;  %v1855_v7 = vor.u32 %v1854_v40, %v1851_v25  ;;  %v6415_v35 = vld [vmem:[%s9191_s6 + $0x40] sm:$0xff]   ;;  %v6628_v40 = vpop.eup %6627 }
  0xd3   : > { %6641 = vrcp.f32 %v1534_v51  ;;  %v1535_v57 = vadd.f32 1.0, %v6628_v40  ;;  %v1444_v40 = vld [vmem:[%s7517_s20 + $0x58] sm:$0xff] }
  0xd4   : > { %v1731_v37 = vsel %vm813_vm3, %v1729_v19, %v1730_v17  ;;  %v860_v31 = vpop.permute.xlu0 %859  ;;  %v1859_v41 = vrot.slane %v1857_v42, 3  ;;  %v1862_v63 = vrot.slane %v1860_v34, 4 }
  0xd5   : > { %5874 = vmatmul.mubr.msk.bf16.vlgmr.msra.gmra.mrb[0].mxu0 %vm1758_vm14, %v1731_v37  ;;  %875 = vst.msk [vmem:[#allocation2 + $0x20] sm:$0xff] %vm871_vm12, %v860_v31  ;;  %v7605_v26 = vld [vmem:[#allocation2 + $0x10] sm:$0xff]  ;;  %6643 = vrcp.f32 %v1535_v57 }
  0xd6   : > { %5920 = vmatpush3.bf16.msra.mxu0 %v6411_v39  ;;  %915 = vst.msk [vmem:[#allocation2 + $0x20] sm:$0xff] %vm911_vm13, %v900_v59  ;;  %v1863_v24 = vor.u32 %v1862_v63, %v1859_v41  ;;  %5877 = vmatprep.mubr.msk.bf16.mxu0 %vm6735_vm5, %v9223_v38  ;;  %v1866_v21 = vshrl.u32 %v7605_v26, 16  ;;  %v1869_v62 = vshll.u32 %v7605_v26, 16  ;;  %v902_v18 = vpop.permute.xlu1 %901  ;;  %v1732_v13 = vrot.slane %v7605_v26, 4  ;;  %v6630_v39 = vpop.eup %6629 }
  0xd7   : > { %5921 = vmatprep.subr.bf16.mxu0 %v9223_v38  ;;  %v6632_v28 = vpop.eup %6631  ;;  %v1568_v41 = vmul.f32 %v6630_v39, %v7531_v49 }
  0xd8   : > { %v1864_v14 = vsel %vm1847_vm15, %v1855_v7, %v1863_v24  ;;  %v862_v15 = vpop.permute.xlu0 %861  ;;  %v1868_v58 = vrot.slane %v1866_v21, 3  ;;  %v1871_v44 = vrot.slane %v1869_v62, 4  ;;  %v1733_v9 = vsel %vm813_vm3, %v1730_v17, %v1732_v13  ;;  %v6416_v17 = vld [vmem:[%s9191_s6 + $0x58] sm:$0xff]   ;;  %v6634_v45 = vpop.eup %6633 }
  0xd9   : > { %5900 = vmatmul.mubr.msk.bf16.vlgmr.msra.gmra.mrb[0].mxu1 %vm1758_vm14, %v1864_v14  ;;  %877 = vst.msk [vmem:[#allocation2 + $0x28] sm:$0xf] %vm876_vm6, %v862_v15  ;;  %v7629_v3 = vld [vmem:[#allocation2 + $0x18] sm:$0xff]  ;;  %v6636_v63 = vpop.eup %6635  ;;  %v1569_v7 = vmul.f32 %v6634_v45, %v7534_v46  ;;  %v1536_v10 = vadd.f32 1.0, %v6632_v28  ;;  %v1581_v14 = vmul.f32 %v6667_v1, %v1568_v41  ;;  %v1443_v15 = vld [vmem:[%s7517_s20 + $0x50] sm:$0xff]  ;;  %v6671_v41 = vld [vmem:[%s9188_s3 + $0x20] sm:$0xff] }
  0xda   : > { %5946 = vmatpush3.bf16.msra.mxu1 %v6412_v61  ;;  %5903 = vmatprep.mubr.msk.bf16.mxu1 %vm6735_vm5, %v9223_v38  ;;  %917 = vst.msk [vmem:[#allocation2 + $0x28] sm:$0xf] %vm916_vm7, %v902_v18  ;;  %v1875_v4 = vshrl.u32 %v7629_v3, 16  ;;  %v1878_v11 = vshll.u32 %v7629_v3, 16  ;;  %v1872_v36 = vor.u32 %v1871_v44, %v1868_v58  ;;  %v1734_v59 = vrot.slane %v7629_v3, 4 }
  0xdb   : > { %5922 = vmatpush3.bf16.msra.mxu0 %v6413_v60  ;;  %5947 = vmatprep.subr.bf16.mxu1 %v9223_v38  ;;  %v1570_v46 = vmul.f32 %v6636_v63, %v7537_v53  ;;  %v6668_v53 = vld [vmem:[%s9188_s3 + $0x8] sm:$0xff]  ;;  %6645 = vrcp.f32 %v1536_v10 }
  0xdc   : > { %5923 = vmatprep.subr.bf16.mxu0 %v9223_v38  ;;  %v1877_v19 = vrot.slane %v1875_v4, 3  ;;  %v1880_v25 = vrot.slane %v1878_v11, 4  ;;  %v1873_v27 = vsel %vm1847_vm15, %v1863_v24, %v1872_v36  ;;  %v1735_v12 = vsel %vm813_vm3, %v1732_v13, %v1734_v59  ;;  %v6638_v24 = vpop.eup %6637 }
  0xdd   : > { %5878 = vmatmul.mubr.msk.bf16.gmra.mrb[4].mxu0 %vm1758_vm14, %v1733_v9  ;;  %v7660_v23 = vld [vmem:[#allocation2 + $0x20] sm:$0xff]  ;;  %v1571_v22 = vmul.f32 %v6638_v24, %v7541_v54  ;;  %v1582_v13 = vmul.f32 %v6668_v53, %v1569_v7  ;;  %v6640_v58 = vpop.eup %6639  ;;  %v6669_v54 = vld [vmem:[%s9188_s3 + $0x10] sm:$0xff]  ;;  %v6670_v9 = vld [vmem:[%s9188_s3 + $0x18] sm:$0xff] }
  0xde   : > { %5881 = vmatprep.mubr.msk.bf16.mxu0 %vm6735_vm5, %v9223_v38  ;;  %5948 = vmatpush3.bf16.msra.mxu1 %v6414_v30  ;;  %v7670_v8 = vor.u32 %v1880_v25, %v1877_v19  ;;  %v1736_v37 = vrot.slane %v7660_v23, 4  ;;  %v1884_v31 = vshrl.u32 %v7660_v23, 16  ;;  %v1887_v56 = vshll.u32 %v7660_v23, 16  ;;  %v6642_v39 = vpop.eup %6641 }
  0xdf   : > { %5924 = vmatpush3.bf16.msra.mxu0 %v6415_v35  ;;  %5949 = vmatprep.subr.bf16.mxu1 %v9223_v38  ;;  %v1583_v30 = vmul.f32 %v6669_v54, %v1570_v46  ;;  %v5410_v35 = vmul.f32 -1.442695, %v7644_v16  ;;  %v7716_v19 = vpack.c.bf16 %v1582_v13, %v1581_v14  ;;  %v1572_v25 = vmul.f32 %v6640_v58, %v7549_v47 }
  0xe0   : > { %5971 = vmatprep.subr.bf16.mxu0 %v9223_v38  ;;  %v1122_v55 = vpop.permute.xlu0 %1121  ;;  %v1882_v49 = vsel %vm1847_vm15, %v1872_v36, %v7670_v8  ;;  %v1737_v18 = vsel %vm813_vm3, %v1734_v59, %v1736_v37  ;;  %v1886_v20 = vrot.slane %v1884_v31, 3  ;;  %v1889_v33 = vrot.slane %v1887_v56, 4 }
  0xe1   : > { %5904 = vmatmul.mubr.msk.bf16.gmra.mrb[4].mxu1 %vm1758_vm14, %v1873_v27  ;;  %1139 = vst.msk [vmem:[#allocation2 + $0x30] sm:$0xf0] %vm869_vm10, %v1122_v55  ;;  %v7689_v60 = vld [vmem:[#allocation2 + $0x28] sm:$0xf]  ;;  %v1584_v36 = vmul.f32 %v6670_v9, %v1571_v22  ;;  %v5411_v27 = vmul.f32 -1.442695, %v7647_v29  ;;  %v1468_v59 = vmul.f32 %v9230_v6, %v1443_v15  ;;  %v1573_v47 = vmul.f32 %v6642_v39, %v7555_v48 }
  0xe2   : > { %5907 = vmatprep.mubr.msk.bf16.mxu1 %vm6735_vm5, %v9223_v38  ;;  %5950 = vmatpush3.bf16.msra.mxu1 %v6416_v17  ;;  %v1124_v0 = vpop.permute.xlu1 %1123  ;;  %v1893_v51 = vshrl.u32 %v7689_v60, 16  ;;  %v1445_v17 = vld [vmem:[%s7517_s20 + $0x60] sm:$0xf]  ;;  %v1896_v28 = vshll.u32 %v7689_v60, 16  ;;  %v1631_v55 = vrot.slane %v7716_v19, 1  ;;  %v1585_v63 = vmul.f32 %v6671_v41, %v1572_v25  ;;  %v6672_v48 = vld [vmem:[%s9188_s3 + $0x28] sm:$0xff] }
  0xe3   : > { %5997 = vmatprep.subr.bf16.mxu1 %v9223_v38  ;;  %1140 = vst.msk [vmem:[#allocation2 + $0x38] sm:$0xff] %vm871_vm12, %v1124_v0  ;;  %v7727_v45 = vpack.c.bf16 %v1584_v36, %v1583_v30  ;;  %6647 = vpow2.f32 %v5410_v35  ;;  %v1469_v0 = vmul.f32 %v9230_v6, %v1444_v40  ;;  %v7736_v7 = vadd.f32 %v9231_v5, %v1468_v59 }
  0xe4   : > { %v1158_v61 = vpop.permute.xlu0 %1157  ;;  %v1470_v57 = vmul.f32 %v9230_v6, %v1445_v17  ;;  %6649 = vpow2.f32 %v5411_v27  ;;  %v2017_v6 = vshrl.u32 %v7576_v2, 16  ;;  %v1738_v22 = vrot.slane %v7689_v60, 4 }
  0xe5   : > { %5882 = vmatmul.mubr.msk.bf16.gmra.mrb[8].mxu0 %vm1758_vm14, %v1735_v12  ;;  %1175 = vst.msk [vmem:[#allocation2 + $0x30] sm:$0xf0] %vm909_vm11, %v1158_v61  ;;  %v7739_v12 = vor.u32 %v1889_v33, %v1886_v20  ;;  %v1632_v24 = vrot.slane %v7727_v45, 1  ;;  %v7747_v46 = vadd.f32 %v9231_v5, %v1469_v0  ;;  %v2020_v20 = vshll.u32 %v7576_v2, 16 }
  0xe6   : > { %5885 = vmatprep.mubr.msk.bf16.mxu0 %vm6735_vm5, %v9223_v38  ;;  %v1160_v44 = vpop.permute.xlu1 %1159  ;;  %v7750_v10 = vadd.f32 %v9231_v5, %v1470_v57  ;;  %v1895_v1 = vrot.slane %v1893_v51, 3  ;;  %v1898_v14 = vrot.slane %v1896_v28, 4  ;;  %v1667_v2 = vrot.slane %v7727_v45, 6 }
  0xe7   : > { %1176 = vst.msk [vmem:[#allocation2 + $0x38] sm:$0xff] %vm911_vm13, %v1160_v44  ;;  %v1633_v13 = vsel %vm839_vm1, %v1631_v55, %v1632_v24  ;;  %v1891_v5 = vsel %vm1847_vm15, %v7670_v8, %v7739_v12  ;;  %v6644_v44 = vpop.eup %6643  ;;  %v2019_v51 = vrot.slane %v2017_v6, 4  ;;  %v2022_v9 = vrot.slane %v2020_v20, 5 }
  0xe8   : > { %1642 = vrot.lane.b32.xlu0 %v1633_v13, %s6734_s14  ;;  %v2024_v8 = vrot.slane %v1857_v42, 4  ;;  %v2025_v36 = vrot.slane %v1860_v34, 5  ;;  %v6646_v25 = vpop.eup %6645  ;;  %v1739_v40 = vsel %vm813_vm3, %v1736_v37, %v1738_v22  ;;  %v1899_v17 = vor.u32 %v1898_v14, %v1895_v1 }
  0xe9   : > { %5908 = vmatmul.mubr.msk.bf16.gmra.mrb[8].mxu1 %vm1758_vm14, %v1882_v49  ;;  %v1586_v49 = vmul.f32 %v6672_v48, %v1573_v47  ;;  %v1574_v28 = vmul.f32 %v6644_v44, %v7568_v52  ;;  %v1575_v27 = vmul.f32 %v6646_v25, %v7571_v50  ;;  %v5413_v0 = vmul.f32 -1.442695, %v7747_v46  ;;  %v6673_v50 = vld [vmem:[%s9188_s3 + $0x30] sm:$0xff]  ;;  %v6674_v48 = vld [vmem:[%s9188_s3 + $0x38] sm:$0xff] }
  0xea   : > { %5911 = vmatprep.mubr.msk.bf16.mxu1 %vm6735_vm5, %v9223_v38  ;;  %v1900_v22 = vsel %vm1847_vm15, %v7739_v12, %v1899_v17  ;;  %v2023_v14 = vor.u32 %v2022_v9, %v2019_v51  ;;  %v6417_v12 = vld [vmem:[%s9191_s6 + $0x60] sm:$0xff]   ;;  %v2028_v9 = vrot.slane %v1866_v21, 4 }
  0xeb   : > { %v7760_v15 = vpack.c.bf16 %v1586_v49, %v1585_v63  ;;  %v5412_v63 = vmul.f32 -1.442695, %v7736_v7  ;;  %v1588_v49 = vmul.f32 %v6674_v48, %v1575_v27 }
  0xec   : > { %v2165_v61 = vld [vmem:[#allocation2 + $0x30] sm:$0xf8]  ;;  %1678 = vrot.lane.b32.xlu0 %v1667_v2, %s6733_s22 }
  0xed   : > { %5886 = vmatmul.mubr.msk.bf16.gmra.mrb[12].mxu0 %vm1758_vm14, %v1737_v18  ;;  %v2179_v18 = vshrl.u32 %v2165_v61, 16  ;;  %v2182_v58 = vshll.u32 %v2165_v61, 16  ;;  %v1634_v35 = vrot.slane %v7760_v15, 1  ;;  %v1668_v34 = vrot.slane %v7760_v15, 6  ;;  %v6648_v59 = vpop.eup %6647 }
  0xee   : > { %5889 = vmatprep.mubr.msk.bf16.mxu0 %vm6735_vm5, %v9223_v38  ;;  %v7757_v53 = vld [vmem:[#allocation2 + $0x38] sm:$0xff]  ;;  %v6650_v57 = vpop.eup %6649  ;;  %v7810_v61 = vor.u32 %v2025_v36, %v2024_v8  ;;  %v1537_v6 = vadd.f32 1.0, %v6648_v59  ;;  %6651 = vpow2.f32 %v5412_v63  ;;  %v2029_v8 = vrot.slane %v1869_v62, 5 }
  0xef   : > { %v2187_v54 = vshrl.u32 %v7757_v53, 16  ;;  %v2190_v30 = vshll.u32 %v7757_v53, 16  ;;  %v7782_v39 = vrot.slane %v2179_v18, 3  ;;  %v1635_v43 = vsel %vm839_vm1, %v1632_v24, %v1634_v35  ;;  %v6418_v62 = vld [vmem:[%s9191_s6 + $0x78] sm:$0xff]  }
  0xf0   : > { %v1126_v60 = vpop.permute.xlu0 %1125  ;;  %v1162_v33 = vpop.permute.xlu1 %1161  ;;  %v2184_v42 = vrot.slane %v2182_v58, 4  ;;  %1644 = vrot.lane.b32.xlu1 %v1635_v43, %s6734_s14  ;;  %v1669_v52 = vsel %vm879_vm2, %v1667_v2, %v1668_v34  ;;  %v1587_v24 = vmul.f32 %v6673_v50, %v1574_v28  ;;  %v1538_v20 = vadd.f32 1.0, %v6650_v57  ;;  %v6419_v43 = vld [vmem:[%s9191_s6 + $0x68] sm:$0xff]  }
  0xf1   : > { %5912 = vmatmul.mubr.msk.bf16.gmra.mrb[12].mxu1 %vm1758_vm14, %v1891_v5  ;;  %1141 = vst.msk [vmem:[#allocation2 + $0x40] sm:$0xff] %vm871_vm12, %v1126_v60  ;;  %v2189_v47 = vrot.slane %v2187_v54, 3  ;;  %v2192_v41 = vrot.slane %v2190_v30, 4  ;;  %6653 = vpow2.f32 %v5413_v0  ;;  %v2027_v51 = vsel %vm2015_vm9, %v2023_v14, %v7810_v61 }
  0xf2   : > { %5915 = vmatprep.mubr.msk.bf16.mxu1 %vm6735_vm5, %v9223_v38  ;;  %1177 = vst.msk [vmem:[#allocation2 + $0x40] sm:$0xff] %vm911_vm13, %v1162_v33  ;;  %v7815_v1 = vpack.c.bf16 %v1588_v49, %v1587_v24  ;;  %v2185_v5 = vor.u32 %v2184_v42, %v7782_v39  ;;  %6655 = vrcp.f32 %v1537_v6  ;;  %v5414_v33 = vmul.f32 -1.442695, %v7750_v10 }
  0xf3   : > { %v7819_v58 = vor.u32 %v2192_v41, %v2189_v47  ;;  %6657 = vrcp.f32 %v1538_v20  ;;  %v2033_v47 = vrot.slane %v1878_v11, 5  ;;  %v6420_v41 = vld [vmem:[%s9191_s6 + $0x80] sm:$0xff]   ;;  %v2037_v6 = vrot.slane %v1887_v56, 5  ;;  %v6422_v20 = vld [vmem:[%s9191_s6 + $0x88] sm:$0xff]  }
  0xf4   : > { %v1128_v37 = vpop.permute.xlu0 %1127  ;;  %v1164_v55 = vpop.permute.xlu1 %1163  ;;  %1680 = vrot.lane.b32.xlu1 %v1669_v52, %s6733_s22  ;;  %v1636_v44 = vrot.slane %v7815_v1, 1  ;;  %v1670_v60 = vrot.slane %v7815_v1, 6  ;;  %6659 = vpow2.f32 %v5414_v33 }
  0xf5   : > { %5890 = vmatmul.mubr.msk.bf16.gmra.mrb[16].mxu0 %vm1758_vm14, %v1739_v40  ;;  %1142 = vst.msk [vmem:[#allocation2 + $0x48] sm:$0xff] %vm871_vm12, %v1128_v37  ;;  %v2194_v26 = vsel %vm1847_vm15, %v2185_v5, %v7819_v58 }
  0xf6   : > { %5925 = vmatprep.mubr.msk.bf16.mxu0 %vm6735_vm5, %v9223_v38  ;;  %1178 = vst.msk [vmem:[#allocation2 + $0x48] sm:$0xff] %vm911_vm13, %v1164_v55  ;;  %v1637_v40 = vsel %vm839_vm1, %v1634_v35, %v1636_v44  ;;  %v1671_v17 = vsel %vm879_vm2, %v1668_v34, %v1670_v60  ;;  %v2030_v35 = vor.u32 %v2029_v8, %v2028_v9  ;;  %v2032_v55 = vrot.slane %v1875_v4, 4  ;;  %v6421_v4 = vld [vmem:[%s9191_s6 + $0x70] sm:$0xff]   ;;  %v6676_v8 = vld [vmem:[%s9188_s3 + $0x48] sm:$0xff] }
  0xf7   : > { %1646 = vrot.lane.b32.xlu0 %v1637_v40, %s6734_s14 }
  0xf8   : > { %v1130_v18 = vpop.permute.xlu0 %1129  ;;  %v1166_v13 = vpop.permute.xlu1 %1165  ;;  %1682 = vrot.lane.b32.xlu1 %v1671_v17, %s6733_s22  ;;  %v2031_v57 = vsel %vm2015_vm9, %v7810_v61, %v2030_v35  ;;  %v2034_v49 = vor.u32 %v2033_v47, %v2032_v55  ;;  %v2036_v61 = vrot.slane %v1884_v31, 4 }
  0xf9   : > { %5916 = vmatmul.mubr.msk.bf16.gmra.mrb[16].mxu1 %vm1758_vm14, %v1900_v22  ;;  %1143 = vst.msk [vmem:[#allocation2 + $0x50] sm:$0xff] %vm871_vm12, %v1130_v18  ;;  %v7827_v2 = vld [vmem:[#allocation2 + $0x40] sm:$0xff]  ;;  %v6652_v28 = vpop.eup %6651 }
  0xfa   : > { %5951 = vmatprep.mubr.msk.bf16.mxu1 %vm6735_vm5, %v9223_v38  ;;  %1179 = vst.msk [vmem:[#allocation2 + $0x50] sm:$0xff] %vm911_vm13, %v1166_v13  ;;  %v2196_v36 = vshrl.u32 %v7827_v2, 16  ;;  %v2199_v25 = vshll.u32 %v7827_v2, 16  ;;  %v1539_v63 = vadd.f32 1.0, %v6652_v28  ;;  %v7924_v9 = vor.u32 %v2037_v6, %v2036_v61 }
  0xfb   : > { %v6654_v37 = vpop.eup %6653  ;;  %v3663_v61 = vrot.slane %v2187_v54, 4 }
  0xfc   : > { %v1132_v21 = vpop.permute.xlu0 %1131  ;;  %v1168_v39 = vpop.permute.xlu1 %1167  ;;  %v2198_v42 = vrot.slane %v2196_v36, 3  ;;  %v2201_v34 = vrot.slane %v2199_v25, 4  ;;  %6661 = vrcp.f32 %v1539_v63  ;;  %v1540_v14 = vadd.f32 1.0, %v6654_v37 }
  0xfd   : > { %5926 = vmatmul.mubr.msk.bf16.vlgmr.msra.gmra.mrb[20].mxu0 %vm1758_vm14, %v2027_v51  ;;  %1144 = vst.msk [vmem:[#allocation2 + $0x58] sm:$0xf] %vm876_vm6, %v1132_v21  ;;  %v7870_v27 = vld [vmem:[#allocation2 + $0x48] sm:$0xff]  ;;  %v6656_v0 = vpop.eup %6655  ;;  %v2035_v51 = vsel %vm2015_vm9, %v2030_v35, %v2034_v49  ;;  %v2039_v37 = vsel %vm2015_vm9, %v2034_v49, %v7924_v9 }
  0xfe   : > { %5972 = vmatpush3.bf16.msra.mxu0 %v6417_v12  ;;  %5929 = vmatprep.mubr.msk.bf16.mxu0 %vm6735_vm5, %v9223_v38  ;;  %1180 = vst.msk [vmem:[#allocation2 + $0x58] sm:$0xf] %vm916_vm7, %v1168_v39  ;;  %v6658_v3 = vpop.eup %6657  ;;  %v2202_v11 = vor.u32 %v2201_v34, %v2198_v42  ;;  %v2205_v52 = vshrl.u32 %v7870_v27, 16  ;;  %v2208_v50 = vshll.u32 %v7870_v27, 16  ;;  %v1576_v24 = vmul.f32 %v6656_v0, %v7644_v16  ;;  %v2007_v16 = vld [vmem:[#allocation2 + $0x28] sm:$0x1f] }
  0xff   : > { %5973 = vmatprep.subr.bf16.mxu0 %v9223_v38  ;;  %v1577_v22 = vmul.f32 %v6658_v3, %v7647_v29  ;;  %v6660_v18 = vpop.eup %6659  ;;  %v6675_v29 = vld [vmem:[%s9188_s3 + $0x40] sm:$0xff]  ;;  %v2041_v12 = vshrl.u32 %v2007_v16, 16  ;;  %v2044_v33 = vshll.u32 %v2007_v16, 16  ;;  %6663 = vrcp.f32 %v1540_v14  ;;  %v6677_v14 = vld [vmem:[%s9188_s3 + $0x50] sm:$0xff] }
 0x100   : > { %v1374_v59 = vpop.permute.xlu0 %1373  ;;  %v7907_v31 = vsel %vm1847_vm15, %v7819_v58, %v2202_v11  ;;  %v2207_v23 = vrot.slane %v2205_v52, 3  ;;  %v2210_v56 = vrot.slane %v2208_v50, 4  ;;  %v1589_v13 = vmul.f32 %v6675_v29, %v1576_v24 }
 0x101   : > { %5952 = vmatmul.mubr.msk.bf16.vlgmr.msra.gmra.mrb[20].mxu1 %vm1758_vm14, %v2194_v26  ;;  %1391 = vst.msk [vmem:[#allocation2 + $0x60] sm:$0xf0] %vm869_vm10, %v1374_v59  ;;  %v7919_v5 = vld [vmem:[#allocation2 + $0x50] sm:$0xff]  ;;  %v1590_v40 = vmul.f32 %v6676_v8, %v1577_v22  ;;  %v1541_v17 = vadd.f32 1.0, %v6660_v18  ;;  %v7937_v42 = vrot.slane %v2044_v33, 5  ;;  %v3667_v16 = vrot.slane %v2196_v36, 4 }
 0x102   : > { %5998 = vmatpush3.bf16.msra.mxu1 %v6418_v62  ;;  %5955 = vmatprep.mubr.msk.bf16.mxu1 %vm6735_vm5, %v9223_v38  ;;  %v2211_v21 = vor.u32 %v2210_v56, %v2207_v23  ;;  %v2214_v39 = vshrl.u32 %v7919_v5, 16  ;;  %v2217_v26 = vshll.u32 %v7919_v5, 16  ;;  %v3671_v8 = vrot.slane %v2205_v52, 4 }
 0x103   : > { %5974 = vmatpush3.bf16.msra.mxu0 %v6419_v43  ;;  %5999 = vmatprep.subr.bf16.mxu1 %v9223_v38  ;;  %v7932_v35 = vpack.c.bf16 %v1590_v40, %v1589_v13  ;;  %v7935_v43 = vrot.slane %v2041_v12, 4  ;;  %6665 = vrcp.f32 %v1541_v17  ;;  %v3672_v40 = vrot.slane %v2208_v50, 5 }
 0x104   : > { %5975 = vmatprep.subr.bf16.mxu0 %v9223_v38  ;;  %v1410_v48 = vpop.permute.xlu0 %1409  ;;  %v2216_v63 = vrot.slane %v2214_v39, 3  ;;  %v2219_v0 = vrot.slane %v2217_v26, 4 }
 0x105   : > { %5930 = vmatmul.mubr.msk.bf16.gmra.mrb[24].mxu0 %vm1758_vm14, %v2031_v57  ;;  %1427 = vst.msk [vmem:[#allocation2 + $0x60] sm:$0xf0] %vm909_vm11, %v1410_v48  ;;  %v7942_v34 = vld [vmem:[#allocation2 + $0x58] sm:$0xf]  ;;  %v1638_v55 = vrot.slane %v7932_v35, 1  ;;  %v1672_v47 = vrot.slane %v7932_v35, 6 }
 0x106   : > { %5933 = vmatprep.mubr.msk.bf16.mxu0 %vm6735_vm5, %v9223_v38  ;;  %6000 = vmatpush3.bf16.msra.mxu1 %v6420_v41  ;;  %v6662_v59 = vpop.eup %6661  ;;  %v7950_v41 = vsel %vm1847_vm15, %v2202_v11, %v2211_v21  ;;  %v2223_v3 = vshrl.u32 %v7942_v34, 16  ;;  %v2226_v6 = vshll.u32 %v7942_v34, 16 }
 0x107   : > { %5976 = vmatpush3.bf16.msra.mxu0 %v6421_v4  ;;  %6001 = vmatprep.subr.bf16.mxu1 %v9223_v38  ;;  %v2047_v4 = vor.u32 %v7937_v42, %v7935_v43  ;;  %v1639_v11 = vsel %vm839_vm1, %v1636_v44, %v1638_v55  ;;  %v1673_v24 = vsel %vm879_vm2, %v1670_v60, %v1672_v47  ;;  %v3664_v44 = vrot.slane %v2190_v30, 5 }
 0x108   : > { %6023 = vmatprep.subr.bf16.mxu0 %v9223_v38  ;;  %1648 = vrot.lane.b32.xlu0 %v1639_v11, %s6734_s14  ;;  %v1578_v49 = vmul.f32 %v6662_v59, %v7736_v7  ;;  %v7983_v60 = vor.u32 %v2219_v0, %v2216_v63  ;;  %v3668_v7 = vrot.slane %v2199_v25, 5  ;;  %v2225_v54 = vrot.slane %v2223_v3, 3  ;;  %v2347_v25 = vld [vmem:[#allocation2 + $0x30] sm:$0xf0] }
 0x109   : > { %5956 = vmatmul.mubr.msk.bf16.gmra.mrb[24].mxu1 %vm1758_vm14, %v7907_v31  ;;  %1684 = vrot.lane.b32.xlu1 %v1673_v24, %s6733_s22  ;;  %v6664_v22 = vpop.eup %6663  ;;  %v7997_v36 = vor.u32 %v3664_v44, %v3663_v61  ;;  %v2228_v56 = vrot.slane %v2226_v6, 4  ;;  %v2048_v43 = vsel %vm2015_vm9, %v7924_v9, %v2047_v4  ;;  %v2497_v42 = vshrl.u32 %v2347_v25, 16 }
 0x10a   : > { %5959 = vmatprep.mubr.msk.bf16.mxu1 %vm6735_vm5, %v9223_v38  ;;  %6002 = vmatpush3.bf16.msra.mxu1 %v6422_v20  ;;  %v1579_v30 = vmul.f32 %v6664_v22, %v7747_v46  ;;  %v1591_v18 = vmul.f32 %v6677_v14, %v1578_v49  ;;  %v3669_v29 = vor.u32 %v3668_v7, %v3667_v16  ;;  %v6678_v46 = vld [vmem:[%s9188_s3 + $0x58] sm:$0xff]  ;;  %v2361_v63 = vrot.slane %v2347_v25, 4 }
 0x10b   : > { %6049 = vmatprep.subr.bf16.mxu1 %v9223_v38  ;;  %v1376_v62 = vpop.permute.xlu1 %1375  ;;  %v8001_v13 = vsel %vm1847_vm15, %v2211_v21, %v7983_v60  ;;  %v6679_v21 = vld [vmem:[%s9188_s3 + $0x60] sm:$0xf]  ;;  %v2229_v52 = vor.u32 %v2228_v56, %v2225_v54  ;;  %v3673_v0 = vor.u32 %v3672_v40, %v3671_v8  ;;  %v8035_v24 = vrot.slane %v7757_v53, 4  ;;  %v6423_v53 = vld [vmem:[%s9191_s6 + $0x90] sm:$0xff]   ;;  %v6424_v54 = vld [vmem:[%s9191_s6 + $0xa8] sm:$0xff]  }
 0x10c   : > { %1392 = vst.msk [vmem:[#allocation2 + $0x68] sm:$0xff] %vm871_vm12, %v1376_v62  ;;  %v1592_v33 = vmul.f32 %v6678_v46, %v1579_v30  ;;  %v8021_v62 = vsel %vm2015_vm9, %v7997_v36, %v3669_v29  ;;  %v3676_v7 = vrot.slane %v2217_v26, 5  ;;  %v2364_v26 = vrot.slane %v7827_v2, 4  ;;  %v6427_v2 = vld [vmem:[%s9191_s6 + $0xa0] sm:$0xff]   ;;  %v2488_v46 = vld [vmem:[#allocation2 + $0x58] sm:$0x1f] }
 0x10d   : > { %5934 = vmatmul.mubr.msk.bf16.gmra.mrb[28].mxu0 %vm1758_vm14, %v2035_v51  ;;  %v1378_v28 = vpop.permute.xlu0 %1377  ;;  %v6666_v23 = vpop.eup %6665  ;;  %v2230_v61 = vsel %vm1847_vm15, %v7983_v60, %v2229_v52  ;;  %v8051_v6 = vsel %vm2015_vm9, %v3669_v29, %v3673_v0  ;;  %v2363_v16 = vsel %vm813_vm3, %v2361_v63, %v8035_v24  ;;  %v6428_v29 = vld [vmem:[%s9191_s6 + $0xb8] sm:$0xff]   ;;  %v2521_v40 = vshrl.u32 %v2488_v46, 16 }
 0x10e   : > { %5937 = vmatprep.mubr.msk.bf16.mxu0 %vm6735_vm5, %v9223_v38  ;;  %1393 = vst.msk [vmem:[#allocation2 + $0x70] sm:$0xff] %vm871_vm12, %v1378_v28  ;;  %v1580_v51 = vmul.f32 %v6666_v23, %v7750_v10  ;;  %v1599_v17 = vpack.c.bf16 %v1592_v33, %v1591_v18  ;;  %v2500_v28 = vshll.u32 %v2347_v25, 16  ;;  %v6426_v23 = vld [vmem:[%s9191_s6 + $0xb0] sm:$0xff]   ;;  %v8094_v56 = vsel %vm813_vm3, %v8035_v24, %v2364_v26  ;;  %v2645_v33 = vld [vmem:[#allocation2 + $0x60] sm:$0xf8] }
 0x10f   : > { %v1412_v57 = vpop.permute.xlu1 %1411  ;;  %v2366_v25 = vrot.slane %v7870_v27, 4  ;;  %v8120_v27 = vrot.slane %v7919_v5, 4  ;;  %v2659_v5 = vshrl.u32 %v2645_v33, 16  ;;  %v2370_v52 = vrot.slane %v7942_v34, 4 }
 0x110   : > { %1428 = vst.msk [vmem:[#allocation2 + $0x68] sm:$0xff] %vm911_vm13, %v1412_v57  ;;  %v1593_v10 = vmul.f32 %v6679_v21, %v1580_v51  ;;  %v1640_v50 = vrot.slane %v1599_v17, 1  ;;  %v1674_v59 = vrot.slane %v1599_v17, 6  ;;  %v2502_v49 = vrot.slane %v2500_v28, 5 }
 0x111   : > { %5960 = vmatmul.mubr.msk.bf16.gmra.mrb[28].mxu1 %vm1758_vm14, %v7950_v41  ;;  %v1380_v48 = vpop.permute.xlu0 %1379  ;;  %v8130_v8 = vsel %vm813_vm3, %v2366_v25, %v8120_v27  ;;  %v2524_v17 = vshll.u32 %v2488_v46, 16  ;;  %v2662_v21 = vshll.u32 %v2645_v33, 16 }
 0x112   : > { %5963 = vmatprep.mubr.msk.bf16.mxu1 %vm6735_vm5, %v9223_v38  ;;  %1394 = vst.msk [vmem:[#allocation2 + $0x78] sm:$0xff] %vm871_vm12, %v1380_v48  ;;  %v1641_v11 = vsel %vm839_vm1, %v1638_v55, %v1640_v50  ;;  %v1675_v9 = vsel %vm879_vm2, %v1672_v47, %v1674_v59  ;;  %v2499_v48 = vrot.slane %v2497_v42, 4  ;;  %v2523_v42 = vrot.slane %v2521_v40, 4 }
 0x113   : > { %v1414_v20 = vpop.permute.xlu1 %1413  ;;  %1650 = vrot.lane.b32.xlu0 %v1641_v11, %s6734_s14  ;;  %1686 = vrot.lane.b32.xlu1 %v1675_v9, %s6733_s22  ;;  %v2526_v28 = vrot.slane %v2524_v17, 5  ;;  %v6434_v17 = vld [vmem:[%s9191_s6 + $0x28] sm:$0xff]   ;;  %vm3340_vm1 = vcmask 122880  }
 0x114   : > { %1429 = vst.msk [vmem:[#allocation2 + $0x70] sm:$0xff] %vm911_vm13, %v1414_v20  ;;  %v3675_v20 = vrot.slane %v2214_v39, 4  ;;  %v2503_v22 = vor.u32 %v2502_v49, %v2499_v48  ;;  %v6425_v39 = vld [vmem:[%s9191_s6 + $0x98] sm:$0xff]   ;;  %v8159_v49 = vld [vmem:[#allocation2 + $0x60] sm:$0xf0] }
 0x115   : > { %5938 = vmatmul.mubr.msk.bf16.gmra.mrb[32].mxu0 %vm1758_vm14, %v2039_v37  ;;  %v1600_v37 = vpack.c.bf16 %v1593_v10, %v1593_v10  ;;  %v2527_v34 = vor.u32 %v2526_v28, %v2523_v42  ;;  %3343 = vst.msk [vmem:[%s7271_s13 + $0x4] sm:$0x1] %vm3340_vm1, %v6736_v32  ;;  %5688 = vst.msk [vmem:[%s7271_s13 + $0x38] sm:$0x1] %vm3340_vm1, %v6736_v32 }
 0x116   : > { %5941 = vmatprep.mubr.msk.bf16.mxu0 %vm6735_vm5, %v9223_v38  ;;  %v8073_v30 = vor.u32 %v3676_v7, %v3675_v20  ;;  %v2507_v14 = vsel %vm2015_vm9, %v2503_v22, %v7997_v36  ;;  %v6430_v22 = vld [vmem:[%s9191_s6 + $0x18] sm:$0xff]   ;;  %v6431_v7 = vld [vmem:[%s9191_s6 + $0xc8] sm:$0xff]  }
 0x117   : > { %v1416_v12 = vpop.permute.xlu1 %1415  ;;  %v1676_v4 = vrot.slane %v1600_v37, 6  ;;  %1652 = vrot.lane.b32.xlu0 %v1640_v50, %s6734_s14  ;;  %v8126_v51 = vld [vmem:[#allocation2 + $0x68] sm:$0xff]  ;;  %v2661_v50 = vrot.slane %v2659_v5, 3  ;;  %v1609_v5 = vrot.slane %v7716_v19, 4 }
 0x118   : > { %1430 = vst.msk [vmem:[#allocation2 + $0x78] sm:$0xff] %vm911_vm13, %v1416_v12  ;;  %v8081_v18 = vsel %vm2015_vm9, %v3673_v0, %v8073_v30  ;;  %v8113_v12 = vsel %vm813_vm3, %v2364_v26, %v2366_v25  ;;  %v2667_v10 = vshrl.u32 %v8126_v51, 16  ;;  %v2371_v0 = vsel %vm813_vm3, %v8120_v27, %v2370_v52 }
 0x119   : > { %5964 = vmatmul.mubr.msk.bf16.gmra.mrb[32].mxu1 %vm1758_vm14, %v8001_v13  ;;  %v1677_v55 = vsel %vm879_vm2, %v1674_v59, %v1676_v4  ;;  %v2664_v59 = vrot.slane %v2662_v21, 4  ;;  %v2528_v9 = vsel %vm2015_vm9, %v8073_v30, %v2527_v34  ;;  %1624 = vst.msk [vmem:[#allocation2 + $0x90] sm:$0xf0] %vm829_vm0, %v1609_v5  ;;  %v1612_v34 = vrot.slane %v7760_v15, 4 }
 0x11a   : > { %5967 = vmatprep.mubr.msk.bf16.mxu1 %vm6735_vm5, %v9223_v38  ;;  %1688 = vrot.lane.b32.xlu1 %v1677_v55, %s6733_s22  ;;  %v2669_v37 = vrot.slane %v2667_v10, 3  ;;  %v6429_v55 = vld [vmem:[%s9191_s6 + $0xc0] sm:$0xff]   ;;  %vm3329_vm0 = vcmask 125953   ;;  %vm3152_vm2 = vcmask 1045504  }
 0x11b   : > { %3344 = vst.msk [vmem:[%s7271_s13 + $0x2c] sm:$0xe] %vm3329_vm0, %v6736_v32  ;;  %5689 = vst.msk [vmem:[%s7271_s13 + $0x60] sm:$0xe] %vm3329_vm0, %v6736_v32 }
 0x11d   : > { %5942 = vmatmul.mubr.msk.bf16.gmra.mrb[36].mxu0 %vm1758_vm14, %v2048_v43  ;;  %v1382_v57 = vpop.permute.xlu0 %1381  ;;  %v1418_v3 = vpop.permute.xlu1 %1417  ;;  %v2670_v43 = vshll.u32 %v8126_v51, 16 }
 0x11e   : > { %5977 = vmatprep.mubr.msk.bf16.mxu0 %vm6735_vm5, %v9223_v38  ;;  %1395 = vst.msk [vmem:[#allocation2 + $0x80] sm:$0xff] %vm871_vm12, %v1382_v57  ;;  %v8150_v57 = vld [vmem:[#allocation2 + $0x70] sm:$0xff] }
 0x11f   : > { %1431 = vst.msk [vmem:[#allocation2 + $0x80] sm:$0xff] %vm911_vm13, %v1418_v3  ;;  %v2672_v63 = vrot.slane %v2670_v43, 4  ;;  %v2665_v3 = vor.u32 %v2664_v59, %v2661_v50  ;;  %v2676_v4 = vshrl.u32 %v8150_v57, 16  ;;  %v2679_v48 = vshll.u32 %v8150_v57, 16 }
 0x120   : > { %v2844_v25 = vrot.slane %v8150_v57, 4  ;;  %v1610_v50 = vrot.slane %v7727_v45, 4 }
 0x121   : > { %5968 = vmatmul.mubr.msk.bf16.gmra.mrb[36].mxu1 %vm1758_vm14, %v2230_v61  ;;  %v1384_v47 = vpop.permute.xlu0 %1383  ;;  %v1420_v44 = vpop.permute.xlu1 %1419  ;;  %v2673_v11 = vor.u32 %v2672_v63, %v2669_v37  ;;  %v2681_v20 = vrot.slane %v2679_v48, 4 }
 0x122   : > { %6003 = vmatprep.mubr.msk.bf16.mxu1 %vm6735_vm5, %v9223_v38  ;;  %1396 = vst.msk [vmem:[#allocation2 + $0x88] sm:$0xf] %vm876_vm6, %v1384_v47  ;;  %v2842_v47 = vrot.slane %v8126_v51, 4  ;;  %v1611_v19 = vsel %vm813_vm3, %v1609_v5, %v1610_v50  ;;  %v2984_v5 = vrot.slane %v2667_v10, 4  ;;  %v8273_v10 = vld [vmem:[#allocation2 + $0x30] sm:$0xf0] }
 0x123   : > { %1432 = vst.msk [vmem:[#allocation2 + $0x88] sm:$0xf] %vm916_vm7, %v1420_v44  ;;  %v2674_v61 = vsel %vm1847_vm15, %v2665_v3, %v2673_v11  ;;  %v2678_v44 = vrot.slane %v2676_v4, 3 }
 0x124   : > { %v2845_v21 = vsel %vm813_vm3, %v2842_v47, %v2844_v25  ;;  %1625 = vst.msk [vmem:[#allocation2 + $0x98] sm:$0xff] %vm831_vm4, %v1611_v19 }
 0x125   : > { %5978 = vmatmul.mubr.msk.bf16.vlgmr.msra.gmra.mrb[40].mxu0 %vm1758_vm14, %v2363_v16  ;;  %v8174_v16 = vld [vmem:[#allocation2 + $0x78] sm:$0xff] }
 0x126   : > { %6024 = vmatpush3.bf16.msra.mxu0 %v6423_v53  ;;  %5981 = vmatprep.mubr.msk.bf16.mxu0 %vm6735_vm5, %v9223_v38  ;;  %v2841_v53 = vrot.slane %v8159_v49, 4  ;;  %v2688_v26 = vshll.u32 %v8174_v16, 16  ;;  %v8206_v40 = vld [vmem:[#allocation2 + $0x80] sm:$0xff]  ;;  %v2846_v37 = vrot.slane %v8174_v16, 4 }
 0x127   : > { %6025 = vmatprep.subr.bf16.mxu0 %v9223_v38  ;;  %v2694_v42 = vshrl.u32 %v8206_v40, 16  ;;  %v2697_v28 = vshll.u32 %v8206_v40, 16  ;;  %v2848_v15 = vrot.slane %v8206_v40, 4 }
 0x128   : > { %v2690_v33 = vrot.slane %v2688_v26, 4  ;;  %v2847_v3 = vsel %vm813_vm3, %v2844_v25, %v2846_v37 }
 0x129   : > { %6004 = vmatmul.mubr.msk.bf16.vlgmr.msra.gmra.mrb[40].mxu1 %vm1758_vm14, %v2507_v14  ;;  %v2685_v14 = vshrl.u32 %v8174_v16, 16  ;;  %v2696_v63 = vrot.slane %v2694_v42, 3 }
 0x12a   : > { %6050 = vmatpush3.bf16.msra.mxu1 %v6424_v54  ;;  %6007 = vmatprep.mubr.msk.bf16.mxu1 %vm6735_vm5, %v9223_v38  ;;  %v2843_v54 = vsel %vm813_vm3, %v2841_v53, %v2842_v47  ;;  %v2650_v45 = vld [vmem:[#allocation2 + $0x88] sm:$0xf] }
 0x12b   : > { %6026 = vmatpush3.bf16.msra.mxu0 %v6425_v39  ;;  %6051 = vmatprep.subr.bf16.mxu1 %v9223_v38  ;;  %v2682_v39 = vor.u32 %v2681_v20, %v2678_v44  ;;  %v2687_v46 = vrot.slane %v2685_v14, 3 }
 0x12c   : > { %6027 = vmatprep.subr.bf16.mxu0 %v9223_v38 }
 0x12d   : > { %5982 = vmatmul.mubr.msk.bf16.gmra.mrb[44].mxu0 %vm1758_vm14, %v8094_v56  ;;  %v2691_v52 = vor.u32 %v2690_v33, %v2687_v46 }
 0x12e   : > { %5985 = vmatprep.mubr.msk.bf16.mxu0 %vm6735_vm5, %v9223_v38  ;;  %6052 = vmatpush3.bf16.msra.mxu1 %v6426_v23  ;;  %v6432_v23 = vld [vmem:[%s9191_s6 + $0x20] sm:$0xff]  }
 0x12f   : > { %6028 = vmatpush3.bf16.msra.mxu0 %v6427_v2  ;;  %6053 = vmatprep.subr.bf16.mxu1 %v9223_v38  ;;  %v6433_v2 = vld [vmem:[%s9191_s6 + $0xd0] sm:$0xff]   ;;  %v2692_v59 = vsel %vm1847_vm15, %v2682_v39, %v2691_v52 }
 0x130   : > { %6075 = vmatprep.subr.bf16.mxu0 %v9223_v38 }
 0x131   : > { %6008 = vmatmul.mubr.msk.bf16.gmra.mrb[44].mxu1 %vm1758_vm14, %v8021_v62 }
 0x132   : > { %6011 = vmatprep.mubr.msk.bf16.mxu1 %vm6735_vm5, %v9223_v38  ;;  %6054 = vmatpush3.bf16.msra.mxu1 %v6428_v29  ;;  %v2683_v29 = vsel %vm1847_vm15, %v2673_v11, %v2682_v39  ;;  %v2980_v39 = vshll.u32 %v8159_v49, 16 }
 0x133   : > { %6101 = vmatprep.subr.bf16.mxu1 %v9223_v38 }
 0x134   : > { %v2982_v33 = vrot.slane %v2980_v39, 5 }
 0x135   : > { %5986 = vmatmul.mubr.msk.bf16.gmra.mrb[48].mxu0 %vm1758_vm14, %v8113_v12 }
 0x136   : > { %5989 = vmatprep.mubr.msk.bf16.mxu0 %vm6735_vm5, %v9223_v38 }
 0x139   : > { %6012 = vmatmul.mubr.msk.bf16.gmra.mrb[48].mxu1 %vm1758_vm14, %v8051_v6 }
 0x13a   : > { %6015 = vmatprep.mubr.msk.bf16.mxu1 %vm6735_vm5, %v9223_v38 }
 0x13d   : > { %5990 = vmatmul.mubr.msk.bf16.gmra.mrb[52].mxu0 %vm1758_vm14, %v8130_v8 }
 0x13e   : > { %5993 = vmatprep.mubr.msk.bf16.mxu0 %vm6735_vm5, %v9223_v38 }
 0x141   : > { %6016 = vmatmul.mubr.msk.bf16.gmra.mrb[52].mxu1 %vm1758_vm14, %v8081_v18 }
 0x142   : > { %6019 = vmatprep.mubr.msk.bf16.mxu1 %vm6735_vm5, %v9223_v38 }
 0x145   : > { %5994 = vmatmul.mubr.msk.bf16.gmra.mrb[56].mxu0 %vm1758_vm14, %v2371_v0  ;;  %v2699_v0 = vrot.slane %v2697_v28, 4 }
 0x146   : > { %6029 = vmatprep.mubr.msk.bf16.mxu0 %vm6735_vm5, %v9223_v38 }
 0x147   : > { %v2700_v11 = vor.u32 %v2699_v0, %v2696_v63  ;;  %v6435_v63 = vld [vmem:[%s9191_s6] sm:$0xff]   ;;  %v3372_v0 = vrot.slane %v8273_v10, 4 }
 0x149   : > { %6020 = vmatmul.mubr.msk.bf16.gmra.mrb[56].mxu1 %vm1758_vm14, %v2528_v9  ;;  %v2703_v9 = vshrl.u32 %v2650_v45, 16  ;;  %v2701_v47 = vsel %vm1847_vm15, %v2691_v52, %v2700_v11  ;;  %v3374_v57 = vsel %vm813_vm3, %v3372_v0, %v8035_v24 }
 0x14a   : > { %6055 = vmatprep.mubr.msk.bf16.mxu1 %vm6735_vm5, %v9223_v38 }
 0x14b   : > { %v2705_v44 = vrot.slane %v2703_v9, 3  ;;  %v6439_v9 = vld [vmem:[%s9191_s6 + $0x10] sm:$0xff]  }
 0x14d   : > { %6030 = vmatmul.mubr.msk.bf16.vlgmr.msra.gmra.mrb[60].mxu0 %vm1758_vm14, %v2674_v61  ;;  %v2706_v61 = vshll.u32 %v2650_v45, 16 }
 0x14e   : > { %6076 = vmatpush3.bf16.msra.mxu0 %v6429_v55  ;;  %6033 = vmatprep.mubr.msk.bf16.mxu0 %vm6735_vm5, %v9223_v38  ;;  %v1613_v55 = vsel %vm813_vm3, %v1610_v50, %v1612_v34  ;;  %v1616_v50 = vrot.slane %v7932_v35, 4 }
 0x14f   : > { %6077 = vmatprep.subr.bf16.mxu0 %v9223_v38  ;;  %1626 = vst.msk [vmem:[#allocation2 + $0xa0] sm:$0xff] %vm831_vm4, %v1613_v55  ;;  %v2708_v20 = vrot.slane %v2706_v61, 4  ;;  %v2992_v61 = vrot.slane %v2685_v14, 4  ;;  %v2993_v55 = vrot.slane %v2688_v26, 5  ;;  %v2996_v14 = vrot.slane %v2694_v42, 4 }
 0x150   : > { %1629 = vst.msk [vmem:[#allocation2 + $0xb8] sm:$0xf] %vm836_vm8, %v1616_v50  ;;  %v2997_v26 = vrot.slane %v2697_v28, 5 }
 0x151   : > { %6056 = vmatmul.mubr.msk.bf16.vlgmr.msra.gmra.mrb[60].mxu1 %vm1758_vm14, %v2843_v54  ;;  %v2977_v54 = vshrl.u32 %v8159_v49, 16 }
 0x152   : > { %6102 = vmatpush3.bf16.msra.mxu1 %v6430_v22  ;;  %6059 = vmatprep.mubr.msk.bf16.mxu1 %vm6735_vm5, %v9223_v38 }
 0x153   : > { %6078 = vmatpush3.bf16.msra.mxu0 %v6431_v7  ;;  %6103 = vmatprep.subr.bf16.mxu1 %v9223_v38  ;;  %v2979_v49 = vrot.slane %v2977_v54, 4  ;;  %v3347_v54 = vld [vmem:[#allocation2 + $0x30] sm:$0xf8] }
 0x154   : > { %6079 = vmatprep.subr.bf16.mxu0 %v9223_v38  ;;  %v3490_v39 = vshrl.u32 %v3347_v54, 16 }
 0x155   : > { %6034 = vmatmul.mubr.msk.bf16.gmra.mrb[64].mxu0 %vm1758_vm14, %v2683_v29  ;;  %v2709_v29 = vor.u32 %v2708_v20, %v2705_v44  ;;  %v2968_v44 = vld [vmem:[#allocation2 + $0x88] sm:$0x1f]  ;;  %v2998_v20 = vor.u32 %v2997_v26, %v2996_v14 }
 0x156   : > { %6037 = vmatprep.mubr.msk.bf16.mxu0 %vm6735_vm5, %v9223_v38  ;;  %6104 = vmatpush3.bf16.msra.mxu1 %v6432_v23  ;;  %v1614_v23 = vrot.slane %v7815_v1, 4  ;;  %v2850_v1 = vrot.slane %v2650_v45, 4  ;;  %v2988_v45 = vrot.slane %v2676_v4, 4 }
 0x157   : > { %6080 = vmatpush3.bf16.msra.mxu0 %v6433_v2  ;;  %6105 = vmatprep.subr.bf16.mxu1 %v9223_v38  ;;  %v2849_v2 = vsel %vm813_vm3, %v2846_v37, %v2848_v15 }
 0x158   : > { %6127 = vmatprep.subr.bf16.mxu0 %v9223_v38  ;;  %v1615_v25 = vsel %vm813_vm3, %v1612_v34, %v1614_v23  ;;  %v2851_v19 = vsel %vm813_vm3, %v2848_v15, %v2850_v1  ;;  %v2989_v34 = vrot.slane %v2679_v48, 5  ;;  %v6438_v48 = vld [vmem:[%s9191_s6 + $0x38] sm:$0xff]   ;;  %v3656_v1 = vshrl.u32 %v8273_v10, 16 }
 0x159   : > { %6060 = vmatmul.mubr.msk.bf16.gmra.mrb[64].mxu1 %vm1758_vm14, %v2845_v21  ;;  %1627 = vst.msk [vmem:[#allocation2 + $0xa8] sm:$0xff] %vm831_vm4, %v1615_v25  ;;  %v2985_v21 = vrot.slane %v2670_v43, 5  ;;  %v1617_v43 = vsel %vm813_vm3, %v1614_v23, %v1616_v50  ;;  %v3493_v23 = vshll.u32 %v3347_v54, 16 }
 0x15a   : > { %6063 = vmatprep.mubr.msk.bf16.mxu1 %vm6735_vm5, %v9223_v38  ;;  %6106 = vmatpush3.bf16.msra.mxu1 %v6434_v17  ;;  %v1643_v53 = vpop.permute.xlu0 %1642  ;;  %v2710_v17 = vsel %vm1847_vm15, %v2700_v11, %v2709_v29  ;;  %1628 = vst.msk [vmem:[#allocation2 + $0xb0] sm:$0xff] %vm831_vm4, %v1617_v43  ;;  %v6437_v11 = vld [vmem:[%s9191_s6 + $0x8] sm:$0xff]   ;;  %v2990_v4 = vor.u32 %v2989_v34, %v2988_v45  ;;  %v6443_v43 = vld [vmem:[%s9191_s6 + $0x50] sm:$0xff]  }
 0x15b   : > { %6153 = vmatprep.subr.bf16.mxu1 %v9223_v38  ;;  %1660 = vst.msk [vmem:[#allocation2 + $0x90] sm:$0xf0] %vm869_vm10, %v1643_v53  ;;  %v2986_v37 = vor.u32 %v2985_v21, %v2984_v5  ;;  %v6440_v53 = vld [vmem:[%s9191_s6 + $0x40] sm:$0xff]  }
 0x15d   : > { %6038 = vmatmul.mubr.msk.bf16.gmra.mrb[68].mxu0 %vm1758_vm14, %v2692_v59  ;;  %v2983_v59 = vor.u32 %v2982_v33, %v2979_v49  ;;  %v2991_v24 = vsel %vm2015_vm9, %v2986_v37, %v2990_v4  ;;  %v3495_v49 = vrot.slane %v3493_v23, 4 }
 0x15e   : > { %6041 = vmatprep.mubr.msk.bf16.mxu0 %vm6735_vm5, %v9223_v38  ;;  %v1679_v7 = vpop.permute.xlu0 %1678 }
 0x15f   : > { %1696 = vst.msk [vmem:[#allocation2 + $0x90] sm:$0xf0] %vm909_vm11, %v1679_v7  ;;  %v2987_v35 = vsel %vm2015_vm9, %v2983_v59, %v2986_v37  ;;  %v3004_v7 = vshll.u32 %v2968_v44, 16  ;;  %v6441_v37 = vld [vmem:[%s9191_s6 + $0x48] sm:$0xff]  }
 0x161   : > { %6064 = vmatmul.mubr.msk.bf16.gmra.mrb[68].mxu1 %vm1758_vm14, %v2847_v3  ;;  %v6436_v3 = vld [vmem:[%s9191_s6 + $0x30] sm:$0xff]   ;;  %v3006_v28 = vrot.slane %v3004_v7, 5  ;;  %v8431_v7 = vld [vmem:[#allocation2 + $0x68] sm:$0xff] }
 0x162   : > { %6067 = vmatprep.mubr.msk.bf16.mxu1 %vm6735_vm5, %v9223_v38  ;;  %v1645_v22 = vpop.permute.xlu1 %1644 }
 0x163   : > { %1661 = vst.msk [vmem:[#allocation2 + $0x98] sm:$0xff] %vm871_vm12, %v1645_v22  ;;  %v3001_v22 = vshrl.u32 %v2968_v44, 16 }
 0x165   : > { %6042 = vmatmul.mubr.msk.bf16.gmra.mrb[72].mxu0 %vm1758_vm14, %v2701_v47  ;;  %v2994_v47 = vor.u32 %v2993_v55, %v2992_v61  ;;  %v3003_v42 = vrot.slane %v3001_v22, 4  ;;  %v3648_v55 = vld [vmem:[#allocation2 + $0x58] sm:$0x1f]  ;;  %v3804_v22 = vld [vmem:[#allocation2 + $0x60] sm:$0xf8] }
 0x166   : > { %6045 = vmatprep.mubr.msk.bf16.mxu0 %vm6735_vm5, %v9223_v38  ;;  %v1681_v46 = vpop.permute.xlu1 %1680  ;;  %v3680_v26 = vshrl.u32 %v3648_v55, 16 }
 0x167   : > { %1697 = vst.msk [vmem:[#allocation2 + $0x98] sm:$0xff] %vm911_vm13, %v1681_v46  ;;  %v2995_v16 = vsel %vm2015_vm9, %v2990_v4, %v2994_v47  ;;  %v2999_v40 = vsel %vm2015_vm9, %v2994_v47, %v2998_v20  ;;  %v3492_v46 = vrot.slane %v3490_v39, 3 }
 0x168   : > { %v3682_v54 = vrot.slane %v3680_v26, 4 }
 0x169   : > { %6068 = vmatmul.mubr.msk.bf16.gmra.mrb[72].mxu1 %vm1758_vm14, %v2849_v2  ;;  %v1647_v52 = vpop.permute.xlu0 %1646  ;;  %v3007_v2 = vor.u32 %v3006_v28, %v3003_v42  ;;  %v3496_v50 = vor.u32 %v3495_v49, %v3492_v46 }
 0x16a   : > { %6071 = vmatprep.mubr.msk.bf16.mxu1 %vm6735_vm5, %v9223_v38  ;;  %1662 = vst.msk [vmem:[#allocation2 + $0xa0] sm:$0xff] %vm871_vm12, %v1647_v52  ;;  %v1683_v51 = vpop.permute.xlu1 %1682 }
 0x16b   : > { %1698 = vst.msk [vmem:[#allocation2 + $0xa0] sm:$0xff] %vm911_vm13, %v1683_v51  ;;  %v3008_v33 = vsel %vm2015_vm9, %v2998_v20, %v3007_v2  ;;  %v3817_v2 = vshrl.u32 %v3804_v22, 16 }
 0x16d   : > { %6046 = vmatmul.mubr.msk.bf16.gmra.mrb[76].mxu0 %vm1758_vm14, %v2710_v17 }
 0x16e   : > { %6081 = vmatprep.mubr.msk.bf16.mxu0 %vm6735_vm5, %v9223_v38 }
 0x171   : > { %6072 = vmatmul.mubr.msk.bf16.gmra.mrb[76].mxu1 %vm1758_vm14, %v2851_v19  ;;  %v3658_v19 = vrot.slane %v3656_v1, 4 }
 0x172   : > { %6107 = vmatprep.mubr.msk.bf16.mxu1 %vm6735_vm5, %v9223_v38 }
 0x175   : > { %6082 = vmatmul.mubr.msk.bf16.vlgmr.msra.gmra.mrb[80].mxu0 %vm1758_vm14, %v2987_v35  ;;  %v6445_v35 = vld [vmem:[%s9191_s6 + $0x58] sm:$0xff]  }
 0x176   : > { %6128 = vmatpush3.bf16.msra.mxu0 %v6435_v63  ;;  %6085 = vmatprep.mubr.msk.bf16.mxu0 %vm6735_vm5, %v9223_v38  ;;  %v6444_v63 = vld [vmem:[%s9191_s6 + $0x68] sm:$0xff]  }
 0x177   : > { %6129 = vmatprep.subr.bf16.mxu0 %v9223_v38 }
 0x179   : > { %6108 = vmatmul.mubr.msk.bf16.vlgmr.msra.gmra.mrb[80].mxu1 %vm1758_vm14, %v3374_v57 }
 0x17a   : > { %6154 = vmatpush3.bf16.msra.mxu1 %v6436_v3  ;;  %6111 = vmatprep.mubr.msk.bf16.mxu1 %vm6735_vm5, %v9223_v38  ;;  %v1649_v15 = vpop.permute.xlu0 %1648 }
 0x17b   : > { %6130 = vmatpush3.bf16.msra.mxu0 %v6437_v11  ;;  %6155 = vmatprep.subr.bf16.mxu1 %v9223_v38  ;;  %1663 = vst.msk [vmem:[#allocation2 + $0xa8] sm:$0xff] %vm871_vm12, %v1649_v15  ;;  %v3683_v15 = vshll.u32 %v3648_v55, 16 }
 0x17c   : > { %6131 = vmatprep.subr.bf16.mxu0 %v9223_v38 }
 0x17d   : > { %6086 = vmatmul.mubr.msk.bf16.gmra.mrb[84].mxu0 %vm1758_vm14, %v2991_v24  ;;  %v3685_v39 = vrot.slane %v3683_v15, 5 }
 0x17e   : > { %6089 = vmatprep.mubr.msk.bf16.mxu0 %vm6735_vm5, %v9223_v38  ;;  %6156 = vmatpush3.bf16.msra.mxu1 %v6438_v48 }
 0x17f   : > { %6132 = vmatpush3.bf16.msra.mxu0 %v6439_v9  ;;  %6157 = vmatprep.subr.bf16.mxu1 %v9223_v38 }
 0x180   : > { %6179 = vmatprep.subr.bf16.mxu0 %v9223_v38 }
 0x181   : > { %6112 = vmatmul.mubr.msk.bf16.gmra.mrb[84].mxu1 %vm1758_vm14, %v8094_v56  ;;  %v1685_v56 = vpop.permute.xlu1 %1684 }
 0x182   : > { %6115 = vmatprep.mubr.msk.bf16.mxu1 %vm6735_vm5, %v9223_v38  ;;  %6158 = vmatpush3.bf16.msra.mxu1 %v6440_v53  ;;  %1699 = vst.msk [vmem:[#allocation2 + $0xa8] sm:$0xff] %vm911_vm13, %v1685_v56 }
 0x183   : > { %6205 = vmatprep.subr.bf16.mxu1 %v9223_v38 }
 0x185   : > { %6090 = vmatmul.mubr.msk.bf16.gmra.mrb[88].mxu0 %vm1758_vm14, %v2995_v16  ;;  %v1651_v29 = vpop.permute.xlu0 %1650  ;;  %v1687_v25 = vpop.permute.xlu1 %1686 }
 0x186   : > { %6093 = vmatprep.mubr.msk.bf16.mxu0 %vm6735_vm5, %v9223_v38  ;;  %1664 = vst.msk [vmem:[#allocation2 + $0xb0] sm:$0xff] %vm871_vm12, %v1651_v29  ;;  %v3825_v29 = vshrl.u32 %v8431_v7, 16 }
 0x187   : > { %1700 = vst.msk [vmem:[#allocation2 + $0xb0] sm:$0xff] %vm911_vm13, %v1687_v25 }
 0x189   : > { %6116 = vmatmul.mubr.msk.bf16.gmra.mrb[88].mxu1 %vm1758_vm14, %v8113_v12  ;;  %v8351_v12 = vld [vmem:[#allocation2 + $0x58] sm:$0xf]  ;;  %v1653_v5 = vpop.permute.xlu0 %1652 }
 0x18a   : > { %6119 = vmatprep.mubr.msk.bf16.mxu1 %vm6735_vm5, %v9223_v38  ;;  %v3381_v17 = vrot.slane %v8351_v12, 4  ;;  %1665 = vst.msk [vmem:[#allocation2 + $0xb8] sm:$0xf] %vm876_vm6, %v1653_v5  ;;  %v3534_v9 = vshrl.u32 %v8351_v12, 16  ;;  %v3537_v24 = vshll.u32 %v8351_v12, 16  ;;  %v3820_v12 = vshll.u32 %v3804_v22, 16 }
 0x18c   : > { %v1689_v21 = vpop.permute.xlu1 %1688  ;;  %v3382_v52 = vsel %vm813_vm3, %v8120_v27, %v3381_v17  ;;  %v6442_v27 = vld [vmem:[%s9191_s6 + $0x60] sm:$0xff]   ;;  %v3536_v16 = vrot.slane %v3534_v9, 3  ;;  %v3539_v14 = vrot.slane %v3537_v24, 4  ;;  %v3686_v17 = vor.u32 %v3685_v39, %v3682_v54  ;;  %v6451_v54 = vld [vmem:[%s9191_s6 + $0x88] sm:$0xff]  }
 0x18d   : > { %6094 = vmatmul.mubr.msk.bf16.gmra.mrb[92].mxu0 %vm1758_vm14, %v2999_v40  ;;  %1701 = vst.msk [vmem:[#allocation2 + $0xb8] sm:$0xf] %vm916_vm7, %v1689_v21  ;;  %v3822_v5 = vrot.slane %v3820_v12, 4  ;;  %v3827_v21 = vrot.slane %v3825_v29, 3 }
 0x18e   : > { %6097 = vmatprep.mubr.msk.bf16.mxu0 %vm6735_vm5, %v9223_v38  ;;  %v3540_v28 = vor.u32 %v3539_v14, %v3536_v16  ;;  %v6449_v16 = vld [vmem:[%s9191_s6 + $0x80] sm:$0xff]  }
 0x191   : > { %6120 = vmatmul.mubr.msk.bf16.gmra.mrb[92].mxu1 %vm1758_vm14, %v8130_v8  ;;  %v3659_v8 = vshll.u32 %v8273_v10, 16  ;;  %v3505_v10 = vsel %vm1847_vm15, %v3496_v50, %v7819_v58 }
 0x192   : > { %6123 = vmatprep.mubr.msk.bf16.mxu1 %vm6735_vm5, %v9223_v38 }
 0x193   : > { %v3661_v59 = vrot.slane %v3659_v8, 5  ;;  %v3819_v8 = vrot.slane %v3817_v2, 3 }
 0x195   : > { %6098 = vmatmul.mubr.msk.bf16.gmra.mrb[96].mxu0 %vm1758_vm14, %v3008_v33  ;;  %v3662_v51 = vor.u32 %v3661_v59, %v3658_v19  ;;  %v3541_v33 = vsel %vm1847_vm15, %v7983_v60, %v3540_v28  ;;  %v8452_v19 = vld [vmem:[#allocation2 + $0x70] sm:$0xff] }
 0x196   : > { %6133 = vmatprep.mubr.msk.bf16.mxu0 %vm6735_vm5, %v9223_v38  ;;  %v4001_v2 = vrot.slane %v8452_v19, 4 }
 0x197   : > { %v3666_v58 = vsel %vm2015_vm9, %v3662_v51, %v7997_v36  ;;  %v6446_v36 = vld [vmem:[%s9191_s6 + $0x70] sm:$0xff]  }
 0x199   : > { %6124 = vmatmul.mubr.msk.bf16.gmra.mrb[96].mxu1 %vm1758_vm14, %v3382_v52 }
 0x19a   : > { %6159 = vmatprep.mubr.msk.bf16.mxu1 %vm6735_vm5, %v9223_v38 }
 0x19d   : > { %6134 = vmatmul.mubr.msk.bf16.vlgmr.msra.gmra.mrb[100].mxu0 %vm1758_vm14, %v3505_v10  ;;  %v3687_v10 = vsel %vm2015_vm9, %v8073_v30, %v3686_v17 }
 0x19e   : > { %6180 = vmatpush3.bf16.msra.mxu0 %v6441_v37  ;;  %6137 = vmatprep.mubr.msk.bf16.mxu0 %vm6735_vm5, %v9223_v38 }
 0x19f   : > { %6181 = vmatprep.subr.bf16.mxu0 %v9223_v38 }
 0x1a1   : > { %6160 = vmatmul.mubr.msk.bf16.vlgmr.msra.gmra.mrb[100].mxu1 %vm1758_vm14, %v3666_v58  ;;  %v8460_v58 = vld [vmem:[#allocation2 + $0x60] sm:$0xf0] }
 0x1a2   : > { %6206 = vmatpush3.bf16.msra.mxu1 %v6442_v27  ;;  %6163 = vmatprep.mubr.msk.bf16.mxu1 %vm6735_vm5, %v9223_v38  ;;  %v3823_v27 = vor.u32 %v3822_v5, %v3819_v8 }
 0x1a3   : > { %6182 = vmatpush3.bf16.msra.mxu0 %v6443_v43  ;;  %6207 = vmatprep.subr.bf16.mxu1 %v9223_v38 }
 0x1a4   : > { %6183 = vmatprep.subr.bf16.mxu0 %v9223_v38 }
 0x1a5   : > { %6138 = vmatmul.mubr.msk.bf16.gmra.mrb[104].mxu0 %vm1758_vm14, %v7907_v31 }
 0x1a6   : > { %6141 = vmatprep.mubr.msk.bf16.mxu0 %vm6735_vm5, %v9223_v38  ;;  %6208 = vmatpush3.bf16.msra.mxu1 %v6444_v63  ;;  %v3834_v63 = vshrl.u32 %v8452_v19, 16 }
 0x1a7   : > { %6184 = vmatpush3.bf16.msra.mxu0 %v6445_v35  ;;  %6209 = vmatprep.subr.bf16.mxu1 %v9223_v38  ;;  %v3837_v35 = vshll.u32 %v8452_v19, 16 }
 0x1a8   : > { %v1808_v0 = vpop.f32.mrb[0].mxu0  ;;  %6231 = vmatprep.subr.bf16.mxu0 %v9223_v38 }
 0x1a9   : > { %v5875_v45 = vpop.f32.mrb[1].mxu0  ;;  %6164 = vmatmul.mubr.msk.bf16.gmra.mrb[104].mxu1 %vm1758_vm14, %v8021_v62 }
 0x1aa   : > { %v1811_v34 = vpop.f32.mrb[2].mxu0  ;;  %6167 = vmatprep.mubr.msk.bf16.mxu1 %vm6735_vm5, %v9223_v38  ;;  %6210 = vmatpush3.bf16.msra.mxu1 %v6446_v36  ;;  %v6447_v45 = vld [vmem:[%s9191_s6 + $0x78] sm:$0xff]  }
 0x1ab   : > { %v5876_v31 = vpop.f32.mrb[3].mxu0  ;;  %6257 = vmatprep.subr.bf16.mxu1 %v9223_v38 }
 0x1ac   : > { %v1968_v3 = vpop.f32.mrb[0].mxu1 }
 0x1ad   : > { %v8413_v11 = vadd.f32 %v1968_v3, %v1808_v0  ;;  %v5901_v57 = vpop.f32.mrb[1].mxu1  ;;  %6142 = vmatmul.mubr.msk.bf16.gmra.mrb[108].mxu0 %vm1758_vm14, %v7950_v41 }
 0x1ae   : > { %v1971_v4 = vpop.f32.mrb[2].mxu1  ;;  %6145 = vmatprep.mubr.msk.bf16.mxu0 %vm6735_vm5, %v9223_v38  ;;  %v3999_v57 = vrot.slane %v8431_v7, 4 }
 0x1af   : > { %v8419_v62 = vadd.f32 %v1971_v4, %v1811_v34  ;;  %v5902_v48 = vpop.f32.mrb[3].mxu1  ;;  %v3998_v34 = vrot.slane %v8460_v58, 4  ;;  %v3836_v4 = vrot.slane %v3834_v63, 3 }
 0x1b0   : > { %v1816_v61 = vpop.f32.mrb[4].mxu0  ;;  %v3839_v48 = vrot.slane %v3837_v35, 4 }
 0x1b1   : > { %v5879_v53 = vpop.f32.mrb[5].mxu0  ;;  %6168 = vmatmul.mubr.msk.bf16.gmra.mrb[108].mxu1 %vm1758_vm14, %v8051_v6  ;;  %v4000_v26 = vsel %vm813_vm3, %v3998_v34, %v3999_v57 }
 0x1b2   : > { %v1819_v47 = vpop.f32.mrb[6].mxu0  ;;  %6171 = vmatprep.mubr.msk.bf16.mxu1 %vm6735_vm5, %v9223_v38  ;;  %v6448_v53 = vld [vmem:[%s9191_s6 + $0x90] sm:$0xff]   ;;  %v3840_v15 = vor.u32 %v3839_v48, %v3836_v4 }
 0x1b3   : > { %v5880_v41 = vpop.f32.mrb[7].mxu0 }
 0x1b4   : > { %v1976_v44 = vpop.f32.mrb[4].mxu1 }
 0x1b5   : > { %v8427_v56 = vadd.f32 %v1976_v44, %v1816_v61  ;;  %v5905_v20 = vpop.f32.mrb[5].mxu1  ;;  %6146 = vmatmul.mubr.msk.bf16.gmra.mrb[112].mxu0 %vm1758_vm14, %v8001_v13  ;;  %v3828_v13 = vshll.u32 %v8431_v7, 16  ;;  %v8480_v61 = vld [vmem:[#allocation2 + $0x78] sm:$0xff] }
 0x1b6   : > { %v1979_v6 = vpop.f32.mrb[6].mxu1  ;;  %6149 = vmatprep.mubr.msk.bf16.mxu0 %vm6735_vm5, %v9223_v38  ;;  %v3843_v44 = vshrl.u32 %v8480_v61, 16  ;;  %v3846_v20 = vshll.u32 %v8480_v61, 16 }
 0x1b7   : > { %v8435_v40 = vadd.f32 %v1979_v6, %v1819_v47  ;;  %v5906_v42 = vpop.f32.mrb[7].mxu1  ;;  %v3830_v52 = vrot.slane %v3828_v13, 4 }
 0x1b8   : > { %v1824_v23 = vpop.f32.mrb[8].mxu0  ;;  %v6450_v42 = vld [vmem:[%s9191_s6 + $0x98] sm:$0xff]   ;;  %v3845_v12 = vrot.slane %v3843_v44, 3 }
 0x1b9   : > { %v5883_v25 = vpop.f32.mrb[9].mxu0  ;;  %6172 = vmatmul.mubr.msk.bf16.gmra.mrb[112].mxu1 %vm1758_vm14, %v8081_v18  ;;  %v3831_v43 = vor.u32 %v3830_v52, %v3827_v21  ;;  %v4002_v52 = vsel %vm813_vm3, %v3999_v57, %v4001_v2 }
 0x1ba   : > { %v1827_v46 = vpop.f32.mrb[10].mxu0  ;;  %6175 = vmatprep.mubr.msk.bf16.mxu1 %vm6735_vm5, %v9223_v38  ;;  %v3848_v25 = vrot.slane %v3846_v20, 4 }
 0x1bb   : > { %v5884_v49 = vpop.f32.mrb[11].mxu0  ;;  %v3832_v3 = vsel %vm1847_vm15, %v3823_v27, %v3831_v43 }
 0x1bc   : > { %v1984_v1 = vpop.f32.mrb[8].mxu1 }
 0x1bd   : > { %v8449_v50 = vadd.f32 %v1984_v1, %v1824_v23  ;;  %v5909_v18 = vpop.f32.mrb[9].mxu1  ;;  %6150 = vmatmul.mubr.msk.bf16.gmra.mrb[116].mxu0 %vm1758_vm14, %v3541_v33  ;;  %v3841_v23 = vsel %vm1847_vm15, %v3831_v43, %v3840_v15  ;;  %v8516_v33 = vld [vmem:[#allocation2 + $0x80] sm:$0xff] }
 0x1be   : > { %v1987_v59 = vpop.f32.mrb[10].mxu1  ;;  %6185 = vmatprep.mubr.msk.bf16.mxu0 %vm6735_vm5, %v9223_v38  ;;  %v6452_v1 = vld [vmem:[%s9191_s6 + $0xa0] sm:$0xff]   ;;  %v3849_v18 = vor.u32 %v3848_v25, %v3845_v12 }
 0x1bf   : > { %v8456_v60 = vadd.f32 %v1987_v59, %v1827_v46  ;;  %v5910_v37 = vpop.f32.mrb[11].mxu1  ;;  %v3852_v59 = vshrl.u32 %v8516_v33, 16 }
 0x1c0   : > { %v1832_v51 = vpop.f32.mrb[12].mxu0  ;;  %v3855_v37 = vshll.u32 %v8516_v33, 16 }
 0x1c1   : > { %v5887_v36 = vpop.f32.mrb[13].mxu0  ;;  %6176 = vmatmul.mubr.msk.bf16.gmra.mrb[116].mxu1 %vm1758_vm14, %v3687_v10 }
 0x1c2   : > { %v1835_v0 = vpop.f32.mrb[14].mxu0  ;;  %6211 = vmatprep.mubr.msk.bf16.mxu1 %vm6735_vm5, %v9223_v38  ;;  %v3857_v34 = vrot.slane %v3855_v37, 4 }
 0x1c3   : > { %v5888_v30 = vpop.f32.mrb[15].mxu0 }
 0x1c4   : > { %v1992_v31 = vpop.f32.mrb[12].mxu1  ;;  %v3854_v30 = vrot.slane %v3852_v59, 3 }
 0x1c5   : > { %v8477_v9 = vadd.f32 %v1992_v31, %v1832_v51  ;;  %v5913_v24 = vpop.f32.mrb[13].mxu1  ;;  %6186 = vmatmul.mubr.msk.bf16.vlgmr.msra.gmra.mrb[120].mxu0 %vm1758_vm14, %v3832_v3  ;;  %v8551_v3 = vld [vmem:[#allocation2 + $0x88] sm:$0xf] }
 0x1c6   : > { %v1995_v55 = vpop.f32.mrb[14].mxu1  ;;  %6232 = vmatpush3.bf16.msra.mxu0 %v6447_v45  ;;  %6189 = vmatprep.mubr.msk.bf16.mxu0 %vm6735_vm5, %v9223_v38  ;;  %v3850_v45 = vsel %vm1847_vm15, %v3840_v15, %v3849_v18 }
 0x1c7   : > { %v8487_v47 = vadd.f32 %v1995_v55, %v1835_v0  ;;  %v5914_v41 = vpop.f32.mrb[15].mxu1  ;;  %6233 = vmatprep.subr.bf16.mxu0 %v9223_v38 }
 0x1c8   : > { %v1840_v14 = vpop.f32.mrb[16].mxu0  ;;  %v3861_v41 = vshrl.u32 %v8551_v3, 16 }
 0x1c9   : > { %v5891_v22 = vpop.f32.mrb[17].mxu0  ;;  %6212 = vmatmul.mubr.msk.bf16.vlgmr.msra.gmra.mrb[120].mxu1 %vm1758_vm14, %v4000_v26 }
 0x1ca   : > { %6258 = vmatpush3.bf16.msra.mxu1 %v6448_v53  ;;  %v1843_v6 = vpop.f32.mrb[18].mxu0  ;;  %6215 = vmatprep.mubr.msk.bf16.mxu1 %vm6735_vm5, %v9223_v38  ;;  %v3858_v53 = vor.u32 %v3857_v34, %v3854_v30 }
 0x1cb   : > { %v5892_v28 = vpop.f32.mrb[19].mxu0  ;;  %6234 = vmatpush3.bf16.msra.mxu0 %v6449_v16  ;;  %6259 = vmatprep.subr.bf16.mxu1 %v9223_v38  ;;  %v3864_v16 = vshll.u32 %v8551_v3, 16 }
 0x1cc   : > { %v2000_v39 = vpop.f32.mrb[16].mxu1  ;;  %6235 = vmatprep.subr.bf16.mxu0 %v9223_v38  ;;  %v3859_v28 = vsel %vm1847_vm15, %v3849_v18, %v3858_v53  ;;  %v4136_v18 = vshll.u32 %v8460_v58, 16 }
 0x1cd   : > { %v8513_v46 = vadd.f32 %v2000_v39, %v1840_v14  ;;  %v5917_v49 = vpop.f32.mrb[17].mxu1  ;;  %6190 = vmatmul.mubr.msk.bf16.gmra.mrb[124].mxu0 %vm1758_vm14, %v3841_v23  ;;  %v3863_v39 = vrot.slane %v3861_v41, 3  ;;  %v3866_v23 = vrot.slane %v3864_v16, 4 }
 0x1ce   : > { %v2003_v17 = vpop.f32.mrb[18].mxu1  ;;  %6193 = vmatprep.mubr.msk.bf16.mxu0 %vm6735_vm5, %v9223_v38  ;;  %6260 = vmatpush3.bf16.msra.mxu1 %v6450_v42  ;;  %v4133_v49 = vshrl.u32 %v8460_v58, 16  ;;  %v4007_v58 = vrot.slane %v8551_v3, 4 }
 0x1cf   : > { %v8523_v8 = vadd.f32 %v2003_v17, %v1843_v6  ;;  %v5918_v5 = vpop.f32.mrb[19].mxu1  ;;  %6236 = vmatpush3.bf16.msra.mxu0 %v6451_v54  ;;  %6261 = vmatprep.subr.bf16.mxu1 %v9223_v38  ;;  %v4005_v54 = vrot.slane %v8516_v33, 4  ;;  %v4281_v17 = vld [vmem:[#allocation2 + $0x90] sm:$0xf8] }
 0x1d0   : > { %v2116_v21 = vpop.f32.mrb[20].mxu0  ;;  %6283 = vmatprep.subr.bf16.mxu0 %v9223_v38  ;;  %v4135_v34 = vrot.slane %v4133_v49, 4 }
 0x1d1   : > { %v2155_v10 = vadd.f32 %v2116_v21, %v8413_v11  ;;  %v5927_v51 = vpop.f32.mrb[21].mxu0  ;;  %6216 = vmatmul.mubr.msk.bf16.gmra.mrb[124].mxu1 %vm1758_vm14, %v4002_v52  ;;  %v4003_v11 = vrot.slane %v8480_v61, 4  ;;  %v3867_v52 = vor.u32 %v3866_v23, %v3863_v39  ;;  %v6453_v23 = vld [vmem:[%s9191_s6 + $0xa8] sm:$0xff]  }
 0x1d2   : > { %v2119_v27 = vpop.f32.mrb[22].mxu0  ;;  %6219 = vmatprep.mubr.msk.bf16.mxu1 %vm6735_vm5, %v9223_v38  ;;  %6262 = vmatpush3.bf16.msra.mxu1 %v6452_v1  ;;  %v8575_v1 = vld [vmem:[#allocation2 + $0x98] sm:$0xff] }
 0x1d3   : > { %v2156_v43 = vadd.f32 %v2119_v27, %v8419_v62  ;;  %v5928_v36 = vpop.f32.mrb[23].mxu0  ;;  %6309 = vmatprep.subr.bf16.mxu1 %v9223_v38  ;;  %v4004_v55 = vsel %vm813_vm3, %v4001_v2, %v4003_v11  ;;  %v4006_v21 = vsel %vm813_vm3, %v4003_v11, %v4005_v54 }
 0x1d4   : > { %v2298_v0 = vpop.f32.mrb[20].mxu1  ;;  %v4297_v36 = vshll.u32 %v4281_v17, 16 }
 0x1d5   : > { %v8548_v62 = vadd.f32 %v2298_v0, %v2155_v10  ;;  %v5953_v31 = vpop.f32.mrb[21].mxu1  ;;  %6194 = vmatmul.mubr.msk.bf16.gmra.mrb[128].mxu0 %vm1758_vm14, %v3850_v45  ;;  %v4302_v0 = vshrl.u32 %v8575_v1, 16  ;;  %v4305_v45 = vshll.u32 %v8575_v1, 16 }
 0x1d6   : > { %v2301_v57 = vpop.f32.mrb[22].mxu1  ;;  %6197 = vmatprep.mubr.msk.bf16.mxu0 %vm6735_vm5, %v9223_v38  ;;  %v3868_v31 = vsel %vm1847_vm15, %v3858_v53, %v3867_v52  ;;  %v4299_v16 = vrot.slane %v4297_v36, 4 }
 0x1d7   : > { %v8555_v4 = vadd.f32 %v2301_v57, %v2156_v43  ;;  %v5954_v48 = vpop.f32.mrb[23].mxu1  ;;  %v4294_v43 = vshrl.u32 %v4281_v17, 16  ;;  %v4138_v57 = vrot.slane %v4136_v18, 5  ;;  %v4304_v53 = vrot.slane %v4302_v0, 3 }
 0x1d8   : > { %v2124_v24 = vpop.f32.mrb[24].mxu0  ;;  %v4140_v48 = vrot.slane %v3825_v29, 4  ;;  %v4307_v29 = vrot.slane %v4305_v45, 4 }
 0x1d9   : > { %v2157_v14 = vadd.f32 %v2124_v24, %v8427_v56  ;;  %v5931_v26 = vpop.f32.mrb[25].mxu0  ;;  %6220 = vmatmul.mubr.msk.bf16.gmra.mrb[128].mxu1 %vm1758_vm14, %v4004_v55  ;;  %v4141_v24 = vrot.slane %v3828_v13, 5  ;;  %v4296_v3 = vrot.slane %v4294_v43, 3 }
 0x1da   : > { %v2127_v15 = vpop.f32.mrb[26].mxu0  ;;  %6223 = vmatprep.mubr.msk.bf16.mxu1 %vm6735_vm5, %v9223_v38  ;;  %v4008_v26 = vsel %vm813_vm3, %v4005_v54, %v4007_v58 }
 0x1db   : > { %v2158_v22 = vadd.f32 %v2127_v15, %v8435_v40  ;;  %v5932_v6 = vpop.f32.mrb[27].mxu0  ;;  %v4139_v15 = vor.u32 %v4138_v57, %v4135_v34  ;;  %v6456_v57 = vld [vmem:[%s9191_s6 + $0xc8] sm:$0xff]  }
 0x1dc   : > { %v2306_v42 = vpop.f32.mrb[24].mxu1 }
 0x1dd   : > { %v8567_v2 = vadd.f32 %v2306_v42, %v2157_v14  ;;  %v5957_v56 = vpop.f32.mrb[25].mxu1  ;;  %6198 = vmatmul.mubr.msk.bf16.gmra.mrb[132].mxu0 %vm1758_vm14, %v3859_v28  ;;  %v8606_v28 = vld [vmem:[#allocation2 + $0xa0] sm:$0xff] }
 0x1de   : > { %v2309_v12 = vpop.f32.mrb[26].mxu1  ;;  %6201 = vmatprep.mubr.msk.bf16.mxu0 %vm6735_vm5, %v9223_v38  ;;  %v4300_v56 = vor.u32 %v4299_v16, %v4296_v3  ;;  %v4314_v52 = vshll.u32 %v8606_v28, 16 }
 0x1df   : > { %v8572_v25 = vadd.f32 %v2309_v12, %v2158_v22  ;;  %v5958_v40 = vpop.f32.mrb[27].mxu1  ;;  %v4142_v22 = vor.u32 %v4141_v24, %v4140_v48  ;;  %v4308_v12 = vor.u32 %v4307_v29, %v4304_v53 }
 0x1e0   : > { %v2132_v5 = vpop.f32.mrb[28].mxu0 }
 0x1e1   : > { %v2159_v10 = vadd.f32 %v2132_v5, %v8449_v50  ;;  %v5935_v51 = vpop.f32.mrb[29].mxu0  ;;  %6224 = vmatmul.mubr.msk.bf16.gmra.mrb[132].mxu1 %vm1758_vm14, %v4006_v21  ;;  %v4143_v17 = vsel %vm2015_vm9, %v4139_v15, %v4142_v22  ;;  %v4145_v5 = vrot.slane %v3837_v35, 5  ;;  %v4311_v21 = vshrl.u32 %v8606_v28, 16 }
 0x1e2   : > { %v2135_v27 = vpop.f32.mrb[30].mxu0  ;;  %6227 = vmatprep.mubr.msk.bf16.mxu1 %vm6735_vm5, %v9223_v38  ;;  %v4309_v51 = vsel %vm1847_vm15, %v4300_v56, %v4308_v12 }
 0x1e3   : > { %v2160_v11 = vadd.f32 %v2135_v27, %v8456_v60  ;;  %v5936_v30 = vpop.f32.mrb[31].mxu0  ;;  %v6455_v27 = vld [vmem:[%s9191_s6 + $0xb0] sm:$0xff]  }
 0x1e4   : > { %v2314_v50 = vpop.f32.mrb[28].mxu1  ;;  %v4316_v30 = vrot.slane %v4314_v52, 4 }
 0x1e5   : > { %v8592_v55 = vadd.f32 %v2314_v50, %v2159_v10  ;;  %v5961_v41 = vpop.f32.mrb[29].mxu1  ;;  %6202 = vmatmul.mubr.msk.bf16.gmra.mrb[136].mxu0 %vm1758_vm14, %v3868_v31  ;;  %v8642_v50 = vld [vmem:[#allocation2 + $0xa8] sm:$0xff] }
 0x1e6   : > { %v2317_v60 = vpop.f32.mrb[30].mxu1  ;;  %6237 = vmatprep.mubr.msk.bf16.mxu0 %vm6735_vm5, %v9223_v38  ;;  %v4149_v41 = vrot.slane %v3846_v20, 5  ;;  %v4323_v29 = vshll.u32 %v8642_v50, 16 }
 0x1e7   : > { %v8601_v14 = vadd.f32 %v2317_v60, %v2160_v11  ;;  %v5962_v7 = vpop.f32.mrb[31].mxu1  ;;  %v4313_v11 = vrot.slane %v4311_v21, 3  ;;  %v6457_v60 = vld [vmem:[%s9191_s6 + $0xb8] sm:$0xff]  }
 0x1e8   : > { %v2140_v13 = vpop.f32.mrb[32].mxu0  ;;  %v6458_v7 = vld [vmem:[%s9191_s6 + $0xd0] sm:$0xff]  }
 0x1e9   : > { %v2161_v6 = vadd.f32 %v2140_v13, %v8477_v9  ;;  %v5939_v42 = vpop.f32.mrb[33].mxu0  ;;  %6228 = vmatmul.mubr.msk.bf16.gmra.mrb[136].mxu1 %vm1758_vm14, %v4008_v26  ;;  %v4144_v9 = vrot.slane %v3834_v63, 4  ;;  %v6454_v63 = vld [vmem:[%s9191_s6 + $0xc0] sm:$0xff]   ;;  %v4317_v53 = vor.u32 %v4316_v30, %v4313_v11 }
 0x1ea   : > { %v2143_v39 = vpop.f32.mrb[34].mxu0  ;;  %6263 = vmatprep.mubr.msk.bf16.mxu1 %vm6735_vm5, %v9223_v38 }
 0x1eb   : > { %v2162_v54 = vadd.f32 %v2143_v39, %v8487_v47  ;;  %v5940_v40 = vpop.f32.mrb[35].mxu0  ;;  %v4146_v36 = vor.u32 %v4145_v5, %v4144_v9  ;;  %v4325_v39 = vrot.slane %v4323_v29, 4 }
 0x1ec   : > { %v2322_v49 = vpop.f32.mrb[32].mxu1 }
 0x1ed   : > { %v8621_v18 = vadd.f32 %v2322_v49, %v2161_v6  ;;  %v5965_v10 = vpop.f32.mrb[33].mxu1  ;;  %6238 = vmatmul.mubr.msk.bf16.vlgmr.msra.gmra.mrb[140].mxu0 %vm1758_vm14, %v4143_v17  ;;  %v4147_v16 = vsel %vm2015_vm9, %v4142_v22, %v4146_v36  ;;  %v4318_v22 = vsel %vm1847_vm15, %v4308_v12, %v4317_v53  ;;  %v4152_v49 = vrot.slane %v3852_v59, 4 }
 0x1ee   : > { %v2325_v47 = vpop.f32.mrb[34].mxu1  ;;  %6284 = vmatpush3.bf16.msra.mxu0 %v6453_v23  ;;  %6241 = vmatprep.mubr.msk.bf16.mxu0 %vm6735_vm5, %v9223_v38  ;;  %v4153_v17 = vrot.slane %v3855_v37, 5 }
 0x1ef   : > { %v8630_v19 = vadd.f32 %v2325_v47, %v2162_v54  ;;  %v5966_v35 = vpop.f32.mrb[35].mxu1  ;;  %6285 = vmatprep.subr.bf16.mxu0 %v9223_v38  ;;  %v8680_v54 = vld [vmem:[#allocation2 + $0xb0] sm:$0xff] }
 0x1f0   : > { %v2148_v43 = vpop.f32.mrb[36].mxu0  ;;  %v4329_v47 = vshrl.u32 %v8680_v54, 16  ;;  %v4154_v30 = vor.u32 %v4153_v17, %v4152_v49 }
 0x1f1   : > { %v2163_v58 = vadd.f32 %v2148_v43, %v8513_v46  ;;  %v5943_v34 = vpop.f32.mrb[37].mxu0  ;;  %6264 = vmatmul.mubr.msk.bf16.vlgmr.msra.gmra.mrb[140].mxu1 %vm1758_vm14, %v4309_v51  ;;  %v4148_v46 = vrot.slane %v3843_v44, 4  ;;  %v4332_v51 = vshll.u32 %v8680_v54, 16 }
 0x1f2   : > { %6310 = vmatpush3.bf16.msra.mxu1 %v6454_v63  ;;  %v2151_v31 = vpop.f32.mrb[38].mxu0  ;;  %6267 = vmatprep.mubr.msk.bf16.mxu1 %vm6735_vm5, %v9223_v38  ;;  %v4125_v63 = vld [vmem:[#allocation2 + $0x88] sm:$0x1f] }
 0x1f3   : > { %v2164_v48 = vadd.f32 %v2151_v31, %v8523_v8  ;;  %v5944_v24 = vpop.f32.mrb[39].mxu0  ;;  %6286 = vmatpush3.bf16.msra.mxu0 %v6455_v27  ;;  %6311 = vmatprep.subr.bf16.mxu1 %v9223_v38  ;;  %v4320_v8 = vshrl.u32 %v8642_v50, 16  ;;  %v4150_v6 = vor.u32 %v4149_v41, %v4148_v46  ;;  %v4157_v37 = vshrl.u32 %v4125_v63, 16 }
 0x1f4   : > { %v2330_v3 = vpop.f32.mrb[36].mxu1  ;;  %6287 = vmatprep.subr.bf16.mxu0 %v9223_v38  ;;  %v4160_v43 = vshll.u32 %v4125_v63, 16  ;;  %v4334_v34 = vrot.slane %v4332_v51, 4 }
 0x1f5   : > { %v8662_v44 = vadd.f32 %v2330_v3, %v2163_v58  ;;  %v5969_v61 = vpop.f32.mrb[37].mxu1  ;;  %6242 = vmatmul.mubr.msk.bf16.gmra.mrb[144].mxu0 %vm1758_vm14, %v4147_v16  ;;  %v4322_v42 = vrot.slane %v4320_v8, 3  ;;  %v4151_v5 = vsel %vm2015_vm9, %v4146_v36, %v4150_v6  ;;  %v4331_v58 = vrot.slane %v4329_v47, 3 }
 0x1f6   : > { %v2333_v20 = vpop.f32.mrb[38].mxu1  ;;  %6245 = vmatprep.mubr.msk.bf16.mxu0 %vm6735_vm5, %v9223_v38  ;;  %6312 = vmatpush3.bf16.msra.mxu1 %v6456_v57  ;;  %v4155_v16 = vsel %vm2015_vm9, %v4150_v6, %v4154_v30 }
 0x1f7   : > { %v8670_v13 = vadd.f32 %v2333_v20, %v2164_v48  ;;  %v5970_v26 = vpop.f32.mrb[39].mxu1  ;;  %6288 = vmatpush3.bf16.msra.mxu0 %v6457_v60  ;;  %6313 = vmatprep.subr.bf16.mxu1 %v9223_v38  ;;  %v4326_v10 = vor.u32 %v4325_v39, %v4322_v42  ;;  %v8706_v48 = vld [vmem:[#allocation2 + $0xb8] sm:$0xf]  ;;  %v4162_v60 = vrot.slane %v4160_v43, 5 }
 0x1f8   : > { %v2439_v15 = vpop.f32.mrb[40].mxu0  ;;  %v4338_v61 = vshrl.u32 %v8706_v48, 16  ;;  %v4341_v20 = vshll.u32 %v8706_v48, 16 }
 0x1f9   : > { %v2478_v23 = vadd.f32 %v2439_v15, %v8548_v62  ;;  %v5979_v56 = vpop.f32.mrb[41].mxu0  ;;  %6268 = vmatmul.mubr.msk.bf16.gmra.mrb[144].mxu1 %vm1758_vm14, %v4318_v22  ;;  %v4327_v11 = vsel %vm1847_vm15, %v4317_v53, %v4326_v10  ;;  %v4335_v53 = vor.u32 %v4334_v34, %v4331_v58 }
 0x1fa   : > { %v2442_v40 = vpop.f32.mrb[42].mxu0  ;;  %6271 = vmatprep.mubr.msk.bf16.mxu1 %vm6735_vm5, %v9223_v38  ;;  %6314 = vmatpush3.bf16.msra.mxu1 %v6458_v7  ;;  %v4340_v39 = vrot.slane %v4338_v61, 3  ;;  %v4462_v56 = vld [vmem:[#allocation2 + $0x90] sm:$0xf0] }
 0x1fb   : > { %v2479_v12 = vadd.f32 %v2442_v40, %v8555_v4  ;;  %v5980_v9 = vpop.f32.mrb[43].mxu0  ;;  %v4336_v6 = vsel %vm1847_vm15, %v4326_v10, %v4335_v53 }
 0x1fc   : > { %v2596_v62 = vpop.f32.mrb[40].mxu1 }
 0x1fd   : > { %v8692_v35 = vadd.f32 %v2596_v62, %v2478_v23  ;;  %v6005_v27 = vpop.f32.mrb[41].mxu1  ;;  %6246 = vmatmul.mubr.msk.bf16.gmra.mrb[148].mxu0 %vm1758_vm14, %v4151_v5  ;;  %v4343_v23 = vrot.slane %v4341_v20, 4  ;;  %v4610_v62 = vshrl.u32 %v4462_v56, 16 }
 0x1fe   : > { %v2599_v4 = vpop.f32.mrb[42].mxu1  ;;  %6249 = vmatprep.mubr.msk.bf16.mxu0 %vm6735_vm5, %v9223_v38  ;;  %v4613_v27 = vshll.u32 %v4462_v56, 16 }
 0x1ff   : > { %v8697_v33 = vadd.f32 %v2599_v4, %v2479_v12  ;;  %v6006_v59 = vpop.f32.mrb[43].mxu1  ;;  %v4344_v63 = vor.u32 %v4343_v23, %v4340_v39 }
 0x200   : > { %v2447_v36 = vpop.f32.mrb[44].mxu0  ;;  %v4615_v34 = vrot.slane %v4613_v27, 5 }
 0x201   : > { %v2480_v31 = vadd.f32 %v2447_v36, %v8567_v2  ;;  %v5983_v57 = vpop.f32.mrb[45].mxu0  ;;  %6272 = vmatmul.mubr.msk.bf16.gmra.mrb[148].mxu1 %vm1758_vm14, %v4327_v11  ;;  %v4159_v2 = vrot.slane %v4157_v37, 4  ;;  %v4476_v36 = vrot.slane %v8575_v1, 4  ;;  %v4612_v11 = vrot.slane %v4610_v62, 4 }
 0x202   : > { %v2450_v24 = vpop.f32.mrb[46].mxu0  ;;  %6275 = vmatprep.mubr.msk.bf16.mxu1 %vm6735_vm5, %v9223_v38  ;;  %v4618_v57 = vrot.slane %v4305_v45, 5  ;;  %v4480_v62 = vrot.slane %v8642_v50, 4 }
 0x203   : > { %v2481_v46 = vadd.f32 %v2450_v24, %v8572_v25  ;;  %v5984_v41 = vpop.f32.mrb[47].mxu0  ;;  %v4163_v42 = vor.u32 %v4162_v60, %v4159_v2 }
 0x204   : > { %v2604_v3 = vpop.f32.mrb[44].mxu1 }
 0x205   : > { %v8720_v7 = vadd.f32 %v2604_v3, %v2480_v31  ;;  %v6009_v26 = vpop.f32.mrb[45].mxu1  ;;  %6250 = vmatmul.mubr.msk.bf16.gmra.mrb[152].mxu0 %vm1758_vm14, %v4155_v16  ;;  %v4164_v10 = vsel %vm2015_vm9, %v4154_v30, %v4163_v42  ;;  %v4345_v30 = vsel %vm1847_vm15, %v4335_v53, %v4344_v63  ;;  %v4617_v31 = vrot.slane %v4302_v0, 4 }
 0x206   : > { %v2607_v15 = vpop.f32.mrb[46].mxu1  ;;  %6253 = vmatprep.mubr.msk.bf16.mxu0 %vm6735_vm5, %v9223_v38  ;;  %v4616_v53 = vor.u32 %v4615_v34, %v4612_v11  ;;  %v4482_v34 = vrot.slane %v8680_v54, 4 }
 0x207   : > { %v8725_v32 = vadd.f32 %v2607_v15, %v2481_v46  ;;  %v6010_v25 = vpop.f32.mrb[47].mxu1  ;;  %v4619_v0 = vor.u32 %v4618_v57, %v4617_v31  ;;  %v4478_v15 = vrot.slane %v8606_v28, 4  ;;  %v4629_v31 = vrot.slane %v4329_v47, 4 }
 0x208   : > { %v2455_v22 = vpop.f32.mrb[48].mxu0  ;;  %v4621_v25 = vrot.slane %v4311_v21, 4  ;;  %v4630_v57 = vrot.slane %v4332_v51, 5 }
 0x209   : > { %v2482_v40 = vadd.f32 %v2455_v22, %v8592_v55  ;;  %v5987_v12 = vpop.f32.mrb[49].mxu0  ;;  %6276 = vmatmul.mubr.msk.bf16.gmra.mrb[152].mxu1 %vm1758_vm14, %v4336_v6  ;;  %v4622_v22 = vrot.slane %v4314_v52, 5 }
 0x20a   : > { %v2458_v9 = vpop.f32.mrb[50].mxu0  ;;  %6279 = vmatprep.mubr.msk.bf16.mxu1 %vm6735_vm5, %v9223_v38  ;;  %v4479_v12 = vsel %vm813_vm3, %v4476_v36, %v4478_v15  ;;  %v4631_v47 = vor.u32 %v4630_v57, %v4629_v31  ;;  %v6681_v57 = vld [vmem:[%s9188_s3 + $0x10] sm:$0xff] }
 0x20b   : > { %v2483_v49 = vadd.f32 %v2458_v9, %v8601_v14  ;;  %v5988_v17 = vpop.f32.mrb[51].mxu0  ;;  %v4475_v14 = vrot.slane %v4462_v56, 4  ;;  %v4623_v9 = vor.u32 %v4622_v22, %v4621_v25 }
 0x20c   : > { %v2612_v5 = vpop.f32.mrb[48].mxu1 }
 0x20d   : > { %v8734_v4 = vadd.f32 %v2612_v5, %v2482_v40  ;;  %v6013_v59 = vpop.f32.mrb[49].mxu1  ;;  %6254 = vmatmul.mubr.msk.bf16.gmra.mrb[156].mxu0 %vm1758_vm14, %v4164_v10  ;;  %v4477_v16 = vsel %vm813_vm3, %v4475_v14, %v4476_v36  ;;  %v4625_v5 = vrot.slane %v4320_v8, 4  ;;  %v4626_v10 = vrot.slane %v4323_v29, 5 }
 0x20e   : > { %v2615_v55 = vpop.f32.mrb[50].mxu1  ;;  %6289 = vmatprep.mubr.msk.bf16.mxu0 %vm6735_vm5, %v9223_v38  ;;  %v4481_v36 = vsel %vm813_vm3, %v4478_v15, %v4480_v62 }
 0x20f   : > { %v8739_v37 = vadd.f32 %v2615_v55, %v2483_v49  ;;  %v6014_v43 = vpop.f32.mrb[51].mxu1  ;;  %v4627_v11 = vor.u32 %v4626_v10, %v4625_v5 }
 0x210   : > { %v2463_v58 = vpop.f32.mrb[52].mxu0 }
 0x211   : > { %v2484_v24 = vadd.f32 %v2463_v58, %v8621_v18  ;;  %v5991_v46 = vpop.f32.mrb[53].mxu0  ;;  %6280 = vmatmul.mubr.msk.bf16.gmra.mrb[156].mxu1 %vm1758_vm14, %v4345_v30 }
 0x212   : > { %v2466_v41 = vpop.f32.mrb[54].mxu0  ;;  %6315 = vmatprep.mubr.msk.bf16.mxu1 %vm6735_vm5, %v9223_v38 }
 0x213   : > { %v2485_v2 = vadd.f32 %v2466_v41, %v8630_v19  ;;  %v5992_v60 = vpop.f32.mrb[55].mxu0  ;;  %v4620_v19 = vsel %vm2015_vm9, %v4616_v53, %v4619_v0  ;;  %v4602_v41 = vld [vmem:[#allocation2 + $0xb8] sm:$0x1f]  ;;  %v4483_v53 = vsel %vm813_vm3, %v4480_v62, %v4482_v34 }
 0x214   : > { %v2620_v3 = vpop.f32.mrb[52].mxu1  ;;  %v4637_v54 = vshll.u32 %v4602_v41, 16 }
 0x215   : > { %v8753_v61 = vadd.f32 %v2620_v3, %v2484_v24  ;;  %v6017_v1 = vpop.f32.mrb[53].mxu1  ;;  %6290 = vmatmul.mubr.msk.bf16.vlgmr.msra.gmra.mrb[160].mxu0 %vm1758_vm14, %v4477_v16 }
 0x216   : > { %v2623_v45 = vpop.f32.mrb[54].mxu1  ;;  %6293 = vmatprep.mubr.msk.bf16.mxu0 %vm6735_vm5, %v9223_v38  ;;  %v4639_v25 = vrot.slane %v4637_v54, 5 }
 0x217   : > { %v8758_v18 = vadd.f32 %v2623_v45, %v2485_v2  ;;  %v6018_v20 = vpop.f32.mrb[55].mxu1 }
 0x218   : > { %v2471_v26 = vpop.f32.mrb[56].mxu0 }
 0x219   : > { %v2486_v6 = vadd.f32 %v2471_v26, %v8662_v44  ;;  %v5995_v42 = vpop.f32.mrb[57].mxu0  ;;  %6316 = vmatmul.mubr.msk.bf16.vlgmr.msra.gmra.mrb[160].mxu1 %vm1758_vm14, %v4620_v19  ;;  %v4632_v26 = vsel %vm2015_vm9, %v4627_v11, %v4631_v47  ;;  %v4484_v19 = vrot.slane %v8706_v48, 4 }
 0x21a   : > { %v2474_v39 = vpop.f32.mrb[58].mxu0  ;;  %6319 = vmatprep.mubr.msk.bf16.mxu1 %vm6735_vm5, %v9223_v38 }
 0x21b   : > { %v2487_v23 = vadd.f32 %v2474_v39, %v8670_v13  ;;  %v5996_v56 = vpop.f32.mrb[59].mxu0  ;;  %v4624_v13 = vsel %vm2015_vm9, %v4619_v0, %v4623_v9  ;;  %v4634_v0 = vshrl.u32 %v4602_v41, 16 }
 0x21c   : > { %v2628_v40 = vpop.f32.mrb[56].mxu1 }
 0x21d   : > { %v8772_v21 = vadd.f32 %v2628_v40, %v2486_v6  ;;  %v6021_v28 = vpop.f32.mrb[57].mxu1  ;;  %6294 = vmatmul.mubr.msk.bf16.gmra.mrb[164].mxu0 %vm1758_vm14, %v4479_v12  ;;  %v4636_v15 = vrot.slane %v4634_v0, 4  ;;  %v4485_v40 = vsel %vm813_vm3, %v4482_v34, %v4484_v19  ;;  %v6680_v34 = vld [vmem:[%s9188_s3 + $0x8] sm:$0xff]  ;;  %vm3286_vm3 = vcmask 1040384  }
 0x21e   : > { %v2631_v52 = vpop.f32.mrb[58].mxu1  ;;  %6297 = vmatprep.mubr.msk.bf16.mxu0 %vm6735_vm5, %v9223_v38  ;;  %v3153_v31 = vrot.slane %v6680_v34, 2 }
 0x21f   : > { %v8777_v44 = vadd.f32 %v2631_v52, %v2487_v23  ;;  %v6022_v49 = vpop.f32.mrb[59].mxu1  ;;  %v4640_v12 = vor.u32 %v4639_v25, %v4636_v15 }
 0x220   : > { %v2778_v17 = vpop.f32.mrb[60].mxu0 }
 0x221   : > { %v2817_v63 = vadd.f32 %v2778_v17, %v8692_v35  ;;  %v6031_v27 = vpop.f32.mrb[61].mxu0  ;;  %6320 = vmatmul.mubr.msk.bf16.gmra.mrb[164].mxu1 %vm1758_vm14, %v4624_v13 }
 0x222   : > { %v2781_v59 = vpop.f32.mrb[62].mxu0  ;;  %6323 = vmatprep.mubr.msk.bf16.mxu1 %vm6735_vm5, %v9223_v38 }
 0x223   : > { %v2818_v55 = vadd.f32 %v2781_v59, %v8697_v33  ;;  %v6032_v43 = vpop.f32.mrb[63].mxu0  ;;  %v4628_v33 = vsel %vm2015_vm9, %v4623_v9, %v4627_v11 }
 0x224   : > { %v2919_v14 = vpop.f32.mrb[60].mxu1 }
 0x225   : > { %v8791_v8 = vadd.f32 %v2919_v14, %v2817_v63  ;;  %v6057_v50 = vpop.f32.mrb[61].mxu1  ;;  %6298 = vmatmul.mubr.msk.bf16.gmra.mrb[168].mxu0 %vm1758_vm14, %v4481_v36 }
 0x226   : > { %v2922_v29 = vpop.f32.mrb[62].mxu1  ;;  %6301 = vmatprep.mubr.msk.bf16.mxu0 %vm6735_vm5, %v9223_v38 }
 0x227   : > { %v8796_v35 = vadd.f32 %v2922_v29, %v2818_v55  ;;  %v6058_v58 = vpop.f32.mrb[63].mxu1 }
 0x228   : > { %v2786_v30 = vpop.f32.mrb[64].mxu0 }
 0x229   : > { %v2819_v24 = vadd.f32 %v2786_v30, %v8720_v7  ;;  %v6035_v46 = vpop.f32.mrb[65].mxu0  ;;  %6324 = vmatmul.mubr.msk.bf16.gmra.mrb[168].mxu1 %vm1758_vm14, %v4628_v33 }
 0x22a   : > { %v2789_v2 = vpop.f32.mrb[66].mxu0  ;;  %6327 = vmatprep.mubr.msk.bf16.mxu1 %vm6735_vm5, %v9223_v38 }
 0x22b   : > { %v2820_v60 = vadd.f32 %v2789_v2, %v8725_v32  ;;  %v6036_v3 = vpop.f32.mrb[67].mxu0  ;;  %v6682_v2 = vld [vmem:[%s9188_s3 + $0x18] sm:$0xff] }
 0x22c   : > { %v2927_v16 = vpop.f32.mrb[64].mxu1 }
 0x22d   : > { %v8810_v51 = vadd.f32 %v2927_v16, %v2819_v24  ;;  %v6061_v7 = vpop.f32.mrb[65].mxu1  ;;  %6302 = vmatmul.mubr.msk.bf16.gmra.mrb[172].mxu0 %vm1758_vm14, %v4483_v53 }
 0x22e   : > { %v2930_v1 = vpop.f32.mrb[66].mxu1  ;;  %6305 = vmatprep.mubr.msk.bf16.mxu0 %vm6735_vm5, %v9223_v38 }
 0x22f   : > { %v8815_v45 = vadd.f32 %v2930_v1, %v2820_v60  ;;  %v6062_v20 = vpop.f32.mrb[67].mxu1  ;;  %v3156_v60 = vrot.slane %v6682_v2, 2 }
 0x230   : > { %v2794_v32 = vpop.f32.mrb[68].mxu0 }
 0x231   : > { %v2821_v22 = vadd.f32 %v2794_v32, %v8734_v4  ;;  %v6039_v6 = vpop.f32.mrb[69].mxu0  ;;  %6328 = vmatmul.mubr.msk.bf16.gmra.mrb[172].mxu1 %vm1758_vm14, %v4632_v26  ;;  %v6683_v32 = vld [vmem:[%s9188_s3 + $0x20] sm:$0xff] }
 0x232   : > { %v2797_v42 = vpop.f32.mrb[70].mxu0  ;;  %6331 = vmatprep.mubr.msk.bf16.mxu1 %vm6735_vm5, %v9223_v38 }
 0x233   : > { %v2822_v39 = vadd.f32 %v2797_v42, %v8739_v37  ;;  %v6040_v23 = vpop.f32.mrb[71].mxu0  ;;  %v4641_v37 = vsel %vm2015_vm9, %v4631_v47, %v4640_v12 }
 0x234   : > { %v2935_v56 = vpop.f32.mrb[68].mxu1 }
 0x235   : > { %v8825_v9 = vadd.f32 %v2935_v56, %v2821_v22  ;;  %v6065_v48 = vpop.f32.mrb[69].mxu1  ;;  %6306 = vmatmul.mubr.msk.bf16.gmra.mrb[176].mxu0 %vm1758_vm14, %v4485_v40  ;;  %v6684_v56 = vld [vmem:[%s9188_s3 + $0x28] sm:$0xff] }
 0x236   : > { %v2938_v4 = vpop.f32.mrb[70].mxu1  ;;  %6339 = vmatprep.mubr.msk.f32.mxu0 %vm6735_vm5, %v9223_v38  ;;  %v3160_v40 = vrot.slane %v6684_v56, 2 }
 0x237   : > { %v8830_v28 = vadd.f32 %v2938_v4, %v2822_v39  ;;  %v6066_v52 = vpop.f32.mrb[71].mxu1 }
 0x238   : > { %v2802_v49 = vpop.f32.mrb[72].mxu0 }
 0x239   : > { %v2823_v17 = vadd.f32 %v2802_v49, %v8753_v61  ;;  %v6043_v13 = vpop.f32.mrb[73].mxu0  ;;  %6332 = vmatmul.mubr.msk.bf16.gmra.mrb[176].mxu1 %vm1758_vm14, %v4641_v37 }
 0x23a   : > { %v2805_v62 = vpop.f32.mrb[74].mxu0  ;;  %6346 = vmatprep.mubr.msk.f32.mxu1 %vm6735_vm5, %v9223_v38  ;;  %vm3287_vm5 = vcmask 1044484  }
 0x23b   : > { %v2824_v5 = vadd.f32 %v2805_v62, %v8758_v18  ;;  %v6044_v10 = vpop.f32.mrb[75].mxu0  ;;  %vm8899_vm10 = vmor %vm3286_vm3, %vm3287_vm5 }
 0x23c   : > { %v2943_v63 = vpop.f32.mrb[72].mxu1 }
 0x23d   : > { %v8838_v27 = vadd.f32 %v2943_v63, %v2823_v17  ;;  %v6069_v59 = vpop.f32.mrb[73].mxu1 }
 0x23e   : > { %v2946_v55 = vpop.f32.mrb[74].mxu1 }
 0x23f   : > { %v8840_v43 = vadd.f32 %v2946_v55, %v2824_v5  ;;  %v6070_v14 = vpop.f32.mrb[75].mxu1  ;;  %v6685_v5 = vld [vmem:[%s9188_s3 + $0x30] sm:$0xff] }
 0x240   : > { %v2810_v36 = vpop.f32.mrb[76].mxu0  ;;  %v3162_v10 = vrot.slane %v6685_v5, 2 }
 0x241   : > { %v2825_v61 = vadd.f32 %v2810_v36, %v8772_v21  ;;  %v6047_v11 = vpop.f32.mrb[77].mxu0  ;;  %v3154_v21 = vrot.slane %v6681_v57, 2 }
 0x242   : > { %v2813_v50 = vpop.f32.mrb[78].mxu0 }
 0x243   : > { %v2826_v29 = vadd.f32 %v2813_v50, %v8777_v44  ;;  %v6048_v58 = vpop.f32.mrb[79].mxu0  ;;  %v8857_v44 = vld [vmem:[%s9192_s7] ss:$0 sm:$0xff]  ;;  %v8864_v53 = vsel %vm3152_vm2, %v3153_v31, %v3154_v21  ;;  %v8869_v1 = vsel %vm3152_vm2, %v3154_v21, %v3156_v60  ;;  %v8920_v21 = vsel %vm3152_vm2, %v3160_v40, %v3162_v10 }
 0x244   : > { %v2951_v38 = vpop.f32.mrb[76].mxu1 }
 0x245   : > { %v8844_v30 = vadd.f32 %v2951_v38, %v2825_v61  ;;  %v6073_v18 = vpop.f32.mrb[77].mxu1 }
 0x246   : > { %v2954_v33 = vpop.f32.mrb[78].mxu1 }
 0x247   : > { %v8852_v24 = vadd.f32 %v2954_v33, %v2826_v29  ;;  %v6074_v46 = vpop.f32.mrb[79].mxu1 }
 0x248   : > { %v3076_v41 = vpop.f32.mrb[80].mxu0  ;;  %v6686_v46 = vld [vmem:[%s9188_s3 + $0x38] sm:$0xff] }
 0x249   : > { %v3115_v3 = vadd.f32 %v3076_v41, %v8791_v8  ;;  %v6083_v16 = vpop.f32.mrb[81].mxu0  ;;  %v3158_v8 = vrot.slane %v6683_v32, 2  ;;  %v3164_v41 = vrot.slane %v6686_v46, 2 }
 0x24a   : > { %v3079_v47 = vpop.f32.mrb[82].mxu0 }
 0x24b   : > { %v3131_v0 = vadd.f32 %v8857_v44, %v3115_v3  ;;  %v3116_v54 = vadd.f32 %v3079_v47, %v8796_v35  ;;  %v6084_v7 = vpop.f32.mrb[83].mxu0  ;;  %v8882_v23 = vsel %vm3152_vm2, %v3156_v60, %v3158_v8  ;;  %v8906_v29 = vsel %vm3152_vm2, %v3158_v8, %v3160_v40  ;;  %v6687_v47 = vld [vmem:[%s9188_s3 + $0x40] sm:$0xff] }
 0x24c   : > { %v8871_v20 = vpop.f32.mrb[80].mxu1 }
 0x24d   : > { %v3184_v26 = vmul.f32 %v8864_v53, %v3131_v0  ;;  %v3132_v19 = vadd.f32 %v8857_v44, %v3116_v54  ;;  %v6109_v15 = vpop.f32.mrb[81].mxu1  ;;  %v3166_v0 = vrot.slane %v6687_v47, 2 }
 0x24e   : > { %v8878_v25 = vpop.f32.mrb[82].mxu1 }
 0x24f   : > { %v3220_v22 = vmul.f32 %v3184_v26, %v3184_v26  ;;  %v5697_v35 = vpack.c.bf16 %v3184_v26, %v3184_v26  ;;  %v3185_v6 = vmul.f32 %v8869_v1, %v3132_v19  ;;  %v6110_v42 = vpop.f32.mrb[83].mxu1  ;;  %v3194_v12 = vsel %vm831_vm4, %v3184_v26, 0.0 }
 0x250   : > { %v3084_v39 = vpop.f32.mrb[84].mxu0 }
 0x251   : > { %v3289_v48 = vrot.slane %v5697_v35, 7  ;;  %v3195_v4 = vsel %vm831_vm4, %v3185_v6, 0.0  ;;  %v3221_v52 = vmul.f32 %v3185_v6, %v3185_v6  ;;  %v6087_v49 = vpop.f32.mrb[85].mxu0  ;;  %v5698_v17 = vpack.c.bf16 %v3185_v6, %v3185_v6 }
 0x252   : > { %v3196_v37 = vadd.f32 %v3195_v4, %v3194_v12  ;;  %v3117_v13 = vadd.f32 %v3084_v39, %v8810_v51  ;;  %v3087_v62 = vpop.f32.mrb[86].mxu0  ;;  %v3230_v63 = vsel %vm831_vm4, %v3220_v22, 0.0 }
 0x253   : > { %v3290_v59 = vrot.slane %v3289_v48, 4  ;;  %3330 = vst.msk [vmem:[%s7271_s13 + $0x4] sm:$0xe] %vm3329_vm0, %v3289_v48  ;;  %v3231_v55 = vsel %vm831_vm4, %v3221_v52, 0.0  ;;  %v3118_v51 = vadd.f32 %v3087_v62, %v8815_v45  ;;  %v6088_v36 = vpop.f32.mrb[87].mxu0  ;;  %v3291_v11 = vrot.slane %v5698_v17, 7 }
 0x254   : > { %v3232_v61 = vadd.f32 %v3231_v55, %v3230_v63  ;;  %v3133_v50 = vadd.f32 %v8857_v44, %v3117_v13  ;;  %v8908_v58 = vpop.f32.mrb[84].mxu1  ;;  %v8942_v17 = vsel %vm3152_vm2, %v3162_v10, %v3164_v41  ;;  %v6688_v62 = vld [vmem:[%s9188_s3 + $0x48] sm:$0xff]  ;;  %v8956_v10 = vsel %vm3152_vm2, %v3164_v41, %v3166_v0 }
 0x255   : > { %v3134_v38 = vadd.f32 %v8857_v44, %v3118_v51  ;;  %v6113_v18 = vpop.f32.mrb[85].mxu1  ;;  %v3292_v33 = vsel %vm8899_vm10, %v3290_v59, %v3291_v11  ;;  %v3293_v19 = vrot.slane %v3291_v11, 4  ;;  %v3168_v5 = vrot.slane %v6688_v62, 2  ;;  %v6690_v62 = vld [vmem:[%s9188_s3 + $0x58] sm:$0xff] }
 0x256   : > { %v3186_v34 = vmul.f32 %v8882_v23, %v3133_v50  ;;  %v8914_v31 = vpop.f32.mrb[86].mxu1  ;;  %3331 = vst.msk [vmem:[%s7271_s13 + $0x8] sm:$0xf] %vm836_vm8, %v3292_v33 }
 0x257   : > { %v3187_v45 = vmul.f32 %v8906_v29, %v3134_v38  ;;  %v6114_v57 = vpop.f32.mrb[87].mxu1 }
 0x258   : > { %v3197_v2 = vsel %vm831_vm4, %v3186_v34, 0.0  ;;  %v3222_v60 = vmul.f32 %v3186_v34, %v3186_v34  ;;  %v5699_v3 = vpack.c.bf16 %v3186_v34, %v3186_v34  ;;  %v3092_v16 = vpop.f32.mrb[88].mxu0  ;;  %v8962_v57 = vsel %vm3152_vm2, %v3166_v0, %v3168_v5 }
 0x259   : > { %v3198_v54 = vadd.f32 %v3197_v2, %v3196_v37  ;;  %v3199_v7 = vsel %vm831_vm4, %v3187_v45, 0.0  ;;  %v3223_v32 = vmul.f32 %v3187_v45, %v3187_v45  ;;  %v5700_v8 = vpack.c.bf16 %v3187_v45, %v3187_v45  ;;  %v6091_v26 = vpop.f32.mrb[89].mxu0 }
 0x25a   : > { %v3233_v15 = vsel %vm831_vm4, %v3222_v60, 0.0  ;;  %v3294_v22 = vrot.slane %v5699_v3, 7  ;;  %v3119_v35 = vadd.f32 %v3092_v16, %v8825_v9  ;;  %v3095_v6 = vpop.f32.mrb[90].mxu0 }
 0x25b   : > { %v3234_v42 = vadd.f32 %v3233_v15, %v3232_v61  ;;  %v3200_v39 = vadd.f32 %v3199_v7, %v3198_v54  ;;  %v3235_v56 = vsel %vm831_vm4, %v3223_v32, 0.0  ;;  %v3297_v40 = vrot.slane %v5700_v8, 7  ;;  %v6092_v12 = vpop.f32.mrb[91].mxu0 }
 0x25c   : > { %v3295_v48 = vsel %vm8899_vm10, %v3293_v19, %v3294_v22  ;;  %v3296_v4 = vrot.slane %v3294_v22, 4  ;;  %v3135_v52 = vadd.f32 %v8857_v44, %v3119_v35  ;;  %v3120_v49 = vadd.f32 %v3095_v6, %v8830_v28  ;;  %v8937_v37 = vpop.f32.mrb[88].mxu1 }
 0x25d   : > { %3332 = vst.msk [vmem:[%s7271_s13 + $0xc] sm:$0xf] %vm836_vm8, %v3295_v48  ;;  %v3236_v9 = vadd.f32 %v3235_v56, %v3234_v42  ;;  %v6117_v13 = vpop.f32.mrb[89].mxu1  ;;  %v3299_v18 = vrot.slane %v3297_v40, 4  ;;  %v6689_v42 = vld [vmem:[%s9188_s3 + $0x50] sm:$0xff] }
 0x25e   : > { %v3298_v63 = vsel %vm8899_vm10, %v3296_v4, %v3297_v40  ;;  %v3188_v59 = vmul.f32 %v8920_v21, %v3135_v52  ;;  %v3136_v28 = vadd.f32 %v8857_v44, %v3120_v49  ;;  %v8951_v55 = vpop.f32.mrb[90].mxu1 }
 0x25f   : > { %3333 = vst.msk [vmem:[%s7271_s13 + $0x10] sm:$0xf] %vm836_vm8, %v3298_v63  ;;  %v6118_v51 = vpop.f32.mrb[91].mxu1  ;;  %v3172_v63 = vrot.slane %v6690_v62, 2 }
 0x260   : > { %v3201_v36 = vsel %vm831_vm4, %v3188_v59, 0.0  ;;  %v3224_v61 = vmul.f32 %v3188_v59, %v3188_v59  ;;  %v5701_v11 = vpack.c.bf16 %v3188_v59, %v3188_v59  ;;  %v3189_v50 = vmul.f32 %v8942_v17, %v3136_v28  ;;  %v3100_v38 = vpop.f32.mrb[92].mxu0 }
 0x261   : > { %v3202_v33 = vadd.f32 %v3201_v36, %v3200_v39  ;;  %v3121_v34 = vadd.f32 %v3100_v38, %v8838_v27  ;;  %v6095_v45 = vpop.f32.mrb[93].mxu0  ;;  %v3170_v39 = vrot.slane %v6689_v42, 2 }
 0x262   : > { %v3237_v46 = vsel %vm831_vm4, %v3224_v61, 0.0  ;;  %v3300_v41 = vrot.slane %v5701_v11, 7  ;;  %v3203_v2 = vsel %vm831_vm4, %v3189_v50, 0.0  ;;  %v3225_v60 = vmul.f32 %v3189_v50, %v3189_v50  ;;  %v3103_v3 = vpop.f32.mrb[94].mxu0 }
 0x263   : > { %v3238_v16 = vadd.f32 %v3237_v46, %v3236_v9  ;;  %v3204_v47 = vadd.f32 %v3203_v2, %v3202_v33  ;;  %v5702_v54 = vpack.c.bf16 %v3189_v50, %v3189_v50  ;;  %v3137_v7 = vadd.f32 %v8857_v44, %v3121_v34  ;;  %v6096_v32 = vpop.f32.mrb[95].mxu0 }
 0x264   : > { %v3301_v27 = vsel %vm8899_vm10, %v3299_v18, %v3300_v41  ;;  %v3302_v8 = vrot.slane %v3300_v41, 4  ;;  %v3239_v0 = vsel %vm831_vm4, %v3225_v60, 0.0  ;;  %v3122_v26 = vadd.f32 %v3103_v3, %v8840_v43  ;;  %v8971_v19 = vpop.f32.mrb[92].mxu1 }
 0x265   : > { %3334 = vst.msk [vmem:[%s7271_s13 + $0x14] sm:$0xf] %vm836_vm8, %v3301_v27  ;;  %v3240_v15 = vadd.f32 %v3239_v0, %v3238_v16  ;;  %v3303_v22 = vrot.slane %v5702_v54, 7  ;;  %v3190_v35 = vmul.f32 %v8956_v10, %v3137_v7  ;;  %v6121_v6 = vpop.f32.mrb[93].mxu1  ;;  %v8994_v36 = vsel %vm3152_vm2, %v3168_v5, %v3170_v39 }
 0x266   : > { %v3138_v56 = vadd.f32 %v8857_v44, %v3122_v26  ;;  %v8980_v40 = vpop.f32.mrb[94].mxu1  ;;  %v9003_v3 = vsel %vm3152_vm2, %v3170_v39, %v3172_v63 }
 0x267   : > { %v3304_v43 = vsel %vm8899_vm10, %v3302_v8, %v3303_v22  ;;  %v3205_v12 = vsel %vm831_vm4, %v3190_v35, 0.0  ;;  %v3226_v48 = vmul.f32 %v3190_v35, %v3190_v35  ;;  %v6122_v4 = vpop.f32.mrb[95].mxu1  ;;  %v5703_v49 = vpack.c.bf16 %v3190_v35, %v3190_v35 }
 0x268   : > { %3335 = vst.msk [vmem:[%s7271_s13 + $0x18] sm:$0xf] %vm836_vm8, %v3304_v43  ;;  %v3206_v52 = vadd.f32 %v3205_v12, %v3204_v47  ;;  %v3191_v9 = vmul.f32 %v8962_v57, %v3138_v56  ;;  %v3108_v13 = vpop.f32.mrb[96].mxu0  ;;  %v3305_v59 = vrot.slane %v3303_v22, 4 }
 0x269   : > { %v3241_v28 = vsel %vm831_vm4, %v3226_v48, 0.0  ;;  %v3123_v51 = vadd.f32 %v3108_v13, %v8844_v30  ;;  %v6099_v61 = vpop.f32.mrb[97].mxu0  ;;  %v3306_v50 = vrot.slane %v5703_v49, 7 }
 0x26a   : > { %v3242_v11 = vadd.f32 %v3241_v28, %v3240_v15  ;;  %v3207_v38 = vsel %vm831_vm4, %v3191_v9, 0.0  ;;  %v3227_v18 = vmul.f32 %v3191_v9, %v3191_v9  ;;  %v3111_v33 = vpop.f32.mrb[98].mxu0  ;;  %v5704_v45 = vpack.c.bf16 %v3191_v9, %v3191_v9 }
 0x26b   : > { %v3208_v34 = vadd.f32 %v3207_v38, %v3206_v52  ;;  %v3139_v46 = vadd.f32 %v8857_v44, %v3123_v51  ;;  %v3124_v41 = vadd.f32 %v3111_v33, %v8852_v24  ;;  %v6100_v2 = vpop.f32.mrb[99].mxu0  ;;  %v3307_v30 = vsel %vm8899_vm10, %v3305_v59, %v3306_v50 }
 0x26c   : > { %v3308_v5 = vrot.slane %v3306_v50, 4  ;;  %v3243_v60 = vsel %vm831_vm4, %v3227_v18, 0.0  ;;  %v9005_v16 = vpop.f32.mrb[96].mxu1  ;;  %3336 = vst.msk [vmem:[%s7271_s13 + $0x1c] sm:$0xf] %vm836_vm8, %v3307_v30  ;;  %v3309_v54 = vrot.slane %v5704_v45, 7 }
 0x26d   : > { %v3244_v47 = vadd.f32 %v3243_v60, %v3242_v11  ;;  %v3192_v7 = vmul.f32 %v8994_v36, %v3139_v46  ;;  %v3140_v24 = vadd.f32 %v8857_v44, %v3124_v41  ;;  %v6125_v32 = vpop.f32.mrb[97].mxu1 }
 0x26e   : > { %v9011_v27 = vpop.f32.mrb[98].mxu1  ;;  %v3310_v8 = vsel %vm8899_vm10, %v3308_v5, %v3309_v54  ;;  %v3311_v39 = vrot.slane %v3309_v54, 4 }
 0x26f   : > { %v3209_v0 = vsel %vm831_vm4, %v3192_v7, 0.0  ;;  %v3228_v26 = vmul.f32 %v3192_v7, %v3192_v7  ;;  %v6126_v15 = vpop.f32.mrb[99].mxu1  ;;  %3337 = vst.msk [vmem:[%s7271_s13 + $0x20] sm:$0xf] %vm836_vm8, %v3310_v8  ;;  %v5705_v35 = vpack.c.bf16 %v3192_v7, %v3192_v7  ;;  %v3193_v6 = vmul.f32 %v9003_v3, %v3140_v24 }
 0x270   : > { %v3210_v22 = vadd.f32 %v3209_v0, %v3208_v34  ;;  %v3609_v42 = vpop.f32.mrb[100].mxu0 }
 0x271   : > { %v3245_v56 = vsel %vm831_vm4, %v3228_v26, 0.0  ;;  %v3610_v43 = vadd.f32 %v3609_v42, %v8871_v20  ;;  %v6135_v12 = vpop.f32.mrb[101].mxu0  ;;  %v3312_v4 = vrot.slane %v5705_v35, 7  ;;  %v3211_v52 = vsel %vm831_vm4, %v3193_v6, 0.0 }
 0x272   : > { %v3246_v48 = vadd.f32 %v3245_v56, %v3244_v47  ;;  %v3229_v49 = vmul.f32 %v3193_v6, %v3193_v6  ;;  %v3612_v9 = vpop.f32.mrb[102].mxu0  ;;  %v9022_v13 = vadd.f32 %v3211_v52, %v3210_v22  ;;  %v5706_v62 = vpack.c.bf16 %v3193_v6, %v3193_v6 }
 0x273   : > { %v3613_v63 = vadd.f32 %v3612_v9, %v8878_v25  ;;  %v6136_v59 = vpop.f32.mrb[103].mxu0  ;;  %v3313_v28 = vsel %vm8899_vm10, %v3311_v39, %v3312_v4  ;;  %v3314_v51 = vrot.slane %v3312_v4, 4 }
 0x274   : > { %v3247_v20 = vsel %vm831_vm4, %v3229_v49, 0.0  ;;  %v3755_v61 = vpop.f32.mrb[100].mxu1  ;;  %3338 = vst.msk [vmem:[%s7271_s13 + $0x24] sm:$0xf] %vm836_vm8, %v3313_v28  ;;  %v3315_v50 = vrot.slane %v5706_v62, 7 }
 0x275   : > { %v9030_v11 = vadd.f32 %v3247_v20, %v3246_v48  ;;  %v9032_v38 = vadd.f32 %v3755_v61, %v3610_v43  ;;  %v6161_v18 = vpop.f32.mrb[101].mxu1 }
 0x276   : > { %v3758_v33 = vpop.f32.mrb[102].mxu1  ;;  %v3316_v25 = vsel %vm8899_vm10, %v3314_v51, %v3315_v50  ;;  %v3317_v34 = vrot.slane %v3315_v50, 4  ;;  %v6737_v51 = vmov 0.0|0.0  }
 0x277   : > { %v6162_v45 = vpop.f32.mrb[103].mxu1  ;;  %3339 = vst.msk [vmem:[%s7271_s13 + $0x28] sm:$0xf] %vm836_vm8, %v3316_v25  ;;  %v3795_v46 = vadd.f32 %v3758_v33, %v3613_v63  ;;  %v4927_v63 = vld [vmem:[%s9193_s8 + $0x8] sm:$0xff]  ;;  %6349 = vmatprep.subr.bf16.mxu0 %v6737_v51  ;;  %6352 = vmatprep.subr.bf16.mxu1 %v6737_v51 }
 0x278   : > { %v3617_v41 = vpop.f32.mrb[104].mxu0  ;;  %3341 = vst.msk [vmem:[%s7271_s13 + $0x2c] sm:$0x1] %vm3340_vm1, %v3317_v34 }
 0x279   : > { %v3618_v2 = vadd.f32 %v3617_v41, %v8908_v58  ;;  %v6139_v30 = vpop.f32.mrb[105].mxu0 }
 0x27a   : > { %v3620_v5 = vpop.f32.mrb[106].mxu0 }
 0x27b   : > { %v3621_v60 = vadd.f32 %v3620_v5, %v8914_v31  ;;  %v6140_v47 = vpop.f32.mrb[107].mxu0 }
 0x27c   : > { %v3763_v54 = vpop.f32.mrb[104].mxu1 }
 0x27d   : > { %v3796_v7 = vadd.f32 %v3763_v54, %v3618_v2  ;;  %v6165_v24 = vpop.f32.mrb[105].mxu1 }
 0x27e   : > { %v3766_v32 = vpop.f32.mrb[106].mxu1 }
 0x27f   : > { %v3797_v8 = vadd.f32 %v3766_v32, %v3621_v60  ;;  %v6166_v0 = vpop.f32.mrb[107].mxu1 }
 0x280   : > { %v3625_v26 = vpop.f32.mrb[108].mxu0 }
 0x281   : > { %v3626_v15 = vadd.f32 %v3625_v26, %v8937_v37  ;;  %v6143_v22 = vpop.f32.mrb[109].mxu0 }
 0x282   : > { %v3628_v35 = vpop.f32.mrb[110].mxu0 }
 0x283   : > { %v3629_v6 = vadd.f32 %v3628_v35, %v8951_v55  ;;  %v6144_v42 = vpop.f32.mrb[111].mxu0  ;;  %v4926_v55 = vld [vmem:[%s9193_s8] sm:$0xff] }
 0x284   : > { %v3771_v58 = vpop.f32.mrb[108].mxu1 }
 0x285   : > { %v3798_v39 = vadd.f32 %v3771_v58, %v3626_v15  ;;  %v6169_v56 = vpop.f32.mrb[109].mxu1 }
 0x286   : > { %v3774_v43 = vpop.f32.mrb[110].mxu1 }
 0x287   : > { %v3799_v31 = vadd.f32 %v3774_v43, %v3629_v6  ;;  %v6170_v12 = vpop.f32.mrb[111].mxu1 }
 0x288   : > { %v3633_v48 = vpop.f32.mrb[112].mxu0 }
 0x289   : > { %v3634_v4 = vadd.f32 %v3633_v48, %v8971_v19  ;;  %v6147_v52 = vpop.f32.mrb[113].mxu0  ;;  %v6350_v19 = vpack.c.bf16 %v4927_v63, %v4926_v55 }
 0x28a   : > { %v3636_v49 = vpop.f32.mrb[114].mxu0 }
 0x28b   : > { %v3637_v9 = vadd.f32 %v3636_v49, %v8980_v40  ;;  %v6148_v62 = vpop.f32.mrb[115].mxu0  ;;  %6351 = vmatpush3.bf16.msra.mxu0 %v6350_v19  ;;  %6354 = vmatpush3.bf16.msra.mxu1 %v6350_v19 }
 0x28c   : > { %v3779_v37 = vpop.f32.mrb[112].mxu1 }
 0x28d   : > { %v3800_v59 = vadd.f32 %v3779_v37, %v3634_v4  ;;  %v6173_v28 = vpop.f32.mrb[113].mxu1 }
 0x28e   : > { %v3782_v20 = vpop.f32.mrb[114].mxu1 }
 0x28f   : > { %v3801_v61 = vadd.f32 %v3782_v20, %v3637_v9  ;;  %v6174_v50 = vpop.f32.mrb[115].mxu1 }
 0x290   : > { %v3641_v40 = vpop.f32.mrb[116].mxu0 }
 0x291   : > { %v3642_v18 = vadd.f32 %v3641_v40, %v9005_v16  ;;  %v6151_v33 = vpop.f32.mrb[117].mxu0 }
 0x292   : > { %v3644_v25 = vpop.f32.mrb[118].mxu0 }
 0x293   : > { %v3645_v34 = vadd.f32 %v3644_v25, %v9011_v27  ;;  %v6152_v45 = vpop.f32.mrb[119].mxu0 }
 0x294   : > { %v3787_v41 = vpop.f32.mrb[116].mxu1 }
 0x295   : > { %v3802_v2 = vadd.f32 %v3787_v41, %v3642_v18  ;;  %v6177_v30 = vpop.f32.mrb[117].mxu1 }
 0x296   : > { %v3790_v5 = vpop.f32.mrb[118].mxu1 }
 0x297   : > { %v3803_v60 = vadd.f32 %v3790_v5, %v3645_v34  ;;  %v6178_v47 = vpop.f32.mrb[119].mxu1 }
 0x298   : > { %v3936_v54 = vpop.f32.mrb[120].mxu0 }
 0x299   : > { %v3975_v24 = vadd.f32 %v3936_v54, %v9032_v38  ;;  %v6187_v32 = vpop.f32.mrb[121].mxu0 }
 0x29a   : > { %v3939_v0 = vpop.f32.mrb[122].mxu0 }
 0x29b   : > { %v3976_v26 = vadd.f32 %v3939_v0, %v3795_v46  ;;  %v6188_v15 = vpop.f32.mrb[123].mxu0 }
 0x29c   : > { %v4076_v22 = vpop.f32.mrb[120].mxu1 }
 0x29d   : > { %v4115_v16 = vadd.f32 %v4076_v22, %v3975_v24  ;;  %v6213_v35 = vpop.f32.mrb[121].mxu1 }
 0x29e   : > { %v4079_v6 = vpop.f32.mrb[122].mxu1 }
 0x29f   : > { %v4116_v42 = vadd.f32 %v4079_v6, %v3976_v26  ;;  %v6214_v27 = vpop.f32.mrb[123].mxu1 }
 0x2a0   : > { %v3944_v58 = vpop.f32.mrb[124].mxu0 }
 0x2a1   : > { %v3977_v56 = vadd.f32 %v3944_v58, %v3796_v7  ;;  %v6191_v43 = vpop.f32.mrb[125].mxu0 }
 0x2a2   : > { %v3947_v12 = vpop.f32.mrb[126].mxu0 }
 0x2a3   : > { %v3978_v48 = vadd.f32 %v3947_v12, %v3797_v8  ;;  %v6192_v4 = vpop.f32.mrb[127].mxu0 }
 0x2a4   : > { %v4084_v52 = vpop.f32.mrb[124].mxu1 }
 0x2a5   : > { %v4117_v49 = vadd.f32 %v4084_v52, %v3977_v56  ;;  %v6217_v9 = vpop.f32.mrb[125].mxu1 }
 0x2a6   : > { %v4087_v38 = vpop.f32.mrb[126].mxu1 }
 0x2a7   : > { %v4118_v62 = vadd.f32 %v4087_v38, %v3978_v48  ;;  %v6218_v37 = vpop.f32.mrb[127].mxu1 }
 0x2a8   : > { %v3952_v46 = vpop.f32.mrb[128].mxu0 }
 0x2a9   : > { %v3979_v55 = vadd.f32 %v3952_v46, %v3798_v39  ;;  %v6195_v63 = vpop.f32.mrb[129].mxu0 }
 0x2aa   : > { %v3955_v28 = vpop.f32.mrb[130].mxu0 }
 0x2ab   : > { %v3980_v51 = vadd.f32 %v3955_v28, %v3799_v31  ;;  %v6196_v19 = vpop.f32.mrb[131].mxu0 }
 0x2ac   : > { %v4092_v20 = vpop.f32.mrb[128].mxu1 }
 0x2ad   : > { %v4119_v50 = vadd.f32 %v4092_v20, %v3979_v55  ;;  %v6221_v40 = vpop.f32.mrb[129].mxu1 }
 0x2ae   : > { %v4095_v7 = vpop.f32.mrb[130].mxu1 }
 0x2af   : > { %v4120_v18 = vadd.f32 %v4095_v7, %v3980_v51  ;;  %v6222_v33 = vpop.f32.mrb[131].mxu1 }
 0x2b0   : > { %v3960_v8 = vpop.f32.mrb[132].mxu0 }
 0x2b1   : > { %v3981_v25 = vadd.f32 %v3960_v8, %v3800_v59  ;;  %v6199_v34 = vpop.f32.mrb[133].mxu0 }
 0x2b2   : > { %v3963_v45 = vpop.f32.mrb[134].mxu0 }
 0x2b3   : > { %v3982_v41 = vadd.f32 %v3963_v45, %v3801_v61  ;;  %v6200_v30 = vpop.f32.mrb[135].mxu0 }
 0x2b4   : > { %v4100_v5 = vpop.f32.mrb[132].mxu1 }
 0x2b5   : > { %v4121_v47 = vadd.f32 %v4100_v5, %v3981_v25  ;;  %v6225_v54 = vpop.f32.mrb[133].mxu1 }
 0x2b6   : > { %v4103_v39 = vpop.f32.mrb[134].mxu1 }
 0x2b7   : > { %v4122_v24 = vadd.f32 %v4103_v39, %v3982_v41  ;;  %v6226_v32 = vpop.f32.mrb[135].mxu1 }
 0x2b8   : > { %v3968_v31 = vpop.f32.mrb[136].mxu0 }
 0x2b9   : > { %v3983_v0 = vadd.f32 %v3968_v31, %v3802_v2  ;;  %v6203_v26 = vpop.f32.mrb[137].mxu0 }
 0x2ba   : > { %v3971_v15 = vpop.f32.mrb[138].mxu0 }
 0x2bb   : > { %v3984_v22 = vadd.f32 %v3971_v15, %v3803_v60  ;;  %v6204_v35 = vpop.f32.mrb[139].mxu0 }
 0x2bc   : > { %v4108_v6 = vpop.f32.mrb[136].mxu1 }
 0x2bd   : > { %v4123_v27 = vadd.f32 %v4108_v6, %v3983_v0  ;;  %v6229_v58 = vpop.f32.mrb[137].mxu1 }
 0x2be   : > { %v4111_v59 = vpop.f32.mrb[138].mxu1 }
 0x2bf   : > { %v4124_v56 = vadd.f32 %v4111_v59, %v3984_v22  ;;  %v6230_v43 = vpop.f32.mrb[139].mxu1 }
 0x2c0   : > { %v4232_v61 = vpop.f32.mrb[140].mxu0 }
 0x2c1   : > { %v4271_v12 = vadd.f32 %v4232_v61, %v4115_v16  ;;  %v6239_v48 = vpop.f32.mrb[141].mxu0 }
 0x2c2   : > { %v4235_v4 = vpop.f32.mrb[142].mxu0 }
 0x2c3   : > { %v4272_v52 = vadd.f32 %v4235_v4, %v4116_v42  ;;  %v6240_v9 = vpop.f32.mrb[143].mxu0 }
 0x2c4   : > { %v4413_v38 = vpop.f32.mrb[140].mxu1 }
 0x2c5   : > { %v4452_v37 = vadd.f32 %v4413_v38, %v4271_v12  ;;  %v6265_v46 = vpop.f32.mrb[141].mxu1 }
 0x2c6   : > { %v4416_v2 = vpop.f32.mrb[142].mxu1 }
 0x2c7   : > { %v4453_v55 = vadd.f32 %v4416_v2, %v4272_v52  ;;  %v6266_v63 = vpop.f32.mrb[143].mxu1 }
 0x2c8   : > { %v4240_v60 = vpop.f32.mrb[144].mxu0 }
 0x2c9   : > { %v4273_v28 = vadd.f32 %v4240_v60, %v4117_v49  ;;  %v6243_v51 = vpop.f32.mrb[145].mxu0 }
 0x2ca   : > { %v4243_v19 = vpop.f32.mrb[146].mxu0 }
 0x2cb   : > { %v4274_v20 = vadd.f32 %v4243_v19, %v4118_v62  ;;  %v6244_v40 = vpop.f32.mrb[147].mxu0 }
 0x2cc   : > { %v4421_v7 = vpop.f32.mrb[144].mxu1 }
 0x2cd   : > { %v4454_v33 = vadd.f32 %v4421_v7, %v4273_v28  ;;  %v6269_v8 = vpop.f32.mrb[145].mxu1 }
 0x2ce   : > { %v4424_v16 = vpop.f32.mrb[146].mxu1 }
 0x2cf   : > { %v4455_v25 = vadd.f32 %v4424_v16, %v4274_v20  ;;  %v6270_v34 = vpop.f32.mrb[147].mxu1 }
 0x2d0   : > { %v4248_v42 = vpop.f32.mrb[148].mxu0 }
 0x2d1   : > { %v4275_v45 = vadd.f32 %v4248_v42, %v4119_v50  ;;  %v6247_v41 = vpop.f32.mrb[149].mxu0 }
 0x2d2   : > { %v4251_v30 = vpop.f32.mrb[150].mxu0 }
 0x2d3   : > { %v4276_v5 = vadd.f32 %v4251_v30, %v4120_v18  ;;  %v6248_v54 = vpop.f32.mrb[151].mxu0 }
 0x2d4   : > { %v4429_v39 = vpop.f32.mrb[148].mxu1 }
 0x2d5   : > { %v9055_v32 = vadd.f32 %v4429_v39, %v4275_v45  ;;  %v6273_v49 = vpop.f32.mrb[149].mxu1 }
 0x2d6   : > { %v4432_v31 = vpop.f32.mrb[150].mxu1 }
 0x2d7   : > { %v9057_v0 = vadd.f32 %v4432_v31, %v4276_v5  ;;  %v6274_v62 = vpop.f32.mrb[151].mxu1 }
 0x2d8   : > { %v4256_v26 = vpop.f32.mrb[152].mxu0 }
 0x2d9   : > { %v4277_v15 = vadd.f32 %v4256_v26, %v4121_v47  ;;  %v6251_v22 = vpop.f32.mrb[153].mxu0 }
 0x2da   : > { %v4259_v35 = vpop.f32.mrb[154].mxu0 }
 0x2db   : > { %v4278_v6 = vadd.f32 %v4259_v35, %v4122_v24  ;;  %v6252_v58 = vpop.f32.mrb[155].mxu0 }
 0x2dc   : > { %v4437_v59 = vpop.f32.mrb[152].mxu1 }
 0x2dd   : > { %v9059_v50 = vadd.f32 %v4437_v59, %v4277_v15  ;;  %v6277_v43 = vpop.f32.mrb[153].mxu1 }
 0x2de   : > { %v4440_v18 = vpop.f32.mrb[154].mxu1 }
 0x2df   : > { %v9061_v61 = vadd.f32 %v4440_v18, %v4278_v6  ;;  %v6278_v12 = vpop.f32.mrb[155].mxu1 }
 0x2e0   : > { %v4264_v48 = vpop.f32.mrb[156].mxu0 }
 0x2e1   : > { %v4279_v4 = vadd.f32 %v4264_v48, %v4123_v27  ;;  %v6255_v52 = vpop.f32.mrb[157].mxu0 }
 0x2e2   : > { %v4267_v9 = vpop.f32.mrb[158].mxu0 }
 0x2e3   : > { %v4280_v38 = vadd.f32 %v4267_v9, %v4124_v56  ;;  %v6256_v46 = vpop.f32.mrb[159].mxu0 }
 0x2e4   : > { %v4445_v2 = vpop.f32.mrb[156].mxu1 }
 0x2e5   : > { %v9063_v47 = vadd.f32 %v4445_v2, %v4279_v4  ;;  %v6281_v63 = vpop.f32.mrb[157].mxu1 }
 0x2e6   : > { %v4448_v24 = vpop.f32.mrb[158].mxu1 }
 0x2e7   : > { %v9065_v60 = vadd.f32 %v4448_v24, %v4280_v38  ;;  %v6282_v28 = vpop.f32.mrb[159].mxu1 }
 0x2e8   : > { %v4553_v51 = vpop.f32.mrb[160].mxu0 }
 0x2e9   : > { %v4592_v19 = vadd.f32 %v4553_v51, %v4452_v37  ;;  %v6291_v20 = vpop.f32.mrb[161].mxu0 }
 0x2ea   : > { %v4556_v40 = vpop.f32.mrb[162].mxu0 }
 0x2eb   : > { %v4593_v7 = vadd.f32 %v4556_v40, %v4453_v55  ;;  %v6292_v8 = vpop.f32.mrb[163].mxu0 }
 0x2ec   : > { %v4709_v16 = vpop.f32.mrb[160].mxu1 }
 0x2ed   : > { %v4748_v27 = vadd.f32 %v4709_v16, %v4592_v19  ;;  %v6317_v34 = vpop.f32.mrb[161].mxu1 }
 0x2ee   : > { %v4712_v42 = vpop.f32.mrb[162].mxu1 }
 0x2ef   : > { %v4758_v56 = vadd.f32 %v8857_v44, %v4748_v27  ;;  %v4749_v45 = vadd.f32 %v4712_v42, %v4593_v7  ;;  %v6318_v41 = vpop.f32.mrb[163].mxu1 }
 0x2f0   : > { %v4561_v30 = vpop.f32.mrb[164].mxu0 }
 0x2f1   : > { %v4768_v5 = vmul.f32 %v4758_v56, %v8864_v53  ;;  %v4759_v54 = vadd.f32 %v8857_v44, %v4749_v45  ;;  %v4594_v39 = vadd.f32 %v4561_v30, %v4454_v33  ;;  %v6295_v49 = vpop.f32.mrb[165].mxu0 }
 0x2f2   : > { %v4564_v37 = vpop.f32.mrb[166].mxu0 }
 0x2f3   : > { %v4804_v31 = vmul.f32 %v4768_v5, %v4768_v5  ;;  %v5707_v62 = vpack.c.bf16 %v4768_v5, %v4768_v5  ;;  %v4769_v55 = vmul.f32 %v4759_v54, %v8869_v1  ;;  %v6296_v26 = vpop.f32.mrb[167].mxu0  ;;  %v4595_v15 = vadd.f32 %v4564_v37, %v4455_v25 }
 0x2f4   : > { %v4717_v22 = vpop.f32.mrb[164].mxu1  ;;  %v4778_v35 = vsel %vm831_vm4, %v4768_v5, 0.0 }
 0x2f5   : > { %v4870_v6 = vrot.slane %v5707_v62, 7  ;;  %v4779_v58 = vsel %vm831_vm4, %v4769_v55, 0.0  ;;  %v4805_v59 = vmul.f32 %v4769_v55, %v4769_v55  ;;  %v6321_v53 = vpop.f32.mrb[165].mxu1  ;;  %v5708_v18 = vpack.c.bf16 %v4769_v55, %v4769_v55 }
 0x2f6   : > { %v4780_v43 = vadd.f32 %v4779_v58, %v4778_v35  ;;  %v4750_v33 = vadd.f32 %v4717_v22, %v4594_v39  ;;  %v4720_v12 = vpop.f32.mrb[166].mxu1  ;;  %v4814_v48 = vsel %vm831_vm4, %v4804_v31, 0.0 }
 0x2f7   : > { %v4871_v4 = vrot.slane %v4870_v6, 4  ;;  %5676 = vst.msk [vmem:[%s7271_s13 + $0x38] sm:$0xe] %vm3329_vm0, %v4870_v6  ;;  %v4815_v1 = vsel %vm831_vm4, %v4805_v59, 0.0  ;;  %v4751_v25 = vadd.f32 %v4720_v12, %v4595_v15  ;;  %v6322_v52 = vpop.f32.mrb[167].mxu1  ;;  %v4872_v38 = vrot.slane %v5708_v18, 7 }
 0x2f8   : > { %v4816_v9 = vadd.f32 %v4815_v1, %v4814_v48  ;;  %v4760_v46 = vadd.f32 %v8857_v44, %v4750_v33  ;;  %v4569_v2 = vpop.f32.mrb[168].mxu0 }
 0x2f9   : > { %v4761_v63 = vadd.f32 %v8857_v44, %v4751_v25  ;;  %v4596_v24 = vadd.f32 %v4569_v2, %v9055_v32  ;;  %v6299_v28 = vpop.f32.mrb[169].mxu0  ;;  %v4873_v51 = vsel %vm8899_vm10, %v4871_v4, %v4872_v38 }
 0x2fa   : > { %v4770_v19 = vmul.f32 %v4760_v46, %v8882_v23  ;;  %v4572_v20 = vpop.f32.mrb[170].mxu0  ;;  %5677 = vst.msk [vmem:[%s7271_s13 + $0x3c] sm:$0xf] %vm836_vm8, %v4873_v51  ;;  %v4874_v23 = vrot.slane %v4872_v38, 4 }
 0x2fb   : > { %v4771_v40 = vmul.f32 %v4761_v63, %v8906_v29  ;;  %v4597_v7 = vadd.f32 %v4572_v20, %v9057_v0  ;;  %v6300_v8 = vpop.f32.mrb[171].mxu0 }
 0x2fc   : > { %v4781_v16 = vsel %vm831_vm4, %v4770_v19, 0.0  ;;  %v4806_v27 = vmul.f32 %v4770_v19, %v4770_v19  ;;  %v5709_v34 = vpack.c.bf16 %v4770_v19, %v4770_v19  ;;  %v4725_v42 = vpop.f32.mrb[168].mxu1 }
 0x2fd   : > { %v4782_v32 = vadd.f32 %v4781_v16, %v4780_v43  ;;  %v4783_v56 = vsel %vm831_vm4, %v4771_v40, 0.0  ;;  %v4807_v45 = vmul.f32 %v4771_v40, %v4771_v40  ;;  %v5710_v41 = vpack.c.bf16 %v4771_v40, %v4771_v40  ;;  %v6325_v30 = vpop.f32.mrb[169].mxu1 }
 0x2fe   : > { %v4817_v5 = vsel %vm831_vm4, %v4806_v27, 0.0  ;;  %v4875_v54 = vrot.slane %v5709_v34, 7  ;;  %v4752_v29 = vadd.f32 %v4725_v42, %v4596_v24  ;;  %v4728_v39 = vpop.f32.mrb[170].mxu1 }
 0x2ff   : > { %v4818_v0 = vadd.f32 %v4817_v5, %v4816_v9  ;;  %v4784_v49 = vadd.f32 %v4783_v56, %v4782_v32  ;;  %v4819_v37 = vsel %vm831_vm4, %v4807_v45, 0.0  ;;  %v4878_v31 = vrot.slane %v5710_v41, 7  ;;  %v6326_v62 = vpop.f32.mrb[171].mxu1 }
 0x300   : > { %v4876_v55 = vsel %vm8899_vm10, %v4874_v23, %v4875_v54  ;;  %v4877_v26 = vrot.slane %v4875_v54, 4  ;;  %v4762_v15 = vadd.f32 %v8857_v44, %v4752_v29  ;;  %v4753_v22 = vadd.f32 %v4728_v39, %v4597_v7  ;;  %v4577_v35 = vpop.f32.mrb[172].mxu0 }
 0x301   : > { %5678 = vst.msk [vmem:[%s7271_s13 + $0x40] sm:$0xf] %vm836_vm8, %v4876_v55  ;;  %v4820_v6 = vadd.f32 %v4819_v37, %v4818_v0  ;;  %v4598_v58 = vadd.f32 %v4577_v35, %v9059_v50  ;;  %v6303_v59 = vpop.f32.mrb[173].mxu0  ;;  %v3213_v9 = vrot.slane %v9022_v13, 4  ;;  %v4880_v38 = vrot.slane %v4878_v31, 4 }
 0x302   : > { %v4879_v53 = vsel %vm8899_vm10, %v4877_v26, %v4878_v31  ;;  %v4772_v43 = vmul.f32 %v4762_v15, %v8920_v21  ;;  %v4763_v18 = vadd.f32 %v8857_v44, %v4753_v22  ;;  %v4580_v33 = vpop.f32.mrb[174].mxu0 }
 0x303   : > { %5679 = vst.msk [vmem:[%s7271_s13 + $0x44] sm:$0xf] %vm836_vm8, %v4879_v53  ;;  %v4599_v12 = vadd.f32 %v4580_v33, %v9061_v61  ;;  %v6304_v48 = vpop.f32.mrb[175].mxu0  ;;  %v3214_v62 = vadd.f32 %v3213_v9, %v9022_v13  ;;  %v3249_v33 = vrot.slane %v9030_v11, 4 }
 0x304   : > { %v4785_v4 = vsel %vm831_vm4, %v4772_v43, 0.0  ;;  %v4808_v1 = vmul.f32 %v4772_v43, %v4772_v43  ;;  %v5711_v25 = vpack.c.bf16 %v4772_v43, %v4772_v43  ;;  %v4773_v50 = vmul.f32 %v4763_v18, %v8942_v17  ;;  %v4733_v52 = vpop.f32.mrb[172].mxu1 }
 0x305   : > { %v4786_v46 = vadd.f32 %v4785_v4, %v4784_v49  ;;  %v4754_v21 = vadd.f32 %v4733_v52, %v4598_v58  ;;  %v6329_v2 = vpop.f32.mrb[173].mxu1 }
 0x306   : > { %v4821_v63 = vsel %vm831_vm4, %v4808_v1, 0.0  ;;  %v4881_v24 = vrot.slane %v5711_v25, 7  ;;  %v4787_v61 = vsel %vm831_vm4, %v4773_v50, 0.0  ;;  %v4809_v28 = vmul.f32 %v4773_v50, %v4773_v50  ;;  %v4736_v51 = vpop.f32.mrb[174].mxu1 }
 0x307   : > { %v4822_v19 = vadd.f32 %v4821_v63, %v4820_v6  ;;  %v4788_v20 = vadd.f32 %v4787_v61, %v4786_v46  ;;  %v5712_v40 = vpack.c.bf16 %v4773_v50, %v4773_v50  ;;  %v4764_v17 = vadd.f32 %v8857_v44, %v4754_v21  ;;  %v6330_v7 = vpop.f32.mrb[175].mxu1 }
 0x308   : > { %v4882_v8 = vsel %vm8899_vm10, %v4880_v38, %v4881_v24  ;;  %v4883_v16 = vrot.slane %v4881_v24, 4  ;;  %v4823_v27 = vsel %vm831_vm4, %v4809_v28, 0.0  ;;  %v4755_v34 = vadd.f32 %v4736_v51, %v4599_v12  ;;  %v4585_v42 = vpop.f32.mrb[176].mxu0 }
 0x309   : > { %5680 = vst.msk [vmem:[%s7271_s13 + $0x48] sm:$0xf] %vm836_vm8, %v4882_v8  ;;  %v4824_v32 = vadd.f32 %v4823_v27, %v4822_v19  ;;  %v4884_v56 = vrot.slane %v5712_v40, 7  ;;  %v4774_v45 = vmul.f32 %v4764_v17, %v8956_v10  ;;  %v4600_v41 = vadd.f32 %v4585_v42, %v9063_v47  ;;  %v6307_v30 = vpop.f32.mrb[177].mxu0 }
 0x30a   : > { %v4765_v23 = vadd.f32 %v8857_v44, %v4755_v34  ;;  %v4588_v5 = vpop.f32.mrb[178].mxu0  ;;  %v3215_v24 = vrot.slane %v3214_v62, 2  ;;  %v3250_v61 = vadd.f32 %v3249_v33, %v9030_v11 }
 0x30b   : > { %v4885_v54 = vsel %vm8899_vm10, %v4883_v16, %v4884_v56  ;;  %v4789_v29 = vsel %vm831_vm4, %v4774_v45, 0.0  ;;  %v4810_v39 = vmul.f32 %v4774_v45, %v4774_v45  ;;  %v6308_v0 = vpop.f32.mrb[179].mxu0  ;;  %v5713_v37 = vpack.c.bf16 %v4774_v45, %v4774_v45 }
 0x30c   : > { %5681 = vst.msk [vmem:[%s7271_s13 + $0x4c] sm:$0xf] %vm836_vm8, %v4885_v54  ;;  %v4790_v49 = vadd.f32 %v4789_v29, %v4788_v20  ;;  %v4775_v31 = vmul.f32 %v4765_v23, %v8962_v57  ;;  %v4601_v10 = vadd.f32 %v4588_v5, %v9065_v60  ;;  %v4741_v47 = vpop.f32.mrb[176].mxu1  ;;  %v4886_v44 = vrot.slane %v4884_v56, 4  ;;  %v6691_v57 = vld [vmem:[%s9192_s7] ss:$0 sm:$0xff] }
 0x30d   : > { %v4825_v55 = vsel %vm831_vm4, %v4810_v39, 0.0  ;;  %v4756_v26 = vadd.f32 %v4741_v47, %v4600_v41  ;;  %v6333_v15 = vpop.f32.mrb[177].mxu1  ;;  %v4887_v35 = vrot.slane %v5713_v37, 7  ;;  %v3251_v27 = vrot.slane %v3250_v61, 2 }
 0x30e   : > { %v4826_v22 = vadd.f32 %v4825_v55, %v4824_v32  ;;  %v4791_v6 = vsel %vm831_vm4, %v4775_v31, 0.0  ;;  %v4811_v58 = vmul.f32 %v4775_v31, %v4775_v31  ;;  %v4744_v59 = vpop.f32.mrb[178].mxu1  ;;  %v5714_v43 = vpack.c.bf16 %v4775_v31, %v4775_v31 }
 0x30f   : > { %v4792_v53 = vadd.f32 %v4791_v6, %v4790_v49  ;;  %v4766_v13 = vadd.f32 %v6691_v57, %v4756_v26  ;;  %v4757_v60 = vadd.f32 %v4744_v59, %v4601_v10  ;;  %v6334_v18 = vpop.f32.mrb[179].mxu1  ;;  %v4888_v12 = vsel %vm8899_vm10, %v4886_v44, %v4887_v35 }
 0x310   : > { %v4889_v48 = vrot.slane %v4887_v35, 4  ;;  %v4827_v4 = vsel %vm831_vm4, %v4811_v58, 0.0  ;;  %5682 = vst.msk [vmem:[%s7271_s13 + $0x50] sm:$0xf] %vm836_vm8, %v4888_v12  ;;  %v4890_v25 = vrot.slane %v5714_v43, 7  ;;  %v3216_v32 = vadd.f32 %v3215_v24, %v3214_v62 }
 0x311   : > { %v4828_v1 = vadd.f32 %v4827_v4, %v4826_v22  ;;  %v4776_v50 = vmul.f32 %v4766_v13, %v8994_v36  ;;  %v4767_v52 = vadd.f32 %v6691_v57, %v4757_v60  ;;  %v3252_v23 = vadd.f32 %v3251_v27, %v3250_v61 }
 0x312   : > { %v4891_v9 = vsel %vm8899_vm10, %v4889_v48, %v4890_v25  ;;  %v4892_v28 = vrot.slane %v4890_v25, 4  ;;  %v3217_v29 = vrot.slane %v3216_v32, 1 }
 0x313   : > { %v4793_v38 = vsel %vm831_vm4, %v4776_v50, 0.0  ;;  %v4812_v46 = vmul.f32 %v4776_v50, %v4776_v50  ;;  %5683 = vst.msk [vmem:[%s7271_s13 + $0x54] sm:$0xf] %vm836_vm8, %v4891_v9  ;;  %v5715_v2 = vpack.c.bf16 %v4776_v50, %v4776_v50  ;;  %v4777_v63 = vmul.f32 %v4767_v52, %v9003_v3 }
 0x314   : > { %v4794_v21 = vadd.f32 %v4793_v38, %v4792_v53  ;;  %v3253_v49 = vrot.slane %v3252_v23, 1  ;;  %v3218_v10 = vadd.f32 %v3217_v29, %v3216_v32 }
 0x315   : > { %v4829_v36 = vsel %vm831_vm4, %v4812_v46, 0.0  ;;  %v4893_v19 = vrot.slane %v5715_v2, 7  ;;  %v4795_v20 = vsel %vm831_vm4, %v4777_v63, 0.0  ;;  %v4813_v40 = vmul.f32 %v4777_v63, %v4777_v63 }
 0x316   : > { %v4830_v51 = vadd.f32 %v4829_v36, %v4828_v1  ;;  %v4796_v17 = vadd.f32 %v4795_v20, %v4794_v21  ;;  %v5716_v7 = vpack.c.bf16 %v4777_v63, %v4777_v63  ;;  %v3254_v62 = vadd.f32 %v3253_v49, %v3252_v23 }
 0x317   : > { %v4894_v8 = vsel %vm8899_vm10, %v4892_v28, %v4893_v19  ;;  %v4895_v16 = vrot.slane %v4893_v19, 4  ;;  %v4831_v3 = vsel %vm831_vm4, %v4813_v40, 0.0 }
 0x318   : > { %5684 = vst.msk [vmem:[%s7271_s13 + $0x58] sm:$0xf] %vm836_vm8, %v4894_v8  ;;  %v4797_v11 = vrot.slane %v4796_v17, 4  ;;  %v4832_v34 = vadd.f32 %v4831_v3, %v4830_v51  ;;  %v4896_v42 = vrot.slane %v5716_v7, 7 }
 0x31a   : > { %v4798_v56 = vadd.f32 %v4797_v11, %v4796_v17  ;;  %v4833_v45 = vrot.slane %v4832_v34, 4  ;;  %v4897_v41 = vsel %vm8899_vm10, %v4895_v16, %v4896_v42  ;;  %v4898_v30 = vrot.slane %v4896_v42, 4 }
 0x31b   : > { %5685 = vst.msk [vmem:[%s7271_s13 + $0x5c] sm:$0xf] %vm836_vm8, %v4897_v41  ;;  %vm5001_vm8 = vcmask 24576  }
 0x31c   : > { %v4799_v5 = vrot.slane %v4798_v56, 2  ;;  %v4834_v54 = vadd.f32 %v4833_v45, %v4832_v34  ;;  %5686 = vst.msk [vmem:[%s7271_s13 + $0x60] sm:$0x1] %vm3340_vm1, %v4898_v30  ;;  %s5348_s13 = sshll.u32 %s9245_s18, 1 }
 0x31d   : > { %s611_s23 = sadd.s32 %s5348_s13, %s9255_s17 }
 0x31e   : > { %v4800_v39 = vadd.f32 %v4799_v5, %v4798_v56  ;;  %v4835_v0 = vrot.slane %v4834_v54, 2  ;;  %s612_s30 = scalar_lea.vmem %s9195_s10, %s611_s23  ;;  %s619_s25 = scalar_lea.vmem %s9196_s11, %s611_s23 }
 0x320   : > { %v4801_v37 = vrot.slane %v4800_v39, 1  ;;  %v4836_v31 = vadd.f32 %v4835_v0, %v4834_v54 }
 0x322   : > { %v4802_v14 = vadd.f32 %v4801_v37, %v4800_v39  ;;  %v4837_v47 = vrot.slane %v4836_v31, 1 }
 0x324   : > { %v4838_v44 = vadd.f32 %v4837_v47, %v4836_v31  ;;  %v4803_v55 = vadd.f32 %v4802_v14, %v3218_v10 }
 0x326   : > { %6340 = vmatmul.mubr.msk.f32.vlgmr.msra.gmra.mrb[180].mxu0 %vm831_vm4, %v4803_v55  ;;  %v4839_v26 = vadd.f32 %v4838_v44, %v3254_v62 }
 0x328   : > { %6347 = vmatmul.mubr.msk.f32.vlgmr.msra.gmra.mrb[180].mxu1 %vm831_vm4, %v4839_v26 }
 0x3f9   : > { %v4997_v15 = vpop.f32.mrb[180].mxu0 }
 0x3fa   : > { %5002 = vst.msk [vmem:[%s612_s30] sm:$0x1] %vm5001_vm8, %v4997_v15  ;;  %v6341_v22 = vpop.f32.mrb[181].mxu0 }
 0x3fb   : > { %v5074_v35 = vpop.f32.mrb[180].mxu1 }
 0x3fc   : > { %5078 = vst.msk [vmem:[%s619_s25] sm:$0x1] %vm5001_vm8, %v5074_v35  ;;  %v6348_v6 = vpop.f32.mrb[181].mxu1 }
 0x3fd PF: > { %s22_s21 = sadd.s32 1, %s6730_s21   ;;  %s9234_s17 = sld [smem:[#allocation3_spill]] }
 0x3fe   : > { %p19_p12 = scmp.ge.s32.totalorder %s22_s21, 6   ;;  %s9235_s18 = sld [smem:[#allocation4_spill]] }
 0x3ff   : > { %s9236_s19 = sld [smem:[#allocation5_spill]]  ;;  %s9237_s20 = sld [smem:[#allocation6_spill]] }
 0x400   :  { %21 = sbr.rel (!%p19_p12) target bundleno = 3 (0x3), region = 135 }

// kernel: _lambda_.5
= control target key start
LH: loop header
LB: loop body
LE: loop exit
PB: predicated region body
PF: predicated region fallthrough
CT: control target
= control target key end

     0   :  { %s6394_s30 = smov 0   ;;  %s6396_s10 = smov 0   ;;  %s8680_s0 = inlined_call_operand.vmem [shape: bf16[2,4,100,16], index: 0, kind: input, shape index: {}, may-alias: {0,1,2}]   ;;  %s8681_s1 = inlined_call_operand.vmem [shape: bf16[2,4,100,16], index: 1, kind: input, shape index: {}, may-alias: {0,1,2}]   ;;  %s8682_s2 = inlined_call_operand.vmem [shape: bf16[2,4,100,16], index: 2, kind: input, shape index: {}, may-alias: {0,1,2}]   ;;  %s8683_s3 = inlined_call_operand.vmem [shape: f32[2,4,100,16], index: 3, kind: input, shape index: {}]   ;;  %s8684_s4 = inlined_call_operand.vmem [shape: f32[100,16], index: 4, kind: input, shape index: {}]   ;;  %s8685_s5 = inlined_call_operand.vmem [shape: f32[2,1,16], index: 5, kind: input, shape index: {}]   ;;  %s8686_s6 = inlined_call_operand.vmem [shape: f32[2,1,16], index: 6, kind: input, shape index: {}]   ;;  %s8687_s7 = inlined_call_operand.vmem [shape: bf16[9,48,16], index: 7, kind: input, shape index: {}]   ;;  %s8688_s8 = inlined_call_operand.vmem [shape: f32[1,16], index: 8, kind: input, shape index: {}]   ;;  %s8689_s9 = inlined_call_operand.vmem [shape: f32[2,4,100,16], index: 9, kind: output, shape index: {}]  }
   0x1   :  { %8699 = sst [smem:[#allocation11_spill]] %s8685_s5  ;;  %s6398_s11 = smov 0  }
   0x2   :  { %s6400_s12 = smov 0   ;;  %s6402_s13 = smov 0  }
   0x3 LB: > { %s28_s14 = sadd.s32 1, %s6329_s11  ;;  %s31_s15 = sadd.s32 1, %s6333_s12  ;;  %s6337_s13 = sphi %s6402_s13, %s19_s13   ;;  %s6333_s12 = sphi %s6400_s12, %s8721_s12   ;;  %s6329_s11 = sphi %s6398_s11, %s8720_s11   ;;  %s6325_s10 = sphi %s6396_s10, %s8719_s10   ;;  %s6321_s30 = sphi %s6394_s30, %s8718_s30  }
   0x4   : > { %p29_p0 = scmp.ge.s32.totalorder %s28_s14, 2  ;;  %p4886_p1 = scmp.ge.s32.totalorder %s6337_s13, 1 }
   0x5   : > { %p407_p2 = scmp.lt.s32.totalorder %s6337_s13, 5 }
   0x6   : > { %s8723_s14 = smov (%p29_p0, %s28_s14), 0  ;;  %s8725_s15 = smov (!%p29_p0, %s31_s15), %s6333_s12 }
   0x7   : > { %8700 = sst [smem:[#allocation3_spill]] %s8723_s14  ;;  %p408_p3 = pnand %p4886_p1, %p407_p2 }
   0x8   : > { %p33_p4 = scmp.ge.s32.totalorder %s8725_s15, 2 }
   0x9   : > { %411 = sbr.rel (%p408_p3) target bundleno = 790 (0x316), region = 56 }
   0xa   : > { %s8727_s15 = smov (%p33_p4, %s8725_s15), 0 }
   0xb   : > { %8701 = sst [smem:[#allocation4_spill]] %s8727_s15 }
  0x10   : > { %s6427_s16 = sshll.u32 %s6321_s30, 1  ;;  %p499_p5 = scmp.lt.s32.totalorder %s6325_s10, 1  ;;  %v617_v0 = vlaneseq  ;;  %vm800_vm0 = vcmask 1046528   ;;  %vm840_vm1 = vcmask 1041408   ;;  %vm790_vm2 = vcmask 130052  }
  0x11   : > { %s4888_s17 = sadd.s32 4294967295, %s6427_s16  ;;  %p515_p6 = scmp.lt.s32.totalorder %s6427_s16, 3  ;;  %vm774_vm3 = vcmask 1043456   ;;  %vm792_vm4 = vcmask 130048   ;;  %vm6342_vm5 = vmmov 0   ;;  %vm765_vm6 = vcmask 388096  }
  0x12   : > { %p497_p7 = scmp.gt.s32.totalorder %s4888_s17, 0  ;;  %p4889_p8 = scmp.lt.s32.totalorder %s4888_s17, 3  ;;  %v618_v1 = vshrl.u32 %v617_v0, 7  ;;  %vm797_vm7 = vcmask 125952   ;;  %vm767_vm8 = vcmask 392196   ;;  %vm830_vm9 = vcmask 261252  }
  0x13   : > { %s8729_s10 = smov (!%p499_p5, %s6325_s10), 1  ;;  %s8702_s5 = sld [smem:[#allocation11_spill]]  ;;  %vm870_vm10 = vcmask 392452   ;;  %vm832_vm11 = vcmask 261248   ;;  %vm872_vm12 = vcmask 392448   ;;  %vm1758_vm13 = vcmask 392192  }
  0x14   : > { %s8731_s17 = smov (!%p497_p7, %s4888_s17), 0  ;;  %s6431_s18 = smul.u32 52, %s8729_s10  ;;  %v619_v4 = vsub.s32 0, %v618_v1  ;;  %vm1847_vm14 = vsmask.f32 4352  ;;  %vm837_vm15 = vcmask 257152  }
  0x15   : > { %s8733_s17 = smov (!%p4889_p8, %s8731_s17), 3  ;;  %s556_s26 = scalar_lea.vmem %s8686_s6, %s8729_s10 }
  0x16   : > { %s516_s22 = scalar_select %p515_p6, %s6427_s16, 3  ;;  %v583_v3 = vld [vmem:[%s556_s26] sm:$0x1] }
  0x17   : > { %s5964_s23 = smul.u32 13, %s8733_s17  ;;  %p597_p9 = scmp.gt.s32.totalorder %s6321_s30, 0  ;;  %v6456_v8 = vrot.slane %v583_v3, %v619_v4 }
  0x18   : > { %s5966_s27 = smul.u32 13, %s516_s22  ;;  %p1433_p10 = scmp.lt.s32.totalorder %s6321_s30, 1 }
  0x19   : > { %s553_s21 = scalar_lea.vmem %s8702_s5, %s8729_s10  ;;  %s505_s28 = sadd.s32 %s6431_s18, %s5964_s23 }
  0x1a   : > { %v582_v2 = vld [vmem:[%s553_s21] sm:$0x1]  ;;  %s4894_s29 = sshll.u32 %s505_s28, 2  ;;  %s6443_s15 = sadd.s32 %s5966_s27, %s6431_s18 }
  0x1b   : > { %s507_s5 = scalar_lea.vmem %s8680_s0, %s4894_s29  ;;  %s4896_s17 = sshll.u32 %s6443_s15, 2  ;;  %v6454_v7 = vrot.slane %v582_v2, %v619_v4 }
  0x1c   : > { %s6452_s10 = scalar_lea.vmem %s8681_s1, %s4896_s17  ;;  %v5241_v5 = vld [vmem:[%s507_s5] sm:$0xff]   ;;  %v5332_v6 = vld [vmem:[%s507_s5 + $0x8] sm:$0xff]   ;;  %v5333_v9 = vld [vmem:[%s507_s5 + $0x10] sm:$0xff]   ;;  %s6339_s19 = smov 32  }
  0x1d   : > { %v5242_v10 = vunpack.c.l.bf16 %v5241_v5  ;;  %v5243_v11 = vunpack.c.h.bf16 %v5241_v5  ;;  %v5246_v12 = vunpack.c.l.bf16 %v5332_v6  ;;  %v5247_v13 = vunpack.c.h.bf16 %v5332_v6  ;;  %s598_s21 = scalar_select %p597_p9, 1, 0  ;;  %v5334_v14 = vld [vmem:[%s507_s5 + $0x18] sm:$0xff]   ;;  %v6460_v15 = vld [vmem:[%s507_s5 + $0x20] sm:$0xff]   ;;  %v6462_v16 = vld [vmem:[%s507_s5 + $0x28] sm:$0xff]  }
  0x1e   : > { %v5250_v17 = vunpack.c.l.bf16 %v5333_v9  ;;  %v5251_v18 = vunpack.c.h.bf16 %v5333_v9  ;;  %v5254_v19 = vunpack.c.l.bf16 %v5334_v14  ;;  %v5255_v20 = vunpack.c.h.bf16 %v5334_v14  ;;  %v6465_v21 = vld [vmem:[%s507_s5 + $0x30] sm:$0x3]  ;;  %v5265_v22 = vld [vmem:[%s6452_s10] sm:$0xff]   ;;  %v5337_v23 = vld [vmem:[%s6452_s10 + $0x8] sm:$0xff]   ;;  %s1434_s22 = scalar_select %p1433_p10, 1, 0 }
  0x1f   : > { %s599_s14 = scvt.s32.f32 %s598_s21  ;;  %v5258_v24 = vunpack.c.l.bf16 %v6460_v15  ;;  %v5259_v25 = vunpack.c.h.bf16 %v6460_v15  ;;  %v5262_v26 = vunpack.c.l.bf16 %v6462_v16  ;;  %v5263_v27 = vunpack.c.h.bf16 %v6462_v16  ;;  %v5338_v28 = vld [vmem:[%s6452_s10 + $0x10] sm:$0xff]   ;;  %s6340_s24 = smov 16  }
  0x20   : > { %v615_v29 = vunpack.c.l.bf16 %v6465_v21  ;;  %v5266_v30 = vunpack.c.l.bf16 %v5265_v22  ;;  %v5267_v31 = vunpack.c.h.bf16 %v5265_v22  ;;  %v5270_v32 = vunpack.c.l.bf16 %v5337_v23  ;;  %s1435_s5 = scvt.s32.f32 %s1434_s22 }
  0x21   : > { %v600_v33 = vstv %s599_s14  ;;  %v5271_v34 = vunpack.c.h.bf16 %v5337_v23  ;;  %v5274_v35 = vunpack.c.l.bf16 %v5338_v28  ;;  %v5275_v36 = vunpack.c.h.bf16 %v5338_v28 }
  0x22   : > { %v601_v37 = vmul.f32 %v600_v33, %v582_v2  ;;  %v602_v38 = vmul.f32 %v600_v33, %v583_v3  ;;  %v911_v39 = vmul.f32 %v5266_v30, %v6454_v7  ;;  %v912_v40 = vmul.f32 %v5267_v31, %v6454_v7  ;;  %v5339_v31 = vld [vmem:[%s6452_s10 + $0x18] sm:$0xff]  }
  0x23   : > { %v913_v41 = vmul.f32 %v5270_v32, %v6454_v7  ;;  %v914_v42 = vmul.f32 %v5271_v34, %v6454_v7  ;;  %v6482_v43 = vmul.f32 %v5274_v35, %v6454_v7  ;;  %v6485_v44 = vmul.f32 %v5275_v36, %v6454_v7  ;;  %v5340_v32 = vld [vmem:[%s6452_s10 + $0x20] sm:$0xff]  }
  0x24   : > { %v620_v45 = vrot.slane %v601_v37, %v619_v4  ;;  %v639_v46 = vrot.slane %v602_v38, %v619_v4  ;;  %v1436_v47 = vstv %s1435_s5  ;;  %v6488_v48 = vadd.f32 %v6456_v8, %v911_v39  ;;  %v5341_v38 = vld [vmem:[%s6452_s10 + $0x28] sm:$0xff]  }
  0x25   : > { %v1437_v49 = vmul.f32 %v1436_v47, %v582_v2  ;;  %v1438_v50 = vmul.f32 %v1436_v47, %v583_v3  ;;  %v6491_v51 = vadd.f32 %v6456_v8, %v912_v40  ;;  %v6494_v52 = vadd.f32 %v6456_v8, %v913_v41 }
  0x26   : > { %v622_v53 = vmul.f32 %v5242_v10, %v620_v45  ;;  %v623_v54 = vmul.f32 %v5243_v11, %v620_v45  ;;  %v624_v55 = vmul.f32 %v5246_v12, %v620_v45  ;;  %v625_v56 = vmul.f32 %v5247_v13, %v620_v45 }
  0x27   : > { %v6496_v57 = vrot.slane %v1437_v49, %v619_v4  ;;  %v6498_v58 = vrot.slane %v1438_v50, %v619_v4  ;;  %v626_v59 = vmul.f32 %v5250_v17, %v620_v45  ;;  %v627_v60 = vmul.f32 %v5251_v18, %v620_v45 }
  0x28   : > { %v6500_v61 = vadd.f32 %v639_v46, %v622_v53  ;;  %v6502_v62 = vadd.f32 %v639_v46, %v623_v54  ;;  %v6504_v63 = vadd.f32 %v639_v46, %v624_v55  ;;  %v6506_v0 = vadd.f32 %v639_v46, %v625_v56 }
  0x29   : > { %8703 = vst [vmem:[#allocation5_spill] sm:$0xff] %v6496_v57  ;;  %8704 = vst [vmem:[#allocation6_spill] sm:$0xff] %v6498_v58  ;;  %v6508_v1 = vadd.f32 %v639_v46, %v626_v59  ;;  %v6510_v2 = vadd.f32 %v639_v46, %v627_v60  ;;  %v628_v3 = vmul.f32 %v5254_v19, %v620_v45  ;;  %v6542_v33 = vmul.f32 -1.442695, %v6488_v48 }
  0x2a   : > { %v629_v5 = vmul.f32 %v5255_v20, %v620_v45  ;;  %v4906_v6 = vmul.f32 -1.442695, %v6500_v61  ;;  %v4907_v4 = vmul.f32 -1.442695, %v6502_v62  ;;  %v4908_v9 = vmul.f32 -1.442695, %v6504_v63 }
  0x2b   : > { %v630_v10 = vmul.f32 %v5258_v24, %v620_v45  ;;  %v4909_v11 = vmul.f32 -1.442695, %v6506_v0  ;;  %v4910_v12 = vmul.f32 -1.442695, %v6508_v1  ;;  %v4911_v13 = vmul.f32 -1.442695, %v6510_v2 }
  0x2c   : > { %v6518_v14 = vadd.f32 %v639_v46, %v628_v3  ;;  %6067 = vpow2.f32 %v4906_v6  ;;  %v6520_v15 = vadd.f32 %v639_v46, %v629_v5  ;;  %v631_v16 = vmul.f32 %v5259_v25, %v620_v45 }
  0x2d   : > { %v6522_v17 = vadd.f32 %v639_v46, %v630_v10  ;;  %6069 = vpow2.f32 %v4907_v4  ;;  %v632_v19 = vmul.f32 %v5262_v26, %v620_v45  ;;  %v633_v20 = vmul.f32 %v5263_v27, %v620_v45 }
  0x2e   : > { %v4912_v18 = vmul.f32 -1.442695, %v6518_v14  ;;  %6071 = vpow2.f32 %v4908_v9  ;;  %v4913_v22 = vmul.f32 -1.442695, %v6520_v15  ;;  %v6526_v23 = vadd.f32 %v639_v46, %v631_v16  ;;  %v891_v16 = vld [vmem:[%s6452_s10 + $0x30] sm:$0x3] }
  0x2f   : > { %v4914_v24 = vmul.f32 -1.442695, %v6522_v17  ;;  %6073 = vpow2.f32 %v4909_v11  ;;  %v6529_v28 = vadd.f32 %v639_v46, %v632_v19  ;;  %v6531_v30 = vadd.f32 %v639_v46, %v633_v20 }
  0x30   : > { %v634_v25 = vmul.f32 %v620_v45, %v615_v29  ;;  %6075 = vpow2.f32 %v4910_v12  ;;  %v4915_v26 = vmul.f32 -1.442695, %v6526_v23  ;;  %v6539_v27 = vadd.f32 %v6456_v8, %v914_v42 }
  0x31   : > { %6077 = vpow2.f32 %v4911_v13  ;;  %v4916_v34 = vmul.f32 -1.442695, %v6529_v28  ;;  %v4917_v35 = vmul.f32 -1.442695, %v6531_v30  ;;  %v6549_v21 = vmul.f32 -1.442695, %v6491_v51 }
  0x32   : > { %v6546_v36 = vadd.f32 %v639_v46, %v634_v25  ;;  %6079 = vpow2.f32 %v4912_v18  ;;  %v6552_v29 = vmul.f32 -1.442695, %v6494_v52  ;;  %v6555_v37 = vmul.f32 -1.442695, %v6539_v27 }
  0x33   : > { %6081 = vpow2.f32 %v4913_v22  ;;  %v6561_v40 = vadd.f32 %v6456_v8, %v6482_v43  ;;  %v6565_v41 = vadd.f32 %v6456_v8, %v6485_v44  ;;  %v5278_v42 = vunpack.c.l.bf16 %v5339_v31 }
  0x34   : > { %v4918_v39 = vmul.f32 -1.442695, %v6546_v36  ;;  %6083 = vpow2.f32 %v4914_v24  ;;  %v5279_v45 = vunpack.c.h.bf16 %v5339_v31  ;;  %v5282_v46 = vunpack.c.l.bf16 %v5340_v32 }
  0x35   : > { %6085 = vpow2.f32 %v4915_v26  ;;  %v6568_v47 = vmul.f32 -1.442695, %v6561_v40  ;;  %v6571_v49 = vmul.f32 -1.442695, %v6565_v41  ;;  %v5283_v50 = vunpack.c.h.bf16 %v5340_v32 }
  0x36   : > { %v6068_v53 = vpop.eup %6067  ;;  %6087 = vpow2.f32 %v4916_v34  ;;  %v917_v43 = vmul.f32 %v5278_v42, %v6454_v7  ;;  %v918_v54 = vmul.f32 %v5279_v45, %v6454_v7  ;;  %v919_v44 = vmul.f32 %v5282_v46, %v6454_v7 }
  0x37   : > { %v6070_v55 = vpop.eup %6069  ;;  %v693_v56 = vadd.f32 1.0, %v6068_v53  ;;  %6089 = vpow2.f32 %v4917_v35  ;;  %v5286_v59 = vunpack.c.l.bf16 %v5341_v38  ;;  %v920_v12 = vmul.f32 %v5283_v50, %v6454_v7 }
  0x38   : > { %v6072_v60 = vpop.eup %6071  ;;  %v694_v3 = vadd.f32 1.0, %v6070_v55  ;;  %6091 = vpow2.f32 %v4918_v39  ;;  %v6577_v5 = vadd.f32 %v6456_v8, %v917_v43  ;;  %v6580_v6 = vadd.f32 %v6456_v8, %v918_v54 }
  0x39   : > { %v6074_v4 = vpop.eup %6073  ;;  %v695_v9 = vadd.f32 1.0, %v6072_v60  ;;  %6093 = vrcp.f32 %v693_v56  ;;  %v6584_v13 = vadd.f32 %v6456_v8, %v919_v44  ;;  %v5287_v31 = vunpack.c.h.bf16 %v5341_v38  ;;  %v6607_v56 = vld [vmem:[%s8684_s4] sm:$0xff] }
  0x3a   : > { %v6076_v10 = vpop.eup %6075  ;;  %v696_v11 = vadd.f32 1.0, %v6074_v4  ;;  %6095 = vrcp.f32 %v694_v3  ;;  %v6588_v20 = vmul.f32 -1.442695, %v6577_v5  ;;  %v6591_v22 = vmul.f32 -1.442695, %v6580_v6  ;;  %v6614_v4 = vld [vmem:[%s6452_s10 + $0x38] sm:$0xff]  }
  0x3b   : > { %v6078_v18 = vpop.eup %6077  ;;  %6097 = vrcp.f32 %v695_v9  ;;  %v697_v19 = vadd.f32 1.0, %v6076_v10  ;;  %v921_v32 = vmul.f32 %v5286_v59, %v6454_v7  ;;  %v904_v35 = vunpack.c.l.bf16 %v891_v16  ;;  %v6611_v3 = vld [vmem:[%s6452_s10 + $0x34] ss:$44 sps:$4 sm:$0xff]   ;;  %v6619_v10 = vld [vmem:[%s8684_s4 + $0x8] sm:$0xff] }
  0x3c   : > { %v6080_v24 = vpop.eup %6079  ;;  %6099 = vrcp.f32 %v696_v11  ;;  %v698_v25 = vadd.f32 1.0, %v6078_v18  ;;  %v6595_v45 = vadd.f32 %v6456_v8, %v920_v12  ;;  %v922_v53 = vmul.f32 %v5287_v31, %v6454_v7  ;;  %v6625_v16 = vld [vmem:[%s6452_s10 + $0x40] sm:$0xff]  }
  0x3d   : > { %v6082_v26 = vpop.eup %6081  ;;  %6101 = vrcp.f32 %v697_v19  ;;  %v699_v34 = vadd.f32 1.0, %v6080_v24  ;;  %v6599_v38 = vadd.f32 %v6456_v8, %v921_v32  ;;  %v6602_v44 = vmul.f32 -1.442695, %v6584_v13  ;;  %v6630_v19 = vld [vmem:[%s8684_s4 + $0x10] sm:$0xff] }
  0x3e   : > { %v6084_v39 = vpop.eup %6083  ;;  %6103 = vrcp.f32 %v698_v25  ;;  %v700_v42 = vadd.f32 1.0, %v6082_v26  ;;  %v923_v60 = vmul.f32 %v6454_v7, %v904_v35  ;;  %v6622_v12 = vmul.f32 -1.442695, %v6595_v45  ;;  %v6641_v26 = vld [vmem:[%s8684_s4 + $0x18] sm:$0xff] }
  0x3f   : > { %v6086_v46 = vpop.eup %6085  ;;  %6105 = vrcp.f32 %v699_v34  ;;  %v701_v50 = vadd.f32 1.0, %v6084_v39  ;;  %v6633_v25 = vadd.f32 %v6456_v8, %v922_v53  ;;  %v6636_v31 = vmul.f32 -1.442695, %v6599_v38 }
  0x40   : > { %v6088_v43 = vpop.eup %6087  ;;  %6107 = vrcp.f32 %v700_v42  ;;  %v702_v54 = vadd.f32 1.0, %v6086_v46  ;;  %v5290_v35 = vunpack.c.l.bf16 %v6614_v4  ;;  %v5291_v39 = vunpack.c.h.bf16 %v6614_v4 }
  0x41   : > { %v6090_v55 = vpop.eup %6089  ;;  %6109 = vrcp.f32 %v701_v50  ;;  %v703_v59 = vadd.f32 1.0, %v6088_v43  ;;  %8705 = vst [vmem:[#allocation7_spill] sm:$0xff] %v6633_v25  ;;  %v6650_v50 = vld [vmem:[%s8684_s4 + $0x20] sm:$0xff]  ;;  %v6653_v53 = vadd.f32 %v6456_v8, %v923_v60  ;;  %v8709_v57 = vunpack.c.l.bf16 %v6625_v16 }
  0x42   : > { %v6092_v9 = vpop.eup %6091  ;;  %6111 = vrcp.f32 %v702_v54  ;;  %v704_v11 = vadd.f32 1.0, %v6090_v55 }
  0x43   : > { %v6094_v18 = vpop.eup %6093  ;;  %6113 = vrcp.f32 %v703_v59  ;;  %v705_v24 = vadd.f32 1.0, %v6092_v9  ;;  %v1169_v59 = vunpack.c.l.bf16 %v6611_v3 }
  0x44   : > { %v6096_v32 = vpop.eup %6095  ;;  %v732_v34 = vmul.f32 %v6094_v18, %v6500_v61  ;;  %6115 = vrcp.f32 %v704_v11  ;;  %v6674_v11 = vmul.f32 -1.442695, %v6633_v25 }
  0x45   : > { %v6098_v42 = vpop.eup %6097  ;;  %v733_v46 = vmul.f32 %v6096_v32, %v6502_v62  ;;  %6117 = vrcp.f32 %v705_v24  ;;  %v6661_v62 = vld [vmem:[%s8684_s4 + $0x28] sm:$0xff]  ;;  %v6685_v32 = vmul.f32 %v5290_v35, %v6454_v7  ;;  %v1182_v35 = vmul.f32 %v1169_v59, %v6454_v7 }
  0x46   : > { %v6100_v43 = vpop.eup %6099  ;;  %v734_v54 = vmul.f32 %v6098_v42, %v6504_v63  ;;  %v745_v55 = vmul.f32 %v732_v34, %v6607_v56  ;;  %6119 = vpow2.f32 %v6542_v33  ;;  %v6670_v63 = vld [vmem:[%s8684_s4 + $0x30] sm:$0xff] }
  0x47   : > { %v6102_v4 = vpop.eup %6101  ;;  %v735_v60 = vmul.f32 %v6100_v43, %v6506_v0  ;;  %v746_v9 = vmul.f32 %v733_v46, %v6619_v10  ;;  %6121 = vpow2.f32 %v6549_v21  ;;  %v6681_v0 = vld [vmem:[%s8684_s4 + $0x38] sm:$0xff]  ;;  %v6766_v25 = vadd.f32 %v1182_v35, %v6456_v8 }
  0x48   : > { %v6104_v18 = vpop.eup %6103  ;;  %v747_v33 = vmul.f32 %v734_v54, %v6630_v19  ;;  %v736_v24 = vmul.f32 %v6102_v4, %v6508_v1  ;;  %6123 = vpow2.f32 %v6552_v29  ;;  %v6697_v29 = vld [vmem:[%s8684_s4 + $0x40] sm:$0xff] }
  0x49   : > { %v6106_v34 = vpop.eup %6105  ;;  %v748_v21 = vmul.f32 %v735_v60, %v6641_v26  ;;  %v6688_v42 = vpack.c.bf16 %v746_v9, %v745_v55  ;;  %v737_v46 = vmul.f32 %v6104_v18, %v6510_v2  ;;  %6125 = vpow2.f32 %v6555_v37 }
  0x4a   : > { %v6108_v1 = vpop.eup %6107  ;;  %v749_v43 = vmul.f32 %v736_v24, %v6650_v50  ;;  %v738_v54 = vmul.f32 %v6106_v34, %v6518_v14  ;;  %6127 = vpow2.f32 %v6568_v47  ;;  %v6709_v14 = vld [vmem:[%s8684_s4 + $0x48] sm:$0xff]  ;;  %v6714_v47 = vld [vmem:[%s8684_s4 + $0x50] sm:$0xff] }
  0x4b   : > { %v6110_v55 = vpop.eup %6109  ;;  %v6701_v4 = vpack.c.bf16 %v748_v21, %v747_v33  ;;  %v801_v2 = vrot.slane %v6688_v42, 1  ;;  %v750_v37 = vmul.f32 %v737_v46, %v6661_v62  ;;  %v739_v60 = vmul.f32 %v6108_v1, %v6520_v15  ;;  %8706 = vst [vmem:[#allocation8_spill] sm:$0xff] %v6714_v47 }
  0x4c   : > { %v6112_v59 = vpop.eup %6111  ;;  %v751_v9 = vmul.f32 %v738_v54, %v6670_v63  ;;  %v740_v18 = vmul.f32 %v6110_v55, %v6522_v17  ;;  %6129 = vpow2.f32 %v6571_v49  ;;  %v1184_v33 = vmul.f32 %v5291_v39, %v6454_v7 }
  0x4d   : > { %v6114_v15 = vpop.eup %6113  ;;  %v802_v24 = vrot.slane %v6701_v4, 1  ;;  %v841_v34 = vrot.slane %v6701_v4, 6  ;;  %v6722_v21 = vpack.c.bf16 %v750_v37, %v749_v43  ;;  %v752_v46 = vmul.f32 %v739_v60, %v6681_v0 }
  0x4e   : > { %v6116_v1 = vpop.eup %6115  ;;  %v741_v61 = vmul.f32 %v6112_v59, %v6526_v23  ;;  %v753_v54 = vmul.f32 %v740_v18, %v6697_v29  ;;  %v742_v17 = vmul.f32 %v6114_v15, %v6529_v28  ;;  %6131 = vpow2.f32 %v6588_v20  ;;  %v6738_v23 = vld [vmem:[%s8684_s4 + $0x58] sm:$0xff]  ;;  %v6747_v59 = vld [vmem:[%s8684_s4 + $0x60] sm:$0xf] }
  0x4f   : > { %v6118_v49 = vpop.eup %6117  ;;  %v803_v39 = vsel %vm800_vm0, %v801_v2, %v802_v24  ;;  %852 = vrot.lane.b32.xlu1 %v841_v34, %s6339_s19  ;;  %v804_v43 = vrot.slane %v6722_v21, 1  ;;  %v842_v55 = vrot.slane %v6722_v21, 6  ;;  %v6733_v37 = vpack.c.bf16 %v752_v46, %v751_v9  ;;  %8707 = vst [vmem:[#allocation9_spill] sm:$0xff] %v6738_v23  ;;  %8708 = vst [vmem:[#allocation10_spill] sm:$0xff] %v6747_v59 }
  0x50   : > { %v6120_v28 = vpop.eup %6119  ;;  %812 = vrot.lane.b32.xlu0 %v803_v39, %s6340_s24  ;;  %v754_v20 = vmul.f32 %v741_v61, %v6709_v14  ;;  %v743_v2 = vmul.f32 %v6116_v1, %v6531_v30  ;;  %v755_v60 = vmul.f32 %v742_v17, %v6714_v47  ;;  %v744_v9 = vmul.f32 %v6118_v49, %v6546_v36 }
  0x51   : > { %v6122_v18 = vpop.eup %6121  ;;  %v805_v15 = vsel %vm800_vm0, %v802_v24, %v804_v43  ;;  %v843_v46 = vsel %vm840_vm1, %v841_v34, %v842_v55  ;;  %v806_v39 = vrot.slane %v6733_v37, 1  ;;  %v844_v61 = vrot.slane %v6733_v37, 6 }
  0x52   : > { %v6124_v58 = vpop.eup %6123  ;;  %v6754_v30 = vpack.c.bf16 %v754_v20, %v753_v54  ;;  %v756_v1 = vmul.f32 %v743_v2, %v6738_v23  ;;  %v982_v17 = vadd.f32 1.0, %v6120_v28  ;;  %v1185_v47 = vmul.f32 %v8709_v57, %v6454_v7 }
  0x53   : > { %v6126_v36 = vpop.eup %6125  ;;  %854 = vrot.lane.b32.xlu1 %v843_v46, %s6339_s19  ;;  %v757_v24 = vmul.f32 %v744_v9, %v6747_v59  ;;  %v983_v34 = vadd.f32 1.0, %v6122_v18  ;;  %v6763_v49 = vmul.f32 -1.442695, %v6653_v53  ;;  %v845_v28 = vsel %vm840_vm1, %v842_v55, %v844_v61 }
  0x54   : > { %v6128_v54 = vpop.eup %6127  ;;  %814 = vrot.lane.b32.xlu0 %v805_v15, %s6340_s24  ;;  %v846_v20 = vrot.slane %v6754_v30, 6  ;;  %v6771_v57 = vpack.c.bf16 %v756_v1, %v755_v60  ;;  %v984_v2 = vadd.f32 1.0, %v6124_v58  ;;  %v807_v9 = vsel %vm800_vm0, %v804_v43, %v806_v39  ;;  %v6790_v1 = vld [vmem:[%s6452_s10 + $0x48] sm:$0xff]  }
  0x55   : > { %v808_v18 = vrot.slane %v6754_v30, 1  ;;  %v985_v46 = vadd.f32 1.0, %v6126_v36  ;;  %6133 = vrcp.f32 %v982_v17  ;;  %v986_v35 = vadd.f32 1.0, %v6128_v54 }
  0x56   : > { %v6130_v59 = vpop.eup %6129  ;;  %v6777_v23 = vadd.f32 %v6685_v32, %v6456_v8  ;;  %v6780_v55 = vadd.f32 %v1184_v33, %v6456_v8  ;;  %v6783_v60 = vadd.f32 %v1185_v47, %v6456_v8  ;;  %v764_v58 = vpack.c.bf16 %v757_v24, %v757_v24 }
  0x57   : > { %856 = vrot.lane.b32.xlu1 %v845_v28, %s6339_s19  ;;  %6135 = vrcp.f32 %v983_v34  ;;  %v987_v43 = vadd.f32 1.0, %v6130_v59  ;;  %v6787_v15 = vmul.f32 -1.442695, %v6766_v25  ;;  %v847_v32 = vsel %vm840_vm1, %v844_v61, %v846_v20  ;;  %v6013_v61 = vld [vmem:[%s8687_s7 + $0x18] sm:$0xff]  }
  0x58   : > { %v6132_v17 = vpop.eup %6131  ;;  %816 = vrot.lane.b32.xlu0 %v807_v9, %s6340_s24  ;;  %v848_v33 = vrot.slane %v6771_v57, 6  ;;  %6137 = vrcp.f32 %v984_v2  ;;  %v775_v47 = vrot.slane %v6688_v42, 4  ;;  %v809_v36 = vsel %vm800_vm0, %v806_v39, %v808_v18  ;;  %v6014_v42 = vld [vmem:[%s8687_s7] sm:$0xff]  }
  0x59   : > { %v810_v24 = vrot.slane %v6771_v57, 1  ;;  %6139 = vrcp.f32 %v985_v46  ;;  %v988_v59 = vadd.f32 1.0, %v6132_v17  ;;  %v5295_v34 = vunpack.c.h.bf16 %v6625_v16 }
  0x5a   : > { %6141 = vrcp.f32 %v986_v35  ;;  %791 = vst.msk [vmem:[#allocation2] sm:$0xf0] %vm790_vm2, %v775_v47  ;;  %v5298_v54 = vunpack.c.l.bf16 %v6790_v1  ;;  %v850_v39 = vrot.slane %v764_v58, 6  ;;  %v776_v28 = vrot.slane %v6701_v4, 4 }
  0x5b   : > { %858 = vrot.lane.b32.xlu1 %v847_v32, %s6339_s19  ;;  %6143 = vrcp.f32 %v987_v43  ;;  %v849_v16 = vsel %vm840_vm1, %v846_v20, %v848_v33  ;;  %v1186_v2 = vmul.f32 %v5295_v34, %v6454_v7  ;;  %v811_v9 = vsel %vm800_vm0, %v808_v18, %v810_v24  ;;  %v6015_v20 = vld [vmem:[%s8687_s7 + $0x20] sm:$0xff]   ;;  %v6016_v18 = vld [vmem:[%s8687_s7 + $0x8] sm:$0xff]  }
  0x5c   : > { %818 = vrot.lane.b32.xlu0 %v809_v36, %s6340_s24  ;;  %6145 = vpow2.f32 %v6591_v22  ;;  %v1187_v46 = vmul.f32 %v5298_v54, %v6454_v7  ;;  %v777_v35 = vsel %vm774_vm3, %v775_v47, %v776_v28  ;;  %v6341_v58 = vmov 0.0  }
  0x5d   : > { %6147 = vrcp.f32 %v988_v59  ;;  %5496 = vmatprep.subr.bf16.mxu0 %v6341_v58  ;;  %5522 = vmatprep.subr.bf16.mxu1 %v6341_v58  ;;  %v4946_v22 = vmul.f32 -1.442695, %v6777_v23  ;;  %v4947_v4 = vmul.f32 -1.442695, %v6780_v55  ;;  %793 = vst.msk [vmem:[#allocation2 + $0x8] sm:$0xff] %vm792_vm4, %v777_v35  ;;  %v778_v17 = vrot.slane %v6722_v21, 4 }
  0x5e   : > { %6149 = vpow2.f32 %v6602_v44  ;;  %5497 = vmatpush3.bf16.msra.mxu0 %v6013_v61  ;;  %5523 = vmatpush3.bf16.msra.mxu1 %v6014_v42  ;;  %v6833_v44 = vadd.f32 %v1186_v2, %v6456_v8  ;;  %v780_v32 = vrot.slane %v6733_v37, 4  ;;  %v851_v47 = vsel %vm840_vm1, %v848_v33, %v850_v39 }
  0x5f   : > { %v6134_v43 = vpop.eup %6133  ;;  %860 = vrot.lane.b32.xlu1 %v849_v16, %s6339_s19  ;;  %6151 = vpow2.f32 %v6622_v12  ;;  %5498 = vmatprep.subr.bf16.mxu0 %v6341_v58  ;;  %v4948_v59 = vmul.f32 -1.442695, %v6783_v60  ;;  %v6844_v12 = vld [vmem:[%s6452_s10 + $0x50] sm:$0xff]   ;;  %v6849_v21 = vadd.f32 %v1187_v46, %v6456_v8  ;;  %v5299_v54 = vunpack.c.h.bf16 %v6790_v1  ;;  %v6017_v1 = vld [vmem:[%s8687_s7 + $0x28] sm:$0xff]  }
  0x60   : > { %820 = vrot.lane.b32.xlu0 %v811_v9, %s6340_s24  ;;  %v1021_v36 = vmul.f32 %v6134_v43, %v6488_v48  ;;  %6153 = vpow2.f32 %v6636_v31  ;;  %5524 = vmatprep.subr.bf16.mxu1 %v6341_v58  ;;  %v779_v33 = vsel %vm774_vm3, %v776_v28, %v778_v17  ;;  %v4949_v39 = vmul.f32 -1.442695, %v6833_v44  ;;  %v6893_v43 = vld [vmem:[%s6452_s10 + $0x58] sm:$0xff]  }
  0x61   : > { %v6136_v34 = vpop.eup %6135  ;;  %6155 = vpow2.f32 %v6674_v11  ;;  %794 = vst.msk [vmem:[#allocation2 + $0x10] sm:$0xff] %vm792_vm4, %v779_v33  ;;  %v781_v11 = vsel %vm774_vm3, %v778_v17, %v780_v32  ;;  %v5302_v28 = vunpack.c.l.bf16 %v6844_v12  ;;  %v1188_v35 = vmul.f32 %v5299_v54, %v6454_v7  ;;  %5502 = vmatprep.mubr.msk.bf16.mxu0 %vm6342_vm5, %v6341_v58  ;;  %5528 = vmatprep.mubr.msk.bf16.mxu1 %vm6342_vm5, %v6341_v58 }
  0x62   : > { %v6138_v61 = vpop.eup %6137  ;;  %v1022_v48 = vmul.f32 %v6136_v34, %v6491_v51  ;;  %v1034_v31 = vmul.f32 %v1021_v36, %v6607_v56  ;;  %6157 = vpow2.f32 %v6763_v49  ;;  %5499 = vmatpush3.bf16.msra.mxu0 %v6015_v20  ;;  %5525 = vmatpush3.bf16.msra.mxu1 %v6016_v18  ;;  %v6018_v51 = vld [vmem:[%s8687_s7 + $0x10] sm:$0xff]   ;;  %795 = vst.msk [vmem:[#allocation2 + $0x18] sm:$0xff] %vm792_vm4, %v781_v11  ;;  %v5303_v18 = vunpack.c.h.bf16 %v6844_v12 }
  0x63   : > { %v6140_v42 = vpop.eup %6139  ;;  %862 = vrot.lane.b32.xlu1 %v851_v47, %s6339_s19  ;;  %v1023_v49 = vmul.f32 %v6138_v61, %v6494_v52  ;;  %6159 = vpow2.f32 %v6787_v15  ;;  %5500 = vmatprep.subr.bf16.mxu0 %v6341_v58  ;;  %v1189_v12 = vmul.f32 %v5302_v28, %v6454_v7  ;;  %v6906_v33 = vadd.f32 %v1188_v35, %v6456_v8 }
  0x64   : > { %v6142_v16 = vpop.eup %6141  ;;  %822 = vrot.lane.b32.xlu0 %v810_v24, %s6340_s24  ;;  %v1024_v2 = vmul.f32 %v6140_v42, %v6539_v27  ;;  %v1035_v9 = vmul.f32 %v1022_v48, %v6619_v10  ;;  %6161 = vpow2.f32 %v4946_v22  ;;  %5526 = vmatprep.subr.bf16.mxu1 %v6341_v58  ;;  %v5306_v11 = vunpack.c.l.bf16 %v6893_v43 }
  0x65   : > { %v6144_v52 = vpop.eup %6143  ;;  %v1036_v15 = vmul.f32 %v1023_v49, %v6630_v19  ;;  %v1025_v46 = vmul.f32 %v6142_v16, %v6561_v40  ;;  %6163 = vpow2.f32 %v4947_v4  ;;  %v6919_v35 = vadd.f32 %v1189_v12, %v6456_v8 }
  0x66   : > { %v6146_v27 = vpop.eup %6145  ;;  %v1037_v57 = vmul.f32 %v1024_v2, %v6641_v26  ;;  %v6887_v24 = vpack.c.bf16 %v1035_v9, %v1034_v31  ;;  %v1026_v22 = vmul.f32 %v6144_v52, %v6565_v41  ;;  %6165 = vpow2.f32 %v4948_v59  ;;  %5501 = vmatpush3.bf16.msra.mxu0 %v6017_v1  ;;  %5527 = vmatpush3.bf16.msra.mxu1 %v6018_v51 }
  0x67   : > { %v6148_v40 = vpop.eup %6147  ;;  %v1038_v4 = vmul.f32 %v1025_v46, %v6650_v50  ;;  %v989_v20 = vadd.f32 1.0, %v6146_v27  ;;  %6167 = vpow2.f32 %v4949_v39  ;;  %5548 = vmatprep.subr.bf16.mxu0 %v6341_v58  ;;  %5574 = vmatprep.subr.bf16.mxu1 %v6341_v58  ;;  %v6902_v59 = vmul.f32 -1.442695, %v6849_v21 }
  0x68   : > { %v6150_v17 = vpop.eup %6149  ;;  %v6897_v47 = vpack.c.bf16 %v1037_v57, %v1036_v15  ;;  %v1084_v41 = vrot.slane %v6887_v24, 1  ;;  %v1039_v36 = vmul.f32 %v1026_v22, %v6661_v62  ;;  %v1190_v1 = vmul.f32 %v5303_v18, %v6454_v7 }
  0x69   : > { %v6152_v34 = vpop.eup %6151  ;;  %6169 = vrcp.f32 %v989_v20  ;;  %v990_v54 = vadd.f32 1.0, %v6150_v17  ;;  %v4951_v27 = vmul.f32 -1.442695, %v6906_v33  ;;  %v1191_v20 = vmul.f32 %v5306_v11, %v6454_v7 }
  0x6a   : > { %v6154_v61 = vpop.eup %6153  ;;  %v1085_v48 = vrot.slane %v6897_v47, 1  ;;  %v6909_v31 = vpack.c.bf16 %v1039_v36, %v1038_v4  ;;  %v1120_v42 = vrot.slane %v6897_v47, 6  ;;  %v991_v49 = vadd.f32 1.0, %v6152_v34 }
  0x6b   : > { %v6156_v51 = vpop.eup %6155  ;;  %6171 = vrcp.f32 %v990_v54  ;;  %v992_v39 = vadd.f32 1.0, %v6154_v61  ;;  %v1027_v17 = vmul.f32 %v6148_v40, %v6577_v5  ;;  %v6929_v36 = vadd.f32 %v1190_v1, %v6456_v8 }
  0x6c   : > { %v6158_v16 = vpop.eup %6157  ;;  %v1086_v28 = vsel %vm800_vm0, %v1084_v41, %v1085_v48  ;;  %v1087_v2 = vrot.slane %v6909_v31, 1  ;;  %v1121_v9 = vrot.slane %v6909_v31, 6  ;;  %v993_v52 = vadd.f32 1.0, %v6156_v51 }
  0x6d   : > { %v6160_v15 = vpop.eup %6159  ;;  %1095 = vrot.lane.b32.xlu0 %v1086_v28, %s6340_s24  ;;  %6173 = vrcp.f32 %v991_v49  ;;  %v994_v46 = vadd.f32 1.0, %v6158_v16  ;;  %v782_v61 = vrot.slane %v6754_v30, 4  ;;  %v6937_v40 = vadd.f32 %v1191_v20, %v6456_v8  ;;  %v4944_v16 = vld [vmem:[%s6452_s10 + $0x64] sm:$0x3]  ;;  %s524_s10 = sadd.s32 2, %s6427_s16  ;;  %s4903_s16 = sshll.u32 %s6443_s15, 3 }
  0x6e   : > { %v6162_v57 = vpop.eup %6161  ;;  %v1088_v22 = vsel %vm800_vm0, %v1085_v48, %v1087_v2  ;;  %6175 = vrcp.f32 %v992_v39  ;;  %v1247_v4 = vadd.f32 1.0, %v6160_v15  ;;  %v1122_v54 = vsel %vm840_vm1, %v1120_v42, %v1121_v9  ;;  %p525_p11 = scmp.lt.s32.totalorder %s524_s10, 3  ;;  %s8077_s20 = scalar_lea.vmem %s8689_s9, %s4903_s16 }
  0x6f   : > { %v6164_v18 = vpop.eup %6163  ;;  %1097 = vrot.lane.b32.xlu1 %v1088_v22, %s6340_s24  ;;  %6177 = vrcp.f32 %v993_v52  ;;  %v1248_v41 = vadd.f32 1.0, %v6162_v57  ;;  %v783_v1 = vsel %vm774_vm3, %v780_v32, %v782_v61  ;;  %v6343_v51 = vmov 0   ;;  %798 = vst.msk [vmem:[#allocation2 + $0x28] sm:$0xf] %vm797_vm7, %v782_v61  ;;  %s8457_s26 = scalar_lea.vmem %s8683_s3, %s4903_s16 }
  0x70   : > { %v6166_v34 = vpop.eup %6165  ;;  %6179 = vrcp.f32 %v994_v46  ;;  %v1249_v12 = vadd.f32 1.0, %v6164_v18  ;;  %766 = vst.msk [vmem:[#allocation2] sm:$0xf] %vm765_vm6, %v6343_v51  ;;  %1055 = vst.msk [vmem:[#allocation2 + $0x30] sm:$0xf] %vm765_vm6, %v6343_v51  ;;  %v5307_v37 = vunpack.c.h.bf16 %v6893_v43  ;;  %v1180_v32 = vunpack.c.h.bf16 %v6611_v3  ;;  %s8735_s10 = smov (!%p525_p11, %s524_s10), 3 }
  0x71   : > { %v6168_v48 = vpop.eup %6167  ;;  %1131 = vrot.lane.b32.xlu0 %v1120_v42, %s6339_s19  ;;  %v1250_v11 = vadd.f32 1.0, %v6166_v34  ;;  %6181 = vrcp.f32 %v1247_v4  ;;  %1320 = vst.msk [vmem:[#allocation2 + $0x60] sm:$0xf] %vm765_vm6, %v6343_v51  ;;  %1602 = vst.msk [vmem:[#allocation2 + $0x90] sm:$0xf] %vm765_vm6, %v6343_v51  ;;  %v1040_v49 = vmul.f32 %v1027_v17, %v6670_v63  ;;  %v1062_v46 = vrot.slane %v6887_v24, 4 }
  0x72   : > { %6183 = vrcp.f32 %v1248_v41  ;;  %v1251_v5 = vadd.f32 1.0, %v6168_v48  ;;  %796 = vst.msk [vmem:[#allocation2 + $0x20] sm:$0xff] %vm792_vm4, %v783_v1  ;;  %v4952_v39 = vmul.f32 -1.442695, %v6919_v35  ;;  %v4953_v52 = vmul.f32 -1.442695, %v6929_v36 }
  0x73   : > { %v6170_v30 = vpop.eup %6169  ;;  %1133 = vrot.lane.b32.xlu1 %v1122_v54, %s6339_s19  ;;  %6185 = vrcp.f32 %v1249_v12  ;;  %v1192_v43 = vmul.f32 %v5307_v37, %v6454_v7  ;;  %v1193_v3 = vmul.f32 %v1180_v32, %v6454_v7  ;;  %v4954_v22 = vmul.f32 -1.442695, %v6937_v40  ;;  %1077 = vst.msk [vmem:[#allocation2 + $0x30] sm:$0xf0] %vm790_vm2, %v1062_v46  ;;  %s8737_s10 = smov (!%p525_p11, %s8735_s10), 3 }
  0x74   : > { %v1028_v42 = vmul.f32 %v6170_v30, %v6580_v6  ;;  %6187 = vrcp.f32 %v1250_v11  ;;  %v8710_v11 = vld [vmem:[#allocation7_spill] sm:$0xff]  ;;  %v8711_v30 = vld [vmem:[#allocation8_spill] sm:$0xff]  ;;  %768 = vst.msk [vmem:[#allocation2 + $0x28] sm:$0xf0] %vm767_vm8, %v6343_v51  ;;  %1056 = vst.msk [vmem:[#allocation2 + $0x58] sm:$0xf0] %vm767_vm8, %v6343_v51 }
  0x75   : > { %v6172_v28 = vpop.eup %6171  ;;  %6189 = vpow2.f32 %v6902_v59  ;;  %v6964_v4 = vadd.f32 %v1192_v43, %v6456_v8  ;;  %v1181_v59 = vunpack.c.l.bf16 %v4944_v16  ;;  %v6975_v34 = vadd.f32 %v1193_v3, %v6456_v8  ;;  %1321 = vst.msk [vmem:[#allocation2 + $0x88] sm:$0xf0] %vm767_vm8, %v6343_v51  ;;  %1603 = vst.msk [vmem:[#allocation2 + $0xb8] sm:$0xf0] %vm767_vm8, %v6343_v51  ;;  %s5967_s14 = smul.u32 13, %s8737_s10 }
  0x76   : > { %v1041_v15 = vmul.f32 %v1028_v42, %v6681_v0  ;;  %v1029_v6 = vmul.f32 %v6172_v28, %v6584_v13  ;;  %6191 = vrcp.f32 %v1251_v5  ;;  %v8712_v28 = vld [vmem:[#allocation9_spill] sm:$0xff]  ;;  %vm877_vm6 = vcmask 388352   ;;  %3224 = vst.msk [vmem:[%s8077_s20] sm:$0xff] %vm792_vm4, %v6341_v58  ;;  %3227 = vst.msk [vmem:[%s8077_s20 + $0x5a] sm:$0xff] %vm792_vm4, %v6341_v58 }
  0x77   : > { %v6174_v57 = vpop.eup %6173  ;;  %6193 = vpow2.f32 %v4951_v27  ;;  %v4955_v54 = vmul.f32 -1.442695, %v6964_v4  ;;  %v1194_v32 = vmul.f32 %v1181_v59, %v6454_v7  ;;  %s533_s22 = sadd.s32 %s5967_s14, %s6431_s18  ;;  %vm2015_vm8 = vsmask.f32 3328  ;;  %5232 = vst.msk [vmem:[%s8077_s20 + $0x68] sm:$0xff] %vm792_vm4, %v6341_v58  ;;  %5234 = vst.msk [vmem:[%s8077_s20 + $0xc2] sm:$0xff] %vm792_vm4, %v6341_v58 }
  0x78   : > { %v6176_v20 = vpop.eup %6175  ;;  %v6966_v18 = vpack.c.bf16 %v1041_v15, %v1040_v49  ;;  %v1030_v17 = vmul.f32 %v6174_v57, %v6595_v45  ;;  %v1042_v41 = vmul.f32 %v1029_v6, %v6697_v29  ;;  %6195 = vpow2.f32 %v4952_v39  ;;  %s4901_s5 = sshll.u32 %s533_s22, 2 }
  0x79   : > { %v6178_v13 = vpop.eup %6177  ;;  %v1031_v27 = vmul.f32 %v6176_v20, %v6599_v38  ;;  %6197 = vpow2.f32 %v4953_v52  ;;  %s7116_s23 = scalar_lea.vmem %s8682_s2, %s4901_s5 }
  0x7a   : > { %v6180_v12 = vpop.eup %6179  ;;  %v1089_v61 = vrot.slane %v6966_v18, 1  ;;  %v1123_v45 = vrot.slane %v6966_v18, 6  ;;  %v1043_v48 = vmul.f32 %v1030_v17, %v6709_v14  ;;  %v1032_v5 = vmul.f32 %v6178_v13, %v8710_v11 }
  0x7b   : > { %v6182_v1 = vpop.eup %6181  ;;  %v1044_v37 = vmul.f32 %v1031_v27, %v8711_v30  ;;  %v1033_v38 = vmul.f32 %v6180_v12, %v6653_v53  ;;  %6199 = vpow2.f32 %v4954_v22  ;;  %v8713_v53 = vld [vmem:[#allocation10_spill] sm:$0xff] }
  0x7c   : > { %v6184_v42 = vpop.eup %6183  ;;  %v1090_v49 = vsel %vm800_vm0, %v1087_v2, %v1089_v61  ;;  %v1124_v39 = vsel %vm840_vm1, %v1121_v9, %v1123_v45  ;;  %v6991_v16 = vpack.c.bf16 %v1043_v48, %v1042_v41  ;;  %v1045_v52 = vmul.f32 %v1032_v5, %v8712_v28 }
  0x7d   : > { %v6186_v43 = vpop.eup %6185  ;;  %1099 = vrot.lane.b32.xlu0 %v1090_v49, %s6340_s24  ;;  %1135 = vrot.lane.b32.xlu1 %v1124_v39, %s6339_s19  ;;  %v1046_v7 = vmul.f32 %v1033_v38, %v8713_v53  ;;  %v1286_v3 = vmul.f32 %v6182_v1, %v6766_v25  ;;  %v1287_v15 = vmul.f32 %v6184_v42, %v6777_v23  ;;  %6201 = vpow2.f32 %v4955_v54 }
  0x7e   : > { %v6188_v2 = vpop.eup %6187  ;;  %v1091_v6 = vrot.slane %v6991_v16, 1  ;;  %v1125_v9 = vrot.slane %v6991_v16, 6  ;;  %v1052_v57 = vpack.c.bf16 %v1045_v52, %v1044_v37  ;;  %v1288_v22 = vmul.f32 %v6186_v43, %v6780_v55 }
  0x7f   : > { %v6190_v59 = vpop.eup %6189  ;;  %v1053_v20 = vpack.c.bf16 %v1046_v7, %v1046_v7  ;;  %v1289_v17 = vmul.f32 %v6188_v2, %v6783_v60  ;;  %v1299_v41 = vmul.f32 %v1286_v3, %v6607_v56  ;;  %v1300_v13 = vmul.f32 %v1287_v15, %v6619_v10 }
  0x80   : > { %v6192_v25 = vpop.eup %6191  ;;  %v1092_v23 = vsel %vm800_vm0, %v1089_v61, %v1091_v6  ;;  %v1126_v27 = vsel %vm840_vm1, %v1123_v45, %v1125_v9  ;;  %v1093_v54 = vrot.slane %v1052_v57, 1  ;;  %v1127_v12 = vrot.slane %v1052_v57, 6 }
  0x81   : > { %v6194_v48 = vpop.eup %6193  ;;  %1101 = vrot.lane.b32.xlu0 %v1092_v23, %s6340_s24  ;;  %1137 = vrot.lane.b32.xlu1 %v1126_v27, %s6339_s19  ;;  %v1129_v55 = vrot.slane %v1053_v20, 6  ;;  %v1301_v11 = vmul.f32 %v1288_v22, %v6630_v19  ;;  %v1302_v60 = vmul.f32 %v1289_v17, %v6641_v26  ;;  %v7011_v56 = vpack.c.bf16 %v1300_v13, %v1299_v41 }
  0x82   : > { %v6196_v10 = vpop.eup %6195  ;;  %v1094_v5 = vsel %vm800_vm0, %v1091_v6, %v1093_v54  ;;  %v1128_v61 = vsel %vm840_vm1, %v1125_v9, %v1127_v12  ;;  %v1252_v45 = vadd.f32 1.0, %v6190_v59  ;;  %v1253_v38 = vadd.f32 1.0, %v6194_v48 }
  0x83   : > { %v6198_v1 = vpop.eup %6197  ;;  %v7015_v37 = vpack.c.bf16 %v1302_v60, %v1301_v11  ;;  %v7018_v42 = vadd.f32 %v1194_v32, %v6456_v8  ;;  %v1254_v49 = vadd.f32 1.0, %v6196_v10  ;;  %v4956_v26 = vmul.f32 -1.442695, %v6975_v34 }
  0x84   : > { %6203 = vrcp.f32 %v1252_v45  ;;  %v1255_v19 = vadd.f32 1.0, %v6198_v1  ;;  %v1130_v52 = vsel %vm840_vm1, %v1127_v12, %v1129_v55  ;;  %v1349_v43 = vrot.slane %v7011_v56, 1 }
  0x85   : > { %v6200_v39 = vpop.eup %6199  ;;  %1103 = vrot.lane.b32.xlu0 %v1094_v5, %s6340_s24  ;;  %1139 = vrot.lane.b32.xlu1 %v1128_v61, %s6339_s19  ;;  %v1350_v7 = vrot.slane %v7015_v37, 1  ;;  %6205 = vrcp.f32 %v1253_v38  ;;  %v1063_v32 = vrot.slane %v6897_v47, 4  ;;  %v1065_v3 = vrot.slane %v6909_v31, 4 }
  0x86   : > { %6207 = vrcp.f32 %v1254_v49  ;;  %v1256_v8 = vadd.f32 1.0, %v6200_v39  ;;  %v4957_v2 = vmul.f32 -1.442695, %v7018_v42  ;;  %v1067_v6 = vrot.slane %v6966_v18, 4 }
  0x87   : > { %v6202_v15 = vpop.eup %6201  ;;  %6209 = vrcp.f32 %v1255_v19  ;;  %v1064_v9 = vsel %vm774_vm3, %v1062_v46, %v1063_v32  ;;  %v1066_v57 = vsel %vm774_vm3, %v1063_v32, %v1065_v3  ;;  %v1069_v31 = vrot.slane %v6991_v16, 4 }
  0x88   : > { %6211 = vrcp.f32 %v1256_v8  ;;  %1078 = vst.msk [vmem:[#allocation2 + $0x38] sm:$0xff] %vm792_vm4, %v1064_v9  ;;  %1079 = vst.msk [vmem:[#allocation2 + $0x40] sm:$0xff] %vm792_vm4, %v1066_v57  ;;  %v1068_v47 = vsel %vm774_vm3, %v1065_v3, %v1067_v6  ;;  %v1351_v24 = vsel %vm800_vm0, %v1349_v43, %v1350_v7  ;;  %v1290_v46 = vmul.f32 %v6192_v25, %v6833_v44 }
  0x89   : > { %1105 = vrot.lane.b32.xlu0 %v1093_v54, %s6340_s24  ;;  %1141 = vrot.lane.b32.xlu1 %v1130_v52, %s6339_s19  ;;  %6213 = vpow2.f32 %v4956_v26  ;;  %1080 = vst.msk [vmem:[#allocation2 + $0x48] sm:$0xff] %vm792_vm4, %v1068_v47  ;;  %v1070_v18 = vsel %vm774_vm3, %v1067_v6, %v1069_v31  ;;  %v1257_v16 = vadd.f32 1.0, %v6202_v15  ;;  %v1385_v22 = vrot.slane %v7015_v37, 6 }
  0x8a   : > { %6215 = vpow2.f32 %v4957_v2  ;;  %1082 = vst.msk [vmem:[#allocation2 + $0x58] sm:$0xf] %vm797_vm7, %v1069_v31  ;;  %v1303_v51 = vmul.f32 %v1290_v46, %v6650_v50 }
  0x8b   : > { %1081 = vst.msk [vmem:[#allocation2 + $0x50] sm:$0xff] %vm792_vm4, %v1070_v18  ;;  %6217 = vrcp.f32 %v1257_v16 }
  0x8d   : > { %1360 = vrot.lane.b32.xlu0 %v1351_v24, %s6340_s24 }
  0x8e   : > { %v6204_v59 = vpop.eup %6203 }
  0x8f   : > { %v6206_v20 = vpop.eup %6205  ;;  %v1291_v17 = vmul.f32 %v6204_v59, %v6849_v21 }
  0x90   : > { %v6208_v41 = vpop.eup %6207  ;;  %v1292_v44 = vmul.f32 %v6206_v20, %v6906_v33 }
  0x91   : > { %v6210_v13 = vpop.eup %6209  ;;  %v1304_v25 = vmul.f32 %v1291_v17, %v6661_v62  ;;  %1396 = vrot.lane.b32.xlu0 %v1385_v22, %s6339_s19  ;;  %v1293_v23 = vmul.f32 %v6208_v41, %v6919_v35 }
  0x92   : > { %v6212_v27 = vpop.eup %6211  ;;  %v1305_v54 = vmul.f32 %v1292_v44, %v6670_v63  ;;  %v1294_v12 = vmul.f32 %v6210_v13, %v6929_v36 }
  0x93   : > { %v6214_v48 = vpop.eup %6213  ;;  %v7062_v21 = vpack.c.bf16 %v1304_v25, %v1303_v51  ;;  %v1306_v50 = vmul.f32 %v1293_v23, %v6681_v0  ;;  %v1295_v33 = vmul.f32 %v6212_v27, %v6937_v40  ;;  %v8714_v51 = vld [vmem:[#allocation5_spill] sm:$0xff] }
  0x94   : > { %v1307_v55 = vmul.f32 %v1294_v12, %v6697_v29  ;;  %v1258_v11 = vadd.f32 1.0, %v6214_v48  ;;  %v6216_v62 = vpop.eup %6215  ;;  %v8715_v12 = vld [vmem:[#allocation6_spill] sm:$0xff] }
  0x95   : > { %v1352_v60 = vrot.slane %v7062_v21, 1  ;;  %v1386_v35 = vrot.slane %v7062_v21, 6  ;;  %v7069_v10 = vpack.c.bf16 %v1306_v50, %v1305_v54  ;;  %v1308_v63 = vmul.f32 %v1295_v33, %v6709_v14  ;;  %v6218_v14 = vpop.eup %6217 }
  0x96   : > { %6219 = vrcp.f32 %v1258_v11  ;;  %v1259_v36 = vadd.f32 1.0, %v6216_v62  ;;  %v1296_v26 = vmul.f32 %v6218_v14, %v6964_v4  ;;  %v1330_v31 = vrot.slane %v7062_v21, 4 }
  0x97   : > { %v1353_v0 = vsel %vm800_vm0, %v1350_v7, %v1352_v60  ;;  %v1354_v40 = vrot.slane %v7069_v10, 1  ;;  %v7077_v29 = vpack.c.bf16 %v1308_v63, %v1307_v55  ;;  %v1387_v5 = vsel %vm840_vm1, %v1385_v22, %v1386_v35  ;;  %v5348_v22 = vld [vmem:[%s7116_s23 + $0x10] sm:$0xff]  }
  0x98   : > { %1362 = vrot.lane.b32.xlu1 %v1353_v0, %s6340_s24  ;;  %6221 = vrcp.f32 %v1259_v36  ;;  %v1388_v45 = vrot.slane %v7069_v10, 6  ;;  %v1309_v7 = vmul.f32 %v1296_v26, %v8711_v30  ;;  %v5318_v20 = vunpack.c.l.bf16 %v5348_v22 }
  0x99   : > { %v1355_v61 = vsel %vm800_vm0, %v1352_v60, %v1354_v40  ;;  %v1356_v1 = vrot.slane %v7077_v29, 1  ;;  %v1390_v19 = vrot.slane %v7077_v29, 6  ;;  %v5319_v17 = vunpack.c.h.bf16 %v5348_v22 }
  0x9a   : > { %1364 = vrot.lane.b32.xlu0 %v1355_v61, %s6340_s24  ;;  %v1389_v49 = vsel %vm840_vm1, %v1386_v35, %v1388_v45  ;;  %v1462_v23 = vmul.f32 %v5318_v20, %v8714_v51  ;;  %v1332_v60 = vrot.slane %v7069_v10, 4  ;;  %v5349_v61 = vld [vmem:[%s7116_s23 + $0x18] sm:$0xff]  }
  0x9b   : > { %v1357_v38 = vsel %vm800_vm0, %v1354_v40, %v1356_v1  ;;  %v1391_v52 = vsel %vm840_vm1, %v1388_v45, %v1390_v19  ;;  %v1463_v27 = vmul.f32 %v5319_v17, %v8714_v51  ;;  %v5322_v14 = vunpack.c.l.bf16 %v5349_v61 }
  0x9c   : > { %1398 = vrot.lane.b32.xlu1 %v1387_v5, %s6339_s19  ;;  %v7142_v11 = vadd.f32 %v8715_v12, %v1462_v23  ;;  %v1333_v5 = vsel %vm774_vm3, %v1330_v31, %v1332_v60 }
  0x9d   : > { %v7145_v62 = vadd.f32 %v8715_v12, %v1463_v27  ;;  %1345 = vst.msk [vmem:[#allocation2 + $0x78] sm:$0xff] %vm792_vm4, %v1333_v5 }
  0x9e   : > { %1366 = vrot.lane.b32.xlu0 %v1357_v38, %s6340_s24  ;;  %v4962_v10 = vmul.f32 -1.442695, %v7142_v11 }
  0x9f   : > { %v4963_v38 = vmul.f32 -1.442695, %v7145_v62 }
  0xa0   : > { %v6220_v39 = vpop.eup %6219  ;;  %1400 = vrot.lane.b32.xlu1 %v1389_v49, %s6339_s19  ;;  %v1464_v49 = vmul.f32 %v5322_v14, %v8714_v51 }
  0xa1   : > { %v1297_v43 = vmul.f32 %v6220_v39, %v6975_v34 }
  0xa2   : > { %v6222_v8 = vpop.eup %6221 }
  0xa3   : > { %v1310_v32 = vmul.f32 %v1297_v43, %v8712_v28  ;;  %v1298_v3 = vmul.f32 %v6222_v8, %v7018_v42  ;;  %v1327_v28 = vrot.slane %v7011_v56, 4  ;;  %v5309_v56 = vld [vmem:[%s7116_s23] sm:$0xff]   ;;  %v1334_v8 = vrot.slane %v7077_v29, 4 }
  0xa4   : > { %1402 = vrot.lane.b32.xlu1 %v1391_v52, %s6339_s19  ;;  %v5310_v46 = vunpack.c.l.bf16 %v5309_v56  ;;  %v5311_v18 = vunpack.c.h.bf16 %v5309_v56  ;;  %v7164_v52 = vadd.f32 %v8715_v12, %v1464_v49 }
  0xa5   : > { %v1317_v4 = vpack.c.bf16 %v1310_v32, %v1309_v7  ;;  %v1311_v15 = vmul.f32 %v1298_v3, %v8713_v53  ;;  %v1328_v53 = vrot.slane %v7015_v37, 4  ;;  %1342 = vst.msk [vmem:[#allocation2 + $0x60] sm:$0xf0] %vm790_vm2, %v1327_v28  ;;  %v5347_v37 = vld [vmem:[%s7116_s23 + $0x8] sm:$0xff]  }
  0xa6   : > { %v5314_v16 = vunpack.c.l.bf16 %v5347_v37  ;;  %v5315_v59 = vunpack.c.h.bf16 %v5347_v37  ;;  %v1458_v41 = vmul.f32 %v5310_v46, %v8714_v51  ;;  %v1459_v44 = vmul.f32 %v5311_v18, %v8714_v51  ;;  %1347 = vst.msk [vmem:[#allocation2 + $0x88] sm:$0xf] %vm797_vm7, %v1334_v8 }
  0xa7   : > { %v1358_v2 = vrot.slane %v1317_v4, 1  ;;  %v1392_v6 = vrot.slane %v1317_v4, 6  ;;  %v1318_v9 = vpack.c.bf16 %v1311_v15, %v1311_v15  ;;  %v1329_v42 = vsel %vm774_vm3, %v1327_v28, %v1328_v53 }
  0xa8   : > { %1343 = vst.msk [vmem:[#allocation2 + $0x68] sm:$0xff] %vm792_vm4, %v1329_v42  ;;  %v1331_v24 = vsel %vm774_vm3, %v1328_v53, %v1330_v31  ;;  %v1460_v13 = vmul.f32 %v5314_v16, %v8714_v51  ;;  %v1461_v25 = vmul.f32 %v5315_v59, %v8714_v51  ;;  %v7130_v48 = vadd.f32 %v8715_v12, %v1458_v41  ;;  %v6019_v42 = vld [vmem:[%s8687_s7 + $0x30] sm:$0xff]  }
  0xa9   : > { %v1359_v57 = vsel %vm800_vm0, %v1356_v1, %v1358_v2  ;;  %v1393_v34 = vsel %vm840_vm1, %v1390_v19, %v1392_v6  ;;  %v1394_v47 = vrot.slane %v1318_v9, 6  ;;  %1344 = vst.msk [vmem:[#allocation2 + $0x70] sm:$0xff] %vm792_vm4, %v1331_v24  ;;  %v7133_v21 = vadd.f32 %v8715_v12, %v1459_v44 }
  0xaa   : > { %1368 = vrot.lane.b32.xlu0 %v1359_v57, %s6340_s24  ;;  %1404 = vrot.lane.b32.xlu1 %v1393_v34, %s6339_s19  ;;  %v7136_v50 = vadd.f32 %v8715_v12, %v1460_v13  ;;  %v7139_v55 = vadd.f32 %v8715_v12, %v1461_v25  ;;  %v4958_v35 = vmul.f32 -1.442695, %v7130_v48  ;;  %v5323_v1 = vunpack.c.h.bf16 %v5349_v61 }
  0xab   : > { %v1395_v30 = vsel %vm840_vm1, %v1392_v6, %v1394_v47  ;;  %v4959_v63 = vmul.f32 -1.442695, %v7133_v21  ;;  %v4964_v9 = vmul.f32 -1.442695, %v7164_v52 }
  0xac   : > { %v4960_v36 = vmul.f32 -1.442695, %v7136_v50  ;;  %v4961_v0 = vmul.f32 -1.442695, %v7139_v55  ;;  %6223 = vpow2.f32 %v4958_v35  ;;  %v1465_v19 = vmul.f32 %v5323_v1, %v8714_v51 }
  0xad   : > { %6225 = vpow2.f32 %v4959_v63  ;;  %v6021_v63 = vld [vmem:[%s8687_s7 + $0x38] sm:$0xff]  }
  0xae   : > { %1370 = vrot.lane.b32.xlu0 %v1358_v2, %s6340_s24  ;;  %1406 = vrot.lane.b32.xlu1 %v1395_v30, %s6339_s19  ;;  %6227 = vpow2.f32 %v4960_v36  ;;  %v7167_v43 = vadd.f32 %v8715_v12, %v1465_v19  ;;  %v1335_v2 = vsel %vm774_vm3, %v1332_v60, %v1334_v8 }
  0xaf   : > { %6229 = vpow2.f32 %v4961_v0  ;;  %1346 = vst.msk [vmem:[#allocation2 + $0x80] sm:$0xff] %vm792_vm4, %v1335_v2 }
  0xb0   : > { %6231 = vpow2.f32 %v4962_v10  ;;  %v4965_v37 = vmul.f32 -1.442695, %v7167_v43 }
  0xb1   : > { %6233 = vpow2.f32 %v4963_v38  ;;  %v6022_v38 = vld [vmem:[%s8687_s7 + $0x50] sm:$0xff]  }
  0xb2   : > { %6235 = vpow2.f32 %v4964_v9 }
  0xb6   : > { %v6224_v57 = vpop.eup %6223 }
  0xb7   : > { %v6226_v28 = vpop.eup %6225  ;;  %v1529_v18 = vadd.f32 1.0, %v6224_v57 }
  0xb8   : > { %v6228_v24 = vpop.eup %6227  ;;  %v1530_v16 = vadd.f32 1.0, %v6226_v28 }
  0xb9   : > { %v6230_v22 = vpop.eup %6229  ;;  %v1531_v25 = vadd.f32 1.0, %v6228_v24  ;;  %6237 = vrcp.f32 %v1529_v18 }
  0xba   : > { %v6232_v23 = vpop.eup %6231  ;;  %6239 = vpow2.f32 %v4965_v37  ;;  %v1532_v36 = vadd.f32 1.0, %v6230_v22 }
  0xbb   : > { %6241 = vrcp.f32 %v1530_v16  ;;  %v6234_v0 = vpop.eup %6233  ;;  %v1533_v1 = vadd.f32 1.0, %v6232_v23 }
  0xbc   : > { %6243 = vrcp.f32 %v1531_v25 }
  0xbd   : > { %6245 = vrcp.f32 %v1532_v36 }
  0xbe   : > { %6247 = vrcp.f32 %v1533_v1 }
  0xc1   : > { %v853_v54 = vpop.permute.xlu1 %852 }
  0xc2   : > { %v813_v33 = vpop.permute.xlu0 %812 }
  0xc3   : > { %831 = vst.msk [vmem:[#allocation2] sm:$0xf0] %vm830_vm9, %v813_v33 }
  0xc4   : > { %871 = vst.msk [vmem:[#allocation2] sm:$0xf0] %vm870_vm10, %v853_v54  ;;  %v6020_v54 = vld [vmem:[%s8687_s7 + $0x48] sm:$0xff]  }
  0xc5   : > { %v855_v40 = vpop.permute.xlu1 %854 }
  0xc6   : > { %v815_v45 = vpop.permute.xlu0 %814 }
  0xc7   : > { %833 = vst.msk [vmem:[#allocation2 + $0x8] sm:$0xff] %vm832_vm11, %v815_v45 }
  0xc8   : > { %873 = vst.msk [vmem:[#allocation2 + $0x8] sm:$0xff] %vm872_vm12, %v855_v40 }
  0xc9   : > { %v857_v26 = vpop.permute.xlu1 %856 }
  0xca   : > { %v817_v39 = vpop.permute.xlu0 %816 }
  0xcb   : > { %834 = vst.msk [vmem:[#allocation2 + $0x10] sm:$0xff] %vm832_vm11, %v817_v39  ;;  %v1703_v7 = vld [vmem:[#allocation2] sm:$0xf8]  ;;  %v1534_v39 = vadd.f32 1.0, %v6234_v0 }
  0xcc   : > { %874 = vst.msk [vmem:[#allocation2 + $0x10] sm:$0xff] %vm872_vm12, %v857_v26  ;;  %v7172_v32 = vld [vmem:[#allocation2] sm:$0xf0]  ;;  %v1849_v3 = vshrl.u32 %v1703_v7, 16  ;;  %v1852_v15 = vshll.u32 %v1703_v7, 16 }
  0xcd   : > { %v859_v4 = vpop.permute.xlu1 %858  ;;  %v1729_v34 = vrot.slane %v7172_v32, 4  ;;  %v6023_v26 = vld [vmem:[%s8687_s7 + $0x40] sm:$0xff]   ;;  %6249 = vrcp.f32 %v1534_v39 }
  0xce   : > { %v819_v6 = vpop.permute.xlu0 %818  ;;  %v1851_v47 = vrot.slane %v1849_v3, 3  ;;  %v1854_v30 = vrot.slane %v1852_v15, 4  ;;  %v5350_v3 = vld [vmem:[%s7116_s23 + $0x20] sm:$0xff]  }
  0xcf   : > { %835 = vst.msk [vmem:[#allocation2 + $0x18] sm:$0xff] %vm832_vm11, %v819_v6  ;;  %v7179_v29 = vld [vmem:[#allocation2 + $0x8] sm:$0xff]  ;;  %v6024_v6 = vld [vmem:[%s8687_s7 + $0x58] sm:$0xff]   ;;  %v5326_v57 = vunpack.c.l.bf16 %v5350_v3  ;;  %v5327_v37 = vunpack.c.h.bf16 %v5350_v3  ;;  %v6275_v0 = vld [vmem:[%s8684_s4] sm:$0xff] }
  0xd0   : > { %875 = vst.msk [vmem:[#allocation2 + $0x18] sm:$0xff] %vm872_vm12, %v859_v4  ;;  %v1730_v53 = vrot.slane %v7179_v29, 4  ;;  %v1857_v31 = vshrl.u32 %v7179_v29, 16  ;;  %v1860_v56 = vshll.u32 %v7179_v29, 16  ;;  %v1855_v44 = vor.u32 %v1854_v30, %v1851_v47  ;;  %v6236_v4 = vpop.eup %6235 }
  0xd1   : > { %v861_v46 = vpop.permute.xlu1 %860  ;;  %v6238_v9 = vpop.eup %6237 }
  0xd2   : > { %v1731_v59 = vsel %vm774_vm3, %v1729_v34, %v1730_v53  ;;  %v821_v20 = vpop.permute.xlu0 %820  ;;  %v1859_v17 = vrot.slane %v1857_v31, 3  ;;  %v1862_v41 = vrot.slane %v1860_v56, 4  ;;  %v6240_v34 = vpop.eup %6239 }
  0xd3   : > { %5503 = vmatmul.mubr.msk.bf16.vlgmr.msra.gmra.mrb[0].mxu0 %vm1758_vm13, %v1731_v59  ;;  %836 = vst.msk [vmem:[#allocation2 + $0x20] sm:$0xff] %vm832_vm11, %v821_v20  ;;  %v7197_v13 = vld [vmem:[#allocation2 + $0x10] sm:$0xff]  ;;  %v1535_v20 = vadd.f32 1.0, %v6236_v4 }
  0xd4   : > { %5549 = vmatpush3.bf16.msra.mxu0 %v6019_v42  ;;  %876 = vst.msk [vmem:[#allocation2 + $0x20] sm:$0xff] %vm872_vm12, %v861_v46  ;;  %v1863_v27 = vor.u32 %v1862_v41, %v1859_v17  ;;  %5506 = vmatprep.mubr.msk.bf16.mxu0 %vm6342_vm5, %v6341_v58  ;;  %v1866_v33 = vshrl.u32 %v7197_v13, 16  ;;  %v1869_v60 = vshll.u32 %v7197_v13, 16  ;;  %v1732_v5 = vrot.slane %v7197_v13, 4 }
  0xd5   : > { %v863_v35 = vpop.permute.xlu1 %862  ;;  %5550 = vmatprep.subr.bf16.mxu0 %v6341_v58  ;;  %v1568_v46 = vmul.f32 %v6238_v9, %v7130_v48  ;;  %v1466_v17 = vmul.f32 %v5326_v57, %v8714_v51  ;;  %v2017_v41 = vshrl.u32 %v7172_v32, 16  ;;  %6251 = vrcp.f32 %v1535_v20  ;;  %v5351_v57 = vld [vmem:[%s7116_s23 + $0x28] sm:$0xff]  }
  0xd6   : > { %v1864_v40 = vsel %vm1847_vm14, %v1855_v44, %v1863_v27  ;;  %v823_v61 = vpop.permute.xlu0 %822  ;;  %v1868_v45 = vrot.slane %v1866_v33, 3  ;;  %v1871_v10 = vrot.slane %v1869_v60, 4  ;;  %v1733_v7 = vsel %vm774_vm3, %v1730_v53, %v1732_v5  ;;  %v6242_v53 = vpop.eup %6241 }
  0xd7   : > { %5529 = vmatmul.mubr.msk.bf16.vlgmr.msra.gmra.mrb[0].mxu1 %vm1758_vm13, %v1864_v40  ;;  %838 = vst.msk [vmem:[#allocation2 + $0x28] sm:$0xf] %vm837_vm15, %v823_v61  ;;  %v7219_v14 = vld [vmem:[#allocation2 + $0x18] sm:$0xff]  ;;  %v6244_v18 = vpop.eup %6243  ;;  %v1569_v59 = vmul.f32 %v6242_v53, %v7133_v21  ;;  %v1536_v21 = vadd.f32 1.0, %v6240_v34  ;;  %v1581_v40 = vmul.f32 %v6275_v0, %v1568_v46 }
  0xd8   : > { %5575 = vmatpush3.bf16.msra.mxu1 %v6020_v54  ;;  %5532 = vmatprep.mubr.msk.bf16.mxu1 %vm6342_vm5, %v6341_v58  ;;  %878 = vst.msk [vmem:[#allocation2 + $0x28] sm:$0xf] %vm877_vm6, %v863_v35  ;;  %v1875_v49 = vshrl.u32 %v7219_v14, 16  ;;  %v1878_v19 = vshll.u32 %v7219_v14, 16  ;;  %v1872_v8 = vor.u32 %v1871_v10, %v1868_v45  ;;  %v1734_v30 = vrot.slane %v7219_v14, 4  ;;  %v6246_v48 = vpop.eup %6245 }
  0xd9   : > { %5551 = vmatpush3.bf16.msra.mxu0 %v6021_v63  ;;  %5576 = vmatprep.subr.bf16.mxu1 %v6341_v58  ;;  %v1570_v54 = vmul.f32 %v6244_v18, %v7136_v50  ;;  %v1467_v35 = vmul.f32 %v5327_v37, %v8714_v51  ;;  %v1571_v36 = vmul.f32 %v6246_v48, %v7139_v55  ;;  %v6276_v50 = vld [vmem:[%s8684_s4 + $0x8] sm:$0xff]  ;;  %v6248_v61 = vpop.eup %6247  ;;  %v6277_v55 = vld [vmem:[%s8684_s4 + $0x10] sm:$0xff]  ;;  %6253 = vrcp.f32 %v1536_v21 }
  0xda   : > { %5552 = vmatprep.subr.bf16.mxu0 %v6341_v58  ;;  %v1877_v15 = vrot.slane %v1875_v49, 3  ;;  %v1880_v2 = vrot.slane %v1878_v19, 4  ;;  %v1873_v47 = vsel %vm1847_vm14, %v1863_v27, %v1872_v8  ;;  %v1735_v44 = vsel %vm774_vm3, %v1732_v5, %v1734_v30 }
  0xdb   : > { %5507 = vmatmul.mubr.msk.bf16.gmra.mrb[4].mxu0 %vm1758_vm13, %v1733_v7  ;;  %v7249_v28 = vld [vmem:[#allocation2 + $0x20] sm:$0xff]  ;;  %v1582_v5 = vmul.f32 %v6276_v50, %v1569_v59  ;;  %v6278_v7 = vld [vmem:[%s8684_s4 + $0x18] sm:$0xff]  ;;  %v1572_v4 = vmul.f32 %v6248_v61, %v7142_v11  ;;  %v6280_v59 = vld [vmem:[%s8684_s4 + $0x28] sm:$0xff]  ;;  %v7330_v48 = vrot.slane %v2017_v41, 4 }
  0xdc   : > { %5510 = vmatprep.mubr.msk.bf16.mxu0 %vm6342_vm5, %v6341_v58  ;;  %5577 = vmatpush3.bf16.msra.mxu1 %v6022_v38  ;;  %v7256_v24 = vor.u32 %v1880_v2, %v1877_v15  ;;  %v1884_v22 = vshrl.u32 %v7249_v28, 16  ;;  %v1887_v25 = vshll.u32 %v7249_v28, 16  ;;  %v1736_v27 = vrot.slane %v7249_v28, 4  ;;  %v6250_v15 = vpop.eup %6249  ;;  %v1432_v61 = vld [vmem:[%s7116_s23 + $0x30] sm:$0x3] }
  0xdd   : > { %5553 = vmatpush3.bf16.msra.mxu0 %v6023_v26  ;;  %5578 = vmatprep.subr.bf16.mxu1 %v6341_v58  ;;  %v1583_v38 = vmul.f32 %v6277_v55, %v1570_v54  ;;  %v7291_v26 = vadd.f32 %v8715_v12, %v1466_v17  ;;  %v7299_v3 = vpack.c.bf16 %v1582_v5, %v1581_v40 }
  0xde   : > { %5600 = vmatprep.subr.bf16.mxu0 %v6341_v58  ;;  %v1882_v63 = vsel %vm1847_vm14, %v1872_v8, %v7256_v24  ;;  %v1886_v10 = vrot.slane %v1884_v22, 3  ;;  %v1889_v39 = vrot.slane %v1887_v25, 4  ;;  %v1584_v8 = vmul.f32 %v6278_v7, %v1571_v36 }
  0xdf   : > { %5533 = vmatmul.mubr.msk.bf16.gmra.mrb[4].mxu1 %vm1758_vm13, %v1873_v47  ;;  %v1096_v42 = vpop.permute.xlu0 %1095  ;;  %v7285_v1 = vld [vmem:[#allocation2 + $0x28] sm:$0xf]  ;;  %v1737_v2 = vsel %vm774_vm3, %v1734_v30, %v1736_v27  ;;  %v4966_v9 = vmul.f32 -1.442695, %v7291_v26  ;;  %v1573_v53 = vmul.f32 %v6250_v15, %v7145_v62  ;;  %v1631_v30 = vrot.slane %v7299_v3, 1 }
  0xe0   : > { %1113 = vst.msk [vmem:[#allocation2 + $0x30] sm:$0xf0] %vm830_vm9, %v1096_v42  ;;  %5536 = vmatprep.mubr.msk.bf16.mxu1 %vm6342_vm5, %v6341_v58  ;;  %5579 = vmatpush3.bf16.msra.mxu1 %v6024_v6  ;;  %v7307_v6 = vadd.f32 %v8715_v12, %v1467_v35  ;;  %v1893_v34 = vshrl.u32 %v7285_v1, 16  ;;  %v1896_v11 = vshll.u32 %v7285_v1, 16  ;;  %v7315_v47 = vpack.c.bf16 %v1584_v8, %v1583_v38  ;;  %v6279_v42 = vld [vmem:[%s8684_s4 + $0x20] sm:$0xff] }
  0xe1   : > { %v1098_v16 = vpop.permute.xlu1 %1097  ;;  %5626 = vmatprep.subr.bf16.mxu1 %v6341_v58  ;;  %v1585_v37 = vmul.f32 %v6279_v42, %v1572_v4  ;;  %6255 = vpow2.f32 %v4966_v9  ;;  %v7323_v18 = vor.u32 %v1889_v39, %v1886_v10  ;;  %v1586_v20 = vmul.f32 %v6280_v59, %v1573_v53 }
  0xe2   : > { %1114 = vst.msk [vmem:[#allocation2 + $0x38] sm:$0xff] %vm832_vm11, %v1098_v16  ;;  %v4967_v46 = vmul.f32 -1.442695, %v7307_v6  ;;  %v1632_v16 = vrot.slane %v7315_v47, 1  ;;  %v5330_v62 = vunpack.c.l.bf16 %v5351_v57  ;;  %v1738_v54 = vrot.slane %v7285_v1, 4 }
  0xe3   : > { %5511 = vmatmul.mubr.msk.bf16.gmra.mrb[8].mxu0 %vm1758_vm13, %v1735_v44  ;;  %v1132_v23 = vpop.permute.xlu0 %1131  ;;  %v5331_v44 = vunpack.c.h.bf16 %v5351_v57  ;;  %v1895_v21 = vrot.slane %v1893_v34, 3  ;;  %v1898_v35 = vrot.slane %v1896_v11, 4  ;;  %v7339_v40 = vpack.c.bf16 %v1586_v20, %v1585_v37 }
  0xe4   : > { %1149 = vst.msk [vmem:[#allocation2 + $0x30] sm:$0xf0] %vm870_vm10, %v1132_v23  ;;  %5514 = vmatprep.mubr.msk.bf16.mxu0 %vm6342_vm5, %v6341_v58  ;;  %6257 = vpow2.f32 %v4967_v46  ;;  %v2020_v23 = vshll.u32 %v7172_v32, 16  ;;  %v1633_v0 = vsel %vm800_vm0, %v1631_v30, %v1632_v16  ;;  %v1891_v41 = vsel %vm1847_vm14, %v7256_v24, %v7323_v18 }
  0xe5   : > { %v1134_v45 = vpop.permute.xlu1 %1133  ;;  %1642 = vrot.lane.b32.xlu0 %v1633_v0, %s6340_s24  ;;  %v1667_v32 = vrot.slane %v7315_v47, 6  ;;  %v1468_v5 = vmul.f32 %v5330_v62, %v8714_v51  ;;  %v1634_v39 = vrot.slane %v7339_v40, 1  ;;  %v1469_v24 = vmul.f32 %v5331_v44, %v8714_v51  ;;  %v6282_v62 = vld [vmem:[%s8684_s4 + $0x38] sm:$0xff] }
  0xe6   : > { %1150 = vst.msk [vmem:[#allocation2 + $0x38] sm:$0xff] %vm872_vm12, %v1134_v45  ;;  %v6252_v45 = vpop.eup %6251  ;;  %v2022_v7 = vrot.slane %v2020_v23, 5  ;;  %v2024_v8 = vrot.slane %v1857_v31, 4  ;;  %v2025_v4 = vrot.slane %v1860_v56, 5  ;;  %v1739_v15 = vsel %vm774_vm3, %v1736_v27, %v1738_v54 }
  0xe7   : > { %5537 = vmatmul.mubr.msk.bf16.gmra.mrb[8].mxu1 %vm1758_vm13, %v1882_v63  ;;  %v1899_v9 = vor.u32 %v1898_v35, %v1895_v21  ;;  %v1635_v29 = vsel %vm800_vm0, %v1632_v16, %v1634_v39  ;;  %v1451_v31 = vunpack.c.l.bf16 %v1432_v61  ;;  %v1668_v27 = vrot.slane %v7339_v40, 6 }
  0xe8   : > { %5540 = vmatprep.mubr.msk.bf16.mxu1 %vm6342_vm5, %v6341_v58  ;;  %1644 = vrot.lane.b32.xlu1 %v1635_v29, %s6340_s24  ;;  %v1574_v34 = vmul.f32 %v6252_v45, %v7164_v52  ;;  %v7382_v16 = vadd.f32 %v8715_v12, %v1468_v5  ;;  %v7385_v59 = vadd.f32 %v8715_v12, %v1469_v24 }
  0xe9   : > { %1678 = vrot.lane.b32.xlu0 %v1667_v32, %s6339_s19  ;;  %v1669_v52 = vsel %vm840_vm1, %v1667_v32, %v1668_v27  ;;  %v2023_v23 = vor.u32 %v2022_v7, %v7330_v48  ;;  %v2026_v54 = vor.u32 %v2025_v4, %v2024_v8  ;;  %v1900_v35 = vsel %vm1847_vm14, %v7323_v18, %v1899_v9  ;;  %v6025_v18 = vld [vmem:[%s8687_s7 + $0x60] sm:$0xff]  }
  0xea   : > { %v4968_v61 = vmul.f32 -1.442695, %v7382_v16  ;;  %v2028_v7 = vrot.slane %v1866_v33, 4  ;;  %v2029_v8 = vrot.slane %v1869_v60, 5  ;;  %v4969_v4 = vmul.f32 -1.442695, %v7385_v59 }
  0xeb   : > { %5515 = vmatmul.mubr.msk.bf16.gmra.mrb[12].mxu0 %vm1758_vm13, %v1737_v2  ;;  %v2165_v17 = vld [vmem:[#allocation2 + $0x30] sm:$0xf8]  ;;  %v6254_v2 = vpop.eup %6253  ;;  %v2027_v24 = vsel %vm2015_vm8, %v2023_v23, %v2026_v54 }
  0xec   : > { %5518 = vmatprep.mubr.msk.bf16.mxu0 %vm6342_vm5, %v6341_v58  ;;  %v2179_v36 = vshrl.u32 %v2165_v17, 16  ;;  %v2182_v50 = vshll.u32 %v2165_v17, 16  ;;  %v1575_v11 = vmul.f32 %v6254_v2, %v7167_v43  ;;  %v6256_v53 = vpop.eup %6255  ;;  %v6281_v43 = vld [vmem:[%s8684_s4 + $0x30] sm:$0xff]  ;;  %1680 = vrot.lane.b32.xlu1 %v1669_v52, %s6339_s19  ;;  %v2030_v29 = vor.u32 %v2029_v8, %v2028_v7 }
  0xed   : > { %v7336_v63 = vld [vmem:[#allocation2 + $0x38] sm:$0xff]  ;;  %v1587_v20 = vmul.f32 %v6281_v43, %v1574_v34  ;;  %v1537_v21 = vadd.f32 1.0, %v6256_v53  ;;  %v2032_v53 = vrot.slane %v1875_v49, 4  ;;  %v6029_v52 = vld [vmem:[%s8687_s7 + $0x70] sm:$0xff]  }
  0xee   : > { %v2187_v55 = vshrl.u32 %v7336_v63, 16  ;;  %v2190_v38 = vshll.u32 %v7336_v63, 16  ;;  %v7364_v57 = vrot.slane %v2179_v36, 3  ;;  %v7369_v56 = vrot.slane %v2182_v50, 4  ;;  %v6258_v44 = vpop.eup %6257 }
  0xef   : > { %v1100_v10 = vpop.permute.xlu0 %1099  ;;  %v1136_v1 = vpop.permute.xlu1 %1135  ;;  %5541 = vmatmul.mubr.msk.bf16.gmra.mrb[12].mxu1 %vm1758_vm13, %v1891_v41  ;;  %v1588_v17 = vmul.f32 %v6282_v62, %v1575_v11  ;;  %v1538_v0 = vadd.f32 1.0, %v6258_v44  ;;  %v1470_v41 = vmul.f32 %v8714_v51, %v1451_v31  ;;  %6259 = vrcp.f32 %v1537_v21  ;;  %v6027_v31 = vld [vmem:[%s8687_s7 + $0x68] sm:$0xff]  }
  0xf0   : > { %1115 = vst.msk [vmem:[#allocation2 + $0x40] sm:$0xff] %vm832_vm11, %v1100_v10  ;;  %5544 = vmatprep.mubr.msk.bf16.mxu1 %vm6342_vm5, %v6341_v58  ;;  %v2189_v37 = vrot.slane %v2187_v55, 3  ;;  %v2192_v46 = vrot.slane %v2190_v38, 4  ;;  %v2185_v5 = vor.u32 %v7369_v56, %v7364_v57  ;;  %v6030_v44 = vld [vmem:[%s8687_s7 + $0x88] sm:$0xff]  }
  0xf1   : > { %1151 = vst.msk [vmem:[#allocation2 + $0x40] sm:$0xff] %vm872_vm12, %v1136_v1  ;;  %v7402_v36 = vpack.c.bf16 %v1588_v17, %v1587_v20  ;;  %6261 = vrcp.f32 %v1538_v0  ;;  %v7422_v1 = vadd.f32 %v8715_v12, %v1470_v41 }
  0xf2   : > { %v7408_v48 = vor.u32 %v2192_v46, %v2189_v37  ;;  %6263 = vpow2.f32 %v4968_v61  ;;  %v2031_v46 = vsel %vm2015_vm8, %v2026_v54, %v2030_v29 }
  0xf3   : > { %5519 = vmatmul.mubr.msk.bf16.gmra.mrb[16].mxu0 %vm1758_vm13, %v1739_v15  ;;  %v1102_v30 = vpop.permute.xlu0 %1101  ;;  %v1138_v42 = vpop.permute.xlu1 %1137  ;;  %v1636_v45 = vrot.slane %v7402_v36, 1  ;;  %v1670_v10 = vrot.slane %v7402_v36, 6  ;;  %v4970_v60 = vmul.f32 -1.442695, %v7422_v1  ;;  %6265 = vpow2.f32 %v4969_v4  ;;  %v2007_v4 = vld [vmem:[#allocation2 + $0x28] sm:$0x1f] }
  0xf4   : > { %1116 = vst.msk [vmem:[#allocation2 + $0x48] sm:$0xff] %vm832_vm11, %v1102_v30  ;;  %5554 = vmatprep.mubr.msk.bf16.mxu0 %vm6342_vm5, %v6341_v58  ;;  %v2194_v57 = vsel %vm1847_vm14, %v2185_v5, %v7408_v48  ;;  %v2033_v30 = vrot.slane %v1878_v19, 5  ;;  %v6284_v5 = vld [vmem:[%s8684_s4 + $0x48] sm:$0xff] }
  0xf5   : > { %1152 = vst.msk [vmem:[#allocation2 + $0x48] sm:$0xff] %vm872_vm12, %v1138_v42  ;;  %v1637_v12 = vsel %vm800_vm0, %v1634_v39, %v1636_v45  ;;  %v1671_v9 = vsel %vm840_vm1, %v1668_v27, %v1670_v10  ;;  %v6026_v39 = vld [vmem:[%s8687_s7 + $0x78] sm:$0xff]   ;;  %6267 = vpow2.f32 %v4970_v60  ;;  %v6028_v42 = vld [vmem:[%s8687_s7 + $0x80] sm:$0xff]  }
  0xf6   : > { %1646 = vrot.lane.b32.xlu0 %v1637_v12, %s6340_s24  ;;  %1682 = vrot.lane.b32.xlu1 %v1671_v9, %s6339_s19  ;;  %v7489_v17 = vor.u32 %v2033_v30, %v2032_v53 }
  0xf7   : > { %5545 = vmatmul.mubr.msk.bf16.gmra.mrb[16].mxu1 %vm1758_vm13, %v1900_v35  ;;  %v1104_v50 = vpop.permute.xlu0 %1103  ;;  %v1140_v32 = vpop.permute.xlu1 %1139 }
  0xf8   : > { %1117 = vst.msk [vmem:[#allocation2 + $0x50] sm:$0xff] %vm832_vm11, %v1104_v50  ;;  %5580 = vmatprep.mubr.msk.bf16.mxu1 %vm6342_vm5, %v6341_v58  ;;  %v7417_v51 = vld [vmem:[#allocation2 + $0x40] sm:$0xff] }
  0xf9   : > { %1153 = vst.msk [vmem:[#allocation2 + $0x50] sm:$0xff] %vm872_vm12, %v1140_v32  ;;  %v2196_v15 = vshrl.u32 %v7417_v51, 16  ;;  %v2199_v2 = vshll.u32 %v7417_v51, 16  ;;  %v6260_v37 = vpop.eup %6259  ;;  %v2035_v32 = vsel %vm2015_vm8, %v2030_v29, %v7489_v17 }
  0xfa   : > { %v1576_v20 = vmul.f32 %v6260_v37, %v7291_v26 }
  0xfb   : > { %5555 = vmatmul.mubr.msk.bf16.vlgmr.msra.gmra.mrb[20].mxu0 %vm1758_vm13, %v2027_v24  ;;  %v1106_v13 = vpop.permute.xlu0 %1105  ;;  %v1142_v33 = vpop.permute.xlu1 %1141  ;;  %v2198_v56 = vrot.slane %v2196_v15, 3  ;;  %v2201_v27 = vrot.slane %v2199_v2, 4  ;;  %v2036_v24 = vrot.slane %v1884_v22, 4  ;;  %v2041_v22 = vshrl.u32 %v2007_v4, 16 }
  0xfc   : > { %5601 = vmatpush3.bf16.msra.mxu0 %v6025_v18  ;;  %5558 = vmatprep.mubr.msk.bf16.mxu0 %vm6342_vm5, %v6341_v58  ;;  %1118 = vst.msk [vmem:[#allocation2 + $0x58] sm:$0xf] %vm837_vm15, %v1106_v13  ;;  %v7463_v34 = vld [vmem:[#allocation2 + $0x48] sm:$0xff]  ;;  %v6262_v49 = vpop.eup %6261  ;;  %v2037_v13 = vrot.slane %v1887_v25, 5 }
  0xfd   : > { %1154 = vst.msk [vmem:[#allocation2 + $0x58] sm:$0xf] %vm877_vm6, %v1142_v33  ;;  %5602 = vmatprep.subr.bf16.mxu0 %v6341_v58  ;;  %v7480_v43 = vor.u32 %v2201_v27, %v2198_v56  ;;  %v2205_v14 = vshrl.u32 %v7463_v34, 16  ;;  %v2208_v19 = vshll.u32 %v7463_v34, 16  ;;  %v1577_v23 = vmul.f32 %v6262_v49, %v7307_v6  ;;  %v6264_v26 = vpop.eup %6263  ;;  %v6283_v6 = vld [vmem:[%s8684_s4 + $0x40] sm:$0xff] }
  0xfe   : > { %v1589_v41 = vmul.f32 %v6283_v6, %v1576_v20  ;;  %v6266_v50 = vpop.eup %6265  ;;  %v1539_v12 = vadd.f32 1.0, %v6264_v26  ;;  %v2038_v53 = vor.u32 %v2037_v13, %v2036_v24 }
  0xff   : > { %5581 = vmatmul.mubr.msk.bf16.vlgmr.msra.gmra.mrb[20].mxu1 %vm1758_vm13, %v2194_v57  ;;  %v1361_v11 = vpop.permute.xlu0 %1360  ;;  %v7500_v54 = vsel %vm1847_vm14, %v7408_v48, %v7480_v43  ;;  %v2207_v21 = vrot.slane %v2205_v14, 3  ;;  %v2210_v35 = vrot.slane %v2208_v19, 4  ;;  %v1590_v61 = vmul.f32 %v6284_v5, %v1577_v23  ;;  %v6268_v18 = vpop.eup %6267  ;;  %v2347_v5 = vld [vmem:[#allocation2 + $0x30] sm:$0xf0] }
 0x100   : > { %5627 = vmatpush3.bf16.msra.mxu1 %v6026_v39  ;;  %5584 = vmatprep.mubr.msk.bf16.mxu1 %vm6342_vm5, %v6341_v58  ;;  %1378 = vst.msk [vmem:[#allocation2 + $0x60] sm:$0xf0] %vm830_vm9, %v1361_v11  ;;  %v7506_v0 = vld [vmem:[#allocation2 + $0x50] sm:$0xff]  ;;  %v1540_v57 = vadd.f32 1.0, %v6266_v50  ;;  %6269 = vrcp.f32 %v1539_v12  ;;  %v2044_v39 = vshll.u32 %v2007_v4, 16  ;;  %v2039_v23 = vsel %vm2015_vm8, %v7489_v17, %v2038_v53 }
 0x101   : > { %5603 = vmatpush3.bf16.msra.mxu0 %v6027_v31  ;;  %5628 = vmatprep.subr.bf16.mxu1 %v6341_v58  ;;  %v2214_v7 = vshrl.u32 %v7506_v0, 16  ;;  %v2217_v8 = vshll.u32 %v7506_v0, 16  ;;  %v2211_v9 = vor.u32 %v2210_v35, %v2207_v21  ;;  %v7528_v60 = vpack.c.bf16 %v1590_v61, %v1589_v41 }
 0x102   : > { %5604 = vmatprep.subr.bf16.mxu0 %v6341_v58  ;;  %v1541_v31 = vadd.f32 1.0, %v6268_v18  ;;  %6271 = vrcp.f32 %v1540_v57  ;;  %v2046_v49 = vrot.slane %v2044_v39, 5  ;;  %v2497_v4 = vshrl.u32 %v2347_v5, 16  ;;  %v6285_v57 = vld [vmem:[%s8684_s4 + $0x50] sm:$0xff] }
 0x103   : > { %5559 = vmatmul.mubr.msk.bf16.gmra.mrb[24].mxu0 %vm1758_vm13, %v2031_v46  ;;  %v1397_v62 = vpop.permute.xlu0 %1396  ;;  %v2216_v28 = vrot.slane %v2214_v7, 3  ;;  %v2219_v25 = vrot.slane %v2217_v8, 4  ;;  %v1638_v56 = vrot.slane %v7528_v60, 1  ;;  %v1672_v27 = vrot.slane %v7528_v60, 6 }
 0x104   : > { %5562 = vmatprep.mubr.msk.bf16.mxu0 %vm6342_vm5, %v6341_v58  ;;  %5629 = vmatpush3.bf16.msra.mxu1 %v6028_v42  ;;  %1414 = vst.msk [vmem:[#allocation2 + $0x60] sm:$0xf0] %vm870_vm10, %v1397_v62  ;;  %v2212_v11 = vsel %vm1847_vm14, %v7480_v43, %v2211_v9  ;;  %v7543_v30 = vld [vmem:[#allocation2 + $0x58] sm:$0xf]  ;;  %6273 = vrcp.f32 %v1541_v31  ;;  %v2500_v12 = vshll.u32 %v2347_v5, 16 }
 0x105   : > { %5605 = vmatpush3.bf16.msra.mxu0 %v6029_v52  ;;  %5630 = vmatprep.subr.bf16.mxu1 %v6341_v58  ;;  %v1639_v37 = vsel %vm800_vm0, %v1636_v45, %v1638_v56  ;;  %v1673_v46 = vsel %vm840_vm1, %v1670_v10, %v1672_v27  ;;  %v2043_v52 = vrot.slane %v2041_v22, 4  ;;  %v2220_v62 = vor.u32 %v2219_v25, %v2216_v28  ;;  %v6286_v31 = vld [vmem:[%s8684_s4 + $0x58] sm:$0xff] }
 0x106   : > { %5652 = vmatprep.subr.bf16.mxu0 %v6341_v58  ;;  %1648 = vrot.lane.b32.xlu0 %v1639_v37, %s6340_s24  ;;  %v3545_v45 = vrot.slane %v2187_v55, 4  ;;  %v3546_v10 = vrot.slane %v2190_v38, 5  ;;  %v2226_v26 = vshll.u32 %v7543_v30, 16  ;;  %v3549_v55 = vrot.slane %v2196_v15, 4 }
 0x107   : > { %5585 = vmatmul.mubr.msk.bf16.gmra.mrb[24].mxu1 %vm1758_vm13, %v7500_v54  ;;  %1684 = vrot.lane.b32.xlu1 %v1673_v46, %s6339_s19  ;;  %v3550_v38 = vrot.slane %v2199_v2, 5  ;;  %v2221_v17 = vsel %vm1847_vm14, %v2211_v9, %v2220_v62  ;;  %v2047_v41 = vor.u32 %v2046_v49, %v2043_v52  ;;  %v6031_v52 = vld [vmem:[%s8687_s7 + $0x90] sm:$0xff]  }
 0x108   : > { %5588 = vmatprep.mubr.msk.bf16.mxu1 %vm6342_vm5, %v6341_v58  ;;  %5631 = vmatpush3.bf16.msra.mxu1 %v6030_v44  ;;  %v2223_v44 = vshrl.u32 %v7543_v30, 16  ;;  %v7572_v35 = vor.u32 %v3546_v10, %v3545_v45 }
 0x109   : > { %5678 = vmatprep.subr.bf16.mxu1 %v6341_v58  ;;  %v7582_v24 = vor.u32 %v3550_v38, %v3549_v55  ;;  %v6032_v55 = vld [vmem:[%s8687_s7 + $0xa8] sm:$0xff]  }
 0x10a   : > { %v1363_v33 = vpop.permute.xlu1 %1362  ;;  %v6270_v6 = vpop.eup %6269  ;;  %v2225_v50 = vrot.slane %v2223_v44, 3 }
 0x10b   : > { %5563 = vmatmul.mubr.msk.bf16.gmra.mrb[28].mxu0 %vm1758_vm13, %v2035_v32  ;;  %1379 = vst.msk [vmem:[#allocation2 + $0x68] sm:$0xff] %vm832_vm11, %v1363_v33  ;;  %v2228_v32 = vrot.slane %v2226_v26, 4  ;;  %v1578_v18 = vmul.f32 %v6270_v6, %v7382_v16  ;;  %v7591_v2 = vsel %vm2015_vm8, %v7572_v35, %v7582_v24  ;;  %v2048_v16 = vsel %vm2015_vm8, %v2038_v53, %v2047_v41  ;;  %v6034_v41 = vld [vmem:[%s8687_s7 + $0xb0] sm:$0xff]  }
 0x10c   : > { %5566 = vmatprep.mubr.msk.bf16.mxu0 %vm6342_vm5, %v6341_v58  ;;  %v1365_v29 = vpop.permute.xlu0 %1364  ;;  %v6272_v15 = vpop.eup %6271  ;;  %v2499_v53 = vrot.slane %v2497_v4, 4  ;;  %v7645_v6 = vrot.slane %v7417_v51, 4  ;;  %v6035_v51 = vld [vmem:[%s8687_s7 + $0xa0] sm:$0xff]  }
 0x10d   : > { %1380 = vst.msk [vmem:[#allocation2 + $0x70] sm:$0xff] %vm832_vm11, %v1365_v29  ;;  %v2229_v13 = vor.u32 %v2228_v32, %v2225_v50  ;;  %v1579_v33 = vmul.f32 %v6272_v15, %v7385_v59  ;;  %v1591_v22 = vmul.f32 %v6285_v57, %v1578_v18  ;;  %v2361_v59 = vrot.slane %v2347_v5, 4  ;;  %v6036_v32 = vld [vmem:[%s8687_s7 + $0xb8] sm:$0xff]  }
 0x10e   : > { %v1399_v42 = vpop.permute.xlu1 %1398  ;;  %v6274_v9 = vpop.eup %6273  ;;  %v2366_v5 = vrot.slane %v7463_v34, 4  ;;  %v2513_v18 = vrot.slane %v2208_v19, 5  ;;  %v2516_v19 = vrot.slane %v2214_v7, 4 }
 0x10f   : > { %5589 = vmatmul.mubr.msk.bf16.gmra.mrb[28].mxu1 %vm1758_vm13, %v2212_v11  ;;  %1415 = vst.msk [vmem:[#allocation2 + $0x68] sm:$0xff] %vm872_vm12, %v1399_v42  ;;  %v1592_v28 = vmul.f32 %v6286_v31, %v1579_v33  ;;  %v1580_v25 = vmul.f32 %v6274_v9, %v7422_v1  ;;  %v7606_v11 = vrot.slane %v7336_v63, 4  ;;  %v2502_v42 = vrot.slane %v2500_v12, 5  ;;  %v2488_v9 = vld [vmem:[#allocation2 + $0x58] sm:$0x1f] }
 0x110   : > { %5592 = vmatprep.mubr.msk.bf16.mxu1 %vm6342_vm5, %v6341_v58  ;;  %v1367_v20 = vpop.permute.xlu0 %1366  ;;  %v2230_v37 = vsel %vm1847_vm14, %v2220_v62, %v2229_v13  ;;  %v6287_v62 = vld [vmem:[%s8684_s4 + $0x60] sm:$0xf]  ;;  %v2367_v15 = vsel %vm774_vm3, %v7645_v6, %v2366_v5  ;;  %v2517_v12 = vrot.slane %v2217_v8, 5 }
 0x111   : > { %1381 = vst.msk [vmem:[#allocation2 + $0x78] sm:$0xff] %vm832_vm11, %v1367_v20  ;;  %v1599_v46 = vpack.c.bf16 %v1592_v28, %v1591_v22  ;;  %v1593_v44 = vmul.f32 %v6287_v62, %v1580_v25  ;;  %v2363_v45 = vsel %vm774_vm3, %v2361_v59, %v7606_v11  ;;  %v2503_v10 = vor.u32 %v2502_v42, %v2499_v53 }
 0x112   : > { %v1401_v21 = vpop.permute.xlu1 %1400  ;;  %v7662_v50 = vsel %vm774_vm3, %v7606_v11, %v7645_v6  ;;  %v2518_v57 = vor.u32 %v2517_v12, %v2516_v19  ;;  %v2521_v22 = vshrl.u32 %v2488_v9, 16  ;;  %v2370_v28 = vrot.slane %v7543_v30, 4  ;;  %v6042_v12 = vld [vmem:[%s8687_s7 + $0x28] sm:$0xff]  }
 0x113   : > { %5567 = vmatmul.mubr.msk.bf16.gmra.mrb[32].mxu0 %vm1758_vm13, %v2039_v23  ;;  %1416 = vst.msk [vmem:[#allocation2 + $0x70] sm:$0xff] %vm872_vm12, %v1401_v21  ;;  %v1640_v49 = vrot.slane %v1599_v46, 1  ;;  %v1674_v20 = vrot.slane %v1599_v46, 6  ;;  %v1600_v21 = vpack.c.bf16 %v1593_v44, %v1593_v44  ;;  %v2507_v38 = vsel %vm2015_vm8, %v2503_v10, %v7572_v35 }
 0x114   : > { %5570 = vmatprep.mubr.msk.bf16.mxu0 %vm6342_vm5, %v6341_v58  ;;  %v2523_v25 = vrot.slane %v2521_v22, 4 }
 0x115   : > { %v1641_v23 = vsel %vm800_vm0, %v1638_v56, %v1640_v49  ;;  %v1675_v26 = vsel %vm840_vm1, %v1672_v27, %v1674_v20  ;;  %v6033_v56 = vld [vmem:[%s8687_s7 + $0x98] sm:$0xff]   ;;  %v1676_v27 = vrot.slane %v1600_v21, 6  ;;  %vm3225_vm0 = vcmask 123904  }
 0x116   : > { %v1403_v61 = vpop.permute.xlu1 %1402  ;;  %1650 = vrot.lane.b32.xlu0 %v1641_v23, %s6340_s24  ;;  %1686 = vrot.lane.b32.xlu1 %v1675_v26, %s6339_s19  ;;  %v7700_v13 = vld [vmem:[#allocation2 + $0x68] sm:$0xff]  ;;  %v6037_v23 = vld [vmem:[%s8687_s7 + $0xc0] sm:$0xff]   ;;  %3226 = vst.msk [vmem:[%s8077_s20 + $0x8] sm:$0x3] %vm3225_vm0, %v6341_v58 }
 0x117   : > { %5593 = vmatmul.mubr.msk.bf16.gmra.mrb[32].mxu1 %vm1758_vm13, %v2221_v17  ;;  %1417 = vst.msk [vmem:[#allocation2 + $0x78] sm:$0xff] %vm872_vm12, %v1403_v61  ;;  %v1677_v17 = vsel %vm840_vm1, %v1674_v20, %v1676_v27  ;;  %v2512_v61 = vrot.slane %v2205_v14, 4  ;;  %v2368_v14 = vrot.slane %v7506_v0, 4  ;;  %v2667_v8 = vshrl.u32 %v7700_v13, 16 }
 0x118   : > { %5596 = vmatprep.mubr.msk.bf16.mxu1 %vm6342_vm5, %v6341_v58  ;;  %v2842_v21 = vrot.slane %v7700_v13, 4  ;;  %3228 = vst.msk [vmem:[%s8077_s20 + $0x62] sm:$0x3] %vm3225_vm0, %v6341_v58  ;;  %5233 = vst.msk [vmem:[%s8077_s20 + $0x70] sm:$0x3] %vm3225_vm0, %v6341_v58  ;;  %vm3152_vm1 = vcmask 1045504  }
 0x119   : > { %v2514_v4 = vor.u32 %v2513_v18, %v2512_v61  ;;  %v2369_v33 = vsel %vm774_vm3, %v2366_v5, %v2368_v14  ;;  %v6040_v61 = vld [vmem:[%s8687_s7 + $0x20] sm:$0xff]   ;;  %v6041_v18 = vld [vmem:[%s8687_s7 + $0xd0] sm:$0xff]   ;;  %5235 = vst.msk [vmem:[%s8077_s20 + $0xca] sm:$0x3] %vm3225_vm0, %v6341_v58 }
 0x11a   : > { %1652 = vrot.lane.b32.xlu0 %v1640_v49, %s6340_s24  ;;  %1688 = vrot.lane.b32.xlu1 %v1677_v17, %s6339_s19  ;;  %v7719_v30 = vld [vmem:[#allocation2 + $0x70] sm:$0xff]  ;;  %v6039_v17 = vld [vmem:[%s8687_s7 + $0xc8] sm:$0xff]  }
 0x11b   : > { %5571 = vmatmul.mubr.msk.bf16.gmra.mrb[36].mxu0 %vm1758_vm13, %v2048_v16  ;;  %v2515_v34 = vsel %vm2015_vm8, %v7582_v24, %v2514_v4  ;;  %v2645_v16 = vld [vmem:[#allocation2 + $0x60] sm:$0xf8]  ;;  %v2519_v31 = vsel %vm2015_vm8, %v2514_v4, %v2518_v57  ;;  %v2676_v62 = vshrl.u32 %v7719_v30, 16  ;;  %v2679_v44 = vshll.u32 %v7719_v30, 16 }
 0x11c   : > { %5606 = vmatprep.mubr.msk.bf16.mxu0 %vm6342_vm5, %v6341_v58  ;;  %v1369_v39 = vpop.permute.xlu0 %1368  ;;  %v1405_v29 = vpop.permute.xlu1 %1404  ;;  %v2659_v0 = vshrl.u32 %v2645_v16, 16  ;;  %v2662_v7 = vshll.u32 %v2645_v16, 16  ;;  %v2844_v4 = vrot.slane %v7719_v30, 4 }
 0x11d   : > { %1382 = vst.msk [vmem:[#allocation2 + $0x80] sm:$0xff] %vm832_vm11, %v1369_v39  ;;  %v2524_v39 = vshll.u32 %v2488_v9, 16  ;;  %v1609_v9 = vrot.slane %v7299_v3, 4 }
 0x11e   : > { %1418 = vst.msk [vmem:[#allocation2 + $0x80] sm:$0xff] %vm872_vm12, %v1405_v29  ;;  %v2670_v29 = vshll.u32 %v7700_v13, 16  ;;  %v2661_v53 = vrot.slane %v2659_v0, 3  ;;  %v2664_v42 = vrot.slane %v2662_v7, 4  ;;  %v7742_v27 = vld [vmem:[#allocation2 + $0x78] sm:$0xff]  ;;  %v2845_v16 = vsel %vm774_vm3, %v2842_v21, %v2844_v4 }
 0x11f   : > { %5597 = vmatmul.mubr.msk.bf16.gmra.mrb[36].mxu1 %vm1758_vm13, %v2230_v37  ;;  %v2526_v59 = vrot.slane %v2524_v39, 5  ;;  %v2669_v37 = vrot.slane %v2667_v8, 3  ;;  %v2688_v5 = vshll.u32 %v7742_v27, 16  ;;  %1624 = vst.msk [vmem:[#allocation2 + $0x90] sm:$0xf0] %vm790_vm2, %v1609_v9  ;;  %v1610_v39 = vrot.slane %v7315_v47, 4 }
 0x120   : > { %5632 = vmatprep.mubr.msk.bf16.mxu1 %vm6342_vm5, %v6341_v58  ;;  %v1371_v63 = vpop.permute.xlu0 %1370  ;;  %v1407_v1 = vpop.permute.xlu1 %1406  ;;  %v2672_v46 = vrot.slane %v2670_v29, 4  ;;  %v2846_v7 = vrot.slane %v7742_v27, 4 }
 0x121   : > { %1383 = vst.msk [vmem:[#allocation2 + $0x88] sm:$0xf] %vm837_vm15, %v1371_v63  ;;  %v2527_v63 = vor.u32 %v2526_v59, %v2523_v25  ;;  %v1611_v3 = vsel %vm774_vm3, %v1609_v9, %v1610_v39  ;;  %v1612_v25 = vrot.slane %v7339_v40, 4  ;;  %v6043_v9 = vld [vmem:[%s8687_s7] sm:$0xff]  }
 0x122   : > { %1419 = vst.msk [vmem:[#allocation2 + $0x88] sm:$0xf] %vm877_vm6, %v1407_v1  ;;  %v2665_v1 = vor.u32 %v2664_v42, %v2661_v53  ;;  %v2673_v49 = vor.u32 %v2672_v46, %v2669_v37  ;;  %v2847_v59 = vsel %vm774_vm3, %v2844_v4, %v2846_v7  ;;  %v1616_v4 = vrot.slane %v7528_v60, 4 }
 0x123   : > { %5607 = vmatmul.mubr.msk.bf16.vlgmr.msra.gmra.mrb[40].mxu0 %vm1758_vm13, %v2363_v45  ;;  %v2528_v20 = vsel %vm2015_vm8, %v2518_v57, %v2527_v63  ;;  %v7727_v45 = vld [vmem:[#allocation2 + $0x60] sm:$0xf0]  ;;  %1625 = vst.msk [vmem:[#allocation2 + $0x98] sm:$0xff] %vm792_vm4, %v1611_v3  ;;  %v1613_v46 = vsel %vm774_vm3, %v1610_v39, %v1612_v25  ;;  %v2989_v39 = vrot.slane %v2679_v44, 5  ;;  %v6044_v3 = vld [vmem:[%s8687_s7 + $0x30] sm:$0xff]  }
 0x124   : > { %5653 = vmatpush3.bf16.msra.mxu0 %v6031_v52  ;;  %5610 = vmatprep.mubr.msk.bf16.mxu0 %vm6342_vm5, %v6341_v58  ;;  %v2371_v52 = vsel %vm774_vm3, %v2368_v14, %v2370_v28  ;;  %v2674_v10 = vsel %vm1847_vm14, %v2665_v1, %v2673_v49  ;;  %v2841_v26 = vrot.slane %v7727_v45, 4  ;;  %v2690_v14 = vrot.slane %v2688_v5, 4  ;;  %1626 = vst.msk [vmem:[#allocation2 + $0xa0] sm:$0xff] %vm792_vm4, %v1613_v46 }
 0x125   : > { %5654 = vmatprep.subr.bf16.mxu0 %v6341_v58  ;;  %v7774_v19 = vld [vmem:[#allocation2 + $0x80] sm:$0xff]  ;;  %1629 = vst.msk [vmem:[#allocation2 + $0xb8] sm:$0xf] %vm797_vm7, %v1616_v4 }
 0x126   : > { %v2694_v57 = vshrl.u32 %v7774_v19, 16  ;;  %v2697_v22 = vshll.u32 %v7774_v19, 16  ;;  %v2848_v40 = vrot.slane %v7774_v19, 4  ;;  %v7915_v19 = vld [vmem:[#allocation2 + $0x50] sm:$0xff] }
 0x127   : > { %5633 = vmatmul.mubr.msk.bf16.vlgmr.msra.gmra.mrb[40].mxu1 %vm1758_vm13, %v2507_v38  ;;  %v6038_v38 = vld [vmem:[%s8687_s7 + $0x18] sm:$0xff]  }
 0x128   : > { %5679 = vmatpush3.bf16.msra.mxu1 %v6032_v55  ;;  %5636 = vmatprep.mubr.msk.bf16.mxu1 %vm6342_vm5, %v6341_v58  ;;  %v2678_v55 = vrot.slane %v2676_v62, 3  ;;  %v2699_v28 = vrot.slane %v2697_v22, 4 }
 0x129   : > { %5655 = vmatpush3.bf16.msra.mxu0 %v6033_v56  ;;  %5680 = vmatprep.subr.bf16.mxu1 %v6341_v58  ;;  %v2681_v56 = vrot.slane %v2679_v44, 4  ;;  %v2650_v47 = vld [vmem:[#allocation2 + $0x88] sm:$0xf]  ;;  %v6046_v44 = vld [vmem:[%s8687_s7 + $0x38] sm:$0xff]  }
 0x12a   : > { %5656 = vmatprep.subr.bf16.mxu0 %v6341_v58  ;;  %v2703_v42 = vshrl.u32 %v2650_v47, 16  ;;  %v2706_v37 = vshll.u32 %v2650_v47, 16 }
 0x12b   : > { %5611 = vmatmul.mubr.msk.bf16.gmra.mrb[44].mxu0 %vm1758_vm13, %v7662_v50 }
 0x12c   : > { %5614 = vmatprep.mubr.msk.bf16.mxu0 %vm6342_vm5, %v6341_v58  ;;  %5681 = vmatpush3.bf16.msra.mxu1 %v6034_v41  ;;  %v2843_v41 = vsel %vm774_vm3, %v2841_v26, %v2842_v21  ;;  %v2705_v1 = vrot.slane %v2703_v42, 3  ;;  %v2980_v26 = vshll.u32 %v7727_v45, 16  ;;  %v1614_v21 = vrot.slane %v7402_v36, 4 }
 0x12d   : > { %5657 = vmatpush3.bf16.msra.mxu0 %v6035_v51  ;;  %5682 = vmatprep.subr.bf16.mxu1 %v6341_v58  ;;  %v2682_v51 = vor.u32 %v2681_v56, %v2678_v55  ;;  %v2849_v55 = vsel %vm774_vm3, %v2846_v7, %v2848_v40  ;;  %v2850_v36 = vrot.slane %v2650_v47, 4  ;;  %v6047_v7 = vld [vmem:[%s8687_s7 + $0x10] sm:$0xff]   ;;  %v6048_v47 = vld [vmem:[%s8687_s7 + $0x40] sm:$0xff]  }
 0x12e   : > { %5704 = vmatprep.subr.bf16.mxu0 %v6341_v58 }
 0x12f   : > { %5637 = vmatmul.mubr.msk.bf16.gmra.mrb[44].mxu1 %vm1758_vm13, %v7591_v2 }
 0x130   : > { %5640 = vmatprep.mubr.msk.bf16.mxu1 %vm6342_vm5, %v6341_v58  ;;  %5683 = vmatpush3.bf16.msra.mxu1 %v6036_v32  ;;  %v2685_v32 = vshrl.u32 %v7742_v27, 16  ;;  %v7896_v27 = vld [vmem:[#allocation2 + $0x48] sm:$0xff] }
 0x131   : > { %5730 = vmatprep.subr.bf16.mxu1 %v6341_v58 }
 0x133   : > { %5615 = vmatmul.mubr.msk.bf16.gmra.mrb[48].mxu0 %vm1758_vm13, %v2367_v15  ;;  %v2683_v15 = vsel %vm1847_vm14, %v2673_v49, %v2682_v51  ;;  %v2708_v49 = vrot.slane %v2706_v37, 4 }
 0x134   : > { %5618 = vmatprep.mubr.msk.bf16.mxu0 %vm6342_vm5, %v6341_v58 }
 0x135   : > { %v2709_v56 = vor.u32 %v2708_v49, %v2705_v1 }
 0x137   : > { %5641 = vmatmul.mubr.msk.bf16.gmra.mrb[48].mxu1 %vm1758_vm13, %v2515_v34  ;;  %v2687_v34 = vrot.slane %v2685_v32, 3 }
 0x138   : > { %5644 = vmatprep.mubr.msk.bf16.mxu1 %vm6342_vm5, %v6341_v58 }
 0x13b   : > { %5619 = vmatmul.mubr.msk.bf16.gmra.mrb[52].mxu0 %vm1758_vm13, %v2369_v33  ;;  %v2691_v33 = vor.u32 %v2690_v14, %v2687_v34  ;;  %v2851_v34 = vsel %vm774_vm3, %v2848_v40, %v2850_v36  ;;  %v3261_v40 = vrot.slane %v7915_v19, 4 }
 0x13c   : > { %5622 = vmatprep.mubr.msk.bf16.mxu0 %vm6342_vm5, %v6341_v58 }
 0x13d   : > { %v2692_v0 = vsel %vm1847_vm14, %v2682_v51, %v2691_v33 }
 0x13f   : > { %5645 = vmatmul.mubr.msk.bf16.gmra.mrb[52].mxu1 %vm1758_vm13, %v2519_v31  ;;  %v2696_v31 = vrot.slane %v2694_v57, 3 }
 0x140   : > { %5648 = vmatprep.mubr.msk.bf16.mxu1 %vm6342_vm5, %v6341_v58 }
 0x141   : > { %v2700_v53 = vor.u32 %v2699_v28, %v2696_v31  ;;  %v2992_v31 = vrot.slane %v2685_v32, 4  ;;  %v2993_v28 = vrot.slane %v2688_v5, 5  ;;  %v3259_v5 = vrot.slane %v7896_v27, 4 }
 0x143   : > { %5623 = vmatmul.mubr.msk.bf16.gmra.mrb[56].mxu0 %vm1758_vm13, %v2371_v52  ;;  %v2701_v63 = vsel %vm1847_vm14, %v2691_v33, %v2700_v53  ;;  %v2710_v51 = vsel %vm1847_vm14, %v2700_v53, %v2709_v56  ;;  %v2988_v33 = vrot.slane %v2676_v62, 4  ;;  %v2997_v53 = vrot.slane %v2697_v22, 5 }
 0x144   : > { %5658 = vmatprep.mubr.msk.bf16.mxu0 %vm6342_vm5, %v6341_v58  ;;  %v3260_v46 = vsel %vm774_vm3, %v7645_v6, %v3259_v5 }
 0x145   : > { %v2990_v62 = vor.u32 %v2989_v39, %v2988_v33  ;;  %v6052_v33 = vld [vmem:[%s8687_s7 + $0x68] sm:$0xff]  }
 0x147   : > { %5649 = vmatmul.mubr.msk.bf16.gmra.mrb[56].mxu1 %vm1758_vm13, %v2528_v20 }
 0x148   : > { %5684 = vmatprep.mubr.msk.bf16.mxu1 %vm6342_vm5, %v6341_v58 }
 0x14b   : > { %5659 = vmatmul.mubr.msk.bf16.vlgmr.msra.gmra.mrb[60].mxu0 %vm1758_vm13, %v2674_v10 }
 0x14c   : > { %5705 = vmatpush3.bf16.msra.mxu0 %v6037_v23  ;;  %5662 = vmatprep.mubr.msk.bf16.mxu0 %vm6342_vm5, %v6341_v58  ;;  %v2977_v23 = vshrl.u32 %v7727_v45, 16 }
 0x14d   : > { %5706 = vmatprep.subr.bf16.mxu0 %v6341_v58 }
 0x14e   : > { %v2979_v45 = vrot.slane %v2977_v23, 4  ;;  %v3262_v23 = vsel %vm774_vm3, %v3259_v5, %v3261_v40 }
 0x14f   : > { %5685 = vmatmul.mubr.msk.bf16.vlgmr.msra.gmra.mrb[60].mxu1 %vm1758_vm13, %v2843_v41  ;;  %v2982_v41 = vrot.slane %v2980_v26, 5 }
 0x150   : > { %5731 = vmatpush3.bf16.msra.mxu1 %v6038_v38  ;;  %5688 = vmatprep.mubr.msk.bf16.mxu1 %vm6342_vm5, %v6341_v58  ;;  %v1615_v38 = vsel %vm774_vm3, %v1612_v25, %v1614_v21  ;;  %v2994_v25 = vor.u32 %v2993_v28, %v2992_v31  ;;  %v3410_v31 = vshll.u32 %v7915_v19, 16 }
 0x151   : > { %5707 = vmatpush3.bf16.msra.mxu0 %v6039_v17  ;;  %5732 = vmatprep.subr.bf16.mxu1 %v6341_v58  ;;  %1627 = vst.msk [vmem:[#allocation2 + $0xa8] sm:$0xff] %vm792_vm4, %v1615_v38  ;;  %v2983_v14 = vor.u32 %v2982_v41, %v2979_v45 }
 0x152   : > { %5708 = vmatprep.subr.bf16.mxu0 %v6341_v58  ;;  %v2995_v32 = vsel %vm2015_vm8, %v2990_v62, %v2994_v25 }
 0x153   : > { %5663 = vmatmul.mubr.msk.bf16.gmra.mrb[64].mxu0 %vm1758_vm13, %v2683_v15 }
 0x154   : > { %5666 = vmatprep.mubr.msk.bf16.mxu0 %vm6342_vm5, %v6341_v58  ;;  %5733 = vmatpush3.bf16.msra.mxu1 %v6040_v61  ;;  %v2984_v61 = vrot.slane %v2667_v8, 4  ;;  %v7841_v8 = vld [vmem:[#allocation2 + $0x30] sm:$0xf0] }
 0x155   : > { %5709 = vmatpush3.bf16.msra.mxu0 %v6041_v18  ;;  %5734 = vmatprep.subr.bf16.mxu1 %v6341_v58  ;;  %v2985_v18 = vrot.slane %v2670_v29, 5  ;;  %v1617_v29 = vsel %vm774_vm3, %v1614_v21, %v1616_v4  ;;  %v7926_v21 = vld [vmem:[#allocation2 + $0x58] sm:$0xf]  ;;  %v3538_v45 = vshrl.u32 %v7841_v8, 16  ;;  %v3541_v41 = vshll.u32 %v7841_v8, 16 }
 0x156   : > { %5756 = vmatprep.subr.bf16.mxu0 %v6341_v58  ;;  %1628 = vst.msk [vmem:[#allocation2 + $0xb0] sm:$0xff] %vm792_vm4, %v1617_v29 }
 0x157   : > { %5689 = vmatmul.mubr.msk.bf16.gmra.mrb[64].mxu1 %vm1758_vm13, %v2845_v16  ;;  %v1643_v52 = vpop.permute.xlu0 %1642  ;;  %v3254_v16 = vrot.slane %v7841_v8, 4 }
 0x158   : > { %5692 = vmatprep.mubr.msk.bf16.mxu1 %vm6342_vm5, %v6341_v58  ;;  %5735 = vmatpush3.bf16.msra.mxu1 %v6042_v12  ;;  %1660 = vst.msk [vmem:[#allocation2 + $0x90] sm:$0xf0] %vm830_vm9, %v1643_v52  ;;  %v2986_v12 = vor.u32 %v2985_v18, %v2984_v61  ;;  %v3540_v18 = vrot.slane %v3538_v45, 4  ;;  %v8011_v45 = vld [vmem:[#allocation2 + $0x68] sm:$0xff] }
 0x159   : > { %5782 = vmatprep.subr.bf16.mxu1 %v6341_v58  ;;  %v3256_v30 = vsel %vm774_vm3, %v3254_v16, %v7606_v11  ;;  %v3401_v16 = vshll.u32 %v7896_v27, 16 }
 0x15a   : > { %v1645_v20 = vpop.permute.xlu1 %1644  ;;  %v2987_v60 = vsel %vm2015_vm8, %v2983_v14, %v2986_v12  ;;  %v2991_v11 = vsel %vm2015_vm8, %v2986_v12, %v2990_v62 }
 0x15b   : > { %5667 = vmatmul.mubr.msk.bf16.gmra.mrb[68].mxu0 %vm1758_vm13, %v2692_v0  ;;  %v1679_v10 = vpop.permute.xlu0 %1678  ;;  %1661 = vst.msk [vmem:[#allocation2 + $0x98] sm:$0xff] %vm832_vm11, %v1645_v20  ;;  %v6045_v0 = vld [vmem:[%s8687_s7 + $0x8] sm:$0xff]   ;;  %v3229_v20 = vld [vmem:[#allocation2 + $0x30] sm:$0xf8] }
 0x15c   : > { %5670 = vmatprep.mubr.msk.bf16.mxu0 %vm6342_vm5, %v6341_v58  ;;  %1696 = vst.msk [vmem:[#allocation2 + $0x90] sm:$0xf0] %vm870_vm10, %v1679_v10  ;;  %v3372_v6 = vshrl.u32 %v3229_v20, 16  ;;  %v3375_v10 = vshll.u32 %v3229_v20, 16 }
 0x15e   : > { %v1681_v17 = vpop.permute.xlu1 %1680  ;;  %v3377_v56 = vrot.slane %v3375_v10, 4 }
 0x15f   : > { %5693 = vmatmul.mubr.msk.bf16.gmra.mrb[68].mxu1 %vm1758_vm13, %v2847_v59  ;;  %1697 = vst.msk [vmem:[#allocation2 + $0x98] sm:$0xff] %vm872_vm12, %v1681_v17  ;;  %v2996_v59 = vrot.slane %v2694_v57, 4  ;;  %v3263_v17 = vrot.slane %v7926_v21, 4 }
 0x160   : > { %5696 = vmatprep.mubr.msk.bf16.mxu1 %vm6342_vm5, %v6341_v58 }
 0x161   : > { %v2998_v52 = vor.u32 %v2997_v53, %v2996_v59  ;;  %v3264_v36 = vsel %vm774_vm3, %v3261_v40, %v3263_v17  ;;  %v3412_v59 = vrot.slane %v3410_v31, 4 }
 0x163   : > { %5671 = vmatmul.mubr.msk.bf16.gmra.mrb[72].mxu0 %vm1758_vm13, %v2701_v63  ;;  %v2999_v22 = vsel %vm2015_vm8, %v2994_v25, %v2998_v52 }
 0x164   : > { %5674 = vmatprep.mubr.msk.bf16.mxu0 %vm6342_vm5, %v6341_v58 }
 0x167   : > { %5697 = vmatmul.mubr.msk.bf16.gmra.mrb[72].mxu1 %vm1758_vm13, %v2849_v55  ;;  %v3374_v55 = vrot.slane %v3372_v6, 3 }
 0x168   : > { %5700 = vmatprep.mubr.msk.bf16.mxu1 %vm6342_vm5, %v6341_v58  ;;  %v1647_v15 = vpop.permute.xlu0 %1646  ;;  %v1683_v13 = vpop.permute.xlu1 %1682 }
 0x169   : > { %1662 = vst.msk [vmem:[#allocation2 + $0xa0] sm:$0xff] %vm832_vm11, %v1647_v15  ;;  %v3378_v61 = vor.u32 %v3377_v56, %v3374_v55  ;;  %v3543_v15 = vrot.slane %v3541_v41, 5 }
 0x16a   : > { %1698 = vst.msk [vmem:[#allocation2 + $0xa0] sm:$0xff] %vm872_vm12, %v1683_v13  ;;  %v6050_v13 = vld [vmem:[%s8687_s7 + $0x60] sm:$0xff]  }
 0x16b   : > { %5675 = vmatmul.mubr.msk.bf16.gmra.mrb[76].mxu0 %vm1758_vm13, %v2710_v51  ;;  %v3387_v12 = vsel %vm1847_vm14, %v3378_v61, %v7408_v48  ;;  %v3544_v8 = vor.u32 %v3543_v15, %v3540_v18  ;;  %v6051_v48 = vld [vmem:[%s8687_s7 + $0x50] sm:$0xff]  }
 0x16c   : > { %5710 = vmatprep.mubr.msk.bf16.mxu0 %vm6342_vm5, %v6341_v58 }
 0x16f   : > { %5701 = vmatmul.mubr.msk.bf16.gmra.mrb[76].mxu1 %vm1758_vm13, %v2851_v34  ;;  %v6049_v34 = vld [vmem:[%s8687_s7 + $0x48] sm:$0xff]  }
 0x170   : > { %5736 = vmatprep.mubr.msk.bf16.mxu1 %vm6342_vm5, %v6341_v58 }
 0x173   : > { %5711 = vmatmul.mubr.msk.bf16.vlgmr.msra.gmra.mrb[80].mxu0 %vm1758_vm13, %v2987_v60  ;;  %v3398_v60 = vshrl.u32 %v7896_v27, 16 }
 0x174   : > { %5757 = vmatpush3.bf16.msra.mxu0 %v6043_v9  ;;  %5714 = vmatprep.mubr.msk.bf16.mxu0 %vm6342_vm5, %v6341_v58  ;;  %v3548_v9 = vsel %vm2015_vm8, %v3544_v8, %v7572_v35  ;;  %v6053_v35 = vld [vmem:[%s8687_s7 + $0x58] sm:$0xff]   ;;  %v3707_v8 = vshrl.u32 %v8011_v45, 16 }
 0x175   : > { %5758 = vmatprep.subr.bf16.mxu0 %v6341_v58  ;;  %v3400_v39 = vrot.slane %v3398_v60, 3 }
 0x177   : > { %5737 = vmatmul.mubr.msk.bf16.vlgmr.msra.gmra.mrb[80].mxu1 %vm1758_vm13, %v3256_v30  ;;  %v3407_v30 = vshrl.u32 %v7915_v19, 16 }
 0x178   : > { %5783 = vmatpush3.bf16.msra.mxu1 %v6044_v3  ;;  %5740 = vmatprep.mubr.msk.bf16.mxu1 %vm6342_vm5, %v6341_v58  ;;  %v1649_v42 = vpop.permute.xlu0 %1648  ;;  %v3403_v3 = vrot.slane %v3401_v16, 4 }
 0x179   : > { %5759 = vmatpush3.bf16.msra.mxu0 %v6045_v0  ;;  %5784 = vmatprep.subr.bf16.mxu1 %v6341_v58  ;;  %1663 = vst.msk [vmem:[#allocation2 + $0xa8] sm:$0xff] %vm832_vm11, %v1649_v42  ;;  %v1685_v37 = vpop.permute.xlu1 %1684  ;;  %v6054_v0 = vld [vmem:[%s8687_s7 + $0x70] sm:$0xff]   ;;  %v3409_v5 = vrot.slane %v3407_v30, 3 }
 0x17a   : > { %5760 = vmatprep.subr.bf16.mxu0 %v6341_v58  ;;  %1699 = vst.msk [vmem:[#allocation2 + $0xa8] sm:$0xff] %vm872_vm12, %v1685_v37  ;;  %v3558_v37 = vrot.slane %v3410_v31, 5 }
 0x17b   : > { %5715 = vmatmul.mubr.msk.bf16.gmra.mrb[84].mxu0 %vm1758_vm13, %v2991_v11  ;;  %v3554_v11 = vrot.slane %v3401_v16, 5 }
 0x17c   : > { %5718 = vmatprep.mubr.msk.bf16.mxu0 %vm6342_vm5, %v6341_v58  ;;  %5785 = vmatpush3.bf16.msra.mxu1 %v6046_v44  ;;  %v3404_v44 = vor.u32 %v3403_v3, %v3400_v39  ;;  %v3709_v3 = vrot.slane %v3707_v8, 3 }
 0x17d   : > { %5761 = vmatpush3.bf16.msra.mxu0 %v6047_v7  ;;  %5786 = vmatprep.subr.bf16.mxu1 %v6341_v58  ;;  %v3553_v7 = vrot.slane %v3398_v60, 4 }
 0x17e   : > { %5808 = vmatprep.subr.bf16.mxu0 %v6341_v58  ;;  %v3405_v27 = vsel %vm1847_vm14, %v7480_v43, %v3404_v44  ;;  %v3419_v43 = vshll.u32 %v7926_v21, 16 }
 0x17f   : > { %5741 = vmatmul.mubr.msk.bf16.gmra.mrb[84].mxu1 %vm1758_vm13, %v7662_v50  ;;  %v2968_v50 = vld [vmem:[#allocation2 + $0x88] sm:$0x1f] }
 0x180   : > { %5744 = vmatprep.mubr.msk.bf16.mxu1 %vm6342_vm5, %v6341_v58  ;;  %5787 = vmatpush3.bf16.msra.mxu1 %v6048_v47  ;;  %v3001_v57 = vshrl.u32 %v2968_v50, 16  ;;  %v3004_v63 = vshll.u32 %v2968_v50, 16  ;;  %v3557_v50 = vrot.slane %v3407_v30, 4  ;;  %v8028_v30 = vld [vmem:[#allocation2 + $0x70] sm:$0xff] }
 0x181   : > { %5834 = vmatprep.subr.bf16.mxu1 %v6341_v58 }
 0x182   : > { %v3003_v1 = vrot.slane %v3001_v57, 4  ;;  %v3006_v49 = vrot.slane %v3004_v63, 5  ;;  %v3416_v57 = vshrl.u32 %v7926_v21, 16  ;;  %v3559_v20 = vor.u32 %v3558_v37, %v3557_v50 }
 0x183   : > { %5719 = vmatmul.mubr.msk.bf16.gmra.mrb[88].mxu0 %vm1758_vm13, %v2995_v32  ;;  %v3555_v32 = vor.u32 %v3554_v11, %v3553_v7 }
 0x184   : > { %5722 = vmatprep.mubr.msk.bf16.mxu0 %vm6342_vm5, %v6341_v58  ;;  %v3007_v26 = vor.u32 %v3006_v49, %v3003_v1  ;;  %v3530_v1 = vld [vmem:[#allocation2 + $0x58] sm:$0x1f]  ;;  %v3418_v10 = vrot.slane %v3416_v57, 3 }
 0x185   : > { %v3556_v19 = vsel %vm2015_vm8, %v7582_v24, %v3555_v32  ;;  %v3562_v55 = vshrl.u32 %v3530_v1, 16  ;;  %v3565_v56 = vshll.u32 %v3530_v1, 16  ;;  %v8058_v1 = vld [vmem:[#allocation2 + $0x78] sm:$0xff] }
 0x186   : > { %v3008_v38 = vsel %vm2015_vm8, %v2998_v52, %v3007_v26 }
 0x187   : > { %5745 = vmatmul.mubr.msk.bf16.gmra.mrb[88].mxu1 %vm1758_vm13, %v3260_v46 }
 0x188   : > { %5748 = vmatprep.mubr.msk.bf16.mxu1 %vm6342_vm5, %v6341_v58  ;;  %v1651_v51 = vpop.permute.xlu0 %1650  ;;  %v1687_v4 = vpop.permute.xlu1 %1686 }
 0x189   : > { %1664 = vst.msk [vmem:[#allocation2 + $0xb0] sm:$0xff] %vm832_vm11, %v1651_v51  ;;  %v3560_v51 = vsel %vm2015_vm8, %v3555_v32, %v3559_v20  ;;  %v8039_v32 = vld [vmem:[#allocation2 + $0x60] sm:$0xf0] }
 0x18a   : > { %1700 = vst.msk [vmem:[#allocation2 + $0xb0] sm:$0xff] %vm872_vm12, %v1687_v4  ;;  %v3880_v37 = vrot.slane %v8039_v32, 4 }
 0x18b   : > { %5723 = vmatmul.mubr.msk.bf16.gmra.mrb[92].mxu0 %vm1758_vm13, %v2999_v22  ;;  %v3413_v22 = vor.u32 %v3412_v59, %v3409_v5  ;;  %v3719_v5 = vshll.u32 %v8028_v30, 16 }
 0x18c   : > { %5726 = vmatprep.mubr.msk.bf16.mxu0 %vm6342_vm5, %v6341_v58  ;;  %v1653_v14 = vpop.permute.xlu0 %1652  ;;  %v1689_v29 = vpop.permute.xlu1 %1688 }
 0x18d   : > { %1665 = vst.msk [vmem:[#allocation2 + $0xb8] sm:$0xf] %vm837_vm15, %v1653_v14  ;;  %v3414_v21 = vsel %vm1847_vm14, %v3404_v44, %v3413_v22  ;;  %v3564_v14 = vrot.slane %v3562_v55, 4 }
 0x18e   : > { %1701 = vst.msk [vmem:[#allocation2 + $0xb8] sm:$0xf] %vm877_vm6, %v1689_v29 }
 0x18f   : > { %5749 = vmatmul.mubr.msk.bf16.gmra.mrb[92].mxu1 %vm1758_vm13, %v3262_v23  ;;  %v3421_v23 = vrot.slane %v3419_v43, 4  ;;  %v3881_v43 = vrot.slane %v8011_v45, 4 }
 0x190   : > { %5752 = vmatprep.mubr.msk.bf16.mxu1 %vm6342_vm5, %v6341_v58 }
 0x191   : > { %v3422_v18 = vor.u32 %v3421_v23, %v3418_v10  ;;  %v6057_v23 = vld [vmem:[%s8687_s7 + $0x80] sm:$0xff]  }
 0x193   : > { %5727 = vmatmul.mubr.msk.bf16.gmra.mrb[96].mxu0 %vm1758_vm13, %v3008_v38  ;;  %v3686_v38 = vld [vmem:[#allocation2 + $0x60] sm:$0xf8]  ;;  %v3423_v60 = vsel %vm1847_vm14, %v3413_v22, %v3422_v18  ;;  %v6059_v18 = vld [vmem:[%s8687_s7 + $0x88] sm:$0xff]  }
 0x194   : > { %5762 = vmatprep.mubr.msk.bf16.mxu0 %vm6342_vm5, %v6341_v58  ;;  %v3699_v15 = vshrl.u32 %v3686_v38, 16  ;;  %v3702_v4 = vshll.u32 %v3686_v38, 16  ;;  %v3728_v38 = vshll.u32 %v8058_v1, 16 }
 0x196   : > { %v3701_v16 = vrot.slane %v3699_v15, 3  ;;  %v3704_v39 = vrot.slane %v3702_v4, 4 }
 0x197   : > { %5753 = vmatmul.mubr.msk.bf16.gmra.mrb[96].mxu1 %vm1758_vm13, %v3264_v36 }
 0x198   : > { %5788 = vmatprep.mubr.msk.bf16.mxu1 %vm6342_vm5, %v6341_v58 }
 0x19b   : > { %5763 = vmatmul.mubr.msk.bf16.vlgmr.msra.gmra.mrb[100].mxu0 %vm1758_vm13, %v3387_v12  ;;  %v3567_v12 = vrot.slane %v3565_v56, 5  ;;  %v3725_v56 = vshrl.u32 %v8058_v1, 16 }
 0x19c   : > { %5809 = vmatpush3.bf16.msra.mxu0 %v6049_v34  ;;  %5766 = vmatprep.mubr.msk.bf16.mxu0 %vm6342_vm5, %v6341_v58 }
 0x19d   : > { %5810 = vmatprep.subr.bf16.mxu0 %v6341_v58 }
 0x19f   : > { %5789 = vmatmul.mubr.msk.bf16.vlgmr.msra.gmra.mrb[100].mxu1 %vm1758_vm13, %v3548_v9 }
 0x1a0   : > { %5835 = vmatpush3.bf16.msra.mxu1 %v6050_v13  ;;  %5792 = vmatprep.mubr.msk.bf16.mxu1 %vm6342_vm5, %v6341_v58  ;;  %v3710_v13 = vshll.u32 %v8011_v45, 16 }
 0x1a1   : > { %5811 = vmatpush3.bf16.msra.mxu0 %v6051_v48  ;;  %5836 = vmatprep.subr.bf16.mxu1 %v6341_v58 }
 0x1a2   : > { %5812 = vmatprep.subr.bf16.mxu0 %v6341_v58 }
 0x1a3   : > { %5767 = vmatmul.mubr.msk.bf16.gmra.mrb[104].mxu0 %vm1758_vm13, %v7500_v54 }
 0x1a4   : > { %5770 = vmatprep.mubr.msk.bf16.mxu0 %vm6342_vm5, %v6341_v58  ;;  %5837 = vmatpush3.bf16.msra.mxu1 %v6052_v33 }
 0x1a5   : > { %5813 = vmatpush3.bf16.msra.mxu0 %v6053_v35  ;;  %5838 = vmatprep.subr.bf16.mxu1 %v6341_v58  ;;  %v3568_v35 = vor.u32 %v3567_v12, %v3564_v14  ;;  %v3727_v14 = vrot.slane %v3725_v56, 3  ;;  %v3730_v12 = vrot.slane %v3728_v38, 4 }
 0x1a6   : > { %v1808_v62 = vpop.f32.mrb[0].mxu0  ;;  %5860 = vmatprep.subr.bf16.mxu0 %v6341_v58 }
 0x1a7   : > { %v5504_v54 = vpop.f32.mrb[1].mxu0  ;;  %5793 = vmatmul.mubr.msk.bf16.gmra.mrb[104].mxu1 %vm1758_vm13, %v7591_v2 }
 0x1a8   : > { %v1811_v28 = vpop.f32.mrb[2].mxu0  ;;  %5796 = vmatprep.mubr.msk.bf16.mxu1 %vm6342_vm5, %v6341_v58  ;;  %5839 = vmatpush3.bf16.msra.mxu1 %v6054_v0  ;;  %v3712_v0 = vrot.slane %v3710_v13, 4  ;;  %v3716_v54 = vshrl.u32 %v8028_v30, 16 }
 0x1a9   : > { %v5505_v47 = vpop.f32.mrb[3].mxu0  ;;  %5886 = vmatprep.subr.bf16.mxu1 %v6341_v58 }
 0x1aa   : > { %v1968_v25 = vpop.f32.mrb[0].mxu1  ;;  %v3569_v47 = vsel %vm2015_vm8, %v3559_v20, %v3568_v35  ;;  %v6056_v20 = vld [vmem:[%s8687_s7 + $0x90] sm:$0xff]  }
 0x1ab   : > { %v7993_v53 = vadd.f32 %v1968_v25, %v1808_v62  ;;  %v5530_v42 = vpop.f32.mrb[1].mxu1  ;;  %5771 = vmatmul.mubr.msk.bf16.gmra.mrb[108].mxu0 %vm1758_vm13, %v3405_v27  ;;  %v3705_v25 = vor.u32 %v3704_v39, %v3701_v16  ;;  %v3713_v27 = vor.u32 %v3712_v0, %v3709_v3  ;;  %v6060_v16 = vld [vmem:[%s8687_s7 + $0xa0] sm:$0xff]   ;;  %v3731_v0 = vor.u32 %v3730_v12, %v3727_v14  ;;  %v4163_v12 = vld [vmem:[#allocation2 + $0x90] sm:$0xf8] }
 0x1ac   : > { %v1971_v2 = vpop.f32.mrb[2].mxu1  ;;  %5774 = vmatprep.mubr.msk.bf16.mxu0 %vm6342_vm5, %v6341_v58 }
 0x1ad   : > { %v7998_v46 = vadd.f32 %v1971_v2, %v1811_v28  ;;  %v5531_v52 = vpop.f32.mrb[3].mxu1  ;;  %v6055_v2 = vld [vmem:[%s8687_s7 + $0x78] sm:$0xff]   ;;  %v3714_v57 = vsel %vm1847_vm14, %v3705_v25, %v3713_v27 }
 0x1ae   : > { %v1816_v63 = vpop.f32.mrb[4].mxu0 }
 0x1af   : > { %v5508_v40 = vpop.f32.mrb[5].mxu0  ;;  %5797 = vmatmul.mubr.msk.bf16.gmra.mrb[108].mxu1 %vm1758_vm13, %v3556_v19  ;;  %v3721_v19 = vrot.slane %v3719_v5, 4 }
 0x1b0   : > { %v1819_v49 = vpop.f32.mrb[6].mxu0  ;;  %5800 = vmatprep.mubr.msk.bf16.mxu1 %vm6342_vm5, %v6341_v58 }
 0x1b1   : > { %v5509_v6 = vpop.f32.mrb[7].mxu0 }
 0x1b2   : > { %v1976_v26 = vpop.f32.mrb[4].mxu1 }
 0x1b3   : > { %v8008_v24 = vadd.f32 %v1976_v26, %v1816_v63  ;;  %v5534_v17 = vpop.f32.mrb[5].mxu1  ;;  %5775 = vmatmul.mubr.msk.bf16.gmra.mrb[112].mxu0 %vm1758_vm13, %v3414_v21  ;;  %v3718_v63 = vrot.slane %v3716_v54, 3  ;;  %v3882_v21 = vsel %vm774_vm3, %v3880_v37, %v3881_v43 }
 0x1b4   : > { %v1979_v41 = vpop.f32.mrb[6].mxu1  ;;  %5778 = vmatprep.mubr.msk.bf16.mxu0 %vm6342_vm5, %v6341_v58 }
 0x1b5   : > { %v8016_v36 = vadd.f32 %v1979_v41, %v1819_v49  ;;  %v5535_v61 = vpop.f32.mrb[7].mxu1  ;;  %v3722_v55 = vor.u32 %v3721_v19, %v3718_v63 }
 0x1b6   : > { %v1824_v34 = vpop.f32.mrb[8].mxu0 }
 0x1b7   : > { %v5512_v29 = vpop.f32.mrb[9].mxu0  ;;  %5801 = vmatmul.mubr.msk.bf16.gmra.mrb[112].mxu1 %vm1758_vm13, %v3560_v51  ;;  %v6058_v51 = vld [vmem:[%s8687_s7 + $0x98] sm:$0xff]   ;;  %v3723_v4 = vsel %vm1847_vm14, %v3713_v27, %v3722_v55 }
 0x1b8   : > { %v1827_v48 = vpop.f32.mrb[10].mxu0  ;;  %5804 = vmatprep.mubr.msk.bf16.mxu1 %vm6342_vm5, %v6341_v58 }
 0x1b9   : > { %v5513_v9 = vpop.f32.mrb[11].mxu0 }
 0x1ba   : > { %v1984_v33 = vpop.f32.mrb[8].mxu1  ;;  %v8114_v9 = vld [vmem:[#allocation2 + $0x80] sm:$0xff] }
 0x1bb   : > { %v8030_v62 = vadd.f32 %v1984_v33, %v1824_v34  ;;  %v5538_v44 = vpop.f32.mrb[9].mxu1  ;;  %5779 = vmatmul.mubr.msk.bf16.gmra.mrb[116].mxu0 %vm1758_vm13, %v3423_v60  ;;  %v3883_v34 = vrot.slane %v8028_v30, 4 }
 0x1bc   : > { %v1987_v7 = vpop.f32.mrb[10].mxu1  ;;  %5814 = vmatprep.mubr.msk.bf16.mxu0 %vm6342_vm5, %v6341_v58  ;;  %v3734_v44 = vshrl.u32 %v8114_v9, 16 }
 0x1bd   : > { %v8035_v11 = vadd.f32 %v1987_v7, %v1827_v48  ;;  %v5539_v31 = vpop.f32.mrb[11].mxu1  ;;  %v3884_v3 = vsel %vm774_vm3, %v3881_v43, %v3883_v34  ;;  %v3737_v7 = vshll.u32 %v8114_v9, 16 }
 0x1be   : > { %v1832_v28 = vpop.f32.mrb[12].mxu0 }
 0x1bf   : > { %v5516_v59 = vpop.f32.mrb[13].mxu0  ;;  %5805 = vmatmul.mubr.msk.bf16.gmra.mrb[116].mxu1 %vm1758_vm13, %v3569_v47 }
 0x1c0   : > { %v1835_v42 = vpop.f32.mrb[14].mxu0  ;;  %5840 = vmatprep.mubr.msk.bf16.mxu1 %vm6342_vm5, %v6341_v58  ;;  %v3732_v59 = vsel %vm1847_vm14, %v3722_v55, %v3731_v0 }
 0x1c1   : > { %v5517_v50 = vpop.f32.mrb[15].mxu0 }
 0x1c2   : > { %v1992_v52 = vpop.f32.mrb[12].mxu1  ;;  %v3739_v50 = vrot.slane %v3737_v7, 4 }
 0x1c3   : > { %v8055_v22 = vadd.f32 %v1992_v52, %v1832_v28  ;;  %v5542_v40 = vpop.f32.mrb[13].mxu1  ;;  %5815 = vmatmul.mubr.msk.bf16.vlgmr.msra.gmra.mrb[120].mxu0 %vm1758_vm13, %v3714_v57 }
 0x1c4   : > { %v1995_v49 = vpop.f32.mrb[14].mxu1  ;;  %5861 = vmatpush3.bf16.msra.mxu0 %v6055_v2  ;;  %5818 = vmatprep.mubr.msk.bf16.mxu0 %vm6342_vm5, %v6341_v58  ;;  %v3736_v2 = vrot.slane %v3734_v44, 3 }
 0x1c5   : > { %v8066_v6 = vadd.f32 %v1995_v49, %v1835_v42  ;;  %v5543_v10 = vpop.f32.mrb[15].mxu1  ;;  %5862 = vmatprep.subr.bf16.mxu0 %v6341_v58  ;;  %v3885_v42 = vrot.slane %v8058_v1, 4 }
 0x1c6   : > { %v1840_v26 = vpop.f32.mrb[16].mxu0  ;;  %v3740_v49 = vor.u32 %v3739_v50, %v3736_v2 }
 0x1c7   : > { %v5520_v17 = vpop.f32.mrb[17].mxu0  ;;  %5841 = vmatmul.mubr.msk.bf16.vlgmr.msra.gmra.mrb[120].mxu1 %vm1758_vm13, %v3882_v21  ;;  %v3886_v40 = vsel %vm774_vm3, %v3883_v34, %v3885_v42 }
 0x1c8   : > { %5887 = vmatpush3.bf16.msra.mxu1 %v6056_v20  ;;  %v1843_v41 = vpop.f32.mrb[18].mxu0  ;;  %5844 = vmatprep.mubr.msk.bf16.mxu1 %vm6342_vm5, %v6341_v58 }
 0x1c9   : > { %v5521_v61 = vpop.f32.mrb[19].mxu0  ;;  %5863 = vmatpush3.bf16.msra.mxu0 %v6057_v23  ;;  %5888 = vmatprep.subr.bf16.mxu1 %v6341_v58 }
 0x1ca   : > { %v2000_v15 = vpop.f32.mrb[16].mxu1  ;;  %5864 = vmatprep.subr.bf16.mxu0 %v6341_v58  ;;  %v3887_v61 = vrot.slane %v8114_v9, 4 }
 0x1cb   : > { %v8111_v29 = vadd.f32 %v2000_v15, %v1840_v26  ;;  %v5546_v48 = vpop.f32.mrb[17].mxu1  ;;  %5819 = vmatmul.mubr.msk.bf16.gmra.mrb[124].mxu0 %vm1758_vm13, %v3723_v4 }
 0x1cc   : > { %v2003_v60 = vpop.f32.mrb[18].mxu1  ;;  %5822 = vmatprep.mubr.msk.bf16.mxu0 %vm6342_vm5, %v6341_v58  ;;  %5889 = vmatpush3.bf16.msra.mxu1 %v6058_v51  ;;  %v3741_v51 = vsel %vm1847_vm14, %v3731_v0, %v3740_v49  ;;  %v8174_v48 = vld [vmem:[#allocation2 + $0x98] sm:$0xff] }
 0x1cd   : > { %v8121_v33 = vadd.f32 %v2003_v60, %v1843_v41  ;;  %v5547_v35 = vpop.f32.mrb[19].mxu1  ;;  %5865 = vmatpush3.bf16.msra.mxu0 %v6059_v18  ;;  %5890 = vmatprep.subr.bf16.mxu1 %v6341_v58 }
 0x1ce   : > { %v2116_v39 = vpop.f32.mrb[20].mxu0  ;;  %5912 = vmatprep.subr.bf16.mxu0 %v6341_v58 }
 0x1cf   : > { %v2155_v31 = vadd.f32 %v2116_v39, %v7993_v53  ;;  %v5556_v28 = vpop.f32.mrb[21].mxu0  ;;  %5845 = vmatmul.mubr.msk.bf16.gmra.mrb[124].mxu1 %vm1758_vm13, %v3884_v3  ;;  %v4015_v39 = vshrl.u32 %v8039_v32, 16  ;;  %v4018_v3 = vshll.u32 %v8039_v32, 16 }
 0x1d0   : > { %v2119_v47 = vpop.f32.mrb[22].mxu0  ;;  %5848 = vmatprep.mubr.msk.bf16.mxu1 %vm6342_vm5, %v6341_v58  ;;  %5891 = vmatpush3.bf16.msra.mxu1 %v6060_v16  ;;  %v3888_v16 = vsel %vm774_vm3, %v3885_v42, %v3887_v61 }
 0x1d1   : > { %v2156_v25 = vadd.f32 %v2119_v47, %v7998_v46  ;;  %v5557_v53 = vpop.f32.mrb[23].mxu0  ;;  %5938 = vmatprep.subr.bf16.mxu1 %v6341_v58  ;;  %v8151_v46 = vld [vmem:[#allocation2 + $0x88] sm:$0xf]  ;;  %v4176_v47 = vshrl.u32 %v4163_v12, 16 }
 0x1d2   : > { %v2298_v27 = vpop.f32.mrb[20].mxu1  ;;  %v3743_v20 = vshrl.u32 %v8151_v46, 16  ;;  %v3746_v10 = vshll.u32 %v8151_v46, 16  ;;  %v4184_v53 = vshrl.u32 %v8174_v48, 16  ;;  %v3889_v32 = vrot.slane %v8151_v46, 4 }
 0x1d3   : > { %v8148_v37 = vadd.f32 %v2298_v27, %v2155_v31  ;;  %v5582_v52 = vpop.f32.mrb[21].mxu1  ;;  %5823 = vmatmul.mubr.msk.bf16.gmra.mrb[128].mxu0 %vm1758_vm13, %v3732_v59  ;;  %v4187_v27 = vshll.u32 %v8174_v48, 16  ;;  %v4178_v46 = vrot.slane %v4176_v47, 3 }
 0x1d4   : > { %v2301_v57 = vpop.f32.mrb[22].mxu1  ;;  %5826 = vmatprep.mubr.msk.bf16.mxu0 %vm6342_vm5, %v6341_v58  ;;  %v3745_v18 = vrot.slane %v3743_v20, 3  ;;  %v3748_v15 = vrot.slane %v3746_v10, 4  ;;  %v4017_v52 = vrot.slane %v4015_v39, 4 }
 0x1d5   : > { %v8155_v43 = vadd.f32 %v2301_v57, %v2156_v25  ;;  %v5583_v63 = vpop.f32.mrb[23].mxu1  ;;  %v4179_v25 = vshll.u32 %v4163_v12, 16  ;;  %v4020_v57 = vrot.slane %v4018_v3, 5 }
 0x1d6   : > { %v2124_v19 = vpop.f32.mrb[24].mxu0  ;;  %v3749_v35 = vor.u32 %v3748_v15, %v3745_v18  ;;  %v4023_v63 = vrot.slane %v3710_v13, 5  ;;  %v6061_v18 = vld [vmem:[%s8687_s7 + $0xa8] sm:$0xff]  }
 0x1d7   : > { %v2157_v23 = vadd.f32 %v2124_v19, %v8008_v24  ;;  %v5560_v26 = vpop.f32.mrb[25].mxu0  ;;  %5849 = vmatmul.mubr.msk.bf16.gmra.mrb[128].mxu1 %vm1758_vm13, %v3886_v40  ;;  %v4181_v20 = vrot.slane %v4179_v25, 4 }
 0x1d8   : > { %v2127_v21 = vpop.f32.mrb[26].mxu0  ;;  %5852 = vmatprep.mubr.msk.bf16.mxu1 %vm6342_vm5, %v6341_v58  ;;  %v3750_v50 = vsel %vm1847_vm14, %v3740_v49, %v3749_v35  ;;  %v4189_v49 = vrot.slane %v4187_v27, 4  ;;  %v4021_v26 = vor.u32 %v4020_v57, %v4017_v52 }
 0x1d9   : > { %v2158_v55 = vadd.f32 %v2127_v21, %v8016_v36  ;;  %v5561_v17 = vpop.f32.mrb[27].mxu0  ;;  %v4182_v15 = vor.u32 %v4181_v20, %v4178_v46 }
 0x1da   : > { %v2306_v41 = vpop.f32.mrb[24].mxu1 }
 0x1db   : > { %v8167_v4 = vadd.f32 %v2306_v41, %v2157_v23  ;;  %v5586_v24 = vpop.f32.mrb[25].mxu1  ;;  %5827 = vmatmul.mubr.msk.bf16.gmra.mrb[132].mxu0 %vm1758_vm13, %v3741_v51  ;;  %v3890_v23 = vsel %vm774_vm3, %v3887_v61, %v3889_v32  ;;  %v8206_v41 = vld [vmem:[#allocation2 + $0xa0] sm:$0xff] }
 0x1dc   : > { %v2309_v34 = vpop.f32.mrb[26].mxu1  ;;  %5830 = vmatprep.mubr.msk.bf16.mxu0 %vm6342_vm5, %v6341_v58  ;;  %v4196_v35 = vshll.u32 %v8206_v41, 16 }
 0x1dd   : > { %v8172_v14 = vadd.f32 %v2309_v34, %v2158_v55  ;;  %v5587_v36 = vpop.f32.mrb[27].mxu1 }
 0x1de   : > { %v2132_v60 = vpop.f32.mrb[28].mxu0 }
 0x1df   : > { %v2159_v0 = vadd.f32 %v2132_v60, %v8030_v62  ;;  %v5564_v31 = vpop.f32.mrb[29].mxu0  ;;  %5853 = vmatmul.mubr.msk.bf16.gmra.mrb[132].mxu1 %vm1758_vm13, %v3888_v16  ;;  %v4022_v62 = vrot.slane %v3707_v8, 4  ;;  %v4186_v8 = vrot.slane %v4184_v53, 3  ;;  %v4027_v60 = vrot.slane %v3719_v5, 5 }
 0x1e0   : > { %v2135_v28 = vpop.f32.mrb[30].mxu0  ;;  %5856 = vmatprep.mubr.msk.bf16.mxu1 %vm6342_vm5, %v6341_v58  ;;  %v4193_v16 = vshrl.u32 %v8206_v41, 16  ;;  %v6063_v31 = vld [vmem:[%s8687_s7 + $0xb0] sm:$0xff]  }
 0x1e1   : > { %v2160_v59 = vadd.f32 %v2135_v28, %v8035_v11  ;;  %v5565_v42 = vpop.f32.mrb[31].mxu0  ;;  %v4024_v21 = vor.u32 %v4023_v63, %v4022_v62  ;;  %v4190_v24 = vor.u32 %v4189_v49, %v4186_v8  ;;  %v8242_v62 = vld [vmem:[#allocation2 + $0xa8] sm:$0xff]  ;;  %v4031_v63 = vrot.slane %v3728_v38, 5  ;;  %v6066_v49 = vld [vmem:[%s8687_s7 + $0xd0] sm:$0xff]  }
 0x1e2   : > { %v2314_v2 = vpop.f32.mrb[28].mxu1  ;;  %v4195_v25 = vrot.slane %v4193_v16, 3  ;;  %v4205_v8 = vshll.u32 %v8242_v62, 16 }
 0x1e3   : > { %v8192_v19 = vadd.f32 %v2314_v2, %v2159_v0  ;;  %v5590_v40 = vpop.f32.mrb[29].mxu1  ;;  %5831 = vmatmul.mubr.msk.bf16.gmra.mrb[136].mxu0 %vm1758_vm13, %v3750_v50  ;;  %v4025_v12 = vsel %vm2015_vm8, %v4021_v26, %v4024_v21  ;;  %v4191_v0 = vsel %vm1847_vm14, %v4182_v15, %v4190_v24  ;;  %v6064_v50 = vld [vmem:[%s8687_s7 + $0xc8] sm:$0xff]   ;;  %v8280_v15 = vld [vmem:[#allocation2 + $0xb0] sm:$0xff] }
 0x1e4   : > { %v2317_v11 = vpop.f32.mrb[30].mxu1  ;;  %5866 = vmatprep.mubr.msk.bf16.mxu0 %vm6342_vm5, %v6341_v58  ;;  %v6065_v40 = vld [vmem:[%s8687_s7 + $0xb8] sm:$0xff]  }
 0x1e5   : > { %v8201_v10 = vadd.f32 %v2317_v11, %v2160_v59  ;;  %v5591_v45 = vpop.f32.mrb[31].mxu1  ;;  %v4198_v59 = vrot.slane %v4196_v35, 4 }
 0x1e6   : > { %v2140_v13 = vpop.f32.mrb[32].mxu0 }
 0x1e7   : > { %v2161_v55 = vadd.f32 %v2140_v13, %v8055_v22  ;;  %v5568_v17 = vpop.f32.mrb[33].mxu0  ;;  %5857 = vmatmul.mubr.msk.bf16.gmra.mrb[136].mxu1 %vm1758_vm13, %v3890_v23  ;;  %v4026_v22 = vrot.slane %v3716_v54, 4  ;;  %v6062_v54 = vld [vmem:[%s8687_s7 + $0xc0] sm:$0xff]   ;;  %v4199_v20 = vor.u32 %v4198_v59, %v4195_v25 }
 0x1e8   : > { %v2143_v51 = vpop.f32.mrb[34].mxu0  ;;  %5892 = vmatprep.mubr.msk.bf16.mxu1 %vm6342_vm5, %v6341_v58  ;;  %v4207_v17 = vrot.slane %v4205_v8, 4 }
 0x1e9   : > { %v2162_v61 = vadd.f32 %v2143_v51, %v8066_v6  ;;  %v5569_v34 = vpop.f32.mrb[35].mxu0  ;;  %v4028_v47 = vor.u32 %v4027_v60, %v4026_v22  ;;  %v4200_v26 = vsel %vm1847_vm14, %v4190_v24, %v4199_v20  ;;  %v4034_v22 = vrot.slane %v3734_v44, 4 }
 0x1ea   : > { %v2322_v36 = vpop.f32.mrb[32].mxu1 }
 0x1eb   : > { %v8221_v39 = vadd.f32 %v2322_v36, %v2161_v55  ;;  %v5594_v3 = vpop.f32.mrb[33].mxu1  ;;  %5867 = vmatmul.mubr.msk.bf16.vlgmr.msra.gmra.mrb[140].mxu0 %vm1758_vm13, %v4025_v12  ;;  %v4029_v46 = vsel %vm2015_vm8, %v4024_v21, %v4028_v47  ;;  %v4035_v36 = vrot.slane %v3737_v7, 5 }
 0x1ec   : > { %v2325_v6 = vpop.f32.mrb[34].mxu1  ;;  %5913 = vmatpush3.bf16.msra.mxu0 %v6061_v18  ;;  %5870 = vmatprep.mubr.msk.bf16.mxu0 %vm6342_vm5, %v6341_v58  ;;  %v4211_v3 = vshrl.u32 %v8280_v15, 16 }
 0x1ed   : > { %v8230_v30 = vadd.f32 %v2325_v6, %v2162_v61  ;;  %v5595_v5 = vpop.f32.mrb[35].mxu1  ;;  %5914 = vmatprep.subr.bf16.mxu0 %v6341_v58  ;;  %v4214_v6 = vshll.u32 %v8280_v15, 16  ;;  %v4036_v25 = vor.u32 %v4035_v36, %v4034_v22 }
 0x1ee   : > { %v2148_v28 = vpop.f32.mrb[36].mxu0  ;;  %v4213_v59 = vrot.slane %v4211_v3, 3 }
 0x1ef   : > { %v2163_v42 = vadd.f32 %v2148_v28, %v8111_v29  ;;  %v5572_v32 = vpop.f32.mrb[37].mxu0  ;;  %5893 = vmatmul.mubr.msk.bf16.vlgmr.msra.gmra.mrb[140].mxu1 %vm1758_vm13, %v4191_v0  ;;  %v4030_v29 = vrot.slane %v3725_v56, 4  ;;  %v4007_v0 = vld [vmem:[#allocation2 + $0x88] sm:$0x1f] }
 0x1f0   : > { %5939 = vmatpush3.bf16.msra.mxu1 %v6062_v54  ;;  %v2151_v2 = vpop.f32.mrb[38].mxu0  ;;  %5896 = vmatprep.mubr.msk.bf16.mxu1 %vm6342_vm5, %v6341_v58  ;;  %v4039_v7 = vshrl.u32 %v4007_v0, 16 }
 0x1f1   : > { %v2164_v52 = vadd.f32 %v2151_v2, %v8121_v33  ;;  %v5573_v57 = vpop.f32.mrb[39].mxu0  ;;  %5915 = vmatpush3.bf16.msra.mxu0 %v6063_v31  ;;  %5940 = vmatprep.subr.bf16.mxu1 %v6341_v58  ;;  %v4202_v33 = vshrl.u32 %v8242_v62, 16  ;;  %v4032_v21 = vor.u32 %v4031_v63, %v4030_v29  ;;  %v4042_v31 = vshll.u32 %v4007_v0, 16 }
 0x1f2   : > { %v2330_v11 = vpop.f32.mrb[36].mxu1  ;;  %5916 = vmatprep.subr.bf16.mxu0 %v6341_v58  ;;  %v4041_v63 = vrot.slane %v4039_v7, 4 }
 0x1f3   : > { %v8262_v56 = vadd.f32 %v2330_v11, %v2163_v42  ;;  %v5598_v1 = vpop.f32.mrb[37].mxu1  ;;  %5871 = vmatmul.mubr.msk.bf16.gmra.mrb[144].mxu0 %vm1758_vm13, %v4029_v46  ;;  %v4204_v55 = vrot.slane %v4202_v33, 3  ;;  %v4033_v12 = vsel %vm2015_vm8, %v4028_v47, %v4032_v21  ;;  %v4216_v42 = vrot.slane %v4214_v6, 4 }
 0x1f4   : > { %v2333_v38 = vpop.f32.mrb[38].mxu1  ;;  %5874 = vmatprep.mubr.msk.bf16.mxu0 %vm6342_vm5, %v6341_v58  ;;  %5941 = vmatpush3.bf16.msra.mxu1 %v6064_v50  ;;  %v8306_v50 = vld [vmem:[#allocation2 + $0xb8] sm:$0xf]  ;;  %v4037_v46 = vsel %vm2015_vm8, %v4032_v21, %v4036_v25 }
 0x1f5   : > { %v8270_v45 = vadd.f32 %v2333_v38, %v2164_v52  ;;  %v5599_v13 = vpop.f32.mrb[39].mxu1  ;;  %5917 = vmatpush3.bf16.msra.mxu0 %v6065_v40  ;;  %5942 = vmatprep.subr.bf16.mxu1 %v6341_v58  ;;  %v4208_v60 = vor.u32 %v4207_v17, %v4204_v55  ;;  %v4044_v40 = vrot.slane %v4042_v31, 5  ;;  %v4223_v1 = vshll.u32 %v8306_v50, 16 }
 0x1f6   : > { %v2439_v23 = vpop.f32.mrb[40].mxu0 }
 0x1f7   : > { %v2478_v51 = vadd.f32 %v2439_v23, %v8148_v37  ;;  %v5608_v18 = vpop.f32.mrb[41].mxu0  ;;  %5897 = vmatmul.mubr.msk.bf16.gmra.mrb[144].mxu1 %vm1758_vm13, %v4200_v26  ;;  %v4209_v47 = vsel %vm1847_vm14, %v4199_v20, %v4208_v60  ;;  %v4217_v20 = vor.u32 %v4216_v42, %v4213_v59  ;;  %v4045_v55 = vor.u32 %v4044_v40, %v4041_v63 }
 0x1f8   : > { %v2442_v61 = vpop.f32.mrb[42].mxu0  ;;  %5900 = vmatprep.mubr.msk.bf16.mxu1 %vm6342_vm5, %v6341_v58  ;;  %5943 = vmatpush3.bf16.msra.mxu1 %v6066_v49  ;;  %v4344_v18 = vld [vmem:[#allocation2 + $0x90] sm:$0xf0] }
 0x1f9   : > { %v2479_v24 = vadd.f32 %v2442_v61, %v8155_v43  ;;  %v5609_v34 = vpop.f32.mrb[43].mxu0  ;;  %v4218_v21 = vsel %vm1847_vm14, %v4208_v60, %v4217_v20  ;;  %v4046_v60 = vsel %vm2015_vm8, %v4036_v25, %v4045_v55 }
 0x1fa   : > { %v2596_v37 = vpop.f32.mrb[40].mxu1 }
 0x1fb   : > { %v8292_v54 = vadd.f32 %v2596_v37, %v2478_v51  ;;  %v5634_v5 = vpop.f32.mrb[41].mxu1  ;;  %5875 = vmatmul.mubr.msk.bf16.gmra.mrb[148].mxu0 %vm1758_vm13, %v4033_v12  ;;  %v4225_v51 = vrot.slane %v4223_v1, 4  ;;  %v4492_v37 = vshrl.u32 %v4344_v18, 16 }
 0x1fc   : > { %v2599_v43 = vpop.f32.mrb[42].mxu1  ;;  %5878 = vmatprep.mubr.msk.bf16.mxu0 %vm6342_vm5, %v6341_v58  ;;  %v4495_v5 = vshll.u32 %v4344_v18, 16 }
 0x1fd   : > { %v8297_v9 = vadd.f32 %v2599_v43, %v2479_v24  ;;  %v5635_v44 = vpop.f32.mrb[43].mxu1 }
 0x1fe   : > { %v2447_v28 = vpop.f32.mrb[44].mxu0  ;;  %v4497_v42 = vrot.slane %v4495_v5, 5 }
 0x1ff   : > { %v2480_v32 = vadd.f32 %v2447_v28, %v8167_v4  ;;  %v5612_v2 = vpop.f32.mrb[45].mxu0  ;;  %5901 = vmatmul.mubr.msk.bf16.gmra.mrb[148].mxu1 %vm1758_vm13, %v4209_v47  ;;  %v4220_v4 = vshrl.u32 %v8306_v50, 16  ;;  %v4358_v28 = vrot.slane %v8174_v48, 4  ;;  %v4494_v47 = vrot.slane %v4492_v37, 4 }
 0x200   : > { %v2450_v52 = vpop.f32.mrb[46].mxu0  ;;  %5904 = vmatprep.mubr.msk.bf16.mxu1 %vm6342_vm5, %v6341_v58  ;;  %v4500_v2 = vrot.slane %v4187_v27, 5  ;;  %v4362_v37 = vrot.slane %v8242_v62, 4 }
 0x201   : > { %v2481_v57 = vadd.f32 %v2450_v52, %v8172_v14  ;;  %v5613_v29 = vpop.f32.mrb[47].mxu0  ;;  %v4222_v17 = vrot.slane %v4220_v4, 3 }
 0x202   : > { %v2604_v11 = vpop.f32.mrb[44].mxu1 }
 0x203   : > { %v8314_v38 = vadd.f32 %v2604_v11, %v2480_v32  ;;  %v5638_v49 = vpop.f32.mrb[45].mxu1  ;;  %5879 = vmatmul.mubr.msk.bf16.gmra.mrb[152].mxu0 %vm1758_vm13, %v4037_v46  ;;  %v4226_v0 = vor.u32 %v4225_v51, %v4222_v17  ;;  %v4499_v32 = vrot.slane %v4184_v53, 4 }
 0x204   : > { %v2607_v13 = vpop.f32.mrb[46].mxu1  ;;  %5882 = vmatprep.mubr.msk.bf16.mxu0 %vm6342_vm5, %v6341_v58 }
 0x205   : > { %v8319_v14 = vadd.f32 %v2607_v13, %v2481_v57  ;;  %v5639_v23 = vpop.f32.mrb[47].mxu1  ;;  %v4227_v25 = vsel %vm1847_vm14, %v4217_v20, %v4226_v0  ;;  %v4498_v20 = vor.u32 %v4497_v42, %v4494_v47  ;;  %v4501_v53 = vor.u32 %v4500_v2, %v4499_v32 }
 0x206   : > { %v2455_v26 = vpop.f32.mrb[48].mxu0  ;;  %v4360_v13 = vrot.slane %v8206_v41, 4  ;;  %v4503_v23 = vrot.slane %v4193_v16, 4  ;;  %v4364_v42 = vrot.slane %v8280_v15, 4  ;;  %v4511_v32 = vrot.slane %v4211_v3, 4 }
 0x207   : > { %v2482_v61 = vadd.f32 %v2455_v26, %v8192_v19  ;;  %v5616_v24 = vpop.f32.mrb[49].mxu0  ;;  %5905 = vmatmul.mubr.msk.bf16.gmra.mrb[152].mxu1 %vm1758_vm13, %v4218_v21  ;;  %v4504_v26 = vrot.slane %v4196_v35, 5  ;;  %v4512_v2 = vrot.slane %v4214_v6, 5 }
 0x208   : > { %v2458_v34 = vpop.f32.mrb[50].mxu0  ;;  %5908 = vmatprep.mubr.msk.bf16.mxu1 %vm6342_vm5, %v6341_v58  ;;  %v4361_v24 = vsel %vm774_vm3, %v4358_v28, %v4360_v13 }
 0x209   : > { %v2483_v22 = vadd.f32 %v2458_v34, %v8201_v10  ;;  %v5617_v36 = vpop.f32.mrb[51].mxu0  ;;  %v4357_v10 = vrot.slane %v4344_v18, 4  ;;  %v4505_v34 = vor.u32 %v4504_v26, %v4503_v23  ;;  %v4513_v3 = vor.u32 %v4512_v2, %v4511_v32 }
 0x20a   : > { %v2612_v12 = vpop.f32.mrb[48].mxu1 }
 0x20b   : > { %v8328_v43 = vadd.f32 %v2612_v12, %v2482_v61  ;;  %v5642_v44 = vpop.f32.mrb[49].mxu1  ;;  %5883 = vmatmul.mubr.msk.bf16.gmra.mrb[156].mxu0 %vm1758_vm13, %v4046_v60  ;;  %v4359_v46 = vsel %vm774_vm3, %v4357_v10, %v4358_v28  ;;  %v4507_v12 = vrot.slane %v4202_v33, 4  ;;  %v4508_v60 = vrot.slane %v4205_v8, 5 }
 0x20c   : > { %v2615_v19 = vpop.f32.mrb[50].mxu1  ;;  %5918 = vmatprep.mubr.msk.bf16.mxu0 %vm6342_vm5, %v6341_v58  ;;  %v4363_v28 = vsel %vm774_vm3, %v4360_v13, %v4362_v37 }
 0x20d   : > { %v8333_v7 = vadd.f32 %v2615_v19, %v2483_v22  ;;  %v5643_v31 = vpop.f32.mrb[51].mxu1  ;;  %v4509_v47 = vor.u32 %v4508_v60, %v4507_v12 }
 0x20e   : > { %v2463_v59 = vpop.f32.mrb[52].mxu0 }
 0x20f   : > { %v2484_v52 = vadd.f32 %v2463_v59, %v8221_v39  ;;  %v5620_v57 = vpop.f32.mrb[53].mxu0  ;;  %5909 = vmatmul.mubr.msk.bf16.gmra.mrb[156].mxu1 %vm1758_vm13, %v4227_v25 }
 0x210   : > { %v2466_v29 = vpop.f32.mrb[54].mxu0  ;;  %5944 = vmatprep.mubr.msk.bf16.mxu1 %vm6342_vm5, %v6341_v58 }
 0x211   : > { %v2485_v63 = vadd.f32 %v2466_v29, %v8230_v30  ;;  %v5621_v40 = vpop.f32.mrb[55].mxu0  ;;  %v4502_v30 = vsel %vm2015_vm8, %v4498_v20, %v4501_v53  ;;  %v4484_v29 = vld [vmem:[#allocation2 + $0xb8] sm:$0x1f]  ;;  %v4365_v20 = vsel %vm774_vm3, %v4362_v37, %v4364_v42 }
 0x212   : > { %v2620_v11 = vpop.f32.mrb[52].mxu1  ;;  %v4519_v15 = vshll.u32 %v4484_v29, 16 }
 0x213   : > { %v8347_v4 = vadd.f32 %v2620_v11, %v2484_v52  ;;  %v5646_v48 = vpop.f32.mrb[53].mxu1  ;;  %5919 = vmatmul.mubr.msk.bf16.vlgmr.msra.gmra.mrb[160].mxu0 %vm1758_vm13, %v4359_v46 }
 0x214   : > { %v2623_v27 = vpop.f32.mrb[54].mxu1  ;;  %5922 = vmatprep.mubr.msk.bf16.mxu0 %vm6342_vm5, %v6341_v58  ;;  %v4521_v23 = vrot.slane %v4519_v15, 5 }
 0x215   : > { %v8352_v39 = vadd.f32 %v2623_v27, %v2485_v63  ;;  %v5647_v1 = vpop.f32.mrb[55].mxu1 }
 0x216   : > { %v2471_v49 = vpop.f32.mrb[56].mxu0 }
 0x217   : > { %v2486_v21 = vadd.f32 %v2471_v49, %v8262_v56  ;;  %v5624_v55 = vpop.f32.mrb[57].mxu0  ;;  %5945 = vmatmul.mubr.msk.bf16.vlgmr.msra.gmra.mrb[160].mxu1 %vm1758_vm13, %v4502_v30  ;;  %v4514_v49 = vsel %vm2015_vm8, %v4509_v47, %v4513_v3  ;;  %v4366_v30 = vrot.slane %v8306_v50, 4 }
 0x218   : > { %v2474_v17 = vpop.f32.mrb[58].mxu0  ;;  %5948 = vmatprep.mubr.msk.bf16.mxu1 %vm6342_vm5, %v6341_v58 }
 0x219   : > { %v2487_v51 = vadd.f32 %v2474_v17, %v8270_v45  ;;  %v5625_v18 = vpop.f32.mrb[59].mxu0  ;;  %v4506_v45 = vsel %vm2015_vm8, %v4501_v53, %v4505_v34  ;;  %v4516_v53 = vshrl.u32 %v4484_v29, 16 }
 0x21a   : > { %v2628_v61 = vpop.f32.mrb[56].mxu1 }
 0x21b   : > { %v8366_v16 = vadd.f32 %v2628_v61, %v2486_v21  ;;  %v5650_v41 = vpop.f32.mrb[57].mxu1  ;;  %5923 = vmatmul.mubr.msk.bf16.gmra.mrb[164].mxu0 %vm1758_vm13, %v4361_v24  ;;  %v4518_v13 = vrot.slane %v4516_v53, 4  ;;  %v4367_v61 = vsel %vm774_vm3, %v4364_v42, %v4366_v30  ;;  %v6288_v42 = vld [vmem:[%s8684_s4 + $0x8] sm:$0xff] }
 0x21c   : > { %v2631_v35 = vpop.f32.mrb[58].mxu1  ;;  %5926 = vmatprep.mubr.msk.bf16.mxu0 %vm6342_vm5, %v6341_v58  ;;  %v3153_v32 = vrot.slane %v6288_v42, 2 }
 0x21d   : > { %v8371_v56 = vadd.f32 %v2631_v35, %v2487_v51  ;;  %v5651_v22 = vpop.f32.mrb[59].mxu1  ;;  %v4522_v24 = vor.u32 %v4521_v23, %v4518_v13  ;;  %v3195_v13 = vld [vmem:[%s8457_s26 + $0x12] sm:$0xff] }
 0x21e   : > { %v2778_v36 = vpop.f32.mrb[60].mxu0 }
 0x21f   : > { %v2817_v0 = vadd.f32 %v2778_v36, %v8292_v54  ;;  %v5660_v5 = vpop.f32.mrb[61].mxu0  ;;  %5949 = vmatmul.mubr.msk.bf16.gmra.mrb[164].mxu1 %vm1758_vm13, %v4506_v45  ;;  %v4523_v36 = vsel %vm2015_vm8, %v4513_v3, %v4522_v24 }
 0x220   : > { %v2781_v44 = vpop.f32.mrb[62].mxu0  ;;  %5952 = vmatprep.mubr.msk.bf16.mxu1 %vm6342_vm5, %v6341_v58 }
 0x221   : > { %v2818_v19 = vadd.f32 %v2781_v44, %v8297_v9  ;;  %v5661_v31 = vpop.f32.mrb[63].mxu0  ;;  %v4510_v9 = vsel %vm2015_vm8, %v4505_v34, %v4509_v47 }
 0x222   : > { %v2919_v10 = vpop.f32.mrb[60].mxu1 }
 0x223   : > { %v8385_v33 = vadd.f32 %v2919_v10, %v2817_v0  ;;  %v5686_v62 = vpop.f32.mrb[61].mxu1  ;;  %5927 = vmatmul.mubr.msk.bf16.gmra.mrb[168].mxu0 %vm1758_vm13, %v4363_v28 }
 0x224   : > { %v2922_v8 = vpop.f32.mrb[62].mxu1  ;;  %5930 = vmatprep.mubr.msk.bf16.mxu0 %vm6342_vm5, %v6341_v58 }
 0x225   : > { %v8390_v54 = vadd.f32 %v2922_v8, %v2818_v19  ;;  %v5687_v59 = vpop.f32.mrb[63].mxu1 }
 0x226   : > { %v2786_v25 = vpop.f32.mrb[64].mxu0 }
 0x227   : > { %v2819_v52 = vadd.f32 %v2786_v25, %v8314_v38  ;;  %v5664_v57 = vpop.f32.mrb[65].mxu0  ;;  %5953 = vmatmul.mubr.msk.bf16.gmra.mrb[168].mxu1 %vm1758_vm13, %v4510_v9 }
 0x228   : > { %v2789_v63 = vpop.f32.mrb[66].mxu0  ;;  %5956 = vmatprep.mubr.msk.bf16.mxu1 %vm6342_vm5, %v6341_v58  ;;  %v8447_v57 = vld [vmem:[%s8688_s8] ss:$0 sm:$0xff] }
 0x229   : > { %v2820_v40 = vadd.f32 %v2789_v63, %v8319_v14  ;;  %v5665_v11 = vpop.f32.mrb[67].mxu0  ;;  %v6290_v63 = vld [vmem:[%s8684_s4 + $0x18] sm:$0xff] }
 0x22a   : > { %v2927_v46 = vpop.f32.mrb[64].mxu1 }
 0x22b   : > { %v8404_v6 = vadd.f32 %v2927_v46, %v2819_v52  ;;  %v5690_v38 = vpop.f32.mrb[65].mxu1  ;;  %5931 = vmatmul.mubr.msk.bf16.gmra.mrb[172].mxu0 %vm1758_vm13, %v4365_v20 }
 0x22c   : > { %v2930_v48 = vpop.f32.mrb[66].mxu1  ;;  %5934 = vmatprep.mubr.msk.bf16.mxu0 %vm6342_vm5, %v6341_v58 }
 0x22d   : > { %v8409_v27 = vadd.f32 %v2930_v48, %v2820_v40  ;;  %v5691_v1 = vpop.f32.mrb[67].mxu1  ;;  %v3156_v40 = vrot.slane %v6290_v63, 2  ;;  %v3194_v48 = vld [vmem:[%s8457_s26 + $0xa] sm:$0xff] }
 0x22e   : > { %v2794_v14 = vpop.f32.mrb[68].mxu0  ;;  %v3198_v63 = vld [vmem:[%s8457_s26 + $0x2a] sm:$0xff] }
 0x22f   : > { %v2821_v26 = vadd.f32 %v2794_v14, %v8328_v43  ;;  %v5668_v21 = vpop.f32.mrb[69].mxu0  ;;  %5957 = vmatmul.mubr.msk.bf16.gmra.mrb[172].mxu1 %vm1758_vm13, %v4514_v49 }
 0x230   : > { %v2797_v55 = vpop.f32.mrb[70].mxu0  ;;  %5960 = vmatprep.mubr.msk.bf16.mxu1 %vm6342_vm5, %v6341_v58 }
 0x231   : > { %v2822_v17 = vadd.f32 %v2797_v55, %v8333_v7  ;;  %v5669_v51 = vpop.f32.mrb[71].mxu0 }
 0x232   : > { %v2935_v18 = vpop.f32.mrb[68].mxu1 }
 0x233   : > { %v8419_v34 = vadd.f32 %v2935_v18, %v2821_v26  ;;  %v5694_v50 = vpop.f32.mrb[69].mxu1  ;;  %5935 = vmatmul.mubr.msk.bf16.gmra.mrb[176].mxu0 %vm1758_vm13, %v4367_v61  ;;  %v6292_v18 = vld [vmem:[%s8684_s4 + $0x28] sm:$0xff] }
 0x234   : > { %v2938_v43 = vpop.f32.mrb[70].mxu1  ;;  %v3160_v61 = vrot.slane %v6292_v18, 2 }
 0x235   : > { %v8422_v41 = vadd.f32 %v2938_v43, %v2822_v17  ;;  %v5695_v35 = vpop.f32.mrb[71].mxu1 }
 0x236   : > { %v2802_v22 = vpop.f32.mrb[72].mxu0 }
 0x237   : > { %v2823_v58 = vadd.f32 %v2802_v22, %v8347_v4  ;;  %v5672_v7 = vpop.f32.mrb[73].mxu0  ;;  %5961 = vmatmul.mubr.msk.bf16.gmra.mrb[176].mxu1 %vm1758_vm13, %v4523_v36 }
 0x238   : > { %v2805_v45 = vpop.f32.mrb[74].mxu0 }
 0x239   : > { %v2824_v37 = vadd.f32 %v2805_v45, %v8352_v39  ;;  %v5673_v12 = vpop.f32.mrb[75].mxu0  ;;  %v3196_v45 = vld [vmem:[%s8457_s26 + $0x1a] sm:$0xff] }
 0x23a   : > { %v2943_v60 = vpop.f32.mrb[72].mxu1 }
 0x23b   : > { %v8428_v0 = vadd.f32 %v2943_v60, %v2823_v58  ;;  %v5698_v5 = vpop.f32.mrb[73].mxu1 }
 0x23c   : > { %v2946_v44 = vpop.f32.mrb[74].mxu1 }
 0x23d   : > { %v8430_v19 = vadd.f32 %v2946_v44, %v2824_v37  ;;  %v5699_v31 = vpop.f32.mrb[75].mxu1  ;;  %v3197_v44 = vld [vmem:[%s8457_s26 + $0x22] sm:$0xff] }
 0x23e   : > { %v2810_v10 = vpop.f32.mrb[76].mxu0 }
 0x23f   : > { %v2825_v28 = vadd.f32 %v2810_v10, %v8366_v16  ;;  %v5676_v47 = vpop.f32.mrb[77].mxu0  ;;  %v6289_v16 = vld [vmem:[%s8684_s4 + $0x10] sm:$0xff] }
 0x240   : > { %v2813_v4 = vpop.f32.mrb[78].mxu0  ;;  %v3154_v2 = vrot.slane %v6289_v16, 2 }
 0x241   : > { %v2826_v62 = vadd.f32 %v2813_v4, %v8371_v56  ;;  %v5677_v8 = vpop.f32.mrb[79].mxu0 }
 0x242   : > { %v2951_v59 = vpop.f32.mrb[76].mxu1  ;;  %v8461_v20 = vsel %vm3152_vm1, %v3153_v32, %v3154_v2  ;;  %v8467_v1 = vsel %vm3152_vm1, %v3154_v2, %v3156_v40  ;;  %v6294_v8 = vld [vmem:[%s8684_s4 + $0x38] sm:$0xff] }
 0x243   : > { %v8434_v39 = vadd.f32 %v2951_v59, %v2825_v28  ;;  %v5702_v25 = vpop.f32.mrb[77].mxu1  ;;  %v3164_v59 = vrot.slane %v6294_v8, 2 }
 0x244   : > { %v2954_v9 = vpop.f32.mrb[78].mxu1 }
 0x245   : > { %v8442_v52 = vadd.f32 %v2954_v9, %v2826_v62  ;;  %v5703_v56 = vpop.f32.mrb[79].mxu1 }
 0x246   : > { %v3076_v29 = vpop.f32.mrb[80].mxu0 }
 0x247   : > { %v3115_v11 = vadd.f32 %v3076_v29, %v8385_v33  ;;  %v5712_v46 = vpop.f32.mrb[81].mxu0 }
 0x248   : > { %v3079_v3 = vpop.f32.mrb[82].mxu0 }
 0x249   : > { %v3131_v53 = vadd.f32 %v8447_v57, %v3115_v11  ;;  %v3116_v15 = vadd.f32 %v3079_v3, %v8390_v54  ;;  %v5713_v38 = vpop.f32.mrb[83].mxu0  ;;  %v6291_v54 = vld [vmem:[%s8684_s4 + $0x20] sm:$0xff] }
 0x24a   : > { %v8469_v14 = vpop.f32.mrb[80].mxu1  ;;  %v3158_v26 = vrot.slane %v6291_v54, 2 }
 0x24b   : > { %v3184_v49 = vmul.f32 %v8461_v20, %v3131_v53  ;;  %v3132_v33 = vadd.f32 %v8447_v57, %v3116_v15  ;;  %v5738_v30 = vpop.f32.mrb[81].mxu1  ;;  %v3199_v53 = vld [vmem:[%s8457_s26 + $0x32] sm:$0xff] }
 0x24c   : > { %v8474_v23 = vpop.f32.mrb[82].mxu1  ;;  %v8487_v35 = vsel %vm3152_vm1, %v3156_v40, %v3158_v26  ;;  %v8495_v37 = vsel %vm3152_vm1, %v3158_v26, %v3160_v61 }
 0x24d   : > { %v3204_v21 = vadd.f32 %v3194_v48, %v3184_v49  ;;  %v3185_v55 = vmul.f32 %v8467_v1, %v3132_v33  ;;  %v5739_v17 = vpop.f32.mrb[83].mxu1 }
 0x24e   : > { %v3084_v51 = vpop.f32.mrb[84].mxu0 }
 0x24f   : > { %3214 = vst.msk [vmem:[%s8077_s20 + $0xa] sm:$0xff] %vm792_vm4, %v3204_v21  ;;  %v3205_v24 = vadd.f32 %v3195_v13, %v3185_v55  ;;  %v3117_v50 = vadd.f32 %v3084_v51, %v8404_v6  ;;  %v5716_v43 = vpop.f32.mrb[85].mxu0  ;;  %v6296_v13 = vld [vmem:[%s8684_s4 + $0x48] sm:$0xff] }
 0x250   : > { %v3087_v22 = vpop.f32.mrb[86].mxu0  ;;  %v3168_v54 = vrot.slane %v6296_v13, 2 }
 0x251   : > { %3215 = vst.msk [vmem:[%s8077_s20 + $0x12] sm:$0xff] %vm792_vm4, %v3205_v24  ;;  %v3133_v36 = vadd.f32 %v8447_v57, %v3117_v50  ;;  %v3118_v58 = vadd.f32 %v3087_v22, %v8409_v27  ;;  %v5717_v7 = vpop.f32.mrb[87].mxu0  ;;  %v6293_v27 = vld [vmem:[%s8684_s4 + $0x30] sm:$0xff]  ;;  %v3200_v50 = vld [vmem:[%s8457_s26 + $0x3a] sm:$0xff] }
 0x252   : > { %v8497_v12 = vpop.f32.mrb[84].mxu1  ;;  %v3162_v10 = vrot.slane %v6293_v27, 2  ;;  %v3201_v7 = vld [vmem:[%s8457_s26 + $0x42] sm:$0xff] }
 0x253   : > { %v3186_v6 = vmul.f32 %v8487_v35, %v3133_v36  ;;  %v3134_v60 = vadd.f32 %v8447_v57, %v3118_v58  ;;  %v5742_v5 = vpop.f32.mrb[85].mxu1 }
 0x254   : > { %v8502_v31 = vpop.f32.mrb[86].mxu1  ;;  %v8515_v32 = vsel %vm3152_vm1, %v3160_v61, %v3162_v10  ;;  %v8523_v40 = vsel %vm3152_vm1, %v3162_v10, %v3164_v59  ;;  %v6298_v10 = vld [vmem:[%s8684_s4 + $0x58] sm:$0xff] }
 0x255   : > { %v3206_v28 = vadd.f32 %v3196_v45, %v3186_v6  ;;  %v3187_v47 = vmul.f32 %v8495_v37, %v3134_v60  ;;  %v5743_v4 = vpop.f32.mrb[87].mxu1 }
 0x256   : > { %v3092_v62 = vpop.f32.mrb[88].mxu0 }
 0x257   : > { %3216 = vst.msk [vmem:[%s8077_s20 + $0x1a] sm:$0xff] %vm792_vm4, %v3206_v28  ;;  %v3207_v25 = vadd.f32 %v3197_v44, %v3187_v47  ;;  %v3119_v9 = vadd.f32 %v3092_v62, %v8419_v34  ;;  %v5720_v42 = vpop.f32.mrb[89].mxu0  ;;  %v3172_v28 = vrot.slane %v6298_v10, 2 }
 0x258   : > { %v3095_v16 = vpop.f32.mrb[90].mxu0 }
 0x259   : > { %3217 = vst.msk [vmem:[%s8077_s20 + $0x22] sm:$0xff] %vm792_vm4, %v3207_v25  ;;  %v3135_v2 = vadd.f32 %v8447_v57, %v3119_v9  ;;  %v3120_v56 = vadd.f32 %v3095_v16, %v8422_v41  ;;  %v5721_v29 = vpop.f32.mrb[91].mxu0  ;;  %v6295_v41 = vld [vmem:[%s8684_s4 + $0x40] sm:$0xff]  ;;  %v3202_v16 = vld [vmem:[%s8457_s26 + $0x4a] sm:$0xff] }
 0x25a   : > { %v8525_v11 = vpop.f32.mrb[88].mxu1  ;;  %v3166_v38 = vrot.slane %v6295_v41, 2 }
 0x25b   : > { %v3188_v34 = vmul.f32 %v8515_v32, %v3135_v2  ;;  %v3136_v46 = vadd.f32 %v8447_v57, %v3120_v56  ;;  %v5746_v3 = vpop.f32.mrb[89].mxu1 }
 0x25c   : > { %v8530_v15 = vpop.f32.mrb[90].mxu1  ;;  %v8543_v17 = vsel %vm3152_vm1, %v3164_v59, %v3166_v38  ;;  %v8551_v43 = vsel %vm3152_vm1, %v3166_v38, %v3168_v54 }
 0x25d   : > { %v3208_v48 = vadd.f32 %v3198_v63, %v3188_v34  ;;  %v3189_v49 = vmul.f32 %v8523_v40, %v3136_v46  ;;  %v5747_v33 = vpop.f32.mrb[91].mxu1  ;;  %v3203_v34 = vld [vmem:[%s8457_s26 + $0x52] sm:$0xff] }
 0x25e   : > { %v3100_v30 = vpop.f32.mrb[92].mxu0 }
 0x25f   : > { %3218 = vst.msk [vmem:[%s8077_s20 + $0x2a] sm:$0xff] %vm792_vm4, %v3208_v48  ;;  %v3209_v26 = vadd.f32 %v3199_v53, %v3189_v49  ;;  %v3121_v21 = vadd.f32 %v3100_v30, %v8428_v0  ;;  %v5724_v55 = vpop.f32.mrb[93].mxu0 }
 0x260   : > { %v3103_v51 = vpop.f32.mrb[94].mxu0 }
 0x261   : > { %3219 = vst.msk [vmem:[%s8077_s20 + $0x32] sm:$0xff] %vm792_vm4, %v3209_v26  ;;  %v3137_v18 = vadd.f32 %v8447_v57, %v3121_v21  ;;  %v3122_v61 = vadd.f32 %v3103_v51, %v8430_v19  ;;  %v5725_v24 = vpop.f32.mrb[95].mxu0  ;;  %v6297_v19 = vld [vmem:[%s8684_s4 + $0x50] sm:$0xff] }
 0x262   : > { %v8553_v22 = vpop.f32.mrb[92].mxu1  ;;  %v3170_v6 = vrot.slane %v6297_v19, 2 }
 0x263   : > { %v3190_v0 = vmul.f32 %v8543_v17, %v3137_v18  ;;  %v3138_v36 = vadd.f32 %v8447_v57, %v3122_v61  ;;  %v5750_v58 = vpop.f32.mrb[93].mxu1 }
 0x264   : > { %v8558_v45 = vpop.f32.mrb[94].mxu1  ;;  %v8571_v8 = vsel %vm3152_vm1, %v3168_v54, %v3170_v6  ;;  %v8579_v2 = vsel %vm3152_vm1, %v3170_v6, %v3172_v28 }
 0x265   : > { %v3210_v60 = vadd.f32 %v3200_v50, %v3190_v0  ;;  %v3191_v5 = vmul.f32 %v8551_v43, %v3138_v36  ;;  %v5751_v44 = vpop.f32.mrb[95].mxu1 }
 0x266   : > { %v3108_v27 = vpop.f32.mrb[96].mxu0 }
 0x267   : > { %3220 = vst.msk [vmem:[%s8077_s20 + $0x3a] sm:$0xff] %vm792_vm4, %v3210_v60  ;;  %v3211_v47 = vadd.f32 %v3201_v7, %v3191_v5  ;;  %v3123_v4 = vadd.f32 %v3108_v27, %v8434_v39  ;;  %v5728_v62 = vpop.f32.mrb[97].mxu0 }
 0x268   : > { %v3111_v59 = vpop.f32.mrb[98].mxu0 }
 0x269   : > { %3221 = vst.msk [vmem:[%s8077_s20 + $0x42] sm:$0xff] %vm792_vm4, %v3211_v47  ;;  %v3139_v25 = vadd.f32 %v8447_v57, %v3123_v4  ;;  %v3124_v9 = vadd.f32 %v3111_v59, %v8442_v52  ;;  %v5729_v42 = vpop.f32.mrb[99].mxu0 }
 0x26a   : > { %v3364_v56 = vpop.f32.mrb[96].mxu1 }
 0x26b   : > { %v3192_v39 = vmul.f32 %v8571_v8, %v3139_v25  ;;  %v3140_v29 = vadd.f32 %v8447_v57, %v3124_v9  ;;  %v5754_v63 = vpop.f32.mrb[97].mxu1 }
 0x26c   : > { %v3367_v46 = vpop.f32.mrb[98].mxu1 }
 0x26d   : > { %v3212_v3 = vadd.f32 %v3202_v16, %v3192_v39  ;;  %v3193_v53 = vmul.f32 %v8579_v2, %v3140_v29  ;;  %v5755_v41 = vpop.f32.mrb[99].mxu1 }
 0x26e   : > { %v3491_v38 = vpop.f32.mrb[100].mxu0 }
 0x26f   : > { %3222 = vst.msk [vmem:[%s8077_s20 + $0x4a] sm:$0xff] %vm792_vm4, %v3212_v3  ;;  %v3213_v52 = vadd.f32 %v3203_v34, %v3193_v53  ;;  %v3492_v48 = vadd.f32 %v3491_v38, %v8469_v14  ;;  %v5764_v49 = vpop.f32.mrb[101].mxu0 }
 0x270   : > { %v3494_v33 = vpop.f32.mrb[102].mxu0 }
 0x271   : > { %3223 = vst.msk [vmem:[%s8077_s20 + $0x52] sm:$0xff] %vm792_vm4, %v3213_v52  ;;  %v3495_v30 = vadd.f32 %v3494_v33, %v8474_v23  ;;  %v5765_v13 = vpop.f32.mrb[103].mxu0 }
 0x272   : > { %v3637_v54 = vpop.f32.mrb[100].mxu1 }
 0x273   : > { %v3676_v26 = vadd.f32 %v3637_v54, %v3492_v48  ;;  %v5790_v21 = vpop.f32.mrb[101].mxu1 }
 0x274   : > { %v3640_v55 = vpop.f32.mrb[102].mxu1 }
 0x275   : > { %v3677_v51 = vadd.f32 %v3640_v55, %v3495_v30  ;;  %v5791_v18 = vpop.f32.mrb[103].mxu1 }
 0x276   : > { %v3499_v61 = vpop.f32.mrb[104].mxu0 }
 0x277   : > { %v3500_v24 = vadd.f32 %v3499_v61, %v8497_v12  ;;  %v5768_v50 = vpop.f32.mrb[105].mxu0 }
 0x278   : > { %v3502_v0 = vpop.f32.mrb[106].mxu0 }
 0x279   : > { %v3503_v14 = vadd.f32 %v3502_v0, %v8502_v31  ;;  %v5769_v36 = vpop.f32.mrb[107].mxu0 }
 0x27a   : > { %v3645_v58 = vpop.f32.mrb[104].mxu1 }
 0x27b   : > { %v3678_v7 = vadd.f32 %v3645_v58, %v3500_v24  ;;  %v5794_v19 = vpop.f32.mrb[105].mxu1 }
 0x27c   : > { %v3648_v6 = vpop.f32.mrb[106].mxu1 }
 0x27d   : > { %v3679_v23 = vadd.f32 %v3648_v6, %v3503_v14  ;;  %v5795_v60 = vpop.f32.mrb[107].mxu1 }
 0x27e   : > { %v3507_v5 = vpop.f32.mrb[108].mxu0 }
 0x27f   : > { %v3508_v44 = vadd.f32 %v3507_v5, %v8525_v11  ;;  %v5772_v27 = vpop.f32.mrb[109].mxu0 }
 0x280   : > { %v3510_v10 = vpop.f32.mrb[110].mxu0 }
 0x281   : > { %v3511_v28 = vadd.f32 %v3510_v10, %v8530_v15  ;;  %v5773_v47 = vpop.f32.mrb[111].mxu0 }
 0x282   : > { %v3653_v12 = vpop.f32.mrb[108].mxu1 }
 0x283   : > { %v3680_v4 = vadd.f32 %v3653_v12, %v3508_v44  ;;  %v5798_v62 = vpop.f32.mrb[109].mxu1 }
 0x284   : > { %v3656_v59 = vpop.f32.mrb[110].mxu1 }
 0x285   : > { %v3681_v31 = vadd.f32 %v3656_v59, %v3511_v28  ;;  %v5799_v25 = vpop.f32.mrb[111].mxu1 }
 0x286   : > { %v3515_v9 = vpop.f32.mrb[112].mxu0 }
 0x287   : > { %v3516_v42 = vadd.f32 %v3515_v9, %v8553_v22  ;;  %v5776_v16 = vpop.f32.mrb[113].mxu0 }
 0x288   : > { %v3518_v39 = vpop.f32.mrb[114].mxu0 }
 0x289   : > { %v3519_v29 = vadd.f32 %v3518_v39, %v8558_v45  ;;  %v5777_v63 = vpop.f32.mrb[115].mxu0 }
 0x28a   : > { %v3661_v11 = vpop.f32.mrb[112].mxu1 }
 0x28b   : > { %v3682_v34 = vadd.f32 %v3661_v11, %v3516_v42  ;;  %v5802_v3 = vpop.f32.mrb[113].mxu1 }
 0x28c   : > { %v3664_v53 = vpop.f32.mrb[114].mxu1 }
 0x28d   : > { %v3683_v15 = vadd.f32 %v3664_v53, %v3519_v29  ;;  %v5803_v41 = vpop.f32.mrb[115].mxu1 }
 0x28e   : > { %v3523_v38 = vpop.f32.mrb[116].mxu0 }
 0x28f   : > { %v3524_v52 = vadd.f32 %v3523_v38, %v3364_v56  ;;  %v5780_v48 = vpop.f32.mrb[117].mxu0 }
 0x290   : > { %v3526_v49 = vpop.f32.mrb[118].mxu0 }
 0x291   : > { %v3527_v33 = vadd.f32 %v3526_v49, %v3367_v46  ;;  %v5781_v30 = vpop.f32.mrb[119].mxu0 }
 0x292   : > { %v3669_v13 = vpop.f32.mrb[116].mxu1 }
 0x293   : > { %v3684_v54 = vadd.f32 %v3669_v13, %v3524_v52  ;;  %v5806_v22 = vpop.f32.mrb[117].mxu1 }
 0x294   : > { %v3672_v21 = vpop.f32.mrb[118].mxu1 }
 0x295   : > { %v3685_v55 = vadd.f32 %v3672_v21, %v3527_v33  ;;  %v5807_v18 = vpop.f32.mrb[119].mxu1 }
 0x296   : > { %v3818_v45 = vpop.f32.mrb[120].mxu0 }
 0x297   : > { %v3857_v61 = vadd.f32 %v3818_v45, %v3676_v26  ;;  %v5816_v24 = vpop.f32.mrb[121].mxu0 }
 0x298   : > { %v3821_v50 = vpop.f32.mrb[122].mxu0 }
 0x299   : > { %v3858_v0 = vadd.f32 %v3821_v50, %v3677_v51  ;;  %v5817_v14 = vpop.f32.mrb[123].mxu0 }
 0x29a   : > { %v3958_v36 = vpop.f32.mrb[120].mxu1 }
 0x29b   : > { %v3997_v58 = vadd.f32 %v3958_v36, %v3857_v61  ;;  %v5842_v19 = vpop.f32.mrb[121].mxu1 }
 0x29c   : > { %v3961_v56 = vpop.f32.mrb[122].mxu1 }
 0x29d   : > { %v3998_v6 = vadd.f32 %v3961_v56, %v3858_v0  ;;  %v5843_v60 = vpop.f32.mrb[123].mxu1 }
 0x29e   : > { %v3826_v46 = vpop.f32.mrb[124].mxu0 }
 0x29f   : > { %v3859_v5 = vadd.f32 %v3826_v46, %v3678_v7  ;;  %v5820_v44 = vpop.f32.mrb[125].mxu0 }
 0x2a0   : > { %v3829_v27 = vpop.f32.mrb[126].mxu0 }
 0x2a1   : > { %v3860_v10 = vadd.f32 %v3829_v27, %v3679_v23  ;;  %v5821_v28 = vpop.f32.mrb[127].mxu0 }
 0x2a2   : > { %v3966_v47 = vpop.f32.mrb[124].mxu1 }
 0x2a3   : > { %v3999_v12 = vadd.f32 %v3966_v47, %v3859_v5  ;;  %v5846_v62 = vpop.f32.mrb[125].mxu1 }
 0x2a4   : > { %v3969_v26 = vpop.f32.mrb[126].mxu1 }
 0x2a5   : > { %v4000_v59 = vadd.f32 %v3969_v26, %v3860_v10  ;;  %v5847_v25 = vpop.f32.mrb[127].mxu1 }
 0x2a6   : > { %v3834_v51 = vpop.f32.mrb[128].mxu0 }
 0x2a7   : > { %v3861_v9 = vadd.f32 %v3834_v51, %v3680_v4  ;;  %v5824_v42 = vpop.f32.mrb[129].mxu0 }
 0x2a8   : > { %v3837_v16 = vpop.f32.mrb[130].mxu0 }
 0x2a9   : > { %v3862_v39 = vadd.f32 %v3837_v16, %v3681_v31  ;;  %v5825_v29 = vpop.f32.mrb[131].mxu0 }
 0x2aa   : > { %v3974_v63 = vpop.f32.mrb[128].mxu1 }
 0x2ab   : > { %v4001_v11 = vadd.f32 %v3974_v63, %v3861_v9  ;;  %v5850_v3 = vpop.f32.mrb[129].mxu1 }
 0x2ac   : > { %v3977_v7 = vpop.f32.mrb[130].mxu1 }
 0x2ad   : > { %v4002_v53 = vadd.f32 %v3977_v7, %v3862_v39  ;;  %v5851_v41 = vpop.f32.mrb[131].mxu1 }
 0x2ae   : > { %v3842_v23 = vpop.f32.mrb[132].mxu0 }
 0x2af   : > { %v3863_v38 = vadd.f32 %v3842_v23, %v3682_v34  ;;  %v5828_v52 = vpop.f32.mrb[133].mxu0 }
 0x2b0   : > { %v3845_v48 = vpop.f32.mrb[134].mxu0 }
 0x2b1   : > { %v3864_v49 = vadd.f32 %v3845_v48, %v3683_v15  ;;  %v5829_v33 = vpop.f32.mrb[135].mxu0 }
 0x2b2   : > { %v3982_v30 = vpop.f32.mrb[132].mxu1 }
 0x2b3   : > { %v4003_v13 = vadd.f32 %v3982_v30, %v3863_v38  ;;  %v5854_v22 = vpop.f32.mrb[133].mxu1 }
 0x2b4   : > { %v3985_v4 = vpop.f32.mrb[134].mxu1 }
 0x2b5   : > { %v4004_v21 = vadd.f32 %v3985_v4, %v3864_v49  ;;  %v5855_v18 = vpop.f32.mrb[135].mxu1 }
 0x2b6   : > { %v3850_v31 = vpop.f32.mrb[136].mxu0 }
 0x2b7   : > { %v3865_v45 = vadd.f32 %v3850_v31, %v3684_v54  ;;  %v5832_v61 = vpop.f32.mrb[137].mxu0 }
 0x2b8   : > { %v3853_v24 = vpop.f32.mrb[138].mxu0 }
 0x2b9   : > { %v3866_v50 = vadd.f32 %v3853_v24, %v3685_v55  ;;  %v5833_v0 = vpop.f32.mrb[139].mxu0 }
 0x2ba   : > { %v3990_v14 = vpop.f32.mrb[136].mxu1 }
 0x2bb   : > { %v4005_v36 = vadd.f32 %v3990_v14, %v3865_v45  ;;  %v5858_v19 = vpop.f32.mrb[137].mxu1 }
 0x2bc   : > { %v3993_v34 = vpop.f32.mrb[138].mxu1 }
 0x2bd   : > { %v4006_v56 = vadd.f32 %v3993_v34, %v3866_v50  ;;  %v5859_v60 = vpop.f32.mrb[139].mxu1 }
 0x2be   : > { %v4114_v15 = vpop.f32.mrb[140].mxu0 }
 0x2bf   : > { %v4153_v46 = vadd.f32 %v4114_v15, %v3997_v58  ;;  %v5868_v5 = vpop.f32.mrb[141].mxu0 }
 0x2c0   : > { %v4117_v44 = vpop.f32.mrb[142].mxu0 }
 0x2c1   : > { %v4154_v27 = vadd.f32 %v4117_v44, %v3998_v6  ;;  %v5869_v10 = vpop.f32.mrb[143].mxu0 }
 0x2c2   : > { %v4295_v28 = vpop.f32.mrb[140].mxu1 }
 0x2c3   : > { %v4334_v47 = vadd.f32 %v4295_v28, %v4153_v46  ;;  %v5894_v62 = vpop.f32.mrb[141].mxu1 }
 0x2c4   : > { %v4298_v54 = vpop.f32.mrb[142].mxu1 }
 0x2c5   : > { %v4335_v26 = vadd.f32 %v4298_v54, %v4154_v27  ;;  %v5895_v25 = vpop.f32.mrb[143].mxu1 }
 0x2c6   : > { %v4122_v55 = vpop.f32.mrb[144].mxu0 }
 0x2c7   : > { %v4155_v51 = vadd.f32 %v4122_v55, %v3999_v12  ;;  %v5872_v9 = vpop.f32.mrb[145].mxu0 }
 0x2c8   : > { %v4125_v42 = vpop.f32.mrb[146].mxu0 }
 0x2c9   : > { %v4156_v16 = vadd.f32 %v4125_v42, %v4000_v59  ;;  %v5873_v39 = vpop.f32.mrb[147].mxu0 }
 0x2ca   : > { %v4303_v29 = vpop.f32.mrb[144].mxu1 }
 0x2cb   : > { %v4336_v63 = vadd.f32 %v4303_v29, %v4155_v51  ;;  %v5898_v3 = vpop.f32.mrb[145].mxu1 }
 0x2cc   : > { %v4306_v58 = vpop.f32.mrb[146].mxu1 }
 0x2cd   : > { %v4337_v7 = vadd.f32 %v4306_v58, %v4156_v16  ;;  %v5899_v41 = vpop.f32.mrb[147].mxu1 }
 0x2ce   : > { %v4130_v6 = vpop.f32.mrb[148].mxu0 }
 0x2cf   : > { %v4157_v23 = vadd.f32 %v4130_v6, %v4001_v11  ;;  %v5876_v38 = vpop.f32.mrb[149].mxu0  ;;  %v5212_v6 = vld [vmem:[%s8457_s26 + $0x72] sm:$0xff] }
 0x2d0   : > { %v4133_v52 = vpop.f32.mrb[150].mxu0 }
 0x2d1   : > { %v4158_v48 = vadd.f32 %v4133_v52, %v4002_v53  ;;  %v5877_v49 = vpop.f32.mrb[151].mxu0 }
 0x2d2   : > { %v4311_v33 = vpop.f32.mrb[148].mxu1 }
 0x2d3   : > { %v8597_v30 = vadd.f32 %v4311_v33, %v4157_v23  ;;  %v5902_v12 = vpop.f32.mrb[149].mxu1 }
 0x2d4   : > { %v4314_v22 = vpop.f32.mrb[150].mxu1 }
 0x2d5   : > { %v8599_v4 = vadd.f32 %v4314_v22, %v4158_v48  ;;  %v5903_v59 = vpop.f32.mrb[151].mxu1 }
 0x2d6   : > { %v4138_v18 = vpop.f32.mrb[152].mxu0 }
 0x2d7   : > { %v4159_v31 = vadd.f32 %v4138_v18, %v4003_v13  ;;  %v5880_v45 = vpop.f32.mrb[153].mxu0 }
 0x2d8   : > { %v4141_v61 = vpop.f32.mrb[154].mxu0 }
 0x2d9   : > { %v4160_v24 = vadd.f32 %v4141_v61, %v4004_v21  ;;  %v5881_v50 = vpop.f32.mrb[155].mxu0 }
 0x2da   : > { %v4319_v0 = vpop.f32.mrb[152].mxu1 }
 0x2db   : > { %v8601_v11 = vadd.f32 %v4319_v0, %v4159_v31  ;;  %v5906_v14 = vpop.f32.mrb[153].mxu1  ;;  %v5214_v0 = vld [vmem:[%s8457_s26 + $0x82] sm:$0xff] }
 0x2dc   : > { %v4322_v53 = vpop.f32.mrb[154].mxu1 }
 0x2dd   : > { %v8603_v19 = vadd.f32 %v4322_v53, %v4160_v24  ;;  %v5907_v34 = vpop.f32.mrb[155].mxu1 }
 0x2de   : > { %v4146_v60 = vpop.f32.mrb[156].mxu0 }
 0x2df   : > { %v4161_v15 = vadd.f32 %v4146_v60, %v4005_v36  ;;  %v5884_v46 = vpop.f32.mrb[157].mxu0  ;;  %v5215_v60 = vld [vmem:[%s8457_s26 + $0x8a] sm:$0xff] }
 0x2e0   : > { %v4149_v5 = vpop.f32.mrb[158].mxu0 }
 0x2e1   : > { %v4162_v44 = vadd.f32 %v4149_v5, %v4006_v56  ;;  %v5885_v27 = vpop.f32.mrb[159].mxu0 }
 0x2e2   : > { %v4327_v10 = vpop.f32.mrb[156].mxu1 }
 0x2e3   : > { %v8605_v13 = vadd.f32 %v4327_v10, %v4161_v15  ;;  %v5910_v28 = vpop.f32.mrb[157].mxu1 }
 0x2e4   : > { %v4330_v21 = vpop.f32.mrb[158].mxu1 }
 0x2e5   : > { %v8607_v62 = vadd.f32 %v4330_v21, %v4162_v44  ;;  %v5911_v54 = vpop.f32.mrb[159].mxu1 }
 0x2e6   : > { %v4435_v25 = vpop.f32.mrb[160].mxu0 }
 0x2e7   : > { %v4474_v55 = vadd.f32 %v4435_v25, %v4334_v47  ;;  %v5920_v51 = vpop.f32.mrb[161].mxu0 }
 0x2e8   : > { %v4438_v9 = vpop.f32.mrb[162].mxu0  ;;  %v5216_v51 = vld [vmem:[%s8457_s26 + $0x92] sm:$0xff] }
 0x2e9   : > { %v4475_v42 = vadd.f32 %v4438_v9, %v4335_v26  ;;  %v5921_v36 = vpop.f32.mrb[163].mxu0  ;;  %v5213_v26 = vld [vmem:[%s8457_s26 + $0x7a] sm:$0xff] }
 0x2ea   : > { %v4591_v16 = vpop.f32.mrb[160].mxu1 }
 0x2eb   : > { %v4630_v39 = vadd.f32 %v4591_v16, %v4474_v55  ;;  %v5946_v56 = vpop.f32.mrb[161].mxu1  ;;  %v5217_v16 = vld [vmem:[%s8457_s26 + $0x9a] sm:$0xff] }
 0x2ec   : > { %v4594_v29 = vpop.f32.mrb[162].mxu1 }
 0x2ed   : > { %v4640_v3 = vadd.f32 %v8447_v57, %v4630_v39  ;;  %v4631_v58 = vadd.f32 %v4594_v29, %v4475_v42  ;;  %v5947_v41 = vpop.f32.mrb[163].mxu1 }
 0x2ee   : > { %v4443_v23 = vpop.f32.mrb[164].mxu0 }
 0x2ef   : > { %v4650_v38 = vmul.f32 %v4640_v3, %v8461_v20  ;;  %v4641_v47 = vadd.f32 %v8447_v57, %v4631_v58  ;;  %v4476_v52 = vadd.f32 %v4443_v23, %v4336_v63  ;;  %v5924_v48 = vpop.f32.mrb[165].mxu0 }
 0x2f0   : > { %v4446_v49 = vpop.f32.mrb[166].mxu0  ;;  %v5218_v48 = vld [vmem:[%s8457_s26 + $0xa2] sm:$0xff] }
 0x2f1   : > { %v4671_v33 = vadd.f32 %v5212_v6, %v4650_v38  ;;  %v4651_v12 = vmul.f32 %v4641_v47, %v8467_v1  ;;  %v4477_v22 = vadd.f32 %v4446_v49, %v4337_v7  ;;  %v5925_v59 = vpop.f32.mrb[167].mxu0 }
 0x2f2   : > { %v4599_v18 = vpop.f32.mrb[164].mxu1 }
 0x2f3   : > { %5222 = vst.msk [vmem:[%s8077_s20 + $0x72] sm:$0xff] %vm792_vm4, %v4671_v33  ;;  %v4672_v31 = vadd.f32 %v5213_v26, %v4651_v12  ;;  %v4632_v45 = vadd.f32 %v4599_v18, %v4476_v52  ;;  %v5950_v20 = vpop.f32.mrb[165].mxu1  ;;  %v5219_v12 = vld [vmem:[%s8457_s26 + $0xaa] sm:$0xff] }
 0x2f4   : > { %v4602_v61 = vpop.f32.mrb[166].mxu1 }
 0x2f5   : > { %5223 = vst.msk [vmem:[%s8077_s20 + $0x7a] sm:$0xff] %vm792_vm4, %v4672_v31  ;;  %v4642_v63 = vadd.f32 %v8447_v57, %v4632_v45  ;;  %v4633_v24 = vadd.f32 %v4602_v61, %v4477_v22  ;;  %v5951_v50 = vpop.f32.mrb[167].mxu1 }
 0x2f6   : > { %v4451_v14 = vpop.f32.mrb[168].mxu0 }
 0x2f7   : > { %v4652_v1 = vmul.f32 %v4642_v63, %v8487_v35  ;;  %v4643_v7 = vadd.f32 %v8447_v57, %v4633_v24  ;;  %v4478_v53 = vadd.f32 %v4451_v14, %v8597_v30  ;;  %v5928_v34 = vpop.f32.mrb[169].mxu0 }
 0x2f8   : > { %v4454_v15 = vpop.f32.mrb[170].mxu0 }
 0x2f9   : > { %v4673_v46 = vadd.f32 %v5214_v0, %v4652_v1  ;;  %v4653_v5 = vmul.f32 %v4643_v7, %v8495_v37  ;;  %v4479_v44 = vadd.f32 %v4454_v15, %v8599_v4  ;;  %v5929_v27 = vpop.f32.mrb[171].mxu0  ;;  %v5221_v1 = vld [vmem:[%s8457_s26 + $0xba] sm:$0xff] }
 0x2fa   : > { %v4607_v10 = vpop.f32.mrb[168].mxu1 }
 0x2fb   : > { %5224 = vst.msk [vmem:[%s8077_s20 + $0x82] sm:$0xff] %vm792_vm4, %v4673_v46  ;;  %v4674_v35 = vadd.f32 %v5215_v60, %v4653_v5  ;;  %v4634_v28 = vadd.f32 %v4607_v10, %v4478_v53  ;;  %v5954_v21 = vpop.f32.mrb[169].mxu1 }
 0x2fc   : > { %v4610_v54 = vpop.f32.mrb[170].mxu1 }
 0x2fd   : > { %5225 = vst.msk [vmem:[%s8077_s20 + $0x8a] sm:$0xff] %vm792_vm4, %v4674_v35  ;;  %v4644_v30 = vadd.f32 %v8447_v57, %v4634_v28  ;;  %v4635_v25 = vadd.f32 %v4610_v54, %v4479_v44  ;;  %v5955_v55 = vpop.f32.mrb[171].mxu1 }
 0x2fe   : > { %v4459_v37 = vpop.f32.mrb[172].mxu0 }
 0x2ff   : > { %v4654_v4 = vmul.f32 %v4644_v30, %v8515_v32  ;;  %v4645_v9 = vadd.f32 %v8447_v57, %v4635_v25  ;;  %v4480_v42 = vadd.f32 %v4459_v37, %v8601_v11  ;;  %v5932_v36 = vpop.f32.mrb[173].mxu0 }
 0x300   : > { %v4462_v39 = vpop.f32.mrb[174].mxu0 }
 0x301   : > { %v4675_v56 = vadd.f32 %v5216_v51, %v4654_v4  ;;  %v4655_v29 = vmul.f32 %v4645_v9, %v8523_v40  ;;  %v4481_v3 = vadd.f32 %v4462_v39, %v8603_v19  ;;  %v5933_v58 = vpop.f32.mrb[175].mxu0 }
 0x302   : > { %v4615_v41 = vpop.f32.mrb[172].mxu1 }
 0x303   : > { %5226 = vst.msk [vmem:[%s8077_s20 + $0x92] sm:$0xff] %vm792_vm4, %v4675_v56  ;;  %v4676_v32 = vadd.f32 %v5217_v16, %v4655_v29  ;;  %v4636_v6 = vadd.f32 %v4615_v41, %v4480_v42  ;;  %v5958_v23 = vpop.f32.mrb[173].mxu1 }
 0x304   : > { %v4618_v38 = vpop.f32.mrb[174].mxu1 }
 0x305   : > { %5227 = vst.msk [vmem:[%s8077_s20 + $0x9a] sm:$0xff] %vm792_vm4, %v4676_v32  ;;  %v4646_v11 = vadd.f32 %v8447_v57, %v4636_v6  ;;  %v4637_v47 = vadd.f32 %v4618_v38, %v4481_v3  ;;  %v5959_v52 = vpop.f32.mrb[175].mxu1 }
 0x306   : > { %v4467_v40 = vpop.f32.mrb[176].mxu0 }
 0x307   : > { %v4656_v19 = vmul.f32 %v4646_v11, %v8543_v17  ;;  %v4647_v26 = vadd.f32 %v8447_v57, %v4637_v47  ;;  %v4482_v49 = vadd.f32 %v4467_v40, %v8605_v13  ;;  %v5936_v33 = vpop.f32.mrb[177].mxu0 }
 0x308   : > { %v4470_v22 = vpop.f32.mrb[178].mxu0 }
 0x309   : > { %v4677_v59 = vadd.f32 %v5218_v48, %v4656_v19  ;;  %v4657_v18 = vmul.f32 %v4647_v26, %v8551_v43  ;;  %v4483_v31 = vadd.f32 %v4470_v22, %v8607_v62  ;;  %v5937_v45 = vpop.f32.mrb[179].mxu0  ;;  %v5220_v43 = vld [vmem:[%s8457_s26 + $0xb2] sm:$0xff] }
 0x30a   : > { %v4623_v20 = vpop.f32.mrb[176].mxu1 }
 0x30b   : > { %5228 = vst.msk [vmem:[%s8077_s20 + $0xa2] sm:$0xff] %vm792_vm4, %v4677_v59  ;;  %v4678_v17 = vadd.f32 %v5219_v12, %v4657_v18  ;;  %v4638_v61 = vadd.f32 %v4623_v20, %v4482_v49  ;;  %v5962_v63 = vpop.f32.mrb[177].mxu1 }
 0x30c   : > { %v4626_v13 = vpop.f32.mrb[178].mxu1 }
 0x30d   : > { %5229 = vst.msk [vmem:[%s8077_s20 + $0xaa] sm:$0xff] %vm792_vm4, %v4678_v17  ;;  %v4648_v24 = vadd.f32 %v8447_v57, %v4638_v61  ;;  %v4639_v50 = vadd.f32 %v4626_v13, %v4483_v31  ;;  %v5963_v0 = vpop.f32.mrb[179].mxu1 }
 0x30f   : > { %v4658_v14 = vmul.f32 %v4648_v24, %v8571_v8  ;;  %v4649_v62 = vadd.f32 %v8447_v57, %v4639_v50 }
 0x311   : > { %v4679_v7 = vadd.f32 %v5220_v43, %v4658_v14  ;;  %v4659_v53 = vmul.f32 %v4649_v62, %v8579_v2 }
 0x313   : > { %5230 = vst.msk [vmem:[%s8077_s20 + $0xb2] sm:$0xff] %vm792_vm4, %v4679_v7  ;;  %v4680_v34 = vadd.f32 %v5221_v1, %v4659_v53 }
 0x315   : > { %5231 = vst.msk [vmem:[%s8077_s20 + $0xba] sm:$0xff] %vm792_vm4, %v4680_v34 }
 0x316 PF: > { %s19_s13 = sadd.s32 1, %s6337_s13   ;;  %s8716_s25 = sld [smem:[#allocation3_spill]] }
 0x317   : > { %p16_p12 = scmp.ge.s32.totalorder %s19_s13, 6   ;;  %s8717_s15 = sld [smem:[#allocation4_spill]] }
 0x318   : > { %s8718_s30 = smov %s6329_s11  ;;  %s8719_s10 = smov %s6333_s12 }
 0x319   :  { %18 = sbr.rel (!%p16_p12) target bundleno = 3 (0x3), region = 115 }
 0x31c   : > { %s8720_s11 = smov %s8716_s25 }
 0x31d   : > { %s8721_s12 = smov %s8717_s15 }

</bundles_post_ra>
